<compile_context>
chip_gen: v6e
topology: v6e:2x2x1
jax: 0.10.0
libtpu: 0.0.40
codegen_flags: <defaults>
</compile_context>

<pallas_src>
import functools

import numpy as np
import jax
import jax.numpy as jnp
from jax import lax
from jax.experimental import pallas as pl
from jax.experimental.pallas import tpu as pltpu


# ---------------------------------------------------------------------------
# Fused kernel: conv1 matmul + conv2 (in-VMEM im2col) + conv3 + dueling heads
# ---------------------------------------------------------------------------
def _fused_dqn_kernel(p1_ref, w1_ref, b1_ref, w2_ref, b2_ref, w3_ref, b3_ref,
                      wh1_ref, bh1_ref, wh2_ref, bh2_ref, out_ref):
    tb = out_ref.shape[0]                       # samples in this batch tile

    # conv1: block-diagonal over the 8 w1 output columns -> lane-dense output
    # (tb*8, 8*32) with rows (b, h1) and lanes (w1, cout).
    x1 = jnp.dot(p1_ref[...], w1_ref[...], preferred_element_type=jnp.float32)
    x1 = jnp.maximum(x1 + b1_ref[...], 0.0)     # (tb*8, 256) f32
    x1 = x1.reshape(tb, 8, 256)                 # 8-aligned sublane split (free)

    # conv2 im2col entirely in VMEM: for output position (i, j) the patch is
    # x1_act[b, 2i:2i+4, 2j:2j+4, :]; in the (w1, c) lane layout that is 4
    # single rows x one 128-lane window -> (kh, kw, cin) = 512 lanes each,
    # laid side by side for the 9 positions -> (tb, 9*512).
    pieces = []
    for i in range(3):                          # conv2 output row
        for j in range(3):                      # conv2 output col
            for dh in range(4):                 # kernel row
                pieces.append(x1[:, 2 * i + dh, 64 * j:64 * j + 128])
    p2 = jnp.concatenate(pieces, axis=1).astype(jnp.bfloat16)     # (tb, 4608)

    # conv2: one dot against the block-diagonal weight -> all 9 positions,
    # lanes ordered (pos, cout).
    x2 = jnp.dot(p2, w2_ref[...], preferred_element_type=jnp.float32)
    x2 = jnp.maximum(x2 + b2_ref[...], 0.0).astype(jnp.bfloat16)  # (tb, 576)

    # conv3 has a 1x1 output -> dense contraction over (pos, cin).
    f = jnp.dot(x2, w3_ref[...], preferred_element_type=jnp.float32)
    f = jnp.maximum(f + b3_ref[...], 0.0).astype(jnp.bfloat16)    # (tb, 64)

    # Dueling heads: concatenated first layer, block-diagonal zero-padded
    # second layer -> col 0 = value, cols 1..A = advantages, rest exactly 0.
    h = jnp.dot(f, wh1_ref[...], preferred_element_type=jnp.float32)
    h = jnp.maximum(h + bh1_ref[...], 0.0).astype(jnp.bfloat16)   # (tb, 256)
    out = jnp.dot(h, wh2_ref[...], preferred_element_type=jnp.float32) \
        + bh2_ref[...]                                            # (tb, >=128)
    out_ref[...] = out


def dueling_dqn_pallas(p1_2d, prep, batch, *, block_batch=64):
    """p1_2d: (batch*8, 8*C*64) bf16 conv1 im2col rows -> (batch, n_out) f32."""
    k1 = p1_2d.shape[1]
    n_out = prep['wh2'].shape[1]
    tb = max(1, min(block_batch, batch))
    grid = (pl.cdiv(batch, tb),)

    def const(a):
        return pl.BlockSpec(a.shape, lambda b: (0, 0))

    return pl.pallas_call(
        _fused_dqn_kernel,
        out_shape=jax.ShapeDtypeStruct((batch, n_out), jnp.float32),
        grid=grid,
        in_specs=[
            pl.BlockSpec((tb * 8, k1), lambda b: (b, 0)),   # conv1 patches
            const(prep['w1bd']), const(prep['b1t']),
            const(prep['w2bd']), const(prep['b2t']),
            const(prep['w3s']), const(prep['b3']),
            const(prep['wh1']), const(prep['bh1']),
            const(prep['wh2']), const(prep['bh2']),
        ],
        out_specs=pl.BlockSpec((tb, n_out), lambda b: (b, 0)),
        compiler_params=pltpu.CompilerParams(
            dimension_semantics=("parallel",),
            vmem_limit_bytes=32 * 1024 * 1024),
    )(p1_2d, prep['w1bd'], prep['b1t'], prep['w2bd'], prep['b2t'],
      prep['w3s'], prep['b3'], prep['wh1'], prep['bh1'],
      prep['wh2'], prep['bh2'])


# ---------------------------------------------------------------------------
# Parameters (PyTorch-style init) + one-time re-layout for the kernel
# ---------------------------------------------------------------------------
def _conv_out(s, k, st):
    return (s - k) // st + 1


def feature_size(input_dim):
    _, H, W = input_dim
    h = _conv_out(H, 8, 4); w = _conv_out(W, 8, 4)
    h = _conv_out(h, 4, 2); w = _conv_out(w, 4, 2)
    h = _conv_out(h, 3, 1); w = _conv_out(w, 3, 1)
    return 64 * h * w


def init_params(input_dim, output_dim, key):
    C, _, _ = input_dim
    fc_in = feature_size(input_dim)
    ks = jax.random.split(key, 14)

    def conv_init(kw_, kb_, cout, cin, kh, kw2):
        bound = 1.0 / np.sqrt(cin * kh * kw2)
        w = jax.random.uniform(kw_, (cout, cin, kh, kw2), jnp.float32, -bound, bound)
        b = jax.random.uniform(kb_, (cout,), jnp.float32, -bound, bound)
        return w, b

    def lin_init(kw_, kb_, fout, fin):
        bound = 1.0 / np.sqrt(fin)
        w = jax.random.uniform(kw_, (fout, fin), jnp.float32, -bound, bound)
        b = jax.random.uniform(kb_, (fout,), jnp.float32, -bound, bound)
        return w, b

    p = {}
    p['c1w'], p['c1b'] = conv_init(ks[0], ks[1], 32, C, 8, 8)
    p['c2w'], p['c2b'] = conv_init(ks[2], ks[3], 64, 32, 4, 4)
    p['c3w'], p['c3b'] = conv_init(ks[4], ks[5], 64, 64, 3, 3)
    p['vw1'], p['vb1'] = lin_init(ks[6], ks[7], 128, fc_in)
    p['vw2'], p['vb2'] = lin_init(ks[8], ks[9], 1, 128)
    p['aw1'], p['ab1'] = lin_init(ks[10], ks[11], 128, fc_in)
    p['aw2'], p['ab2'] = lin_init(ks[12], ks[13], output_dim, 128)
    return p


def prepare_params(params, output_dim):
    """One-time weight re-layout: forward() performs zero weight transposes."""
    c1w, c2w, c3w = params['c1w'], params['c2w'], params['c3w']
    hidden = params['vw1'].shape[0]                       # 128

    # conv1 as a matmul over (cin, kh, kw) patch features (the ordering emitted
    # by conv_general_dilated_patches); block-diagonal over the 8 w1 output
    # columns so the kernel's conv1 output is directly lane-dense (w1, cout).
    w1m = c1w.reshape(c1w.shape[0], -1).T                 # (cin*64, 32)
    w1bd = jnp.kron(jnp.eye(8, dtype=w1m.dtype), w1m)     # (8*cin*64, 8*32)

    # conv2 as a matmul over (kh, kw, cin) patches; block-diagonal over the 9
    # output positions -> one dot yields lanes ordered (pos, cout).
    w2m = jnp.transpose(c2w, (2, 3, 1, 0)).reshape(-1, c2w.shape[0])   # (512, 64)
    w2bd = jnp.kron(jnp.eye(9, dtype=w2m.dtype), w2m)     # (4608, 576)

    # conv3 (1x1 output) == dense layer over (pos, cin).
    w3s = jnp.transpose(c3w, (2, 3, 1, 0)).reshape(-1, c3w.shape[0])   # (576, 64)

    # Dueling heads: layer-1 streams concatenated; layer 2 block-diagonal and
    # zero-padded to a 128-lane-aligned output (col 0 = value, 1..A = adv).
    n_out = max(128, ((1 + output_dim + 127) // 128) * 128)
    wh1 = jnp.concatenate([params['vw1'].T, params['aw1'].T], axis=1)  # (F, 256)
    wh2 = jnp.zeros((2 * hidden, n_out), jnp.float32)
    wh2 = wh2.at[:hidden, 0:1].set(params['vw2'].T)
    wh2 = wh2.at[hidden:, 1:1 + output_dim].set(params['aw2'].T)
    bh2 = jnp.zeros((n_out,), jnp.float32)
    bh2 = bh2.at[0].set(params['vb2'][0]).at[1:1 + output_dim].set(params['ab2'])

    return {
        'w1bd': w1bd.astype(jnp.bfloat16),
        'b1t': jnp.tile(params['c1b'], 8).reshape(1, -1),            # (1, 256)
        'w2bd': w2bd.astype(jnp.bfloat16),
        'b2t': jnp.tile(params['c2b'], 9).reshape(1, -1),            # (1, 576)
        'w3s': w3s.astype(jnp.bfloat16),
        'b3': params['c3b'].reshape(1, -1),                          # (1, 64)
        'wh1': wh1.astype(jnp.bfloat16),
        'bh1': jnp.concatenate([params['vb1'], params['ab1']]).reshape(1, -1),
        'wh2': wh2.astype(jnp.bfloat16),
        'bh2': bh2.reshape(1, -1),                                   # (1, n_out)
    }


# ---------------------------------------------------------------------------
# Forward
# ---------------------------------------------------------------------------
def forward(prep, x_nchw, output_dim):
    x = x_nchw.astype(jnp.bfloat16)
    B = x.shape[0]

    # conv1 im2col (identity depthwise conv in XLA; consumes NCHW directly,
    # patch features ordered (cin, kh, kw)); runs in bf16, no HIGHEST precision.
    p1 = lax.conv_general_dilated_patches(
        x, (8, 8), (4, 4), 'VALID',
        dimension_numbers=('NCHW', 'OIHW', 'NHWC'))       # (B, h1, w1, C*64)
    h1, w1 = p1.shape[1], p1.shape[2]
    if (h1, w1) != (8, 8):
        raise ValueError('fused kernel assumes an 8x8 conv1 output '
                         f'(36 <= H, W <= 39); got {h1}x{w1}')
    p1 = p1.reshape(B * 8, 8 * p1.shape[3])               # rows (b,h1), lanes (w1,cin,kh,kw)

    out = dueling_dqn_pallas(p1, prep, B)                 # (B, >=128): [V | A... | 0...]
    value = out[:, 0:1]
    adv = out[:, 1:1 + output_dim]
    # torch `advantages.mean()` is global over batch AND actions; computed here
    # (outside the batch-tiled kernel) so batch tiling cannot change semantics.
    return value + (adv - jnp.mean(adv))


# ---------------------------------------------------------------------------
# Pure-JAX f32 reference (numerical validation of the Pallas path)
# ---------------------------------------------------------------------------
def reference_forward(params, x_nchw):
    def ref_conv(x_nhwc, w_oihw, b, stride):
        w_hwio = jnp.transpose(w_oihw, (2, 3, 1, 0))
        out = lax.conv_general_dilated(
            x_nhwc, w_hwio, window_strides=(stride, stride), padding='VALID',
            dimension_numbers=('NHWC', 'HWIO', 'NHWC'))
        return jnp.maximum(out + b, 0.0)

    x = jnp.transpose(x_nchw, (0, 2, 3, 1)).astype(jnp.float32)
    x = ref_conv(x, params['c1w'], params['c1b'], 4)
    x = ref_conv(x, params['c2w'], params['c2b'], 2)
    x = ref_conv(x, params['c3w'], params['c3b'], 1)
    B = x.shape[0]
    f = jnp.transpose(x, (0, 3, 1, 2)).reshape(B, -1)
    hv = jnp.maximum(f @ params['vw1'].T + params['vb1'], 0.0)
    values = hv @ params['vw2'].T + params['vb2']
    ha = jnp.maximum(f @ params['aw1'].T + params['ab1'], 0.0)
    adv = ha @ params['aw2'].T + params['ab2']
    return values + (adv - jnp.mean(adv))


# ---------------------------------------------------------------------------
if __name__ == "__main__":
    # Smallest shapes consistent with the conv stack (k8/s4 -> k4/s2 -> k3/s1
    # needs H, W >= 36); feature_size = 64.
    B, C, H, W = 2, 4, 36, 36
    OUTPUT_DIM = 6
    input_dim = (C, H, W)

    key = jax.random.PRNGKey(0)
    x_key, p_key = jax.random.split(key)
    x = jax.random.normal(x_key, (B, C, H, W), dtype=jnp.float32)
    params = init_params(input_dim, OUTPUT_DIM, p_key)
    prep = prepare_params(params, OUTPUT_DIM)

    fwd = jax.jit(functools.partial(forward, output_dim=OUTPUT_DIM))
    q = jax.block_until_ready(fwd(prep, x))

    q_ref = jax.block_until_ready(jax.jit(reference_forward)(params, x))
    # bf16 MXU operands (f32 accumulation) vs. the f32 reference -> loose tol.
    np.testing.assert_allclose(np.asarray(q), np.asarray(q_ref),
                               rtol=5e-2, atol=5e-2)
    assert q.shape == (B, OUTPUT_DIM)

    print("KERNEL_OK")
</pallas_src>

<mosaic_0001>
module attributes {stable_mosaic.version = 11 : i64} {
  func.func @_fused_dqn_kernel(%arg0: i32, %arg1: memref<16x2048xbf16, #tpu.memory_space<vmem>>, %arg2: memref<2048x256xbf16, #tpu.memory_space<vmem>>, %arg3: memref<1x256xf32, #tpu.memory_space<vmem>>, %arg4: memref<4608x576xbf16, #tpu.memory_space<vmem>>, %arg5: memref<1x576xf32, #tpu.memory_space<vmem>>, %arg6: memref<576x64xbf16, #tpu.memory_space<vmem>>, %arg7: memref<1x64xf32, #tpu.memory_space<vmem>>, %arg8: memref<64x256xbf16, #tpu.memory_space<vmem>>, %arg9: memref<1x256xf32, #tpu.memory_space<vmem>>, %arg10: memref<256x128xbf16, #tpu.memory_space<vmem>>, %arg11: memref<1x128xf32, #tpu.memory_space<vmem>>, %arg12: memref<2x128xf32, #tpu.memory_space<vmem>>) attributes {dimension_semantics = [#tpu.dimension_semantics<parallel>], iteration_bounds = array<i64: 1>, scalar_prefetch = 0 : i64, scratch_operands = 0 : i64, tpu.core_type = #tpu.core_type<tc>, window_params = [{transform_indices = @transform_0, window_bounds = array<i64: 16, 2048>}, {pipeline_mode = #tpu.pipeline_mode<synchronous>, transform_indices = @transform_1, window_bounds = array<i64: 2048, 256>}, {pipeline_mode = #tpu.pipeline_mode<synchronous>, transform_indices = @transform_2, window_bounds = array<i64: 1, 256>}, {pipeline_mode = #tpu.pipeline_mode<synchronous>, transform_indices = @transform_3, window_bounds = array<i64: 4608, 576>}, {pipeline_mode = #tpu.pipeline_mode<synchronous>, transform_indices = @transform_4, window_bounds = array<i64: 1, 576>}, {pipeline_mode = #tpu.pipeline_mode<synchronous>, transform_indices = @transform_5, window_bounds = array<i64: 576, 64>}, {pipeline_mode = #tpu.pipeline_mode<synchronous>, transform_indices = @transform_6, window_bounds = array<i64: 1, 64>}, {pipeline_mode = #tpu.pipeline_mode<synchronous>, transform_indices = @transform_7, window_bounds = array<i64: 64, 256>}, {pipeline_mode = #tpu.pipeline_mode<synchronous>, transform_indices = @transform_8, window_bounds = array<i64: 1, 256>}, {pipeline_mode = #tpu.pipeline_mode<synchronous>, transform_indices = @transform_9, window_bounds = array<i64: 256, 128>}, {pipeline_mode = #tpu.pipeline_mode<synchronous>, transform_indices = @transform_10, window_bounds = array<i64: 1, 128>}, {transform_indices = @transform_11, window_bounds = array<i64: 2, 128>}]} {
    %c0 = arith.constant 0 : index
    %c0_0 = arith.constant 0 : index
    %0 = vector.load %arg1[%c0, %c0_0] : memref<16x2048xbf16, #tpu.memory_space<vmem>>, vector<16x2048xbf16>
    %c0_1 = arith.constant 0 : index
    %c0_2 = arith.constant 0 : index
    %1 = vector.load %arg2[%c0_1, %c0_2] : memref<2048x256xbf16, #tpu.memory_space<vmem>>, vector<2048x256xbf16>
    %cst = arith.constant dense<0.000000e+00> : vector<16x256xf32>
    %2 = tpu.matmul %0, %1, %cst {dimension_numbers = #tpu.dot_dimension_numbers<[1], [0], [0], [1], [0, 0, 1, 1], [], []>} : vector<16x2048xbf16>, vector<2048x256xbf16>, vector<16x256xf32> -> vector<16x256xf32>
    %c0_3 = arith.constant 0 : index
    %c0_4 = arith.constant 0 : index
    %3 = vector.load %arg3[%c0_3, %c0_4] : memref<1x256xf32, #tpu.memory_space<vmem>>, vector<1x256xf32>
    %4 = vector.broadcast %3 : vector<1x256xf32> to vector<16x256xf32>
    %5 = arith.addf %2, %4 : vector<16x256xf32>
    %cst_5 = arith.constant 0.000000e+00 : f32
    %6 = vector.broadcast %cst_5 : f32 to vector<16x256xf32>
    %7 = arith.maximumf %5, %6 : vector<16x256xf32>
    %8 = vector.shape_cast %7 : vector<16x256xf32> to vector<2x8x256xf32>
    %9 = vector.extract_strided_slice %8 {offsets = [0, 0, 0], sizes = [2, 1, 128], strides = [1, 1, 1]} : vector<2x8x256xf32> to vector<2x1x128xf32>
    %10 = vector.shape_cast %9 : vector<2x1x128xf32> to vector<2x128xf32>
    %11 = vector.extract_strided_slice %8 {offsets = [0, 1, 0], sizes = [2, 1, 128], strides = [1, 1, 1]} : vector<2x8x256xf32> to vector<2x1x128xf32>
    %12 = vector.shape_cast %11 : vector<2x1x128xf32> to vector<2x128xf32>
    %13 = vector.extract_strided_slice %8 {offsets = [0, 2, 0], sizes = [2, 1, 128], strides = [1, 1, 1]} : vector<2x8x256xf32> to vector<2x1x128xf32>
    %14 = vector.shape_cast %13 : vector<2x1x128xf32> to vector<2x128xf32>
    %15 = vector.extract_strided_slice %8 {offsets = [0, 3, 0], sizes = [2, 1, 128], strides = [1, 1, 1]} : vector<2x8x256xf32> to vector<2x1x128xf32>
    %16 = vector.shape_cast %15 : vector<2x1x128xf32> to vector<2x128xf32>
    %17 = vector.extract_strided_slice %8 {offsets = [0, 0, 64], sizes = [2, 1, 128], strides = [1, 1, 1]} : vector<2x8x256xf32> to vector<2x1x128xf32>
    %18 = vector.shape_cast %17 : vector<2x1x128xf32> to vector<2x128xf32>
    %19 = vector.extract_strided_slice %8 {offsets = [0, 1, 64], sizes = [2, 1, 128], strides = [1, 1, 1]} : vector<2x8x256xf32> to vector<2x1x128xf32>
    %20 = vector.shape_cast %19 : vector<2x1x128xf32> to vector<2x128xf32>
    %21 = vector.extract_strided_slice %8 {offsets = [0, 2, 64], sizes = [2, 1, 128], strides = [1, 1, 1]} : vector<2x8x256xf32> to vector<2x1x128xf32>
    %22 = vector.shape_cast %21 : vector<2x1x128xf32> to vector<2x128xf32>
    %23 = vector.extract_strided_slice %8 {offsets = [0, 3, 64], sizes = [2, 1, 128], strides = [1, 1, 1]} : vector<2x8x256xf32> to vector<2x1x128xf32>
    %24 = vector.shape_cast %23 : vector<2x1x128xf32> to vector<2x128xf32>
    %25 = vector.extract_strided_slice %8 {offsets = [0, 0, 128], sizes = [2, 1, 128], strides = [1, 1, 1]} : vector<2x8x256xf32> to vector<2x1x128xf32>
    %26 = vector.shape_cast %25 : vector<2x1x128xf32> to vector<2x128xf32>
    %27 = vector.extract_strided_slice %8 {offsets = [0, 1, 128], sizes = [2, 1, 128], strides = [1, 1, 1]} : vector<2x8x256xf32> to vector<2x1x128xf32>
    %28 = vector.shape_cast %27 : vector<2x1x128xf32> to vector<2x128xf32>
    %29 = vector.extract_strided_slice %8 {offsets = [0, 2, 128], sizes = [2, 1, 128], strides = [1, 1, 1]} : vector<2x8x256xf32> to vector<2x1x128xf32>
    %30 = vector.shape_cast %29 : vector<2x1x128xf32> to vector<2x128xf32>
    %31 = vector.extract_strided_slice %8 {offsets = [0, 3, 128], sizes = [2, 1, 128], strides = [1, 1, 1]} : vector<2x8x256xf32> to vector<2x1x128xf32>
    %32 = vector.shape_cast %31 : vector<2x1x128xf32> to vector<2x128xf32>
    %33 = vector.extract_strided_slice %8 {offsets = [0, 2, 0], sizes = [2, 1, 128], strides = [1, 1, 1]} : vector<2x8x256xf32> to vector<2x1x128xf32>
    %34 = vector.shape_cast %33 : vector<2x1x128xf32> to vector<2x128xf32>
    %35 = vector.extract_strided_slice %8 {offsets = [0, 3, 0], sizes = [2, 1, 128], strides = [1, 1, 1]} : vector<2x8x256xf32> to vector<2x1x128xf32>
    %36 = vector.shape_cast %35 : vector<2x1x128xf32> to vector<2x128xf32>
    %37 = vector.extract_strided_slice %8 {offsets = [0, 4, 0], sizes = [2, 1, 128], strides = [1, 1, 1]} : vector<2x8x256xf32> to vector<2x1x128xf32>
    %38 = vector.shape_cast %37 : vector<2x1x128xf32> to vector<2x128xf32>
    %39 = vector.extract_strided_slice %8 {offsets = [0, 5, 0], sizes = [2, 1, 128], strides = [1, 1, 1]} : vector<2x8x256xf32> to vector<2x1x128xf32>
    %40 = vector.shape_cast %39 : vector<2x1x128xf32> to vector<2x128xf32>
    %41 = vector.extract_strided_slice %8 {offsets = [0, 2, 64], sizes = [2, 1, 128], strides = [1, 1, 1]} : vector<2x8x256xf32> to vector<2x1x128xf32>
    %42 = vector.shape_cast %41 : vector<2x1x128xf32> to vector<2x128xf32>
    %43 = vector.extract_strided_slice %8 {offsets = [0, 3, 64], sizes = [2, 1, 128], strides = [1, 1, 1]} : vector<2x8x256xf32> to vector<2x1x128xf32>
    %44 = vector.shape_cast %43 : vector<2x1x128xf32> to vector<2x128xf32>
    %45 = vector.extract_strided_slice %8 {offsets = [0, 4, 64], sizes = [2, 1, 128], strides = [1, 1, 1]} : vector<2x8x256xf32> to vector<2x1x128xf32>
    %46 = vector.shape_cast %45 : vector<2x1x128xf32> to vector<2x128xf32>
    %47 = vector.extract_strided_slice %8 {offsets = [0, 5, 64], sizes = [2, 1, 128], strides = [1, 1, 1]} : vector<2x8x256xf32> to vector<2x1x128xf32>
    %48 = vector.shape_cast %47 : vector<2x1x128xf32> to vector<2x128xf32>
    %49 = vector.extract_strided_slice %8 {offsets = [0, 2, 128], sizes = [2, 1, 128], strides = [1, 1, 1]} : vector<2x8x256xf32> to vector<2x1x128xf32>
    %50 = vector.shape_cast %49 : vector<2x1x128xf32> to vector<2x128xf32>
    %51 = vector.extract_strided_slice %8 {offsets = [0, 3, 128], sizes = [2, 1, 128], strides = [1, 1, 1]} : vector<2x8x256xf32> to vector<2x1x128xf32>
    %52 = vector.shape_cast %51 : vector<2x1x128xf32> to vector<2x128xf32>
    %53 = vector.extract_strided_slice %8 {offsets = [0, 4, 128], sizes = [2, 1, 128], strides = [1, 1, 1]} : vector<2x8x256xf32> to vector<2x1x128xf32>
    %54 = vector.shape_cast %53 : vector<2x1x128xf32> to vector<2x128xf32>
    %55 = vector.extract_strided_slice %8 {offsets = [0, 5, 128], sizes = [2, 1, 128], strides = [1, 1, 1]} : vector<2x8x256xf32> to vector<2x1x128xf32>
    %56 = vector.shape_cast %55 : vector<2x1x128xf32> to vector<2x128xf32>
    %57 = vector.extract_strided_slice %8 {offsets = [0, 4, 0], sizes = [2, 1, 128], strides = [1, 1, 1]} : vector<2x8x256xf32> to vector<2x1x128xf32>
    %58 = vector.shape_cast %57 : vector<2x1x128xf32> to vector<2x128xf32>
    %59 = vector.extract_strided_slice %8 {offsets = [0, 5, 0], sizes = [2, 1, 128], strides = [1, 1, 1]} : vector<2x8x256xf32> to vector<2x1x128xf32>
    %60 = vector.shape_cast %59 : vector<2x1x128xf32> to vector<2x128xf32>
    %61 = vector.extract_strided_slice %8 {offsets = [0, 6, 0], sizes = [2, 1, 128], strides = [1, 1, 1]} : vector<2x8x256xf32> to vector<2x1x128xf32>
    %62 = vector.shape_cast %61 : vector<2x1x128xf32> to vector<2x128xf32>
    %63 = vector.extract_strided_slice %8 {offsets = [0, 7, 0], sizes = [2, 1, 128], strides = [1, 1, 1]} : vector<2x8x256xf32> to vector<2x1x128xf32>
    %64 = vector.shape_cast %63 : vector<2x1x128xf32> to vector<2x128xf32>
    %65 = vector.extract_strided_slice %8 {offsets = [0, 4, 64], sizes = [2, 1, 128], strides = [1, 1, 1]} : vector<2x8x256xf32> to vector<2x1x128xf32>
    %66 = vector.shape_cast %65 : vector<2x1x128xf32> to vector<2x128xf32>
    %67 = vector.extract_strided_slice %8 {offsets = [0, 5, 64], sizes = [2, 1, 128], strides = [1, 1, 1]} : vector<2x8x256xf32> to vector<2x1x128xf32>
    %68 = vector.shape_cast %67 : vector<2x1x128xf32> to vector<2x128xf32>
    %69 = vector.extract_strided_slice %8 {offsets = [0, 6, 64], sizes = [2, 1, 128], strides = [1, 1, 1]} : vector<2x8x256xf32> to vector<2x1x128xf32>
    %70 = vector.shape_cast %69 : vector<2x1x128xf32> to vector<2x128xf32>
    %71 = vector.extract_strided_slice %8 {offsets = [0, 7, 64], sizes = [2, 1, 128], strides = [1, 1, 1]} : vector<2x8x256xf32> to vector<2x1x128xf32>
    %72 = vector.shape_cast %71 : vector<2x1x128xf32> to vector<2x128xf32>
    %73 = vector.extract_strided_slice %8 {offsets = [0, 4, 128], sizes = [2, 1, 128], strides = [1, 1, 1]} : vector<2x8x256xf32> to vector<2x1x128xf32>
    %74 = vector.shape_cast %73 : vector<2x1x128xf32> to vector<2x128xf32>
    %75 = vector.extract_strided_slice %8 {offsets = [0, 5, 128], sizes = [2, 1, 128], strides = [1, 1, 1]} : vector<2x8x256xf32> to vector<2x1x128xf32>
    %76 = vector.shape_cast %75 : vector<2x1x128xf32> to vector<2x128xf32>
    %77 = vector.extract_strided_slice %8 {offsets = [0, 6, 128], sizes = [2, 1, 128], strides = [1, 1, 1]} : vector<2x8x256xf32> to vector<2x1x128xf32>
    %78 = vector.shape_cast %77 : vector<2x1x128xf32> to vector<2x128xf32>
    %79 = vector.extract_strided_slice %8 {offsets = [0, 7, 128], sizes = [2, 1, 128], strides = [1, 1, 1]} : vector<2x8x256xf32> to vector<2x1x128xf32>
    %80 = vector.shape_cast %79 : vector<2x1x128xf32> to vector<2x128xf32>
    %81 = tpu.concatenate %10, %12, %14, %16, %18, %20, %22, %24, %26, %28, %30, %32, %34, %36, %38, %40 in 1 : vector<2x128xf32>, vector<2x128xf32>, vector<2x128xf32>, vector<2x128xf32>, vector<2x128xf32>, vector<2x128xf32>, vector<2x128xf32>, vector<2x128xf32>, vector<2x128xf32>, vector<2x128xf32>, vector<2x128xf32>, vector<2x128xf32>, vector<2x128xf32>, vector<2x128xf32>, vector<2x128xf32>, vector<2x128xf32> -> vector<2x2048xf32>
    %82 = tpu.concatenate %42, %44, %46, %48, %50, %52, %54, %56, %58, %60, %62, %64, %66, %68, %70, %72 in 1 : vector<2x128xf32>, vector<2x128xf32>, vector<2x128xf32>, vector<2x128xf32>, vector<2x128xf32>, vector<2x128xf32>, vector<2x128xf32>, vector<2x128xf32>, vector<2x128xf32>, vector<2x128xf32>, vector<2x128xf32>, vector<2x128xf32>, vector<2x128xf32>, vector<2x128xf32>, vector<2x128xf32>, vector<2x128xf32> -> vector<2x2048xf32>
    %83 = tpu.concatenate %74, %76, %78, %80 in 1 : vector<2x128xf32>, vector<2x128xf32>, vector<2x128xf32>, vector<2x128xf32> -> vector<2x512xf32>
    %84 = tpu.concatenate %81, %82, %83 in 1 : vector<2x2048xf32>, vector<2x2048xf32>, vector<2x512xf32> -> vector<2x4608xf32>
    %85 = arith.truncf %84 : vector<2x4608xf32> to vector<2x4608xbf16>
    %c0_6 = arith.constant 0 : index
    %c0_7 = arith.constant 0 : index
    %86 = vector.load %arg4[%c0_6, %c0_7] : memref<4608x576xbf16, #tpu.memory_space<vmem>>, vector<4608x576xbf16>
    %cst_8 = arith.constant dense<0.000000e+00> : vector<2x576xf32>
    %87 = tpu.matmul %85, %86, %cst_8 {dimension_numbers = #tpu.dot_dimension_numbers<[1], [0], [0], [1], [0, 0, 1, 1], [], []>} : vector<2x4608xbf16>, vector<4608x576xbf16>, vector<2x576xf32> -> vector<2x576xf32>
    %c0_9 = arith.constant 0 : index
    %c0_10 = arith.constant 0 : index
    %88 = vector.load %arg5[%c0_9, %c0_10] : memref<1x576xf32, #tpu.memory_space<vmem>>, vector<1x576xf32>
    %89 = vector.broadcast %88 : vector<1x576xf32> to vector<2x576xf32>
    %90 = arith.addf %87, %89 : vector<2x576xf32>
    %cst_11 = arith.constant 0.000000e+00 : f32
    %91 = vector.broadcast %cst_11 : f32 to vector<2x576xf32>
    %92 = arith.maximumf %90, %91 : vector<2x576xf32>
    %93 = arith.truncf %92 : vector<2x576xf32> to vector<2x576xbf16>
    %c0_12 = arith.constant 0 : index
    %c0_13 = arith.constant 0 : index
    %94 = vector.load %arg6[%c0_12, %c0_13] : memref<576x64xbf16, #tpu.memory_space<vmem>>, vector<576x64xbf16>
    %cst_14 = arith.constant dense<0.000000e+00> : vector<2x64xf32>
    %95 = tpu.matmul %93, %94, %cst_14 {dimension_numbers = #tpu.dot_dimension_numbers<[1], [0], [0], [1], [0, 0, 1, 1], [], []>} : vector<2x576xbf16>, vector<576x64xbf16>, vector<2x64xf32> -> vector<2x64xf32>
    %c0_15 = arith.constant 0 : index
    %c0_16 = arith.constant 0 : index
    %96 = vector.load %arg7[%c0_15, %c0_16] : memref<1x64xf32, #tpu.memory_space<vmem>>, vector<1x64xf32>
    %97 = vector.broadcast %96 : vector<1x64xf32> to vector<2x64xf32>
    %98 = arith.addf %95, %97 : vector<2x64xf32>
    %cst_17 = arith.constant 0.000000e+00 : f32
    %99 = vector.broadcast %cst_17 : f32 to vector<2x64xf32>
    %100 = arith.maximumf %98, %99 : vector<2x64xf32>
    %101 = arith.truncf %100 : vector<2x64xf32> to vector<2x64xbf16>
    %c0_18 = arith.constant 0 : index
    %c0_19 = arith.constant 0 : index
    %102 = vector.load %arg8[%c0_18, %c0_19] : memref<64x256xbf16, #tpu.memory_space<vmem>>, vector<64x256xbf16>
    %cst_20 = arith.constant dense<0.000000e+00> : vector<2x256xf32>
    %103 = tpu.matmul %101, %102, %cst_20 {dimension_numbers = #tpu.dot_dimension_numbers<[1], [0], [0], [1], [0, 0, 1, 1], [], []>} : vector<2x64xbf16>, vector<64x256xbf16>, vector<2x256xf32> -> vector<2x256xf32>
    %c0_21 = arith.constant 0 : index
    %c0_22 = arith.constant 0 : index
    %104 = vector.load %arg9[%c0_21, %c0_22] : memref<1x256xf32, #tpu.memory_space<vmem>>, vector<1x256xf32>
    %105 = vector.broadcast %104 : vector<1x256xf32> to vector<2x256xf32>
    %106 = arith.addf %103, %105 : vector<2x256xf32>
    %cst_23 = arith.constant 0.000000e+00 : f32
    %107 = vector.broadcast %cst_23 : f32 to vector<2x256xf32>
    %108 = arith.maximumf %106, %107 : vector<2x256xf32>
    %109 = arith.truncf %108 : vector<2x256xf32> to vector<2x256xbf16>
    %c0_24 = arith.constant 0 : index
    %c0_25 = arith.constant 0 : index
    %110 = vector.load %arg10[%c0_24, %c0_25] : memref<256x128xbf16, #tpu.memory_space<vmem>>, vector<256x128xbf16>
    %cst_26 = arith.constant dense<0.000000e+00> : vector<2x128xf32>
    %111 = tpu.matmul %109, %110, %cst_26 {dimension_numbers = #tpu.dot_dimension_numbers<[1], [0], [0], [1], [0, 0, 1, 1], [], []>} : vector<2x256xbf16>, vector<256x128xbf16>, vector<2x128xf32> -> vector<2x128xf32>
    %c0_27 = arith.constant 0 : index
    %c0_28 = arith.constant 0 : index
    %112 = vector.load %arg11[%c0_27, %c0_28] : memref<1x128xf32, #tpu.memory_space<vmem>>, vector<1x128xf32>
    %113 = vector.broadcast %112 : vector<1x128xf32> to vector<2x128xf32>
    %114 = arith.addf %111, %113 : vector<2x128xf32>
    %c0_29 = arith.constant 0 : index
    %c0_30 = arith.constant 0 : index
    %115 = vector.load %arg12[%c0_29, %c0_30] : memref<2x128xf32, #tpu.memory_space<vmem>>, vector<2x128xf32>
    tpu.vector_store %arg12[%c0_29, %c0_30], %114 {strides = array<i32>} : memref<2x128xf32, #tpu.memory_space<vmem>>, vector<2x128xf32>,
    return
  }
  func.func @transform_0(%arg0: i32) -> (i32, i32) {
    %c0_i32 = arith.constant 0 : i32
    %c0_i32_0 = arith.constant 0 : i32
    return %arg0, %c0_i32 : i32, i32
  }
  func.func @transform_1(%arg0: i32) -> (i32, i32) {
    %c0_i32 = arith.constant 0 : i32
    %c0_i32_0 = arith.constant 0 : i32
    %c0_i32_1 = arith.constant 0 : i32
    return %c0_i32, %c0_i32_0 : i32, i32
  }
  func.func @transform_2(%arg0: i32) -> (i32, i32) {
    %c0_i32 = arith.constant 0 : i32
    %c0_i32_0 = arith.constant 0 : i32
    %c0_i32_1 = arith.constant 0 : i32
    return %c0_i32, %c0_i32_0 : i32, i32
  }
  func.func @transform_3(%arg0: i32) -> (i32, i32) {
    %c0_i32 = arith.constant 0 : i32
    %c0_i32_0 = arith.constant 0 : i32
    %c0_i32_1 = arith.constant 0 : i32
    return %c0_i32, %c0_i32_0 : i32, i32
  }
  func.func @transform_4(%arg0: i32) -> (i32, i32) {
    %c0_i32 = arith.constant 0 : i32
    %c0_i32_0 = arith.constant 0 : i32
    %c0_i32_1 = arith.constant 0 : i32
    return %c0_i32, %c0_i32_0 : i32, i32
  }
  func.func @transform_5(%arg0: i32) -> (i32, i32) {
    %c0_i32 = arith.constant 0 : i32
    %c0_i32_0 = arith.constant 0 : i32
    %c0_i32_1 = arith.constant 0 : i32
    return %c0_i32, %c0_i32_0 : i32, i32
  }
  func.func @transform_6(%arg0: i32) -> (i32, i32) {
    %c0_i32 = arith.constant 0 : i32
    %c0_i32_0 = arith.constant 0 : i32
    %c0_i32_1 = arith.constant 0 : i32
    return %c0_i32, %c0_i32_0 : i32, i32
  }
  func.func @transform_7(%arg0: i32) -> (i32, i32) {
    %c0_i32 = arith.constant 0 : i32
    %c0_i32_0 = arith.constant 0 : i32
    %c0_i32_1 = arith.constant 0 : i32
    return %c0_i32, %c0_i32_0 : i32, i32
  }
  func.func @transform_8(%arg0: i32) -> (i32, i32) {
    %c0_i32 = arith.constant 0 : i32
    %c0_i32_0 = arith.constant 0 : i32
    %c0_i32_1 = arith.constant 0 : i32
    return %c0_i32, %c0_i32_0 : i32, i32
  }
  func.func @transform_9(%arg0: i32) -> (i32, i32) {
    %c0_i32 = arith.constant 0 : i32
    %c0_i32_0 = arith.constant 0 : i32
    %c0_i32_1 = arith.constant 0 : i32
    return %c0_i32, %c0_i32_0 : i32, i32
  }
  func.func @transform_10(%arg0: i32) -> (i32, i32) {
    %c0_i32 = arith.constant 0 : i32
    %c0_i32_0 = arith.constant 0 : i32
    %c0_i32_1 = arith.constant 0 : i32
    return %c0_i32, %c0_i32_0 : i32, i32
  }
  func.func @transform_11(%arg0: i32) -> (i32, i32) {
    %c0_i32 = arith.constant 0 : i32
    %c0_i32_0 = arith.constant 0 : i32
    return %arg0, %c0_i32 : i32, i32
  }
}

</mosaic_0001>

<bundles_post_ra>
// kernel: forward.1
= control target key start
LH: loop header
LB: loop body
LE: loop exit
PB: predicated region body
PF: predicated region fallthrough
CT: control target
= control target key end

     0   :  { %vm2034_vm0 = vcmask 1041409   ;;  %s19149_s17 = smov 64   ;;  %vm2097_vm1 = vcmask 1043459   ;;  %vm2144_vm2 = vcmask 1045509   ;;  %vm2056_vm3 = vcmask 523264   ;;  %s25150_s1 = inlined_call_operand.vmem [shape: bf16[2048,256], index: 1, kind: input, shape index: {}]   ;;  %s25151_s0 = inlined_call_operand.vmem [shape: bf16[16,2048], index: 0, kind: input, shape index: {}]   ;;  %s25152_s3 = inlined_call_operand.vmem [shape: bf16[4608,576], index: 3, kind: input, shape index: {}]   ;;  %s25153_s2 = inlined_call_operand.vmem [shape: f32[1,256], index: 2, kind: input, shape index: {}]   ;;  %s25154_s4 = inlined_call_operand.vmem [shape: f32[1,576], index: 4, kind: input, shape index: {}]   ;;  %s25155_s5 = inlined_call_operand.vmem [shape: bf16[576,64], index: 5, kind: input, shape index: {}]   ;;  %s25156_s7 = inlined_call_operand.vmem [shape: bf16[64,256], index: 7, kind: input, shape index: {}]   ;;  %s25157_s6 = inlined_call_operand.vmem [shape: f32[1,64], index: 6, kind: input, shape index: {}]   ;;  %s25158_s9 = inlined_call_operand.vmem [shape: bf16[256,128], index: 9, kind: input, shape index: {}]   ;;  %s25159_s8 = inlined_call_operand.vmem [shape: f32[1,256], index: 8, kind: input, shape index: {}]   ;;  %s25160_s10 = inlined_call_operand.vmem [shape: f32[1,128], index: 10, kind: input, shape index: {}]   ;;  %s25161_s11 = inlined_call_operand.vmem [shape: f32[2,128], index: 11, kind: output, shape index: {}]  }
   0x1   :  { %v16683_v0 = vld [vmem:[%s25150_s1 + $0x74] ss:$8 sps:$4 sm:$0xff]   ;;  %v16687_v2 = vld [vmem:[%s25150_s1 + $0x70] ss:$8 sps:$4 sm:$0xff]   ;;  %v16689_v4 = vld [vmem:[%s25150_s1 + $0x64] ss:$8 sps:$4 sm:$0xff]  }
   0x2   :  { %v16685_v1 = vld [vmem:[%s25150_s1 + $0x174] ss:$8 sps:$4 sm:$0xff]   ;;  %1683 = vmatprep.subr.bf16.mxu0 %v16683_v0  ;;  %v16688_v3 = vld [vmem:[%s25150_s1 + $0x170] ss:$8 sps:$4 sm:$0xff]   ;;  %v16691_v5 = vld [vmem:[%s25150_s1 + $0x164] ss:$8 sps:$4 sm:$0xff]  }
   0x3   :  { %1726 = vmatprep.subr.bf16.mxu1 %v16685_v1  ;;  %1684 = vmatpush1.bf16.msra.mxu0 %v16687_v2  ;;  %v16693_v6 = vld [vmem:[%s25150_s1 + $0x60] ss:$8 sps:$4 sm:$0xff]   ;;  %v16695_v8 = vld [vmem:[%s25150_s1 + $0x54] ss:$8 sps:$4 sm:$0xff]   ;;  %v16699_v10 = vld [vmem:[%s25150_s1 + $0x50] ss:$8 sps:$4 sm:$0xff]  }
   0x4   :  { %1727 = vmatpush1.bf16.msra.mxu1 %v16688_v3  ;;  %1685 = vmatprep.subr.bf16.mxu0 %v16689_v4  ;;  %v16694_v7 = vld [vmem:[%s25150_s1 + $0x160] ss:$8 sps:$4 sm:$0xff]   ;;  %v16697_v9 = vld [vmem:[%s25150_s1 + $0x154] ss:$8 sps:$4 sm:$0xff]   ;;  %v16700_v11 = vld [vmem:[%s25150_s1 + $0x150] ss:$8 sps:$4 sm:$0xff]  }
   0x5   :  { %1728 = vmatprep.subr.bf16.mxu1 %v16691_v5  ;;  %v16701_v12 = vld [vmem:[%s25150_s1 + $0x44] ss:$8 sps:$4 sm:$0xff]   ;;  %v16705_v14 = vld [vmem:[%s25150_s1 + $0x40] ss:$8 sps:$4 sm:$0xff]   ;;  %v16707_v16 = vld [vmem:[%s25150_s1 + $0x34] ss:$8 sps:$4 sm:$0xff]  }
   0x6   :  { %v16703_v13 = vld [vmem:[%s25150_s1 + $0x144] ss:$8 sps:$4 sm:$0xff]   ;;  %v16706_v15 = vld [vmem:[%s25150_s1 + $0x140] ss:$8 sps:$4 sm:$0xff]   ;;  %v16709_v17 = vld [vmem:[%s25150_s1 + $0x134] ss:$8 sps:$4 sm:$0xff]  }
   0x7   :  { %1686 = vmatpush1.bf16.msra.mxu0 %v16693_v6  ;;  %v16711_v18 = vld [vmem:[%s25150_s1 + $0x30] ss:$8 sps:$4 sm:$0xff]   ;;  %v16713_v20 = vld [vmem:[%s25150_s1 + $0x24] ss:$8 sps:$4 sm:$0xff]   ;;  %v16717_v22 = vld [vmem:[%s25150_s1 + $0x20] ss:$8 sps:$4 sm:$0xff]  }
   0x8   :  { %1729 = vmatpush1.bf16.msra.mxu1 %v16694_v7  ;;  %1687 = vmatprep.subr.bf16.mxu0 %v16695_v8  ;;  %v16712_v19 = vld [vmem:[%s25150_s1 + $0x130] ss:$8 sps:$4 sm:$0xff]   ;;  %v16715_v21 = vld [vmem:[%s25150_s1 + $0x124] ss:$8 sps:$4 sm:$0xff]   ;;  %v16718_v23 = vld [vmem:[%s25150_s1 + $0x120] ss:$8 sps:$4 sm:$0xff]  }
   0x9   :  { %1730 = vmatprep.subr.bf16.mxu1 %v16697_v9  ;;  %v16719_v24 = vld [vmem:[%s25150_s1 + $0x14] ss:$8 sps:$4 sm:$0xff]   ;;  %v16723_v26 = vld [vmem:[%s25150_s1 + $0x10] ss:$8 sps:$4 sm:$0xff]   ;;  %v16725_v28 = vld [vmem:[%s25150_s1 + $0x4] ss:$8 sps:$4 sm:$0xff]  }
   0xa   :  { %v16721_v25 = vld [vmem:[%s25150_s1 + $0x114] ss:$8 sps:$4 sm:$0xff]   ;;  %v16724_v27 = vld [vmem:[%s25150_s1 + $0x110] ss:$8 sps:$4 sm:$0xff]   ;;  %v16727_v29 = vld [vmem:[%s25150_s1 + $0x104] ss:$8 sps:$4 sm:$0xff]  }
   0xb   :  { %1688 = vmatpush1.bf16.msra.mxu0 %v16699_v10  ;;  %v16729_v30 = vld [vmem:[%s25150_s1] ss:$8 sps:$4 sm:$0xff]   ;;  %v16731_v32 = vld [vmem:[%s25150_s1 + $0xf4] ss:$8 sps:$4 sm:$0xff]   ;;  %v16735_v34 = vld [vmem:[%s25150_s1 + $0xf0] ss:$8 sps:$4 sm:$0xff]  }
   0xc   :  { %1731 = vmatpush1.bf16.msra.mxu1 %v16700_v11  ;;  %1689 = vmatprep.subr.bf16.mxu0 %v16701_v12  ;;  %v16730_v31 = vld [vmem:[%s25150_s1 + $0x100] ss:$8 sps:$4 sm:$0xff]   ;;  %v16733_v33 = vld [vmem:[%s25150_s1 + $0x1f4] ss:$8 sps:$4 sm:$0xff]   ;;  %v16736_v35 = vld [vmem:[%s25150_s1 + $0x1f0] ss:$8 sps:$4 sm:$0xff]  }
   0xd   :  { %1732 = vmatprep.subr.bf16.mxu1 %v16703_v13  ;;  %v16737_v36 = vld [vmem:[%s25150_s1 + $0xe4] ss:$8 sps:$4 sm:$0xff]   ;;  %v16741_v38 = vld [vmem:[%s25150_s1 + $0xe0] ss:$8 sps:$4 sm:$0xff]   ;;  %v16743_v40 = vld [vmem:[%s25150_s1 + $0xd4] ss:$8 sps:$4 sm:$0xff]  }
   0xe   :  { %v16739_v37 = vld [vmem:[%s25150_s1 + $0x1e4] ss:$8 sps:$4 sm:$0xff]   ;;  %v16742_v39 = vld [vmem:[%s25150_s1 + $0x1e0] ss:$8 sps:$4 sm:$0xff]   ;;  %v16745_v41 = vld [vmem:[%s25150_s1 + $0x1d4] ss:$8 sps:$4 sm:$0xff]  }
   0xf   :  { %1690 = vmatpush1.bf16.msra.mxu0 %v16705_v14  ;;  %v16747_v42 = vld [vmem:[%s25150_s1 + $0xd0] ss:$8 sps:$4 sm:$0xff]   ;;  %v16749_v44 = vld [vmem:[%s25150_s1 + $0xc4] ss:$8 sps:$4 sm:$0xff]   ;;  %v16753_v46 = vld [vmem:[%s25150_s1 + $0xc0] ss:$8 sps:$4 sm:$0xff]  }
  0x10   :  { %1733 = vmatpush1.bf16.msra.mxu1 %v16706_v15  ;;  %1691 = vmatprep.subr.bf16.mxu0 %v16707_v16  ;;  %v16748_v43 = vld [vmem:[%s25150_s1 + $0x1d0] ss:$8 sps:$4 sm:$0xff]   ;;  %v16751_v45 = vld [vmem:[%s25150_s1 + $0x1c4] ss:$8 sps:$4 sm:$0xff]   ;;  %v16754_v47 = vld [vmem:[%s25150_s1 + $0x1c0] ss:$8 sps:$4 sm:$0xff]  }
  0x11   :  { %1734 = vmatprep.subr.bf16.mxu1 %v16709_v17  ;;  %v39_v48 = vld [vmem:[%s25151_s0] sm:$0xff]  ;;  %v40_v50 = vld [vmem:[%s25151_s0 + $0x8] sm:$0xff]  ;;  %v16755_v52 = vld [vmem:[%s25150_s1 + $0xb4] ss:$8 sps:$4 sm:$0xff]   ;;  %vm19151_vm4 = vmmov 0  }
  0x12   :  { %v47_v49 = vld [vmem:[%s25151_s0 + $0x40] sm:$0xff]  ;;  %v48_v51 = vld [vmem:[%s25151_s0 + $0x48] sm:$0xff]  ;;  %v16757_v54 = vld [vmem:[%s25150_s1 + $0x1b4] ss:$8 sps:$4 sm:$0xff]  }
  0x13   :  { %1692 = vmatpush1.bf16.msra.mxu0 %v16711_v18  ;;  %v14375_v53 = vcombine.high %v39_v48, %v47_v49  ;;  %v14377_v55 = vcombine.high %v40_v50, %v48_v51  ;;  %v16759_v56 = vld [vmem:[%s25150_s1 + $0xb0] ss:$8 sps:$4 sm:$0xff]   ;;  %v16761_v58 = vld [vmem:[%s25150_s1 + $0xa4] ss:$8 sps:$4 sm:$0xff]   ;;  %v16765_v60 = vld [vmem:[%s25150_s1 + $0xa0] ss:$8 sps:$4 sm:$0xff]   ;;  %v14374_v8 = vcombine.low %v39_v48, %v47_v49  ;;  %v14376_v9 = vcombine.low %v40_v50, %v48_v51 }
  0x14   :  { %1735 = vmatpush1.bf16.msra.mxu1 %v16712_v19  ;;  %1693 = vmatprep.subr.bf16.mxu0 %v16713_v20  ;;  %v16760_v57 = vld [vmem:[%s25150_s1 + $0x1b0] ss:$8 sps:$4 sm:$0xff]   ;;  %v16763_v59 = vld [vmem:[%s25150_s1 + $0x1a4] ss:$8 sps:$4 sm:$0xff]   ;;  %v16766_v61 = vld [vmem:[%s25150_s1 + $0x1a0] ss:$8 sps:$4 sm:$0xff]  }
  0x15   :  { %1736 = vmatprep.subr.bf16.mxu1 %v16715_v21  ;;  %1715 = vmatprep.mubr.bf16.mxu0 %v14375_v53  ;;  %v16767_v62 = vld [vmem:[%s25150_s1 + $0x94] ss:$8 sps:$4 sm:$0xff]   ;;  %v16771_v0 = vld [vmem:[%s25150_s1 + $0x90] ss:$8 sps:$4 sm:$0xff]   ;;  %v16773_v2 = vld [vmem:[%s25150_s1 + $0x84] ss:$8 sps:$4 sm:$0xff]  }
  0x16   :  { %1758 = vmatprep.mubr.bf16.mxu1 %v14377_v55  ;;  %v16769_v63 = vld [vmem:[%s25150_s1 + $0x194] ss:$8 sps:$4 sm:$0xff]   ;;  %v16772_v1 = vld [vmem:[%s25150_s1 + $0x190] ss:$8 sps:$4 sm:$0xff]   ;;  %v16775_v3 = vld [vmem:[%s25150_s1 + $0x184] ss:$8 sps:$4 sm:$0xff]  }
  0x17   :  { %1694 = vmatpush1.bf16.msra.mxu0 %v16717_v22  ;;  %v16777_v4 = vld [vmem:[%s25150_s1 + $0x80] ss:$8 sps:$4 sm:$0xff]   ;;  %v16781_v6 = vld [vmem:[%s25150_s1 + $0x274] ss:$8 sps:$4 sm:$0xff]   ;;  %v16779_v10 = vld [vmem:[%s25150_s1 + $0x270] ss:$8 sps:$4 sm:$0xff]  }
  0x18   :  { %1737 = vmatpush1.bf16.msra.mxu1 %v16718_v23  ;;  %1695 = vmatprep.subr.bf16.mxu0 %v16719_v24  ;;  %v16778_v5 = vld [vmem:[%s25150_s1 + $0x180] ss:$8 sps:$4 sm:$0xff]   ;;  %v16784_v7 = vld [vmem:[%s25150_s1 + $0x374] ss:$8 sps:$4 sm:$0xff]   ;;  %v16782_v11 = vld [vmem:[%s25150_s1 + $0x370] ss:$8 sps:$4 sm:$0xff]  }
  0x19   :  { %1738 = vmatprep.subr.bf16.mxu1 %v16721_v25  ;;  %v16787_v12 = vld [vmem:[%s25150_s1 + $0x264] ss:$8 sps:$4 sm:$0xff]   ;;  %v16785_v14 = vld [vmem:[%s25150_s1 + $0x260] ss:$8 sps:$4 sm:$0xff]   ;;  %v16793_v16 = vld [vmem:[%s25150_s1 + $0x254] ss:$8 sps:$4 sm:$0xff]  }
  0x1a   :  { %v16790_v13 = vld [vmem:[%s25150_s1 + $0x364] ss:$8 sps:$4 sm:$0xff]   ;;  %v16788_v15 = vld [vmem:[%s25150_s1 + $0x360] ss:$8 sps:$4 sm:$0xff]   ;;  %v16796_v17 = vld [vmem:[%s25150_s1 + $0x354] ss:$8 sps:$4 sm:$0xff]  }
  0x1b   :  { %1696 = vmatpush1.bf16.msra.mxu0 %v16723_v26  ;;  %v16791_v18 = vld [vmem:[%s25150_s1 + $0x250] ss:$8 sps:$4 sm:$0xff]   ;;  %v16799_v20 = vld [vmem:[%s25150_s1 + $0x244] ss:$8 sps:$4 sm:$0xff]   ;;  %v16797_v22 = vld [vmem:[%s25150_s1 + $0x240] ss:$8 sps:$4 sm:$0xff]  }
  0x1c   :  { %1739 = vmatpush1.bf16.msra.mxu1 %v16724_v27  ;;  %1697 = vmatprep.subr.bf16.mxu0 %v16725_v28  ;;  %v16794_v19 = vld [vmem:[%s25150_s1 + $0x350] ss:$8 sps:$4 sm:$0xff]   ;;  %v16802_v21 = vld [vmem:[%s25150_s1 + $0x344] ss:$8 sps:$4 sm:$0xff]   ;;  %v16800_v23 = vld [vmem:[%s25150_s1 + $0x340] ss:$8 sps:$4 sm:$0xff]  }
  0x1d   :  { %1740 = vmatprep.subr.bf16.mxu1 %v16727_v29  ;;  %v16805_v24 = vld [vmem:[%s25150_s1 + $0x234] ss:$8 sps:$4 sm:$0xff]   ;;  %v16803_v26 = vld [vmem:[%s25150_s1 + $0x230] ss:$8 sps:$4 sm:$0xff]   ;;  %v16811_v28 = vld [vmem:[%s25150_s1 + $0x224] ss:$8 sps:$4 sm:$0xff]  }
  0x1e   :  { %v16808_v25 = vld [vmem:[%s25150_s1 + $0x334] ss:$8 sps:$4 sm:$0xff]   ;;  %v16806_v27 = vld [vmem:[%s25150_s1 + $0x330] ss:$8 sps:$4 sm:$0xff]   ;;  %v16814_v29 = vld [vmem:[%s25150_s1 + $0x324] ss:$8 sps:$4 sm:$0xff]  }
  0x1f   :  { %1698 = vmatpush1.bf16.msra.mxu0 %v16729_v30  ;;  %v16809_v30 = vld [vmem:[%s25150_s1 + $0x220] ss:$8 sps:$4 sm:$0xff]   ;;  %v16827_v48 = vld [vmem:[%s25150_s1 + $0x2f0] ss:$8 sps:$4 sm:$0xff]   ;;  %v16835_v50 = vld [vmem:[%s25150_s1 + $0x2e4] ss:$8 sps:$4 sm:$0xff]  }
  0x20   :  { %1741 = vmatpush1.bf16.msra.mxu1 %v16730_v31  ;;  %1699 = vmatprep.subr.bf16.mxu0 %v16731_v32  ;;  %v16812_v31 = vld [vmem:[%s25150_s1 + $0x320] ss:$8 sps:$4 sm:$0xff]   ;;  %v16817_v32 = vld [vmem:[%s25150_s1 + $0x214] ss:$8 sps:$4 sm:$0xff]   ;;  %v16830_v49 = vld [vmem:[%s25150_s1 + $0x3f0] ss:$8 sps:$4 sm:$0xff]  }
  0x21   :  { %1742 = vmatprep.subr.bf16.mxu1 %v16733_v33  ;;  %v16820_v33 = vld [vmem:[%s25150_s1 + $0x314] ss:$8 sps:$4 sm:$0xff]   ;;  %v16838_v51 = vld [vmem:[%s25150_s1 + $0x3e4] ss:$8 sps:$4 sm:$0xff]   ;;  %v16836_v53 = vld [vmem:[%s25150_s1 + $0x3e0] ss:$8 sps:$4 sm:$0xff]  }
  0x22   :  { %v16844_v55 = vld [vmem:[%s25150_s1 + $0x3d4] ss:$8 sps:$4 sm:$0xff]  }
  0x23   :  { %1700 = vmatpush2.bf16.msra.mxu0 %v16735_v34  ;;  %v16815_v34 = vld [vmem:[%s25150_s1 + $0x210] ss:$8 sps:$4 sm:$0xff]  }
  0x24   :  { %1743 = vmatpush2.bf16.msra.mxu1 %v16736_v35  ;;  %1701 = vmatprep.subr.bf16.mxu0 %v16737_v36  ;;  %v16818_v35 = vld [vmem:[%s25150_s1 + $0x310] ss:$8 sps:$4 sm:$0xff]  }
  0x25   :  { %1744 = vmatprep.subr.bf16.mxu1 %v16739_v37  ;;  %v19504_v36 = vld [vmem:[%s25151_s0 + $0x10] sm:$0xff] }
  0x26   :  { %v19509_v37 = vld [vmem:[%s25151_s0 + $0x50] sm:$0xff] }
  0x27   :  { %1702 = vmatpush2.bf16.msra.mxu0 %v16741_v38  ;;  %v19514_v38 = vld [vmem:[%s25151_s0 + $0x18] sm:$0xff] }
  0x28   :  { %1745 = vmatpush2.bf16.msra.mxu1 %v16742_v39  ;;  %1703 = vmatprep.subr.bf16.mxu0 %v16743_v40  ;;  %v19519_v39 = vld [vmem:[%s25151_s0 + $0x58] sm:$0xff]  ;;  %v16823_v40 = vld [vmem:[%s25150_s1 + $0x204] ss:$8 sps:$4 sm:$0xff]  }
  0x29   :  { %1746 = vmatprep.subr.bf16.mxu1 %v16745_v41  ;;  %v14379_v41 = vcombine.high %v19504_v36, %v19509_v37 }
  0x2b   :  { %1704 = vmatpush2.bf16.msra.mxu0 %v16747_v42  ;;  %v16826_v42 = vld [vmem:[%s25150_s1 + $0x304] ss:$8 sps:$4 sm:$0xff]  }
  0x2c   :  { %1747 = vmatpush2.bf16.msra.mxu1 %v16748_v43  ;;  %1705 = vmatprep.subr.bf16.mxu0 %v16749_v44  ;;  %v14381_v43 = vcombine.high %v19514_v38, %v19519_v39  ;;  %v16821_v44 = vld [vmem:[%s25150_s1 + $0x200] ss:$8 sps:$4 sm:$0xff]  }
  0x2d   :  { %1748 = vmatprep.subr.bf16.mxu1 %v16751_v45  ;;  %v16824_v45 = vld [vmem:[%s25150_s1 + $0x300] ss:$8 sps:$4 sm:$0xff]  }
  0x2f   :  { %1706 = vmatpush2.bf16.msra.mxu0 %v16753_v46  ;;  %v16829_v46 = vld [vmem:[%s25150_s1 + $0x2f4] ss:$8 sps:$4 sm:$0xff]  }
  0x30   :  { %1749 = vmatpush2.bf16.msra.mxu1 %v16754_v47  ;;  %1707 = vmatprep.subr.bf16.mxu0 %v16755_v52  ;;  %v16832_v47 = vld [vmem:[%s25150_s1 + $0x3f4] ss:$8 sps:$4 sm:$0xff]   ;;  %v16833_v52 = vld [vmem:[%s25150_s1 + $0x2e0] ss:$8 sps:$4 sm:$0xff]  }
  0x31   :  { %1750 = vmatprep.subr.bf16.mxu1 %v16757_v54  ;;  %v16841_v54 = vld [vmem:[%s25150_s1 + $0x2d4] ss:$8 sps:$4 sm:$0xff]  }
  0x33   :  { %1708 = vmatpush2.bf16.msra.mxu0 %v16759_v56  ;;  %v16839_v56 = vld [vmem:[%s25150_s1 + $0x2d0] ss:$8 sps:$4 sm:$0xff]  }
  0x34   :  { %1751 = vmatpush2.bf16.msra.mxu1 %v16760_v57  ;;  %1709 = vmatprep.subr.bf16.mxu0 %v16761_v58  ;;  %v16842_v57 = vld [vmem:[%s25150_s1 + $0x3d0] ss:$8 sps:$4 sm:$0xff]   ;;  %v16847_v58 = vld [vmem:[%s25150_s1 + $0x2c4] ss:$8 sps:$4 sm:$0xff]  }
  0x35   :  { %1752 = vmatprep.subr.bf16.mxu1 %v16763_v59  ;;  %v16850_v59 = vld [vmem:[%s25150_s1 + $0x3c4] ss:$8 sps:$4 sm:$0xff]  }
  0x37   :  { %1710 = vmatpush2.bf16.msra.mxu0 %v16765_v60  ;;  %v16845_v60 = vld [vmem:[%s25150_s1 + $0x2c0] ss:$8 sps:$4 sm:$0xff]  }
  0x38   :  { %1753 = vmatpush2.bf16.msra.mxu1 %v16766_v61  ;;  %1711 = vmatprep.subr.bf16.mxu0 %v16767_v62  ;;  %v16848_v61 = vld [vmem:[%s25150_s1 + $0x3c0] ss:$8 sps:$4 sm:$0xff]   ;;  %v16853_v62 = vld [vmem:[%s25150_s1 + $0x2b4] ss:$8 sps:$4 sm:$0xff]  }
  0x39   :  { %1754 = vmatprep.subr.bf16.mxu1 %v16769_v63  ;;  %v16856_v63 = vld [vmem:[%s25150_s1 + $0x3b4] ss:$8 sps:$4 sm:$0xff]  }
  0x3b   :  { %1712 = vmatpush2.bf16.msra.mxu0 %v16771_v0  ;;  %v16851_v0 = vld [vmem:[%s25150_s1 + $0x2b0] ss:$8 sps:$4 sm:$0xff]  }
  0x3c   :  { %1755 = vmatpush2.bf16.msra.mxu1 %v16772_v1  ;;  %1713 = vmatprep.subr.bf16.mxu0 %v16773_v2  ;;  %v16854_v1 = vld [vmem:[%s25150_s1 + $0x3b0] ss:$8 sps:$4 sm:$0xff]   ;;  %v16859_v2 = vld [vmem:[%s25150_s1 + $0x2a4] ss:$8 sps:$4 sm:$0xff]  }
  0x3d   :  { %1756 = vmatprep.subr.bf16.mxu1 %v16775_v3  ;;  %v16862_v3 = vld [vmem:[%s25150_s1 + $0x3a4] ss:$8 sps:$4 sm:$0xff]  }
  0x3f   :  { %1714 = vmatpush2.bf16.msra.mxu0 %v16777_v4  ;;  %v16857_v4 = vld [vmem:[%s25150_s1 + $0x2a0] ss:$8 sps:$4 sm:$0xff]  }
  0x40   :  { %1757 = vmatpush2.bf16.msra.mxu1 %v16778_v5  ;;  %1769 = vmatprep.subr.bf16.mxu0 %v16781_v6  ;;  %v16860_v5 = vld [vmem:[%s25150_s1 + $0x3a0] ss:$8 sps:$4 sm:$0xff]   ;;  %v16865_v6 = vld [vmem:[%s25150_s1 + $0x294] ss:$8 sps:$4 sm:$0xff]  }
  0x41   :  { %1812 = vmatprep.subr.bf16.mxu1 %v16784_v7  ;;  %v16868_v7 = vld [vmem:[%s25150_s1 + $0x394] ss:$8 sps:$4 sm:$0xff]  }
  0x42   :  { %1716 = vmatmul.mubr.bf16.vlgmr.msra.gmra.mxu0 %v14374_v8  ;;  %v16863_v8 = vld [vmem:[%s25150_s1 + $0x290] ss:$8 sps:$4 sm:$0xff]  }
  0x43   :  { %1759 = vmatmul.mubr.bf16.vlgmr.msra.gmra.mxu1 %v14376_v9  ;;  %1770 = vmatpush1.bf16.msra.mxu0 %v16779_v10  ;;  %v16866_v9 = vld [vmem:[%s25150_s1 + $0x390] ss:$8 sps:$4 sm:$0xff]   ;;  %v16871_v10 = vld [vmem:[%s25150_s1 + $0x284] ss:$8 sps:$4 sm:$0xff]  }
  0x44   :  { %1813 = vmatpush1.bf16.msra.mxu1 %v16782_v11  ;;  %1771 = vmatprep.subr.bf16.mxu0 %v16787_v12  ;;  %v16874_v11 = vld [vmem:[%s25150_s1 + $0x384] ss:$8 sps:$4 sm:$0xff]   ;;  %v16869_v12 = vld [vmem:[%s25150_s1 + $0x280] ss:$8 sps:$4 sm:$0xff]  }
  0x45   :  { %1814 = vmatprep.subr.bf16.mxu1 %v16790_v13  ;;  %1801 = vmatprep.mubr.bf16.mxu0 %v14379_v41  ;;  %v16872_v13 = vld [vmem:[%s25150_s1 + $0x380] ss:$8 sps:$4 sm:$0xff]   ;;  %v16902_v41 = vld [vmem:[%s25150_s1 + $0x530] ss:$8 sps:$4 sm:$0xff]  }
  0x46   :  { %1844 = vmatprep.mubr.bf16.mxu1 %v14381_v43  ;;  %v16910_v43 = vld [vmem:[%s25150_s1 + $0x524] ss:$8 sps:$4 sm:$0xff]  }
  0x47   :  { %1772 = vmatpush1.bf16.msra.mxu0 %v16785_v14  ;;  %v16877_v14 = vld [vmem:[%s25150_s1 + $0x474] ss:$8 sps:$4 sm:$0xff]  }
  0x48   :  { %1815 = vmatpush1.bf16.msra.mxu1 %v16788_v15  ;;  %1773 = vmatprep.subr.bf16.mxu0 %v16793_v16  ;;  %v16880_v15 = vld [vmem:[%s25150_s1 + $0x574] ss:$8 sps:$4 sm:$0xff]   ;;  %v14378_v16 = vcombine.low %v19504_v36, %v19509_v37  ;;  %v16893_v36 = vld [vmem:[%s25150_s1 + $0x440] ss:$8 sps:$4 sm:$0xff]  }
  0x49   :  { %1816 = vmatprep.subr.bf16.mxu1 %v16796_v17  ;;  %v14380_v17 = vcombine.low %v19514_v38, %v19519_v39  ;;  %v16896_v37 = vld [vmem:[%s25150_s1 + $0x540] ss:$8 sps:$4 sm:$0xff]   ;;  %v16901_v38 = vld [vmem:[%s25150_s1 + $0x434] ss:$8 sps:$4 sm:$0xff]  }
  0x4a   :  { %v16904_v39 = vld [vmem:[%s25150_s1 + $0x534] ss:$8 sps:$4 sm:$0xff]  }
  0x4b   :  { %1774 = vmatpush1.bf16.msra.mxu0 %v16791_v18  ;;  %v16875_v18 = vld [vmem:[%s25150_s1 + $0x470] ss:$8 sps:$4 sm:$0xff]  }
  0x4c   :  { %1817 = vmatpush1.bf16.msra.mxu1 %v16794_v19  ;;  %1775 = vmatprep.subr.bf16.mxu0 %v16799_v20  ;;  %v16878_v19 = vld [vmem:[%s25150_s1 + $0x570] ss:$8 sps:$4 sm:$0xff]   ;;  %v16883_v20 = vld [vmem:[%s25150_s1 + $0x464] ss:$8 sps:$4 sm:$0xff]  }
  0x4d   :  { %1818 = vmatprep.subr.bf16.mxu1 %v16802_v21  ;;  %v16886_v21 = vld [vmem:[%s25150_s1 + $0x564] ss:$8 sps:$4 sm:$0xff]  }
  0x4f   :  { %1776 = vmatpush1.bf16.msra.mxu0 %v16797_v22  ;;  %v16881_v22 = vld [vmem:[%s25150_s1 + $0x460] ss:$8 sps:$4 sm:$0xff]  }
  0x50   :  { %1819 = vmatpush1.bf16.msra.mxu1 %v16800_v23  ;;  %1777 = vmatprep.subr.bf16.mxu0 %v16805_v24  ;;  %v16884_v23 = vld [vmem:[%s25150_s1 + $0x560] ss:$8 sps:$4 sm:$0xff]  }
  0x51   :  { %1820 = vmatprep.subr.bf16.mxu1 %v16808_v25  ;;  %v19664_v24 = vld [vmem:[%s25151_s0 + $0x20] sm:$0xff] }
  0x52   :  { %v19669_v25 = vld [vmem:[%s25151_s0 + $0x60] sm:$0xff] }
  0x53   :  { %1778 = vmatpush1.bf16.msra.mxu0 %v16803_v26  ;;  %v19674_v26 = vld [vmem:[%s25151_s0 + $0x28] sm:$0xff] }
  0x54   :  { %1821 = vmatpush1.bf16.msra.mxu1 %v16806_v27  ;;  %1779 = vmatprep.subr.bf16.mxu0 %v16811_v28  ;;  %v19679_v27 = vld [vmem:[%s25151_s0 + $0x68] sm:$0xff]  ;;  %v16889_v28 = vld [vmem:[%s25150_s1 + $0x454] ss:$8 sps:$4 sm:$0xff]  }
  0x55   :  { %1822 = vmatprep.subr.bf16.mxu1 %v16814_v29  ;;  %v14383_v29 = vcombine.high %v19664_v24, %v19669_v25 }
  0x57   :  { %1780 = vmatpush1.bf16.msra.mxu0 %v16809_v30  ;;  %v16892_v30 = vld [vmem:[%s25150_s1 + $0x554] ss:$8 sps:$4 sm:$0xff]  }
  0x58   :  { %1823 = vmatpush1.bf16.msra.mxu1 %v16812_v31  ;;  %1781 = vmatprep.subr.bf16.mxu0 %v16817_v32  ;;  %v14385_v31 = vcombine.high %v19674_v26, %v19679_v27  ;;  %v16887_v32 = vld [vmem:[%s25150_s1 + $0x450] ss:$8 sps:$4 sm:$0xff]  }
  0x59   :  { %1824 = vmatprep.subr.bf16.mxu1 %v16820_v33  ;;  %v16890_v33 = vld [vmem:[%s25150_s1 + $0x550] ss:$8 sps:$4 sm:$0xff]  }
  0x5b   :  { %1782 = vmatpush1.bf16.msra.mxu0 %v16815_v34  ;;  %v16895_v34 = vld [vmem:[%s25150_s1 + $0x444] ss:$8 sps:$4 sm:$0xff]  }
  0x5c   :  { %1825 = vmatpush1.bf16.msra.mxu1 %v16818_v35  ;;  %1783 = vmatprep.subr.bf16.mxu0 %v16823_v40  ;;  %v16898_v35 = vld [vmem:[%s25150_s1 + $0x544] ss:$8 sps:$4 sm:$0xff]   ;;  %v16899_v40 = vld [vmem:[%s25150_s1 + $0x430] ss:$8 sps:$4 sm:$0xff]  }
  0x5d   :  { %1826 = vmatprep.subr.bf16.mxu1 %v16826_v42  ;;  %v16907_v42 = vld [vmem:[%s25150_s1 + $0x424] ss:$8 sps:$4 sm:$0xff]  }
  0x5f   :  { %1784 = vmatpush1.bf16.msra.mxu0 %v16821_v44  ;;  %v16905_v44 = vld [vmem:[%s25150_s1 + $0x420] ss:$8 sps:$4 sm:$0xff]  }
  0x60   :  { %1827 = vmatpush1.bf16.msra.mxu1 %v16824_v45  ;;  %1785 = vmatprep.subr.bf16.mxu0 %v16829_v46  ;;  %v16908_v45 = vld [vmem:[%s25150_s1 + $0x520] ss:$8 sps:$4 sm:$0xff]   ;;  %v16913_v46 = vld [vmem:[%s25150_s1 + $0x414] ss:$8 sps:$4 sm:$0xff]  }
  0x61   :  { %1828 = vmatprep.subr.bf16.mxu1 %v16832_v47  ;;  %v16916_v47 = vld [vmem:[%s25150_s1 + $0x514] ss:$8 sps:$4 sm:$0xff]  }
  0x63   :  { %1786 = vmatpush2.bf16.msra.mxu0 %v16827_v48  ;;  %v16911_v48 = vld [vmem:[%s25150_s1 + $0x410] ss:$8 sps:$4 sm:$0xff]  }
  0x64   :  { %1829 = vmatpush2.bf16.msra.mxu1 %v16830_v49  ;;  %1787 = vmatprep.subr.bf16.mxu0 %v16835_v50  ;;  %v16914_v49 = vld [vmem:[%s25150_s1 + $0x510] ss:$8 sps:$4 sm:$0xff]   ;;  %v16919_v50 = vld [vmem:[%s25150_s1 + $0x404] ss:$8 sps:$4 sm:$0xff]  }
  0x65   :  { %1830 = vmatprep.subr.bf16.mxu1 %v16838_v51  ;;  %v16922_v51 = vld [vmem:[%s25150_s1 + $0x504] ss:$8 sps:$4 sm:$0xff]  }
  0x67   :  { %1788 = vmatpush2.bf16.msra.mxu0 %v16833_v52  ;;  %v16917_v52 = vld [vmem:[%s25150_s1 + $0x400] ss:$8 sps:$4 sm:$0xff]  }
  0x68   :  { %1831 = vmatpush2.bf16.msra.mxu1 %v16836_v53  ;;  %1789 = vmatprep.subr.bf16.mxu0 %v16841_v54  ;;  %v16920_v53 = vld [vmem:[%s25150_s1 + $0x500] ss:$8 sps:$4 sm:$0xff]   ;;  %v16925_v54 = vld [vmem:[%s25150_s1 + $0x4f4] ss:$8 sps:$4 sm:$0xff]  }
  0x69   :  { %1832 = vmatprep.subr.bf16.mxu1 %v16844_v55  ;;  %v16928_v55 = vld [vmem:[%s25150_s1 + $0x5f4] ss:$8 sps:$4 sm:$0xff]  }
  0x6b   :  { %1790 = vmatpush2.bf16.msra.mxu0 %v16839_v56  ;;  %v16923_v56 = vld [vmem:[%s25150_s1 + $0x4f0] ss:$8 sps:$4 sm:$0xff]  }
  0x6c   :  { %1833 = vmatpush2.bf16.msra.mxu1 %v16842_v57  ;;  %1791 = vmatprep.subr.bf16.mxu0 %v16847_v58  ;;  %v16926_v57 = vld [vmem:[%s25150_s1 + $0x5f0] ss:$8 sps:$4 sm:$0xff]   ;;  %v16931_v58 = vld [vmem:[%s25150_s1 + $0x4e4] ss:$8 sps:$4 sm:$0xff]  }
  0x6d   :  { %1834 = vmatprep.subr.bf16.mxu1 %v16850_v59  ;;  %v16934_v59 = vld [vmem:[%s25150_s1 + $0x5e4] ss:$8 sps:$4 sm:$0xff]  }
  0x6f   :  { %1792 = vmatpush2.bf16.msra.mxu0 %v16845_v60  ;;  %v16929_v60 = vld [vmem:[%s25150_s1 + $0x4e0] ss:$8 sps:$4 sm:$0xff]  }
  0x70   :  { %1835 = vmatpush2.bf16.msra.mxu1 %v16848_v61  ;;  %1793 = vmatprep.subr.bf16.mxu0 %v16853_v62  ;;  %v16932_v61 = vld [vmem:[%s25150_s1 + $0x5e0] ss:$8 sps:$4 sm:$0xff]   ;;  %v16937_v62 = vld [vmem:[%s25150_s1 + $0x4d4] ss:$8 sps:$4 sm:$0xff]  }
  0x71   :  { %1836 = vmatprep.subr.bf16.mxu1 %v16856_v63  ;;  %v16940_v63 = vld [vmem:[%s25150_s1 + $0x5d4] ss:$8 sps:$4 sm:$0xff]  }
  0x73   :  { %1794 = vmatpush2.bf16.msra.mxu0 %v16851_v0  ;;  %v16935_v0 = vld [vmem:[%s25150_s1 + $0x4d0] ss:$8 sps:$4 sm:$0xff]  }
  0x74   :  { %1837 = vmatpush2.bf16.msra.mxu1 %v16854_v1  ;;  %1795 = vmatprep.subr.bf16.mxu0 %v16859_v2  ;;  %v16938_v1 = vld [vmem:[%s25150_s1 + $0x5d0] ss:$8 sps:$4 sm:$0xff]   ;;  %v16943_v2 = vld [vmem:[%s25150_s1 + $0x4c4] ss:$8 sps:$4 sm:$0xff]  }
  0x75   :  { %1838 = vmatprep.subr.bf16.mxu1 %v16862_v3  ;;  %v16946_v3 = vld [vmem:[%s25150_s1 + $0x5c4] ss:$8 sps:$4 sm:$0xff]  }
  0x77   :  { %1796 = vmatpush2.bf16.msra.mxu0 %v16857_v4  ;;  %v16941_v4 = vld [vmem:[%s25150_s1 + $0x4c0] ss:$8 sps:$4 sm:$0xff]  }
  0x78   :  { %1839 = vmatpush2.bf16.msra.mxu1 %v16860_v5  ;;  %1797 = vmatprep.subr.bf16.mxu0 %v16865_v6  ;;  %v16944_v5 = vld [vmem:[%s25150_s1 + $0x5c0] ss:$8 sps:$4 sm:$0xff]   ;;  %v16949_v6 = vld [vmem:[%s25150_s1 + $0x4b4] ss:$8 sps:$4 sm:$0xff]  }
  0x79   :  { %1840 = vmatprep.subr.bf16.mxu1 %v16868_v7  ;;  %v16952_v7 = vld [vmem:[%s25150_s1 + $0x5b4] ss:$8 sps:$4 sm:$0xff]  }
  0x7b   :  { %1798 = vmatpush2.bf16.msra.mxu0 %v16863_v8  ;;  %v16947_v8 = vld [vmem:[%s25150_s1 + $0x4b0] ss:$8 sps:$4 sm:$0xff]  }
  0x7c   :  { %1841 = vmatpush2.bf16.msra.mxu1 %v16866_v9  ;;  %1799 = vmatprep.subr.bf16.mxu0 %v16871_v10  ;;  %v16950_v9 = vld [vmem:[%s25150_s1 + $0x5b0] ss:$8 sps:$4 sm:$0xff]   ;;  %v16955_v10 = vld [vmem:[%s25150_s1 + $0x4a4] ss:$8 sps:$4 sm:$0xff]  }
  0x7d   :  { %1842 = vmatprep.subr.bf16.mxu1 %v16874_v11  ;;  %v16958_v11 = vld [vmem:[%s25150_s1 + $0x5a4] ss:$8 sps:$4 sm:$0xff]  }
  0x7f   :  { %1800 = vmatpush2.bf16.msra.mxu0 %v16869_v12  ;;  %v16953_v12 = vld [vmem:[%s25150_s1 + $0x4a0] ss:$8 sps:$4 sm:$0xff]  }
  0x80   :  { %1843 = vmatpush2.bf16.msra.mxu1 %v16872_v13  ;;  %1855 = vmatprep.subr.bf16.mxu0 %v16877_v14  ;;  %v16956_v13 = vld [vmem:[%s25150_s1 + $0x5a0] ss:$8 sps:$4 sm:$0xff]   ;;  %v16961_v14 = vld [vmem:[%s25150_s1 + $0x494] ss:$8 sps:$4 sm:$0xff]  }
  0x81   :  { %1898 = vmatprep.subr.bf16.mxu1 %v16880_v15  ;;  %v16964_v15 = vld [vmem:[%s25150_s1 + $0x594] ss:$8 sps:$4 sm:$0xff]  }
  0x82   :  { %1802 = vmatmul.mubr.bf16.vlgmr.msra.gmra.mxu0 %v14378_v16  ;;  %v16959_v16 = vld [vmem:[%s25150_s1 + $0x490] ss:$8 sps:$4 sm:$0xff]  }
  0x83   :  { %1845 = vmatmul.mubr.bf16.vlgmr.msra.gmra.mxu1 %v14380_v17  ;;  %1856 = vmatpush1.bf16.msra.mxu0 %v16875_v18  ;;  %v16962_v17 = vld [vmem:[%s25150_s1 + $0x590] ss:$8 sps:$4 sm:$0xff]   ;;  %v16967_v18 = vld [vmem:[%s25150_s1 + $0x484] ss:$8 sps:$4 sm:$0xff]  }
  0x84   :  { %1899 = vmatpush1.bf16.msra.mxu1 %v16878_v19  ;;  %1857 = vmatprep.subr.bf16.mxu0 %v16883_v20  ;;  %v16970_v19 = vld [vmem:[%s25150_s1 + $0x584] ss:$8 sps:$4 sm:$0xff]   ;;  %v16965_v20 = vld [vmem:[%s25150_s1 + $0x480] ss:$8 sps:$4 sm:$0xff]  }
  0x85   :  { %1900 = vmatprep.subr.bf16.mxu1 %v16886_v21  ;;  %1887 = vmatprep.mubr.bf16.mxu0 %v14383_v29  ;;  %v16968_v21 = vld [vmem:[%s25150_s1 + $0x580] ss:$8 sps:$4 sm:$0xff]   ;;  %v14382_v29 = vcombine.low %v19664_v24, %v19669_v25  ;;  %v16971_v24 = vld [vmem:[%s25150_s1 + $0x670] ss:$8 sps:$4 sm:$0xff]  }
  0x86   :  { %1930 = vmatprep.mubr.bf16.mxu1 %v14385_v31  ;;  %v19871_v31 = vld [vmem:[%s25151_s0 + $0x70] sm:$0xff] }
  0x87   :  { %1858 = vmatpush1.bf16.msra.mxu0 %v16881_v22  ;;  %v16973_v22 = vld [vmem:[%s25150_s1 + $0x674] ss:$8 sps:$4 sm:$0xff]   ;;  %v16974_v25 = vld [vmem:[%s25150_s1 + $0x770] ss:$8 sps:$4 sm:$0xff]  }
  0x88   :  { %1901 = vmatpush1.bf16.msra.mxu1 %v16884_v23  ;;  %1859 = vmatprep.subr.bf16.mxu0 %v16889_v28  ;;  %v16976_v23 = vld [vmem:[%s25150_s1 + $0x774] ss:$8 sps:$4 sm:$0xff]  }
  0x89   :  { %1902 = vmatprep.subr.bf16.mxu1 %v16892_v30  ;;  %v19862_v28 = vld [vmem:[%s25151_s0 + $0x30] sm:$0xff]  ;;  %v14384_v30 = vcombine.low %v19674_v26, %v19679_v27  ;;  %v16979_v26 = vld [vmem:[%s25150_s1 + $0x664] ss:$8 sps:$4 sm:$0xff]  }
  0x8a   :  { %v16982_v27 = vld [vmem:[%s25150_s1 + $0x764] ss:$8 sps:$4 sm:$0xff]  }
  0x8b   :  { %1860 = vmatpush1.bf16.msra.mxu0 %v16887_v32  ;;  %v19876_v32 = vld [vmem:[%s25151_s0 + $0x38] sm:$0xff] }
  0x8c   :  { %1903 = vmatpush1.bf16.msra.mxu1 %v16890_v33  ;;  %1861 = vmatprep.subr.bf16.mxu0 %v16895_v34  ;;  %v19881_v33 = vld [vmem:[%s25151_s0 + $0x78] sm:$0xff]  ;;  %v14387_v34 = vcombine.high %v19862_v28, %v19871_v31 }
  0x8d   :  { %1904 = vmatprep.subr.bf16.mxu1 %v16898_v35  ;;  %v14389_v35 = vcombine.high %v19876_v32, %v19881_v33 }
  0x8f   :  { %1862 = vmatpush1.bf16.msra.mxu0 %v16893_v36  ;;  %v16977_v36 = vld [vmem:[%s25150_s1 + $0x660] ss:$8 sps:$4 sm:$0xff]  }
  0x90   :  { %1905 = vmatpush1.bf16.msra.mxu1 %v16896_v37  ;;  %1863 = vmatprep.subr.bf16.mxu0 %v16901_v38  ;;  %v16980_v37 = vld [vmem:[%s25150_s1 + $0x760] ss:$8 sps:$4 sm:$0xff]   ;;  %v16985_v38 = vld [vmem:[%s25150_s1 + $0x654] ss:$8 sps:$4 sm:$0xff]  }
  0x91   :  { %1906 = vmatprep.subr.bf16.mxu1 %v16904_v39  ;;  %v16988_v39 = vld [vmem:[%s25150_s1 + $0x754] ss:$8 sps:$4 sm:$0xff]  }
  0x93   :  { %1864 = vmatpush1.bf16.msra.mxu0 %v16899_v40  ;;  %v16983_v40 = vld [vmem:[%s25150_s1 + $0x650] ss:$8 sps:$4 sm:$0xff]  }
  0x94   :  { %1907 = vmatpush1.bf16.msra.mxu1 %v16902_v41  ;;  %1865 = vmatprep.subr.bf16.mxu0 %v16907_v42  ;;  %v16986_v41 = vld [vmem:[%s25150_s1 + $0x750] ss:$8 sps:$4 sm:$0xff]   ;;  %v16991_v42 = vld [vmem:[%s25150_s1 + $0x644] ss:$8 sps:$4 sm:$0xff]  }
  0x95   :  { %1908 = vmatprep.subr.bf16.mxu1 %v16910_v43  ;;  %v16994_v43 = vld [vmem:[%s25150_s1 + $0x744] ss:$8 sps:$4 sm:$0xff]  }
  0x97   :  { %1866 = vmatpush1.bf16.msra.mxu0 %v16905_v44  ;;  %v16989_v44 = vld [vmem:[%s25150_s1 + $0x640] ss:$8 sps:$4 sm:$0xff]  }
  0x98   :  { %1909 = vmatpush1.bf16.msra.mxu1 %v16908_v45  ;;  %1867 = vmatprep.subr.bf16.mxu0 %v16913_v46  ;;  %v16992_v45 = vld [vmem:[%s25150_s1 + $0x740] ss:$8 sps:$4 sm:$0xff]   ;;  %v16997_v46 = vld [vmem:[%s25150_s1 + $0x634] ss:$8 sps:$4 sm:$0xff]  }
  0x99   :  { %1910 = vmatprep.subr.bf16.mxu1 %v16916_v47  ;;  %v17000_v47 = vld [vmem:[%s25150_s1 + $0x734] ss:$8 sps:$4 sm:$0xff]  }
  0x9b   :  { %1868 = vmatpush1.bf16.msra.mxu0 %v16911_v48  ;;  %v16995_v48 = vld [vmem:[%s25150_s1 + $0x630] ss:$8 sps:$4 sm:$0xff]  }
  0x9c   :  { %1911 = vmatpush1.bf16.msra.mxu1 %v16914_v49  ;;  %1869 = vmatprep.subr.bf16.mxu0 %v16919_v50  ;;  %v16998_v49 = vld [vmem:[%s25150_s1 + $0x730] ss:$8 sps:$4 sm:$0xff]   ;;  %v17003_v50 = vld [vmem:[%s25150_s1 + $0x624] ss:$8 sps:$4 sm:$0xff]  }
  0x9d   :  { %1912 = vmatprep.subr.bf16.mxu1 %v16922_v51  ;;  %v17006_v51 = vld [vmem:[%s25150_s1 + $0x724] ss:$8 sps:$4 sm:$0xff]  }
  0x9f   :  { %1870 = vmatpush1.bf16.msra.mxu0 %v16917_v52  ;;  %v17001_v52 = vld [vmem:[%s25150_s1 + $0x620] ss:$8 sps:$4 sm:$0xff]  }
  0xa0   :  { %1913 = vmatpush1.bf16.msra.mxu1 %v16920_v53  ;;  %1871 = vmatprep.subr.bf16.mxu0 %v16925_v54  ;;  %v17004_v53 = vld [vmem:[%s25150_s1 + $0x720] ss:$8 sps:$4 sm:$0xff]   ;;  %v17009_v54 = vld [vmem:[%s25150_s1 + $0x614] ss:$8 sps:$4 sm:$0xff]  }
  0xa1   :  { %1914 = vmatprep.subr.bf16.mxu1 %v16928_v55  ;;  %v17012_v55 = vld [vmem:[%s25150_s1 + $0x714] ss:$8 sps:$4 sm:$0xff]  }
  0xa3   :  { %1872 = vmatpush2.bf16.msra.mxu0 %v16923_v56  ;;  %v17007_v56 = vld [vmem:[%s25150_s1 + $0x610] ss:$8 sps:$4 sm:$0xff]  }
  0xa4   :  { %1915 = vmatpush2.bf16.msra.mxu1 %v16926_v57  ;;  %1873 = vmatprep.subr.bf16.mxu0 %v16931_v58  ;;  %v17010_v57 = vld [vmem:[%s25150_s1 + $0x710] ss:$8 sps:$4 sm:$0xff]   ;;  %v17015_v58 = vld [vmem:[%s25150_s1 + $0x604] ss:$8 sps:$4 sm:$0xff]  }
  0xa5   :  { %1916 = vmatprep.subr.bf16.mxu1 %v16934_v59  ;;  %v17018_v59 = vld [vmem:[%s25150_s1 + $0x704] ss:$8 sps:$4 sm:$0xff]  }
  0xa7   :  { %1874 = vmatpush2.bf16.msra.mxu0 %v16929_v60  ;;  %v17013_v60 = vld [vmem:[%s25150_s1 + $0x600] ss:$8 sps:$4 sm:$0xff]  }
  0xa8   :  { %1917 = vmatpush2.bf16.msra.mxu1 %v16932_v61  ;;  %1875 = vmatprep.subr.bf16.mxu0 %v16937_v62  ;;  %v17016_v61 = vld [vmem:[%s25150_s1 + $0x700] ss:$8 sps:$4 sm:$0xff]   ;;  %v17021_v62 = vld [vmem:[%s25150_s1 + $0x6f4] ss:$8 sps:$4 sm:$0xff]  }
  0xa9   :  { %1918 = vmatprep.subr.bf16.mxu1 %v16940_v63  ;;  %v17024_v63 = vld [vmem:[%s25150_s1 + $0x7f4] ss:$8 sps:$4 sm:$0xff]  }
  0xab   :  { %1876 = vmatpush2.bf16.msra.mxu0 %v16935_v0  ;;  %v17019_v0 = vld [vmem:[%s25150_s1 + $0x6f0] ss:$8 sps:$4 sm:$0xff]  }
  0xac   :  { %1919 = vmatpush2.bf16.msra.mxu1 %v16938_v1  ;;  %1877 = vmatprep.subr.bf16.mxu0 %v16943_v2  ;;  %v17022_v1 = vld [vmem:[%s25150_s1 + $0x7f0] ss:$8 sps:$4 sm:$0xff]   ;;  %v17027_v2 = vld [vmem:[%s25150_s1 + $0x6e4] ss:$8 sps:$4 sm:$0xff]  }
  0xad   :  { %1920 = vmatprep.subr.bf16.mxu1 %v16946_v3  ;;  %v17030_v3 = vld [vmem:[%s25150_s1 + $0x7e4] ss:$8 sps:$4 sm:$0xff]  }
  0xaf   :  { %1878 = vmatpush2.bf16.msra.mxu0 %v16941_v4  ;;  %v17025_v4 = vld [vmem:[%s25150_s1 + $0x6e0] ss:$8 sps:$4 sm:$0xff]  }
  0xb0   :  { %1921 = vmatpush2.bf16.msra.mxu1 %v16944_v5  ;;  %1879 = vmatprep.subr.bf16.mxu0 %v16949_v6  ;;  %v17028_v5 = vld [vmem:[%s25150_s1 + $0x7e0] ss:$8 sps:$4 sm:$0xff]   ;;  %v17033_v6 = vld [vmem:[%s25150_s1 + $0x6d4] ss:$8 sps:$4 sm:$0xff]  }
  0xb1   :  { %1922 = vmatprep.subr.bf16.mxu1 %v16952_v7  ;;  %v17036_v7 = vld [vmem:[%s25150_s1 + $0x7d4] ss:$8 sps:$4 sm:$0xff]  }
  0xb3   :  { %1880 = vmatpush2.bf16.msra.mxu0 %v16947_v8  ;;  %v17031_v8 = vld [vmem:[%s25150_s1 + $0x6d0] ss:$8 sps:$4 sm:$0xff]  }
  0xb4   :  { %1923 = vmatpush2.bf16.msra.mxu1 %v16950_v9  ;;  %1881 = vmatprep.subr.bf16.mxu0 %v16955_v10  ;;  %v17034_v9 = vld [vmem:[%s25150_s1 + $0x7d0] ss:$8 sps:$4 sm:$0xff]   ;;  %v17039_v10 = vld [vmem:[%s25150_s1 + $0x6c4] ss:$8 sps:$4 sm:$0xff]  }
  0xb5   :  { %1924 = vmatprep.subr.bf16.mxu1 %v16958_v11  ;;  %v17042_v11 = vld [vmem:[%s25150_s1 + $0x7c4] ss:$8 sps:$4 sm:$0xff]  }
  0xb7   :  { %1882 = vmatpush2.bf16.msra.mxu0 %v16953_v12  ;;  %v17037_v12 = vld [vmem:[%s25150_s1 + $0x6c0] ss:$8 sps:$4 sm:$0xff]  }
  0xb8   :  { %1925 = vmatpush2.bf16.msra.mxu1 %v16956_v13  ;;  %1883 = vmatprep.subr.bf16.mxu0 %v16961_v14  ;;  %v17040_v13 = vld [vmem:[%s25150_s1 + $0x7c0] ss:$8 sps:$4 sm:$0xff]   ;;  %v17045_v14 = vld [vmem:[%s25150_s1 + $0x6b4] ss:$8 sps:$4 sm:$0xff]  }
  0xb9   :  { %1926 = vmatprep.subr.bf16.mxu1 %v16964_v15  ;;  %v17048_v15 = vld [vmem:[%s25150_s1 + $0x7b4] ss:$8 sps:$4 sm:$0xff]  }
  0xbb   :  { %1884 = vmatpush2.bf16.msra.mxu0 %v16959_v16  ;;  %v17043_v16 = vld [vmem:[%s25150_s1 + $0x6b0] ss:$8 sps:$4 sm:$0xff]  }
  0xbc   :  { %1927 = vmatpush2.bf16.msra.mxu1 %v16962_v17  ;;  %1885 = vmatprep.subr.bf16.mxu0 %v16967_v18  ;;  %v17046_v17 = vld [vmem:[%s25150_s1 + $0x7b0] ss:$8 sps:$4 sm:$0xff]   ;;  %v17051_v18 = vld [vmem:[%s25150_s1 + $0x6a4] ss:$8 sps:$4 sm:$0xff]  }
  0xbd   :  { %1928 = vmatprep.subr.bf16.mxu1 %v16970_v19  ;;  %v17054_v19 = vld [vmem:[%s25150_s1 + $0x7a4] ss:$8 sps:$4 sm:$0xff]  }
  0xbf   :  { %1886 = vmatpush2.bf16.msra.mxu0 %v16965_v20  ;;  %v17049_v20 = vld [vmem:[%s25150_s1 + $0x6a0] ss:$8 sps:$4 sm:$0xff]  }
  0xc0   :  { %1929 = vmatpush2.bf16.msra.mxu1 %v16968_v21  ;;  %1941 = vmatprep.subr.bf16.mxu0 %v16973_v22  ;;  %v17052_v21 = vld [vmem:[%s25150_s1 + $0x7a0] ss:$8 sps:$4 sm:$0xff]   ;;  %v17057_v22 = vld [vmem:[%s25150_s1 + $0x694] ss:$8 sps:$4 sm:$0xff]  }
  0xc1   :  { %1984 = vmatprep.subr.bf16.mxu1 %v16976_v23  ;;  %v17060_v23 = vld [vmem:[%s25150_s1 + $0x794] ss:$8 sps:$4 sm:$0xff]  }
  0xc2   :  { %1888 = vmatmul.mubr.bf16.vlgmr.msra.gmra.mxu0 %v14382_v29  ;;  %v17055_v29 = vld [vmem:[%s25150_s1 + $0x690] ss:$8 sps:$4 sm:$0xff]  }
  0xc3   :  { %1931 = vmatmul.mubr.bf16.vlgmr.msra.gmra.mxu1 %v14384_v30  ;;  %1942 = vmatpush1.bf16.msra.mxu0 %v16971_v24  ;;  %v17058_v30 = vld [vmem:[%s25150_s1 + $0x790] ss:$8 sps:$4 sm:$0xff]   ;;  %v17063_v24 = vld [vmem:[%s25150_s1 + $0x684] ss:$8 sps:$4 sm:$0xff]  }
  0xc4   :  { %1985 = vmatpush1.bf16.msra.mxu1 %v16974_v25  ;;  %1943 = vmatprep.subr.bf16.mxu0 %v16979_v26  ;;  %v17066_v25 = vld [vmem:[%s25150_s1 + $0x784] ss:$8 sps:$4 sm:$0xff]   ;;  %v17061_v26 = vld [vmem:[%s25150_s1 + $0x680] ss:$8 sps:$4 sm:$0xff]  }
  0xc5   :  { %1986 = vmatprep.subr.bf16.mxu1 %v16982_v27  ;;  %1973 = vmatprep.mubr.bf16.mxu0 %v14387_v34  ;;  %v17064_v27 = vld [vmem:[%s25150_s1 + $0x780] ss:$8 sps:$4 sm:$0xff]   ;;  %v14386_v34 = vcombine.low %v19862_v28, %v19871_v31  ;;  %v17072_v28 = vld [vmem:[%s25152_s3 + $0x39c] ss:$20 sps:$4 sm:$0xff]  }
  0xc6   :  { %2016 = vmatprep.mubr.bf16.mxu1 %v14389_v35  ;;  %v14388_v35 = vcombine.low %v19876_v32, %v19881_v33  ;;  %v17073_v31 = vld [vmem:[%s25152_s3 + $0xf0] ss:$20 sps:$4 sm:$0xff]   ;;  %v17075_v32 = vld [vmem:[%s25152_s3 + $0xf4] ss:$20 sps:$4 sm:$0xff]  }
  0xc7   :  { %1944 = vmatpush1.bf16.msra.mxu0 %v16977_v36  ;;  %v17067_v36 = vld [vmem:[%s25152_s3 + $0x118] ss:$20 sps:$4 sm:$0xff]   ;;  %v17076_v33 = vld [vmem:[%s25152_s3 + $0x370] ss:$20 sps:$4 sm:$0xff]  }
  0xc8   :  { %1987 = vmatpush1.bf16.msra.mxu1 %v16980_v37  ;;  %1945 = vmatprep.subr.bf16.mxu0 %v16985_v38  ;;  %v17069_v37 = vld [vmem:[%s25152_s3 + $0x11c] ss:$20 sps:$4 sm:$0xff]   ;;  %v17070_v38 = vld [vmem:[%s25152_s3 + $0x398] ss:$20 sps:$4 sm:$0xff]  }
  0xc9   :  { %1988 = vmatprep.subr.bf16.mxu1 %v16988_v39  ;;  %v17078_v39 = vld [vmem:[%s25152_s3 + $0x374] ss:$20 sps:$4 sm:$0xff]  }
  0xcb   :  { %1946 = vmatpush1.bf16.msra.mxu0 %v16983_v40  ;;  %v17081_v40 = vld [vmem:[%s25152_s3 + $0xcc] ss:$20 sps:$4 sm:$0xff]  }
  0xcc   :  { %1989 = vmatpush1.bf16.msra.mxu1 %v16986_v41  ;;  %1947 = vmatprep.subr.bf16.mxu0 %v16991_v42  ;;  %v17079_v41 = vld [vmem:[%s25152_s3 + $0xc8] ss:$20 sps:$4 sm:$0xff]   ;;  %v17084_v42 = vld [vmem:[%s25152_s3 + $0x34c] ss:$20 sps:$4 sm:$0xff]  }
  0xcd   :  { %1990 = vmatprep.subr.bf16.mxu1 %v16994_v43  ;;  %v17082_v43 = vld [vmem:[%s25152_s3 + $0x348] ss:$20 sps:$4 sm:$0xff]  }
  0xcf   :  { %1948 = vmatpush1.bf16.msra.mxu0 %v16989_v44  ;;  %v17087_v44 = vld [vmem:[%s25152_s3 + $0xa4] ss:$20 sps:$4 sm:$0xff]  }
  0xd0   :  { %1991 = vmatpush1.bf16.msra.mxu1 %v16992_v45  ;;  %1949 = vmatprep.subr.bf16.mxu0 %v16997_v46  ;;  %v17090_v45 = vld [vmem:[%s25152_s3 + $0x324] ss:$20 sps:$4 sm:$0xff]   ;;  %v17085_v46 = vld [vmem:[%s25152_s3 + $0xa0] ss:$20 sps:$4 sm:$0xff]  }
  0xd1   :  { %1992 = vmatprep.subr.bf16.mxu1 %v17000_v47  ;;  %v17088_v47 = vld [vmem:[%s25152_s3 + $0x320] ss:$20 sps:$4 sm:$0xff]  }
  0xd3   :  { %1950 = vmatpush1.bf16.msra.mxu0 %v16995_v48  ;;  %v17093_v48 = vld [vmem:[%s25152_s3 + $0x7c] ss:$20 sps:$4 sm:$0xff]  }
  0xd4   :  { %1993 = vmatpush1.bf16.msra.mxu1 %v16998_v49  ;;  %1951 = vmatprep.subr.bf16.mxu0 %v17003_v50  ;;  %v17096_v49 = vld [vmem:[%s25152_s3 + $0x2fc] ss:$20 sps:$4 sm:$0xff]   ;;  %v17091_v50 = vld [vmem:[%s25152_s3 + $0x78] ss:$20 sps:$4 sm:$0xff]  }
  0xd5   :  { %1994 = vmatprep.subr.bf16.mxu1 %v17006_v51  ;;  %v17094_v51 = vld [vmem:[%s25152_s3 + $0x2f8] ss:$20 sps:$4 sm:$0xff]  }
  0xd7   :  { %1952 = vmatpush1.bf16.msra.mxu0 %v17001_v52  ;;  %v17099_v52 = vld [vmem:[%s25152_s3 + $0x54] ss:$20 sps:$4 sm:$0xff]  }
  0xd8   :  { %1995 = vmatpush1.bf16.msra.mxu1 %v17004_v53  ;;  %1953 = vmatprep.subr.bf16.mxu0 %v17009_v54  ;;  %v17102_v53 = vld [vmem:[%s25152_s3 + $0x2d4] ss:$20 sps:$4 sm:$0xff]   ;;  %v17097_v54 = vld [vmem:[%s25152_s3 + $0x50] ss:$20 sps:$4 sm:$0xff]  }
  0xd9   :  { %1996 = vmatprep.subr.bf16.mxu1 %v17012_v55  ;;  %v17100_v55 = vld [vmem:[%s25152_s3 + $0x2d0] ss:$20 sps:$4 sm:$0xff]  }
  0xdb   :  { %1954 = vmatpush1.bf16.msra.mxu0 %v17007_v56  ;;  %v17105_v56 = vld [vmem:[%s25152_s3 + $0x2c] ss:$20 sps:$4 sm:$0xff]  }
  0xdc   :  { %1997 = vmatpush1.bf16.msra.mxu1 %v17010_v57  ;;  %1955 = vmatprep.subr.bf16.mxu0 %v17015_v58  ;;  %v17108_v57 = vld [vmem:[%s25152_s3 + $0x2ac] ss:$20 sps:$4 sm:$0xff]   ;;  %v17103_v58 = vld [vmem:[%s25152_s3 + $0x28] ss:$20 sps:$4 sm:$0xff]  }
  0xdd   :  { %1998 = vmatprep.subr.bf16.mxu1 %v17018_v59  ;;  %v17106_v59 = vld [vmem:[%s25152_s3 + $0x2a8] ss:$20 sps:$4 sm:$0xff]  }
  0xdf   :  { %1956 = vmatpush1.bf16.msra.mxu0 %v17013_v60  ;;  %v17111_v60 = vld [vmem:[%s25152_s3 + $0x4] ss:$20 sps:$4 sm:$0xff]  }
  0xe0   :  { %1999 = vmatpush1.bf16.msra.mxu1 %v17016_v61  ;;  %1957 = vmatprep.subr.bf16.mxu0 %v17021_v62  ;;  %v17114_v61 = vld [vmem:[%s25152_s3 + $0x284] ss:$20 sps:$4 sm:$0xff]   ;;  %v17109_v62 = vld [vmem:[%s25152_s3] ss:$20 sps:$4 sm:$0xff]  }
  0xe1   :  { %2000 = vmatprep.subr.bf16.mxu1 %v17024_v63  ;;  %v17112_v63 = vld [vmem:[%s25152_s3 + $0x280] ss:$20 sps:$4 sm:$0xff]  }
  0xe3   :  { %1958 = vmatpush2.bf16.msra.mxu0 %v17019_v0  ;;  %v17117_v0 = vld [vmem:[%s25152_s3 + $0x25c] ss:$20 sps:$4 sm:$0xff]  }
  0xe4   :  { %2001 = vmatpush2.bf16.msra.mxu1 %v17022_v1  ;;  %1959 = vmatprep.subr.bf16.mxu0 %v17027_v2  ;;  %v17115_v1 = vld [vmem:[%s25152_s3 + $0x258] ss:$20 sps:$4 sm:$0xff]   ;;  %v17120_v2 = vld [vmem:[%s25152_s3 + $0x4dc] ss:$20 sps:$4 sm:$0xff]  }
  0xe5   :  { %2002 = vmatprep.subr.bf16.mxu1 %v17030_v3  ;;  %v17118_v3 = vld [vmem:[%s25152_s3 + $0x4d8] ss:$20 sps:$4 sm:$0xff]  }
  0xe7   :  { %1960 = vmatpush2.bf16.msra.mxu0 %v17025_v4  ;;  %v17123_v4 = vld [vmem:[%s25152_s3 + $0x234] ss:$20 sps:$4 sm:$0xff]  }
  0xe8   :  { %2003 = vmatpush2.bf16.msra.mxu1 %v17028_v5  ;;  %1961 = vmatprep.subr.bf16.mxu0 %v17033_v6  ;;  %v17126_v5 = vld [vmem:[%s25152_s3 + $0x4b4] ss:$20 sps:$4 sm:$0xff]   ;;  %v17121_v6 = vld [vmem:[%s25152_s3 + $0x230] ss:$20 sps:$4 sm:$0xff]  }
  0xe9   :  { %2004 = vmatprep.subr.bf16.mxu1 %v17036_v7  ;;  %v17124_v7 = vld [vmem:[%s25152_s3 + $0x4b0] ss:$20 sps:$4 sm:$0xff]  }
  0xeb   :  { %1962 = vmatpush2.bf16.msra.mxu0 %v17031_v8  ;;  %v17129_v8 = vld [vmem:[%s25152_s3 + $0x20c] ss:$20 sps:$4 sm:$0xff]  }
  0xec   :  { %2005 = vmatpush2.bf16.msra.mxu1 %v17034_v9  ;;  %1963 = vmatprep.subr.bf16.mxu0 %v17039_v10  ;;  %v17132_v9 = vld [vmem:[%s25152_s3 + $0x48c] ss:$20 sps:$4 sm:$0xff]   ;;  %v17127_v10 = vld [vmem:[%s25152_s3 + $0x208] ss:$20 sps:$4 sm:$0xff]  }
  0xed   :  { %2006 = vmatprep.subr.bf16.mxu1 %v17042_v11  ;;  %v17130_v11 = vld [vmem:[%s25152_s3 + $0x488] ss:$20 sps:$4 sm:$0xff]  }
  0xef   :  { %1964 = vmatpush2.bf16.msra.mxu0 %v17037_v12  ;;  %v17135_v12 = vld [vmem:[%s25152_s3 + $0x1e4] ss:$20 sps:$4 sm:$0xff]  }
  0xf0   :  { %2007 = vmatpush2.bf16.msra.mxu1 %v17040_v13  ;;  %1965 = vmatprep.subr.bf16.mxu0 %v17045_v14  ;;  %v17138_v13 = vld [vmem:[%s25152_s3 + $0x464] ss:$20 sps:$4 sm:$0xff]   ;;  %v17133_v14 = vld [vmem:[%s25152_s3 + $0x1e0] ss:$20 sps:$4 sm:$0xff]  }
  0xf1   :  { %2008 = vmatprep.subr.bf16.mxu1 %v17048_v15  ;;  %v17136_v15 = vld [vmem:[%s25152_s3 + $0x460] ss:$20 sps:$4 sm:$0xff]  }
  0xf3   :  { %1966 = vmatpush2.bf16.msra.mxu0 %v17043_v16  ;;  %v17141_v16 = vld [vmem:[%s25152_s3 + $0x1bc] ss:$20 sps:$4 sm:$0xff]  }
  0xf4   :  { %2009 = vmatpush2.bf16.msra.mxu1 %v17046_v17  ;;  %1967 = vmatprep.subr.bf16.mxu0 %v17051_v18  ;;  %v17139_v17 = vld [vmem:[%s25152_s3 + $0x1b8] ss:$20 sps:$4 sm:$0xff]   ;;  %v17144_v18 = vld [vmem:[%s25152_s3 + $0x43c] ss:$20 sps:$4 sm:$0xff]  }
  0xf5   :  { %2010 = vmatprep.subr.bf16.mxu1 %v17054_v19  ;;  %v17142_v19 = vld [vmem:[%s25152_s3 + $0x438] ss:$20 sps:$4 sm:$0xff]  }
  0xf7   :  { %1968 = vmatpush2.bf16.msra.mxu0 %v17049_v20  ;;  %v17147_v20 = vld [vmem:[%s25152_s3 + $0x194] ss:$20 sps:$4 sm:$0xff]  }
  0xf8   :  { %2011 = vmatpush2.bf16.msra.mxu1 %v17052_v21  ;;  %1969 = vmatprep.subr.bf16.mxu0 %v17057_v22  ;;  %v17145_v21 = vld [vmem:[%s25152_s3 + $0x190] ss:$20 sps:$4 sm:$0xff]   ;;  %v17150_v22 = vld [vmem:[%s25152_s3 + $0x414] ss:$20 sps:$4 sm:$0xff]  }
  0xf9   :  { %2012 = vmatprep.subr.bf16.mxu1 %v17060_v23  ;;  %v17148_v23 = vld [vmem:[%s25152_s3 + $0x410] ss:$20 sps:$4 sm:$0xff]  }
  0xfb   :  { %1970 = vmatpush2.bf16.msra.mxu0 %v17055_v29  ;;  %v17153_v29 = vld [vmem:[%s25152_s3 + $0x16c] ss:$20 sps:$4 sm:$0xff]  }
  0xfc   :  { %2013 = vmatpush2.bf16.msra.mxu1 %v17058_v30  ;;  %1971 = vmatprep.subr.bf16.mxu0 %v17063_v24  ;;  %v17151_v30 = vld [vmem:[%s25152_s3 + $0x168] ss:$20 sps:$4 sm:$0xff]   ;;  %v17156_v24 = vld [vmem:[%s25152_s3 + $0x3ec] ss:$20 sps:$4 sm:$0xff]  }
  0xfd   :  { %2014 = vmatprep.subr.bf16.mxu1 %v17066_v25  ;;  %v17154_v25 = vld [vmem:[%s25152_s3 + $0x3e8] ss:$20 sps:$4 sm:$0xff]  }
  0xff   :  { %1972 = vmatpush2.bf16.msra.mxu0 %v17061_v26  ;;  %v17159_v26 = vld [vmem:[%s25152_s3 + $0x144] ss:$20 sps:$4 sm:$0xff]  }
 0x100   :  { %2015 = vmatpush2.bf16.msra.mxu1 %v17064_v27  ;;  %11460 = vmatprep.subr.bf16.mxu0 %v17069_v37  ;;  %v17157_v27 = vld [vmem:[%s25152_s3 + $0x140] ss:$20 sps:$4 sm:$0xff]   ;;  %v17168_v37 = vld [vmem:[%s25152_s3 + $0x89c] ss:$20 sps:$4 sm:$0xff]  }
 0x101   :  { %11501 = vmatprep.subr.bf16.mxu1 %v17072_v28 }
 0x102   :  { %1974 = vmatmul.mubr.bf16.vlgmr.msra.gmra.mxu0 %v14386_v34  ;;  %v17160_v34 = vld [vmem:[%s25152_s3 + $0x3c0] ss:$20 sps:$4 sm:$0xff]  }
 0x103   :  { %2017 = vmatmul.mubr.bf16.vlgmr.msra.gmra.mxu1 %v14388_v35  ;;  %11461 = vmatpush1.bf16.msra.mxu0 %v17067_v36  ;;  %v17162_v35 = vld [vmem:[%s25152_s3 + $0x3c4] ss:$20 sps:$4 sm:$0xff]   ;;  %v17165_v36 = vld [vmem:[%s25152_s3 + $0x61c] ss:$20 sps:$4 sm:$0xff]   ;;  %v1760_v28 = vpop.f32.mrf.mxu1 }
 0x104   :  { %11502 = vmatpush1.bf16.msra.mxu1 %v17070_v38  ;;  %11462 = vmatprep.subr.bf16.mxu0 %v17075_v32  ;;  %v1717_v38 = vpop.f32.mrf.mxu0 }
 0x105   :  { %11503 = vmatprep.subr.bf16.mxu1 %v17078_v39  ;;  %v1762_v32 = vpop.f32.mrf.mxu1 }
 0x107   :  { %11463 = vmatpush1.bf16.msra.mxu0 %v17073_v31  ;;  %v1719_v31 = vpop.f32.mrf.mxu0  ;;  %v1764_v39 = vpop.f32.mrf.mxu1 }
 0x108   :  { %11504 = vmatpush1.bf16.msra.mxu1 %v17076_v33  ;;  %11464 = vmatprep.subr.bf16.mxu0 %v17081_v40  ;;  %v313_v40 = vlaneseq }
 0x109   :  { %11505 = vmatprep.subr.bf16.mxu1 %v17084_v42  ;;  %v1721_v33 = vpop.f32.mrf.mxu0  ;;  %v1766_v42 = vpop.f32.mrf.mxu1 }
 0x10b   :  { %11465 = vmatpush1.bf16.msra.mxu0 %v17079_v41  ;;  %v1723_v41 = vpop.f32.mrf.mxu0 }
 0x10c   :  { %11506 = vmatpush1.bf16.msra.mxu1 %v17082_v43  ;;  %11466 = vmatprep.subr.bf16.mxu0 %v17087_v44  ;;  %v20275_v43 = vshrl.u32 %v313_v40, 7 }
 0x10d   :  { %11507 = vmatprep.subr.bf16.mxu1 %v17090_v45 }
 0x10f   :  { %11467 = vmatpush1.bf16.msra.mxu0 %v17085_v46  ;;  %v311_v46 = vld [vmem:[%s25153_s2] sm:$0x3] }
 0x110   :  { %11508 = vmatpush1.bf16.msra.mxu1 %v17088_v47  ;;  %11468 = vmatprep.subr.bf16.mxu0 %v17093_v48  ;;  %v20281_v47 = vsub.s32 0, %v20275_v43 }
 0x111   :  { %11509 = vmatprep.subr.bf16.mxu1 %v17096_v49 }
 0x113   :  { %11469 = vmatpush1.bf16.msra.mxu0 %v17091_v50  ;;  %v20284_v50 = vsub.s32 1, %v20275_v43 }
 0x114   :  { %11510 = vmatpush1.bf16.msra.mxu1 %v17094_v51  ;;  %11470 = vmatprep.subr.bf16.mxu0 %v17099_v52  ;;  %v316_v51 = vrot.slane %v311_v46, %v20281_v47 }
 0x115   :  { %11511 = vmatprep.subr.bf16.mxu1 %v17102_v53 }
 0x117   :  { %11471 = vmatpush1.bf16.msra.mxu0 %v17097_v54  ;;  %v320_v54 = vrot.slane %v311_v46, %v20284_v50 }
 0x118   :  { %11512 = vmatpush1.bf16.msra.mxu1 %v17100_v55  ;;  %11472 = vmatprep.subr.bf16.mxu0 %v17105_v56  ;;  %v1718_v55 = vadd.f32 %v1717_v38, %v316_v51 }
 0x119   :  { %11513 = vmatprep.subr.bf16.mxu1 %v17108_v57 }
 0x11b   :  { %11473 = vmatpush1.bf16.msra.mxu0 %v17103_v58  ;;  %v1720_v58 = vadd.f32 %v1719_v31, %v320_v54 }
 0x11c   :  { %11514 = vmatpush1.bf16.msra.mxu1 %v17106_v59  ;;  %11474 = vmatprep.subr.bf16.mxu0 %v17111_v60 }
 0x11d   :  { %11515 = vmatprep.subr.bf16.mxu1 %v17114_v61  ;;  %v1761_v61 = vadd.f32 %v1760_v28, %v1718_v55 }
 0x11f   :  { %11475 = vmatpush1.bf16.msra.mxu0 %v17109_v62  ;;  %v1722_v62 = vadd.f32 %v1721_v33, %v316_v51 }
 0x120   :  { %11516 = vmatpush1.bf16.msra.mxu1 %v17112_v63  ;;  %11476 = vmatprep.subr.bf16.mxu0 %v17117_v0  ;;  %v1763_v63 = vadd.f32 %v1762_v32, %v1720_v58  ;;  %v1724_v0 = vadd.f32 %v1723_v41, %v320_v54 }
 0x121   :  { %11517 = vmatprep.subr.bf16.mxu1 %v17120_v2 }
 0x123   :  { %11477 = vmatpush2.bf16.msra.mxu0 %v17115_v1 }
 0x124   :  { %11518 = vmatpush2.bf16.msra.mxu1 %v17118_v3  ;;  %11478 = vmatprep.subr.bf16.mxu0 %v17123_v4  ;;  %v1765_v4 = vadd.f32 %v1764_v39, %v1722_v62  ;;  %v17163_v62 = vld [vmem:[%s25152_s3 + $0x618] ss:$20 sps:$4 sm:$0xff]  }
 0x125   :  { %11519 = vmatprep.subr.bf16.mxu1 %v17126_v5 }
 0x127   :  { %11479 = vmatpush2.bf16.msra.mxu0 %v17121_v6  ;;  %v1767_v6 = vadd.f32 %v1766_v42, %v1724_v0 }
 0x128   :  { %11520 = vmatpush2.bf16.msra.mxu1 %v17124_v7  ;;  %11480 = vmatprep.subr.bf16.mxu0 %v17129_v8 }
 0x129   :  { %11521 = vmatprep.subr.bf16.mxu1 %v17132_v9 }
 0x12b   :  { %11481 = vmatpush2.bf16.msra.mxu0 %v17127_v10 }
 0x12c   :  { %11522 = vmatpush2.bf16.msra.mxu1 %v17130_v11  ;;  %11482 = vmatprep.subr.bf16.mxu0 %v17135_v12 }
 0x12d   :  { %11523 = vmatprep.subr.bf16.mxu1 %v17138_v13 }
 0x12f   :  { %11483 = vmatpush2.bf16.msra.mxu0 %v17133_v14 }
 0x130   :  { %11524 = vmatpush2.bf16.msra.mxu1 %v17136_v15  ;;  %11484 = vmatprep.subr.bf16.mxu0 %v17141_v16 }
 0x131   :  { %11525 = vmatprep.subr.bf16.mxu1 %v17144_v18 }
 0x133   :  { %11485 = vmatpush2.bf16.msra.mxu0 %v17139_v17 }
 0x134   :  { %11526 = vmatpush2.bf16.msra.mxu1 %v17142_v19  ;;  %11486 = vmatprep.subr.bf16.mxu0 %v17147_v20 }
 0x135   :  { %11527 = vmatprep.subr.bf16.mxu1 %v17150_v22 }
 0x137   :  { %11487 = vmatpush2.bf16.msra.mxu0 %v17145_v21 }
 0x138   :  { %11528 = vmatpush2.bf16.msra.mxu1 %v17148_v23  ;;  %11488 = vmatprep.subr.bf16.mxu0 %v17153_v29 }
 0x139   :  { %11529 = vmatprep.subr.bf16.mxu1 %v17156_v24 }
 0x13b   :  { %11489 = vmatpush2.bf16.msra.mxu0 %v17151_v30 }
 0x13c   :  { %11530 = vmatpush2.bf16.msra.mxu1 %v17154_v25  ;;  %11490 = vmatprep.subr.bf16.mxu0 %v17159_v26 }
 0x13d   :  { %11531 = vmatprep.subr.bf16.mxu1 %v17162_v35 }
 0x13f   :  { %11491 = vmatpush2.bf16.msra.mxu0 %v17157_v27 }
 0x140   :  { %11532 = vmatpush2.bf16.msra.mxu1 %v17160_v34  ;;  %11542 = vmatprep.subr.bf16.mxu0 %v17165_v36 }
 0x141   :  { %11583 = vmatprep.subr.bf16.mxu1 %v17168_v37 }
 0x142   :  { %v1803_v44 = vpop.f32.mrf.mxu0 }
 0x143   :  { %v1846_v45 = vpop.f32.mrf.mxu1  ;;  %v1804_v1 = vadd.f32 %v1803_v44, %v1761_v61 }
 0x144   :  { %v1805_v48 = vpop.f32.mrf.mxu0 }
 0x145   :  { %v1848_v49 = vpop.f32.mrf.mxu1  ;;  %v1806_v5 = vadd.f32 %v1805_v48, %v1763_v63  ;;  %v1847_v7 = vadd.f32 %v1846_v45, %v1804_v1 }
 0x146   :  { %v1807_v52 = vpop.f32.mrf.mxu0 }
 0x147   :  { %v1850_v53 = vpop.f32.mrf.mxu1  ;;  %v1808_v8 = vadd.f32 %v1807_v52, %v1765_v4  ;;  %v1849_v11 = vadd.f32 %v1848_v49, %v1806_v5 }
 0x148   :  { %v1809_v56 = vpop.f32.mrf.mxu0 }
 0x149   :  { %v1852_v57 = vpop.f32.mrf.mxu1  ;;  %v1810_v12 = vadd.f32 %v1809_v56, %v1767_v6  ;;  %v1851_v14 = vadd.f32 %v1850_v53, %v1808_v8  ;;  %v17171_v8 = vld [vmem:[%s25152_s3 + $0x5f4] ss:$20 sps:$4 sm:$0xff]  }
 0x14b   :  { %v1853_v18 = vadd.f32 %v1852_v57, %v1810_v12 }
 0x182   :  { %v1889_v59 = vpop.f32.mrf.mxu0 }
 0x183   :  { %v1932_v60 = vpop.f32.mrf.mxu1  ;;  %v1890_v13 = vadd.f32 %v1889_v59, %v1847_v7 }
 0x184   :  { %v1891_v2 = vpop.f32.mrf.mxu0 }
 0x185   :  { %v1934_v3 = vpop.f32.mrf.mxu1  ;;  %v1892_v15 = vadd.f32 %v1891_v2, %v1849_v11  ;;  %v1933_v19 = vadd.f32 %v1932_v60, %v1890_v13 }
 0x186   :  { %v1893_v9 = vpop.f32.mrf.mxu0 }
 0x187   :  { %v1936_v10 = vpop.f32.mrf.mxu1  ;;  %v1894_v20 = vadd.f32 %v1893_v9, %v1851_v14  ;;  %v1935_v23 = vadd.f32 %v1934_v3, %v1892_v15  ;;  %v17166_v3 = vld [vmem:[%s25152_s3 + $0x898] ss:$20 sps:$4 sm:$0xff]   ;;  %v17174_v9 = vld [vmem:[%s25152_s3 + $0x874] ss:$20 sps:$4 sm:$0xff]   ;;  %v17169_v15 = vld [vmem:[%s25152_s3 + $0x5f0] ss:$20 sps:$4 sm:$0xff]  }
 0x188   :  { %v1895_v16 = vpop.f32.mrf.mxu0 }
 0x189   :  { %v1938_v17 = vpop.f32.mrf.mxu1  ;;  %v1896_v29 = vadd.f32 %v1895_v16, %v1853_v18  ;;  %v1937_v26 = vadd.f32 %v1936_v10, %v1894_v20  ;;  %v17172_v16 = vld [vmem:[%s25152_s3 + $0x870] ss:$20 sps:$4 sm:$0xff]   ;;  %v17177_v18 = vld [vmem:[%s25152_s3 + $0x5cc] ss:$20 sps:$4 sm:$0xff]  }
 0x18b   :  { %v1939_v37 = vadd.f32 %v1938_v17, %v1896_v29 }
 0x1c2   :  { %v1975_v21 = vpop.f32.mrf.mxu0 }
 0x1c3   :  { %v2018_v22 = vpop.f32.mrf.mxu1  ;;  %v1976_v30 = vadd.f32 %v1975_v21, %v1933_v19 }
 0x1c4   :  { %v1977_v24 = vpop.f32.mrf.mxu0 }
 0x1c5   :  { %v2020_v25 = vpop.f32.mrf.mxu1  ;;  %v2019_v27 = vadd.f32 %v2018_v22, %v1976_v30  ;;  %v1978_v34 = vadd.f32 %v1977_v24, %v1935_v23  ;;  %v17180_v22 = vld [vmem:[%s25152_s3 + $0x84c] ss:$20 sps:$4 sm:$0xff]   ;;  %v17175_v30 = vld [vmem:[%s25152_s3 + $0x5c8] ss:$20 sps:$4 sm:$0xff]  }
 0x1c6   :  { %v1979_v35 = vpop.f32.mrf.mxu0 }
 0x1c7   :  { %v2022_v36 = vpop.f32.mrf.mxu1  ;;  %v20288_v38 = vmax.f32 %v2019_v27, 0.0  ;;  %v2021_v28 = vadd.f32 %v2020_v25, %v1978_v34  ;;  %v1980_v31 = vadd.f32 %v1979_v35, %v1937_v26  ;;  %v17178_v27 = vld [vmem:[%s25152_s3 + $0x848] ss:$20 sps:$4 sm:$0xff]  }
 0x1c8   :  { %v1981_v32 = vpop.f32.mrf.mxu0 }
 0x1c9   :  { %v20290_v33 = vmax.f32 %v2021_v28, 0.0  ;;  %v2023_v39 = vadd.f32 %v2022_v36, %v1980_v31  ;;  %v1982_v40 = vadd.f32 %v1981_v32, %v1939_v37  ;;  %v2024_v41 = vpop.f32.mrf.mxu1  ;;  %v2037_v45 = vrot.slane %v20288_v38, 1  ;;  %v17183_v37 = vld [vmem:[%s25152_s3 + $0x5a4] ss:$20 sps:$4 sm:$0xff]  }
 0x1ca   :  { %v2044_v46 = vrot.slane %v20288_v38, 3  ;;  %v2040_v55 = vrot.slane %v20288_v38, 2  ;;  %v2093_v25 = vrot.slane %v20288_v38, 5  ;;  %v2089_v26 = vrot.slane %v20288_v38, 4  ;;  %v17186_v28 = vld [vmem:[%s25152_s3 + $0x824] ss:$20 sps:$4 sm:$0xff]  }
 0x1cb   :  { %v20292_v42 = vmax.f32 %v2023_v39, 0.0  ;;  %v2025_v44 = vadd.f32 %v2024_v41, %v1982_v40  ;;  %v20297_v48 = vrot.slane %v20290_v33, 1  ;;  %v20310_v57 = vrot.slane %v20290_v33, 3 }
 0x1cc   :  { %v20337_v2 = vrot.slane %v20290_v33, 2 }
 0x1cd   :  { %v20299_v49 = vmax.f32 %v2025_v44, 0.0  ;;  %v2038_v51 = vsel %vm2034_vm0, %v20292_v42, %v2037_v45  ;;  %v2045_v52 = vrot.slane %v20292_v42, 2  ;;  %v2033_v53 = vrot.slane %v20292_v42, 7 }
 0x1ce   :  { %v20305_v54 = vpack.c.bf16 %v2038_v51, %v2038_v51  ;;  %v2041_v56 = vrot.slane %v20292_v42, 1  ;;  %v2094_v20 = vrot.slane %v20292_v42, 4  ;;  %v2090_v21 = vrot.slane %v20292_v42, 3 }
 0x1cf   :  { %v2046_v58 = vsel %vm2034_vm0, %v2045_v52, %v2044_v46  ;;  %v20320_v59 = vsel %vm2034_vm0, %v20299_v49, %v20297_v48  ;;  %v2035_v60 = vsel %vm2034_vm0, %v2033_v53, %v20288_v38  ;;  %v20325_v61 = vrot.slane %v20299_v49, 2 }
 0x1d0   :  { %11492 = vmatprep.mubr.bf16.mxu0 %v20305_v54  ;;  %v20331_v63 = vpack.c.bf16 %v2046_v58, %v2046_v58  ;;  %v16633_v0 = vpack.i.bf16 %v20320_v59, %v2038_v51  ;;  %v20334_v1 = vpack.c.bf16 %v2035_v60, %v2035_v60  ;;  %v2042_v4 = vsel %vm2034_vm0, %v2041_v56, %v2040_v55 }
 0x1d1   :  { %v20350_v5 = vsel %vm2034_vm0, %v20325_v61, %v20310_v57  ;;  %v20353_v6 = vrot.slane %v20299_v49, 7  ;;  %v20356_v7 = vrot.slane %v20299_v49, 1  ;;  %v20366_v10 = vpack.c.bf16 %v2042_v4, %v2042_v4 }
 0x1d2   :  { %11533 = vmatprep.mubr.bf16.mxu1 %v20331_v63  ;;  %16634 = vrot.lane.b32.xlu0 %v16633_v0, %s19149_s17  ;;  %v16643_v11 = vpack.i.bf16 %v20350_v5, %v2046_v58  ;;  %v20392_v17 = vsel %vm2097_vm1, %v20299_v49, %v20297_v48  ;;  %v2105_v23 = vsel %vm2097_vm1, %v20292_v42, %v2037_v45  ;;  %v2137_v36 = vrot.slane %v20299_v49, 4 }
 0x1d3   :  { %11493 = vmatmul.mubr.bf16.vlgmr.msra.gmra.mxu0 %v20334_v1  ;;  %v20373_v12 = vsel %vm2034_vm0, %v20353_v6, %v20290_v33  ;;  %v20378_v13 = vsel %vm2034_vm0, %v20356_v7, %v20337_v2  ;;  %11534 = vmatmul.mubr.bf16.vlgmr.msra.gmra.mxu1 %v20366_v10  ;;  %v20409_v29 = vsel %vm2097_vm1, %v20353_v6, %v20290_v33  ;;  %v2136_v44 = vrot.slane %v20290_v33, 5 }
 0x1d4   :  { %16644 = vrot.lane.b32.xlu1 %v16643_v11, %s19149_s17  ;;  %v16638_v14 = vpack.i.bf16 %v20373_v12, %v2035_v60  ;;  %11543 = vmatpush1.bf16.msra.mxu0 %v17163_v62  ;;  %v16648_v19 = vpack.i.bf16 %v20378_v13, %v2042_v4  ;;  %v16653_v24 = vpack.i.bf16 %v20392_v17, %v2105_v23  ;;  %v2129_v45 = vrot.slane %v20299_v49, 3  ;;  %v17192_v62 = vld [vmem:[%s25152_s3 + $0x7fc] ss:$20 sps:$4 sm:$0xff]   ;;  %v17195_v4 = vld [vmem:[%s25152_s3 + $0x554] ss:$20 sps:$4 sm:$0xff]  }
 0x1d5   :  { %11584 = vmatpush1.bf16.msra.mxu1 %v17166_v3  ;;  %11544 = vmatprep.subr.bf16.mxu0 %v17171_v8  ;;  %v2098_v34 = vsel %vm2097_vm1, %v2033_v53, %v20288_v38  ;;  %v20426_v35 = vsel %vm2097_vm1, %v20325_v61, %v20310_v57  ;;  %v20438_v32 = vsel %vm2034_vm0, %v2094_v20, %v2093_v25  ;;  %v2128_v53 = vrot.slane %v20290_v33, 4  ;;  %v17190_v3 = vld [vmem:[%s25152_s3 + $0x7f8] ss:$20 sps:$4 sm:$0xff]   ;;  %v17198_v8 = vld [vmem:[%s25152_s3 + $0x7d4] ss:$20 sps:$4 sm:$0xff]  }
 0x1d6   :  { %16639 = vrot.lane.b32.xlu0 %v16638_v14, %s19149_s17  ;;  %11585 = vmatprep.subr.bf16.mxu1 %v17174_v9  ;;  %v16658_v31 = vpack.i.bf16 %v20409_v29, %v2098_v34  ;;  %v20441_v39 = vsel %vm2034_vm0, %v2090_v21, %v2089_v26  ;;  %v20448_v40 = vsel %vm2097_vm1, %v2045_v52, %v2044_v46  ;;  %v17196_v9 = vld [vmem:[%s25152_s3 + $0x7d0] ss:$20 sps:$4 sm:$0xff]   ;;  %v17201_v11 = vld [vmem:[%s25152_s3 + $0x52c] ss:$20 sps:$4 sm:$0xff]   ;;  %v17199_v14 = vld [vmem:[%s25152_s3 + $0x528] ss:$20 sps:$4 sm:$0xff]  }
 0x1d7   :  { %v20453_v41 = vsel %vm2097_vm1, %v20356_v7, %v20337_v2  ;;  %v16663_v51 = vpack.i.bf16 %v20426_v35, %v20448_v40  ;;  %v20464_v46 = vsel %vm2144_vm2, %v20299_v49, %v20297_v48  ;;  %v20469_v52 = vsel %vm2144_vm2, %v20325_v61, %v20310_v57  ;;  %v17181_v48 = vld [vmem:[%s25152_s3 + $0x5a0] ss:$20 sps:$4 sm:$0xff]   ;;  %v17187_v57 = vld [vmem:[%s25152_s3 + $0x578] ss:$20 sps:$4 sm:$0xff]   ;;  %v17189_v61 = vld [vmem:[%s25152_s3 + $0x57c] ss:$20 sps:$4 sm:$0xff]  }
 0x1d8   :  { %16649 = vrot.lane.b32.xlu1 %v16648_v19, %s19149_s17  ;;  %11545 = vmatpush1.bf16.msra.mxu0 %v17169_v15  ;;  %v20476_v58 = vsel %vm2097_vm1, %v2041_v56, %v2040_v55  ;;  %v2138_v60 = vsel %vm2097_vm1, %v2137_v36, %v2136_v44  ;;  %v20485_v49 = vsel %vm2144_vm2, %v20353_v6, %v20290_v33  ;;  %v17184_v55 = vld [vmem:[%s25152_s3 + $0x820] ss:$20 sps:$4 sm:$0xff]   ;;  %v17211_v23 = vld [vmem:[%s25152_s3 + $0x758] ss:$20 sps:$4 sm:$0xff]   ;;  %v17220_v34 = vld [vmem:[%s25152_s3 + $0x9b0] ss:$20 sps:$4 sm:$0xff]  }
 0x1d9   :  { %11586 = vmatpush1.bf16.msra.mxu1 %v17172_v16  ;;  %11546 = vmatprep.subr.bf16.mxu0 %v17177_v18  ;;  %v20490_v38 = vsel %vm2144_vm2, %v20356_v7, %v20337_v2  ;;  %v16668_v42 = vpack.i.bf16 %v20453_v41, %v20476_v58  ;;  %v20499_v56 = vsel %vm2097_vm1, %v2094_v20, %v2093_v25  ;;  %v17193_v7 = vld [vmem:[%s25152_s3 + $0x550] ss:$20 sps:$4 sm:$0xff]   ;;  %v17204_v15 = vld [vmem:[%s25152_s3 + $0x7ac] ss:$20 sps:$4 sm:$0xff]   ;;  %v17202_v16 = vld [vmem:[%s25152_s3 + $0x7a8] ss:$20 sps:$4 sm:$0xff]  }
 0x1da   :  { %16654 = vrot.lane.b32.xlu0 %v16653_v24, %s19149_s17  ;;  %11587 = vmatprep.subr.bf16.mxu1 %v17180_v22  ;;  %v2130_v33 = vsel %vm2097_vm1, %v2129_v45, %v2128_v53  ;;  %v16673_v0 = vpack.i.bf16 %v2138_v60, %v20499_v56  ;;  %v20514_v2 = vsel %vm2097_vm1, %v2090_v21, %v2089_v26  ;;  %v17207_v18 = vld [vmem:[%s25152_s3 + $0x504] ss:$20 sps:$4 sm:$0xff]   ;;  %v17205_v19 = vld [vmem:[%s25152_s3 + $0x500] ss:$20 sps:$4 sm:$0xff]   ;;  %v17213_v22 = vld [vmem:[%s25152_s3 + $0x75c] ss:$20 sps:$4 sm:$0xff]  }
 0x1db   :  { %v16678_v6 = vpack.i.bf16 %v2130_v33, %v20514_v2  ;;  %v17210_v20 = vld [vmem:[%s25152_s3 + $0x784] ss:$20 sps:$4 sm:$0xff]   ;;  %v17208_v21 = vld [vmem:[%s25152_s3 + $0x780] ss:$20 sps:$4 sm:$0xff]   ;;  %v17237_v60 = vld [vmem:[%s25152_s3 + $0x6bc] ss:$20 sps:$4 sm:$0xff]  }
 0x1dc   :  { %16659 = vrot.lane.b32.xlu1 %v16658_v31, %s19149_s17  ;;  %11547 = vmatpush1.bf16.msra.mxu0 %v17175_v30  ;;  %v17216_v30 = vld [vmem:[%s25152_s3 + $0x9dc] ss:$20 sps:$4 sm:$0xff]   ;;  %v17214_v24 = vld [vmem:[%s25152_s3 + $0x9d8] ss:$20 sps:$4 sm:$0xff]   ;;  %v17219_v25 = vld [vmem:[%s25152_s3 + $0x734] ss:$20 sps:$4 sm:$0xff]  }
 0x1dd   :  { %11588 = vmatpush1.bf16.msra.mxu1 %v17178_v27  ;;  %11548 = vmatprep.subr.bf16.mxu0 %v17183_v37  ;;  %v17217_v26 = vld [vmem:[%s25152_s3 + $0x730] ss:$20 sps:$4 sm:$0xff]   ;;  %v17222_v27 = vld [vmem:[%s25152_s3 + $0x9b4] ss:$20 sps:$4 sm:$0xff]   ;;  %v17225_v36 = vld [vmem:[%s25152_s3 + $0x70c] ss:$20 sps:$4 sm:$0xff]  }
 0x1de   :  { %16664 = vrot.lane.b32.xlu0 %v16663_v51, %s19149_s17  ;;  %11589 = vmatprep.subr.bf16.mxu1 %v17186_v28  ;;  %v17223_v37 = vld [vmem:[%s25152_s3 + $0x708] ss:$20 sps:$4 sm:$0xff]   ;;  %v17228_v28 = vld [vmem:[%s25152_s3 + $0x98c] ss:$20 sps:$4 sm:$0xff]   ;;  %v17231_v44 = vld [vmem:[%s25152_s3 + $0x6e4] ss:$20 sps:$4 sm:$0xff]  }
 0x1df   :  { %v17226_v31 = vld [vmem:[%s25152_s3 + $0x988] ss:$20 sps:$4 sm:$0xff]   ;;  %v17229_v45 = vld [vmem:[%s25152_s3 + $0x6e0] ss:$20 sps:$4 sm:$0xff]   ;;  %v17234_v51 = vld [vmem:[%s25152_s3 + $0x964] ss:$20 sps:$4 sm:$0xff]  }
 0x1e0   :  { %16669 = vrot.lane.b32.xlu1 %v16668_v42, %s19149_s17  ;;  %11549 = vmatpush1.bf16.msra.mxu0 %v17181_v48  ;;  %v17232_v53 = vld [vmem:[%s25152_s3 + $0x960] ss:$20 sps:$4 sm:$0xff]   ;;  %v17235_v48 = vld [vmem:[%s25152_s3 + $0x6b8] ss:$20 sps:$4 sm:$0xff]   ;;  %v17240_v42 = vld [vmem:[%s25152_s3 + $0x93c] ss:$20 sps:$4 sm:$0xff]  }
 0x1e1   :  { %11590 = vmatpush1.bf16.msra.mxu1 %v17184_v55  ;;  %11550 = vmatprep.subr.bf16.mxu0 %v17189_v61  ;;  %v17238_v55 = vld [vmem:[%s25152_s3 + $0x938] ss:$20 sps:$4 sm:$0xff]   ;;  %v17243_v33 = vld [vmem:[%s25152_s3 + $0x694] ss:$20 sps:$4 sm:$0xff]  }
 0x1e2   :  { %16674 = vrot.lane.b32.xlu0 %v16673_v0, %s19149_s17  ;;  %11591 = vmatprep.subr.bf16.mxu1 %v17192_v62  ;;  %v17246_v61 = vld [vmem:[%s25152_s3 + $0x914] ss:$20 sps:$4 sm:$0xff]   ;;  %v17244_v62 = vld [vmem:[%s25152_s3 + $0x910] ss:$20 sps:$4 sm:$0xff]   ;;  %v17249_v0 = vld [vmem:[%s25152_s3 + $0x66c] ss:$20 sps:$4 sm:$0xff]  }
 0x1e4   :  { %16679 = vrot.lane.b32.xlu1 %v16678_v6, %s19149_s17  ;;  %11551 = vmatpush1.bf16.msra.mxu0 %v17187_v57  ;;  %v17241_v57 = vld [vmem:[%s25152_s3 + $0x690] ss:$20 sps:$4 sm:$0xff]   ;;  %v17250_v6 = vld [vmem:[%s25152_s3 + $0x8e8] ss:$20 sps:$4 sm:$0xff]  }
 0x1e5   :  { %11592 = vmatpush1.bf16.msra.mxu1 %v17190_v3  ;;  %11552 = vmatprep.subr.bf16.mxu0 %v17195_v4  ;;  %v17247_v3 = vld [vmem:[%s25152_s3 + $0x668] ss:$20 sps:$4 sm:$0xff]   ;;  %v17252_v4 = vld [vmem:[%s25152_s3 + $0x8ec] ss:$20 sps:$4 sm:$0xff]  }
 0x1e6   :  { %11593 = vmatprep.subr.bf16.mxu1 %v17198_v8  ;;  %v17253_v8 = vld [vmem:[%s25152_s3 + $0x640] ss:$20 sps:$4 sm:$0xff]  }
 0x1e8   :  { %11553 = vmatpush1.bf16.msra.mxu0 %v17193_v7  ;;  %v17255_v7 = vld [vmem:[%s25152_s3 + $0x644] ss:$20 sps:$4 sm:$0xff]  }
 0x1e9   :  { %11594 = vmatpush1.bf16.msra.mxu1 %v17196_v9  ;;  %11554 = vmatprep.subr.bf16.mxu0 %v17201_v11  ;;  %v17258_v9 = vld [vmem:[%s25152_s3 + $0x8c4] ss:$20 sps:$4 sm:$0xff]   ;;  %v17256_v11 = vld [vmem:[%s25152_s3 + $0x8c0] ss:$20 sps:$4 sm:$0xff]  }
 0x1ea   :  { %11595 = vmatprep.subr.bf16.mxu1 %v17204_v15  ;;  %v17264_v15 = vld [vmem:[%s25152_s3 + $0xd9c] ss:$20 sps:$4 sm:$0xff]  }
 0x1ec   :  { %11555 = vmatpush1.bf16.msra.mxu0 %v17199_v14  ;;  %v17261_v14 = vld [vmem:[%s25152_s3 + $0xb1c] ss:$20 sps:$4 sm:$0xff]  }
 0x1ed   :  { %11596 = vmatpush1.bf16.msra.mxu1 %v17202_v16  ;;  %11556 = vmatprep.subr.bf16.mxu0 %v17207_v18 }
 0x1ee   :  { %11597 = vmatprep.subr.bf16.mxu1 %v17210_v20 }
 0x1f0   :  { %11557 = vmatpush1.bf16.msra.mxu0 %v17205_v19 }
 0x1f1   :  { %11598 = vmatpush1.bf16.msra.mxu1 %v17208_v21  ;;  %11558 = vmatprep.subr.bf16.mxu0 %v17213_v22 }
 0x1f2   :  { %11599 = vmatprep.subr.bf16.mxu1 %v17216_v30 }
 0x1f4   :  { %11559 = vmatpush2.bf16.msra.mxu0 %v17211_v23 }
 0x1f5   :  { %11600 = vmatpush2.bf16.msra.mxu1 %v17214_v24  ;;  %11560 = vmatprep.subr.bf16.mxu0 %v17219_v25 }
 0x1f6   :  { %11601 = vmatprep.subr.bf16.mxu1 %v17222_v27 }
 0x1f8   :  { %11561 = vmatpush2.bf16.msra.mxu0 %v17217_v26 }
 0x1f9   :  { %11602 = vmatpush2.bf16.msra.mxu1 %v17220_v34  ;;  %11562 = vmatprep.subr.bf16.mxu0 %v17225_v36  ;;  %v17259_v34 = vld [vmem:[%s25152_s3 + $0xb18] ss:$20 sps:$4 sm:$0xff]  }
 0x1fa   :  { %11603 = vmatprep.subr.bf16.mxu1 %v17228_v28 }
 0x1fc   :  { %11563 = vmatpush2.bf16.msra.mxu0 %v17223_v37 }
 0x1fd   :  { %11604 = vmatpush2.bf16.msra.mxu1 %v17226_v31  ;;  %11564 = vmatprep.subr.bf16.mxu0 %v17231_v44 }
 0x1fe   :  { %11605 = vmatprep.subr.bf16.mxu1 %v17234_v51  ;;  %v17267_v51 = vld [vmem:[%s25152_s3 + $0xaf4] ss:$20 sps:$4 sm:$0xff]  }
 0x200   :  { %11565 = vmatpush2.bf16.msra.mxu0 %v17229_v45  ;;  %v17262_v45 = vld [vmem:[%s25152_s3 + $0xd98] ss:$20 sps:$4 sm:$0xff]  }
 0x201   :  { %11606 = vmatpush2.bf16.msra.mxu1 %v17232_v53  ;;  %11566 = vmatprep.subr.bf16.mxu0 %v17237_v60  ;;  %v20682_v60 = vpack.c.bf16 %v20320_v59, %v20320_v59  ;;  %v17268_v59 = vld [vmem:[%s25152_s3 + $0xd70] ss:$20 sps:$4 sm:$0xff]  }
 0x202   :  { %11607 = vmatprep.subr.bf16.mxu1 %v17240_v42 }
 0x204   :  { %11567 = vmatpush2.bf16.msra.mxu0 %v17235_v48 }
 0x205   :  { %11608 = vmatpush2.bf16.msra.mxu1 %v17238_v55  ;;  %11568 = vmatprep.subr.bf16.mxu0 %v17243_v33  ;;  %v17265_v55 = vld [vmem:[%s25152_s3 + $0xaf0] ss:$20 sps:$4 sm:$0xff]   ;;  %v17270_v33 = vld [vmem:[%s25152_s3 + $0xd74] ss:$20 sps:$4 sm:$0xff]  }
 0x206   :  { %11609 = vmatprep.subr.bf16.mxu1 %v17246_v61  ;;  %v17273_v61 = vld [vmem:[%s25152_s3 + $0xacc] ss:$20 sps:$4 sm:$0xff]  }
 0x208   :  { %11569 = vmatpush2.bf16.msra.mxu0 %v17241_v57  ;;  %v20696_v57 = vpack.c.bf16 %v20350_v5, %v20350_v5  ;;  %v17271_v5 = vld [vmem:[%s25152_s3 + $0xac8] ss:$20 sps:$4 sm:$0xff]  }
 0x209   :  { %11610 = vmatpush2.bf16.msra.mxu1 %v17244_v62  ;;  %11570 = vmatprep.subr.bf16.mxu0 %v17249_v0  ;;  %v17276_v62 = vld [vmem:[%s25152_s3 + $0xd4c] ss:$20 sps:$4 sm:$0xff]   ;;  %v17274_v0 = vld [vmem:[%s25152_s3 + $0xd48] ss:$20 sps:$4 sm:$0xff]  }
 0x20a   :  { %11611 = vmatprep.subr.bf16.mxu1 %v17252_v4  ;;  %v17277_v4 = vld [vmem:[%s25152_s3 + $0xaa0] ss:$20 sps:$4 sm:$0xff]  }
 0x20c   :  { %11571 = vmatpush2.bf16.msra.mxu0 %v17247_v3  ;;  %v17279_v3 = vld [vmem:[%s25152_s3 + $0xaa4] ss:$20 sps:$4 sm:$0xff]  }
 0x20d   :  { %11612 = vmatpush2.bf16.msra.mxu1 %v17250_v6  ;;  %11572 = vmatprep.subr.bf16.mxu0 %v17255_v7  ;;  %v17282_v6 = vld [vmem:[%s25152_s3 + $0xd24] ss:$20 sps:$4 sm:$0xff]   ;;  %v17280_v7 = vld [vmem:[%s25152_s3 + $0xd20] ss:$20 sps:$4 sm:$0xff]  }
 0x20e   :  { %11613 = vmatprep.subr.bf16.mxu1 %v17258_v9  ;;  %v17283_v9 = vld [vmem:[%s25152_s3 + $0xa78] ss:$20 sps:$4 sm:$0xff]  }
 0x210   :  { %11573 = vmatpush2.bf16.msra.mxu0 %v17253_v8  ;;  %v17285_v8 = vld [vmem:[%s25152_s3 + $0xa7c] ss:$20 sps:$4 sm:$0xff]  }
 0x211   :  { %11614 = vmatpush2.bf16.msra.mxu1 %v17256_v11  ;;  %11624 = vmatprep.subr.bf16.mxu0 %v17261_v14  ;;  %v17288_v11 = vld [vmem:[%s25152_s3 + $0xcfc] ss:$20 sps:$4 sm:$0xff]   ;;  %v17286_v14 = vld [vmem:[%s25152_s3 + $0xcf8] ss:$20 sps:$4 sm:$0xff]  }
 0x212   :  { %11665 = vmatprep.subr.bf16.mxu1 %v17264_v15  ;;  %v17291_v15 = vld [vmem:[%s25152_s3 + $0xa54] ss:$20 sps:$4 sm:$0xff]  }
 0x244   :  { %v16635_v16 = vpop.permute.xlu0 %16634 }
 0x245   :  { %v16637_v18 = vunpack.i.h.bf16 %v16635_v16  ;;  %v16636_v19 = vunpack.i.l.bf16 %v16635_v16  ;;  %v17289_v16 = vld [vmem:[%s25152_s3 + $0xa50] ss:$20 sps:$4 sm:$0xff]  }
 0x246   :  { %v16645_v20 = vpop.permute.xlu1 %16644 }
 0x247   :  { %v16647_v21 = vunpack.i.h.bf16 %v16645_v20  ;;  %v16646_v22 = vunpack.i.l.bf16 %v16645_v20  ;;  %v2065_v23 = vsel %vm2056_vm3, %v16636_v19, %v16637_v18  ;;  %v17294_v18 = vld [vmem:[%s25152_s3 + $0xcd4] ss:$20 sps:$4 sm:$0xff]   ;;  %v17292_v19 = vld [vmem:[%s25152_s3 + $0xcd0] ss:$20 sps:$4 sm:$0xff]   ;;  %v17297_v20 = vld [vmem:[%s25152_s3 + $0xa2c] ss:$20 sps:$4 sm:$0xff]  }
 0x248   :  { %v16640_v30 = vpop.permute.xlu0 %16639  ;;  %v20661_v24 = vpack.c.bf16 %v2065_v23, %v2065_v23  ;;  %v17298_v23 = vld [vmem:[%s25152_s3 + $0xca8] ss:$20 sps:$4 sm:$0xff]  }
 0x249   :  { %v16642_v25 = vunpack.i.h.bf16 %v16640_v30  ;;  %v16641_v26 = vunpack.i.l.bf16 %v16640_v30  ;;  %v2083_v27 = vsel %vm2056_vm3, %v16646_v22, %v16647_v21  ;;  %v17295_v21 = vld [vmem:[%s25152_s3 + $0xa28] ss:$20 sps:$4 sm:$0xff]   ;;  %v17300_v22 = vld [vmem:[%s25152_s3 + $0xcac] ss:$20 sps:$4 sm:$0xff]   ;;  %v17303_v30 = vld [vmem:[%s25152_s3 + $0xa04] ss:$20 sps:$4 sm:$0xff]  }
 0x24a   :  { %v16650_v36 = vpop.permute.xlu1 %16649  ;;  %11574 = vmatprep.mubr.bf16.mxu0 %v20661_v24  ;;  %v20668_v37 = vpack.c.bf16 %v2083_v27, %v2083_v27  ;;  %v17304_v27 = vld [vmem:[%s25152_s3 + $0xc80] ss:$20 sps:$4 sm:$0xff]  }
 0x24b   :  { %v2057_v28 = vsel %vm2056_vm3, %v16641_v26, %v16642_v25  ;;  %v16652_v31 = vunpack.i.h.bf16 %v16650_v36  ;;  %v16651_v44 = vunpack.i.l.bf16 %v16650_v36  ;;  %v17301_v25 = vld [vmem:[%s25152_s3 + $0xa00] ss:$20 sps:$4 sm:$0xff]   ;;  %v17306_v26 = vld [vmem:[%s25152_s3 + $0xc84] ss:$20 sps:$4 sm:$0xff]  }
 0x24c   :  { %v20677_v53 = vpack.c.bf16 %v2057_v28, %v2057_v28  ;;  %11615 = vmatprep.mubr.bf16.mxu1 %v20668_v37  ;;  %v17307_v36 = vld [vmem:[%s25152_s3 + $0xc58] ss:$20 sps:$4 sm:$0xff]   ;;  %v17312_v28 = vld [vmem:[%s25152_s3 + $0xedc] ss:$20 sps:$4 sm:$0xff]  }
 0x24d   :  { %v2074_v48 = vsel %vm2056_vm3, %v16651_v44, %v16652_v31  ;;  %v17310_v31 = vld [vmem:[%s25152_s3 + $0xed8] ss:$20 sps:$4 sm:$0xff]   ;;  %v17315_v44 = vld [vmem:[%s25152_s3 + $0xc34] ss:$20 sps:$4 sm:$0xff]  }
 0x24e   :  { %v20685_v42 = vpack.c.bf16 %v2074_v48, %v2074_v48  ;;  %11575 = vmatmul.mubr.bf16.vlgmr.msra.gmra.mxu0 %v20677_v53  ;;  %v17316_v48 = vld [vmem:[%s25152_s3 + $0xeb0] ss:$20 sps:$4 sm:$0xff]  }
 0x24f   :  { %11625 = vmatpush1.bf16.msra.mxu0 %v17259_v34  ;;  %11656 = vmatprep.mubr.bf16.mxu0 %v20682_v60  ;;  %v17309_v34 = vld [vmem:[%s25152_s3 + $0xc5c] ss:$20 sps:$4 sm:$0xff]  }
 0x250   :  { %11616 = vmatmul.mubr.bf16.vlgmr.msra.gmra.mxu1 %v20685_v42  ;;  %11626 = vmatprep.subr.bf16.mxu0 %v17267_v51  ;;  %v17318_v51 = vld [vmem:[%s25152_s3 + $0xeb4] ss:$20 sps:$4 sm:$0xff]  }
 0x251   :  { %11666 = vmatpush1.bf16.msra.mxu1 %v17262_v45  ;;  %11697 = vmatprep.mubr.bf16.mxu1 %v20696_v57  ;;  %v17313_v45 = vld [vmem:[%s25152_s3 + $0xc30] ss:$20 sps:$4 sm:$0xff]  }
 0x252   :  { %11667 = vmatprep.subr.bf16.mxu1 %v17270_v33  ;;  %v17319_v33 = vld [vmem:[%s25152_s3 + $0xc08] ss:$20 sps:$4 sm:$0xff]  }
 0x253   :  { %11627 = vmatpush1.bf16.msra.mxu0 %v17265_v55  ;;  %v17321_v55 = vld [vmem:[%s25152_s3 + $0xc0c] ss:$20 sps:$4 sm:$0xff]  }
 0x254   :  { %11628 = vmatprep.subr.bf16.mxu0 %v17273_v61  ;;  %v17322_v61 = vld [vmem:[%s25152_s3 + $0xe88] ss:$20 sps:$4 sm:$0xff]  }
 0x255   :  { %11668 = vmatpush1.bf16.msra.mxu1 %v17268_v59  ;;  %v17324_v59 = vld [vmem:[%s25152_s3 + $0xe8c] ss:$20 sps:$4 sm:$0xff]  }
 0x256   :  { %11669 = vmatprep.subr.bf16.mxu1 %v17276_v62  ;;  %v17325_v62 = vld [vmem:[%s25152_s3 + $0xbe0] ss:$20 sps:$4 sm:$0xff]  }
 0x257   :  { %11629 = vmatpush1.bf16.msra.mxu0 %v17271_v5  ;;  %v17327_v5 = vld [vmem:[%s25152_s3 + $0xbe4] ss:$20 sps:$4 sm:$0xff]  }
 0x258   :  { %11630 = vmatprep.subr.bf16.mxu0 %v17279_v3  ;;  %v17328_v3 = vld [vmem:[%s25152_s3 + $0xe60] ss:$20 sps:$4 sm:$0xff]  }
 0x259   :  { %11670 = vmatpush1.bf16.msra.mxu1 %v17274_v0  ;;  %v17330_v0 = vld [vmem:[%s25152_s3 + $0xe64] ss:$20 sps:$4 sm:$0xff]  }
 0x25a   :  { %11671 = vmatprep.subr.bf16.mxu1 %v17282_v6  ;;  %v17331_v6 = vld [vmem:[%s25152_s3 + $0xbb8] ss:$20 sps:$4 sm:$0xff]  }
 0x25b   :  { %11631 = vmatpush1.bf16.msra.mxu0 %v17277_v4  ;;  %v17333_v4 = vld [vmem:[%s25152_s3 + $0xbbc] ss:$20 sps:$4 sm:$0xff]  }
 0x25c   :  { %11632 = vmatprep.subr.bf16.mxu0 %v17285_v8  ;;  %v17334_v8 = vld [vmem:[%s25152_s3 + $0xe38] ss:$20 sps:$4 sm:$0xff]  }
 0x25d   :  { %11672 = vmatpush1.bf16.msra.mxu1 %v17280_v7  ;;  %v17336_v7 = vld [vmem:[%s25152_s3 + $0xe3c] ss:$20 sps:$4 sm:$0xff]  }
 0x25e   :  { %11673 = vmatprep.subr.bf16.mxu1 %v17288_v11  ;;  %v17337_v11 = vld [vmem:[%s25152_s3 + $0xb90] ss:$20 sps:$4 sm:$0xff]  }
 0x25f   :  { %11633 = vmatpush1.bf16.msra.mxu0 %v17283_v9  ;;  %v17339_v9 = vld [vmem:[%s25152_s3 + $0xb94] ss:$20 sps:$4 sm:$0xff]  }
 0x260   :  { %11634 = vmatprep.subr.bf16.mxu0 %v17291_v15  ;;  %v17340_v15 = vld [vmem:[%s25152_s3 + $0xe10] ss:$20 sps:$4 sm:$0xff]  }
 0x261   :  { %11674 = vmatpush1.bf16.msra.mxu1 %v17286_v14  ;;  %v17342_v14 = vld [vmem:[%s25152_s3 + $0xe14] ss:$20 sps:$4 sm:$0xff]  }
 0x262   :  { %11675 = vmatprep.subr.bf16.mxu1 %v17294_v18  ;;  %v17343_v18 = vld [vmem:[%s25152_s3 + $0xb68] ss:$20 sps:$4 sm:$0xff]  }
 0x263   :  { %11635 = vmatpush1.bf16.msra.mxu0 %v17289_v16  ;;  %v17345_v16 = vld [vmem:[%s25152_s3 + $0xb6c] ss:$20 sps:$4 sm:$0xff]  }
 0x264   :  { %11636 = vmatprep.subr.bf16.mxu0 %v17297_v20  ;;  %v17346_v20 = vld [vmem:[%s25152_s3 + $0xde8] ss:$20 sps:$4 sm:$0xff]  }
 0x265   :  { %11676 = vmatpush1.bf16.msra.mxu1 %v17292_v19  ;;  %v17348_v19 = vld [vmem:[%s25152_s3 + $0xdec] ss:$20 sps:$4 sm:$0xff]  }
 0x266   :  { %11677 = vmatprep.subr.bf16.mxu1 %v17300_v22  ;;  %v17349_v22 = vld [vmem:[%s25152_s3 + $0xb40] ss:$20 sps:$4 sm:$0xff]  }
 0x267   :  { %11637 = vmatpush1.bf16.msra.mxu0 %v17295_v21  ;;  %v17351_v21 = vld [vmem:[%s25152_s3 + $0xb44] ss:$20 sps:$4 sm:$0xff]  }
 0x268   :  { %11638 = vmatprep.subr.bf16.mxu0 %v17303_v30  ;;  %v17352_v30 = vld [vmem:[%s25152_s3 + $0xdc0] ss:$20 sps:$4 sm:$0xff]  }
 0x269   :  { %11678 = vmatpush1.bf16.msra.mxu1 %v17298_v23  ;;  %v17354_v23 = vld [vmem:[%s25152_s3 + $0xdc4] ss:$20 sps:$4 sm:$0xff]  }
 0x26a   :  { %11679 = vmatprep.subr.bf16.mxu1 %v17306_v26  ;;  %v17355_v26 = vld [vmem:[%s25152_s3 + $0x1018] ss:$20 sps:$4 sm:$0xff]  }
 0x26b   :  { %11639 = vmatpush1.bf16.msra.mxu0 %v17301_v25  ;;  %v17357_v25 = vld [vmem:[%s25152_s3 + $0x101c] ss:$20 sps:$4 sm:$0xff]  }
 0x26c   :  { %11640 = vmatprep.subr.bf16.mxu0 %v17309_v34  ;;  %v17358_v34 = vld [vmem:[%s25152_s3 + $0x1298] ss:$20 sps:$4 sm:$0xff]  }
 0x26d   :  { %11680 = vmatpush1.bf16.msra.mxu1 %v17304_v27  ;;  %v17360_v27 = vld [vmem:[%s25152_s3 + $0x129c] ss:$20 sps:$4 sm:$0xff]  }
 0x26e   :  { %11681 = vmatprep.subr.bf16.mxu1 %v17312_v28  ;;  %v3945_v28 = vld [vmem:[%s25154_s4] sm:$0x1f] }
 0x26f   :  { %11641 = vmatpush2.bf16.msra.mxu0 %v17307_v36  ;;  %v17363_v36 = vld [vmem:[%s25152_s3 + $0xff4] ss:$20 sps:$4 sm:$0xff]  }
 0x270   :  { %11642 = vmatprep.subr.bf16.mxu0 %v17315_v44  ;;  %v20896_v44 = vpack.c.bf16 %v20378_v13, %v20378_v13  ;;  %v3950_v13 = vrot.slane %v3945_v28, %v20281_v47 }
 0x271   :  { %11682 = vmatpush2.bf16.msra.mxu1 %v17310_v31  ;;  %v20892_v31 = vpack.c.bf16 %v20373_v12, %v20373_v12  ;;  %v20908_v12 = vpack.c.bf16 %v20438_v32, %v20438_v32  ;;  %v17367_v32 = vld [vmem:[%s25152_s3 + $0xfc8] ss:$20 sps:$4 sm:$0xff]  }
 0x272   :  { %11683 = vmatprep.subr.bf16.mxu1 %v17318_v51  ;;  %v17366_v51 = vld [vmem:[%s25152_s3 + $0x1274] ss:$20 sps:$4 sm:$0xff]  }
 0x273   :  { %11643 = vmatpush2.bf16.msra.mxu0 %v17313_v45  ;;  %v17361_v45 = vld [vmem:[%s25152_s3 + $0xff0] ss:$20 sps:$4 sm:$0xff]  }
 0x274   :  { %11644 = vmatprep.subr.bf16.mxu0 %v17321_v55  ;;  %v17369_v55 = vld [vmem:[%s25152_s3 + $0xfcc] ss:$20 sps:$4 sm:$0xff]  }
 0x275   :  { %11684 = vmatpush2.bf16.msra.mxu1 %v17316_v48  ;;  %v17364_v48 = vld [vmem:[%s25152_s3 + $0x1270] ss:$20 sps:$4 sm:$0xff]  }
 0x276   :  { %11685 = vmatprep.subr.bf16.mxu1 %v17324_v59  ;;  %v3954_v59 = vrot.slane %v3945_v28, %v20284_v50  ;;  %v17391_v28 = vld [vmem:[%s25152_s3 + $0xf28] ss:$20 sps:$4 sm:$0xff]  }
 0x277   :  { %11645 = vmatpush2.bf16.msra.mxu0 %v17319_v33  ;;  %v17372_v33 = vld [vmem:[%s25152_s3 + $0x124c] ss:$20 sps:$4 sm:$0xff]  }
 0x278   :  { %11646 = vmatprep.subr.bf16.mxu0 %v17327_v5  ;;  %v17370_v5 = vld [vmem:[%s25152_s3 + $0x1248] ss:$20 sps:$4 sm:$0xff]  }
 0x279   :  { %11686 = vmatpush2.bf16.msra.mxu1 %v17322_v61 }
 0x27a   :  { %11687 = vmatprep.subr.bf16.mxu1 %v17330_v0 }
 0x27b   :  { %11647 = vmatpush2.bf16.msra.mxu0 %v17325_v62  ;;  %v17375_v62 = vld [vmem:[%s25152_s3 + $0xfa4] ss:$20 sps:$4 sm:$0xff]  }
 0x27c   :  { %11648 = vmatprep.subr.bf16.mxu0 %v17333_v4 }
 0x27d   :  { %11688 = vmatpush2.bf16.msra.mxu1 %v17328_v3 }
 0x27e   :  { %11689 = vmatprep.subr.bf16.mxu1 %v17336_v7  ;;  %v17378_v7 = vld [vmem:[%s25152_s3 + $0x1224] ss:$20 sps:$4 sm:$0xff]  }
 0x27f   :  { %11649 = vmatpush2.bf16.msra.mxu0 %v17331_v6  ;;  %v17373_v6 = vld [vmem:[%s25152_s3 + $0xfa0] ss:$20 sps:$4 sm:$0xff]  }
 0x280   :  { %11650 = vmatprep.subr.bf16.mxu0 %v17339_v9 }
 0x281   :  { %11690 = vmatpush2.bf16.msra.mxu1 %v17334_v8 }
 0x282   :  { %11691 = vmatprep.subr.bf16.mxu1 %v17342_v14 }
 0x283   :  { %11651 = vmatpush2.bf16.msra.mxu0 %v17337_v11 }
 0x284   :  { %11652 = vmatprep.subr.bf16.mxu0 %v17345_v16  ;;  %v17381_v16 = vld [vmem:[%s25152_s3 + $0xf7c] ss:$20 sps:$4 sm:$0xff]  }
 0x285   :  { %11692 = vmatpush2.bf16.msra.mxu1 %v17340_v15  ;;  %v17376_v15 = vld [vmem:[%s25152_s3 + $0x1220] ss:$20 sps:$4 sm:$0xff]  }
 0x286   :  { %11693 = vmatprep.subr.bf16.mxu1 %v17348_v19 }
 0x287   :  { %11653 = vmatpush2.bf16.msra.mxu0 %v17343_v18 }
 0x288   :  { %11654 = vmatprep.subr.bf16.mxu0 %v17351_v21  ;;  %v17379_v21 = vld [vmem:[%s25152_s3 + $0xf78] ss:$20 sps:$4 sm:$0xff]  }
 0x289   :  { %11694 = vmatpush2.bf16.msra.mxu1 %v17346_v20 }
 0x28a   :  { %11695 = vmatprep.subr.bf16.mxu1 %v17354_v23 }
 0x28b   :  { %11655 = vmatpush2.bf16.msra.mxu0 %v17349_v22  ;;  %v17384_v22 = vld [vmem:[%s25152_s3 + $0x11fc] ss:$20 sps:$4 sm:$0xff]  }
 0x28c   :  { %11706 = vmatprep.subr.bf16.mxu0 %v17357_v25  ;;  %v17387_v25 = vld [vmem:[%s25152_s3 + $0xf54] ss:$20 sps:$4 sm:$0xff]  }
 0x28d   :  { %11696 = vmatpush2.bf16.msra.mxu1 %v17352_v30  ;;  %v17382_v30 = vld [vmem:[%s25152_s3 + $0x11f8] ss:$20 sps:$4 sm:$0xff]  }
 0x28e   :  { %11657 = vmatmul.mubr.bf16.vlgmr.msra.gmra.mxu0 %v20892_v31  ;;  %11747 = vmatprep.subr.bf16.mxu1 %v17360_v27  ;;  %v17390_v27 = vld [vmem:[%s25152_s3 + $0x11d4] ss:$20 sps:$4 sm:$0xff]  }
 0x28f   :  { %11707 = vmatpush1.bf16.msra.mxu0 %v17355_v26  ;;  %11738 = vmatprep.mubr.bf16.mxu0 %v20331_v63  ;;  %v17385_v26 = vld [vmem:[%s25152_s3 + $0xf50] ss:$20 sps:$4 sm:$0xff]  }
 0x290   :  { %11698 = vmatmul.mubr.bf16.vlgmr.msra.gmra.mxu1 %v20896_v44  ;;  %11708 = vmatprep.subr.bf16.mxu0 %v17363_v36  ;;  %v17393_v36 = vld [vmem:[%s25152_s3 + $0xf2c] ss:$20 sps:$4 sm:$0xff]  }
 0x291   :  { %11748 = vmatpush1.bf16.msra.mxu1 %v17358_v34  ;;  %11779 = vmatprep.mubr.bf16.mxu1 %v20908_v12  ;;  %v17388_v34 = vld [vmem:[%s25152_s3 + $0x11d0] ss:$20 sps:$4 sm:$0xff]  }
 0x292   :  { %11749 = vmatprep.subr.bf16.mxu1 %v17366_v51  ;;  %v17394_v51 = vld [vmem:[%s25152_s3 + $0x11a8] ss:$20 sps:$4 sm:$0xff]  }
 0x293   :  { %v11494_v61 = vpop.f32.mrf.mxu0  ;;  %11709 = vmatpush1.bf16.msra.mxu0 %v17361_v45  ;;  %v11535_v3 = vpop.f32.mrf.mxu1  ;;  %v17396_v45 = vld [vmem:[%s25152_s3 + $0x11ac] ss:$20 sps:$4 sm:$0xff]  }
 0x294   :  { %v11495_v0 = vadd.f32 %v11494_v61, %v3950_v13  ;;  %11710 = vmatprep.subr.bf16.mxu0 %v17369_v55  ;;  %v17399_v13 = vld [vmem:[%s25152_s3 + $0xf04] ss:$20 sps:$4 sm:$0xff]   ;;  %v17408_v61 = vld [vmem:[%s25152_s3 + $0x13dc] ss:$20 sps:$4 sm:$0xff]  }
 0x295   :  { %v11496_v4 = vpop.f32.mrf.mxu0  ;;  %11750 = vmatpush1.bf16.msra.mxu1 %v17364_v48  ;;  %v11537_v11 = vpop.f32.mrf.mxu1  ;;  %v17397_v48 = vld [vmem:[%s25152_s3 + $0xf00] ss:$20 sps:$4 sm:$0xff]   ;;  %v17402_v55 = vld [vmem:[%s25152_s3 + $0x1184] ss:$20 sps:$4 sm:$0xff]  }
 0x296   :  { %v20938_v8 = vadd.f32 %v11535_v3, %v11495_v0  ;;  %v11497_v9 = vadd.f32 %v11496_v4, %v3954_v59  ;;  %11751 = vmatprep.subr.bf16.mxu1 %v17372_v33  ;;  %v17405_v33 = vld [vmem:[%s25152_s3 + $0x115c] ss:$20 sps:$4 sm:$0xff]   ;;  %v17403_v59 = vld [vmem:[%s25152_s3 + $0x1158] ss:$20 sps:$4 sm:$0xff]   ;;  %v17414_v3 = vld [vmem:[%s25152_s3 + $0x13b4] ss:$20 sps:$4 sm:$0xff]  }
 0x297   :  { %v11498_v14 = vpop.f32.mrf.mxu0  ;;  %11711 = vmatpush1.bf16.msra.mxu0 %v17367_v32  ;;  %v11539_v19 = vpop.f32.mrf.mxu1  ;;  %v17400_v32 = vld [vmem:[%s25152_s3 + $0x1180] ss:$20 sps:$4 sm:$0xff]   ;;  %v17409_v0 = vld [vmem:[%s25152_s3 + $0x1130] ss:$20 sps:$4 sm:$0xff]  }
 0x298   :  { %v20946_v18 = vadd.f32 %v11537_v11, %v11497_v9  ;;  %11712 = vmatprep.subr.bf16.mxu0 %v17375_v62  ;;  %v17411_v62 = vld [vmem:[%s25152_s3 + $0x1134] ss:$20 sps:$4 sm:$0xff]   ;;  %v17412_v4 = vld [vmem:[%s25152_s3 + $0x13b0] ss:$20 sps:$4 sm:$0xff]   ;;  %v17420_v9 = vld [vmem:[%s25152_s3 + $0x138c] ss:$20 sps:$4 sm:$0xff]  }
 0x299   :  { %v11499_v20 = vpop.f32.mrf.mxu0  ;;  %11752 = vmatpush1.bf16.msra.mxu1 %v17370_v5  ;;  %v11540_v23 = vpop.f32.mrf.mxu1  ;;  %v17406_v5 = vld [vmem:[%s25152_s3 + $0x13d8] ss:$20 sps:$4 sm:$0xff]   ;;  %v17418_v11 = vld [vmem:[%s25152_s3 + $0x1388] ss:$20 sps:$4 sm:$0xff]   ;;  %v17424_v19 = vld [vmem:[%s25152_s3 + $0x1360] ss:$20 sps:$4 sm:$0xff]  }
 0x29a   :  { %11753 = vmatprep.subr.bf16.mxu1 %v17378_v7  ;;  %v17415_v7 = vld [vmem:[%s25152_s3 + $0x1108] ss:$20 sps:$4 sm:$0xff]   ;;  %v17423_v14 = vld [vmem:[%s25152_s3 + $0x10e4] ss:$20 sps:$4 sm:$0xff]   ;;  %v16655_v23 = vpop.permute.xlu0 %16654 }
 0x29b   :  { %11713 = vmatpush1.bf16.msra.mxu0 %v17373_v6  ;;  %v17417_v6 = vld [vmem:[%s25152_s3 + $0x110c] ss:$20 sps:$4 sm:$0xff]   ;;  %v17429_v20 = vld [vmem:[%s25152_s3 + $0x10bc] ss:$20 sps:$4 sm:$0xff]  }
 0x29c   :  { %11714 = vmatprep.subr.bf16.mxu0 %v17381_v16  ;;  %v17426_v16 = vld [vmem:[%s25152_s3 + $0x1364] ss:$20 sps:$4 sm:$0xff]  }
 0x29d   :  { %11754 = vmatpush1.bf16.msra.mxu1 %v17376_v15  ;;  %v17421_v15 = vld [vmem:[%s25152_s3 + $0x10e0] ss:$20 sps:$4 sm:$0xff]  }
 0x29e   :  { %11755 = vmatprep.subr.bf16.mxu1 %v17384_v22  ;;  %v17432_v22 = vld [vmem:[%s25152_s3 + $0x133c] ss:$20 sps:$4 sm:$0xff]  }
 0x29f   :  { %11715 = vmatpush1.bf16.msra.mxu0 %v17379_v21  ;;  %v17427_v21 = vld [vmem:[%s25152_s3 + $0x10b8] ss:$20 sps:$4 sm:$0xff]  }
 0x2a0   :  { %11716 = vmatprep.subr.bf16.mxu0 %v17387_v25  ;;  %v17435_v25 = vld [vmem:[%s25152_s3 + $0x1094] ss:$20 sps:$4 sm:$0xff]  }
 0x2a1   :  { %11756 = vmatpush1.bf16.msra.mxu1 %v17382_v30  ;;  %v17430_v30 = vld [vmem:[%s25152_s3 + $0x1338] ss:$20 sps:$4 sm:$0xff]  }
 0x2a2   :  { %11757 = vmatprep.subr.bf16.mxu1 %v17390_v27  ;;  %v17438_v27 = vld [vmem:[%s25152_s3 + $0x1314] ss:$20 sps:$4 sm:$0xff]  }
 0x2a3   :  { %11717 = vmatpush1.bf16.msra.mxu0 %v17385_v26  ;;  %v17433_v26 = vld [vmem:[%s25152_s3 + $0x1090] ss:$20 sps:$4 sm:$0xff]  }
 0x2a4   :  { %11718 = vmatprep.subr.bf16.mxu0 %v17393_v36  ;;  %v17441_v36 = vld [vmem:[%s25152_s3 + $0x106c] ss:$20 sps:$4 sm:$0xff]  }
 0x2a5   :  { %11758 = vmatpush1.bf16.msra.mxu1 %v17388_v34  ;;  %v17436_v34 = vld [vmem:[%s25152_s3 + $0x1310] ss:$20 sps:$4 sm:$0xff]  }
 0x2a6   :  { %11759 = vmatprep.subr.bf16.mxu1 %v17396_v45  ;;  %v17439_v45 = vld [vmem:[%s25152_s3 + $0x1068] ss:$20 sps:$4 sm:$0xff]  }
 0x2a7   :  { %11719 = vmatpush1.bf16.msra.mxu0 %v17391_v28  ;;  %v16665_v28 = vpop.permute.xlu0 %16664 }
 0x2a8   :  { %11720 = vmatprep.subr.bf16.mxu0 %v17399_v13  ;;  %v16657_v13 = vunpack.i.h.bf16 %v16655_v23 }
 0x2a9   :  { %11760 = vmatpush1.bf16.msra.mxu1 %v17394_v51  ;;  %v17444_v51 = vld [vmem:[%s25152_s3 + $0x12ec] ss:$20 sps:$4 sm:$0xff]  }
 0x2aa   :  { %11761 = vmatprep.subr.bf16.mxu1 %v17402_v55  ;;  %v17442_v55 = vld [vmem:[%s25152_s3 + $0x12e8] ss:$20 sps:$4 sm:$0xff]  }
 0x2ab   :  { %11721 = vmatpush1.bf16.msra.mxu0 %v17397_v48  ;;  %v16656_v48 = vunpack.i.l.bf16 %v16655_v23  ;;  %v17465_v23 = vld [vmem:[%s25152_s3 + $0x14cc] ss:$20 sps:$4 sm:$0xff]  }
 0x2ac   :  { %11722 = vmatprep.subr.bf16.mxu0 %v17405_v33  ;;  %v16667_v33 = vunpack.i.h.bf16 %v16665_v28 }
 0x2ad   :  { %11762 = vmatpush1.bf16.msra.mxu1 %v17400_v32  ;;  %v17447_v32 = vld [vmem:[%s25152_s3 + $0x1044] ss:$20 sps:$4 sm:$0xff]  }
 0x2ae   :  { %11763 = vmatprep.subr.bf16.mxu1 %v17408_v61  ;;  %v17445_v61 = vld [vmem:[%s25152_s3 + $0x1040] ss:$20 sps:$4 sm:$0xff]  }
 0x2af   :  { %11723 = vmatpush2.bf16.msra.mxu0 %v17403_v59  ;;  %v16666_v59 = vunpack.i.l.bf16 %v16665_v28  ;;  %v17472_v28 = vld [vmem:[%s25152_s3 + $0x1720] ss:$20 sps:$4 sm:$0xff]  }
 0x2b0   :  { %11724 = vmatprep.subr.bf16.mxu0 %v17411_v62  ;;  %v2111_v62 = vsel %vm2056_vm3, %v16656_v48, %v16657_v13  ;;  %v17480_v13 = vld [vmem:[%s25152_s3 + $0x16fc] ss:$20 sps:$4 sm:$0xff]   ;;  %v17478_v48 = vld [vmem:[%s25152_s3 + $0x16f8] ss:$20 sps:$4 sm:$0xff]  }
 0x2b1   :  { %11764 = vmatpush2.bf16.msra.mxu1 %v17406_v5  ;;  %v17450_v5 = vld [vmem:[%s25152_s3 + $0x12c4] ss:$20 sps:$4 sm:$0xff]  }
 0x2b2   :  { %11765 = vmatprep.subr.bf16.mxu1 %v17414_v3  ;;  %v17453_v3 = vld [vmem:[%s25152_s3 + $0x151c] ss:$20 sps:$4 sm:$0xff]  }
 0x2b3   :  { %11725 = vmatpush2.bf16.msra.mxu0 %v17409_v0  ;;  %v17448_v0 = vld [vmem:[%s25152_s3 + $0x12c0] ss:$20 sps:$4 sm:$0xff]  }
 0x2b4   :  { %11726 = vmatprep.subr.bf16.mxu0 %v17417_v6  ;;  %v17451_v6 = vld [vmem:[%s25152_s3 + $0x1518] ss:$20 sps:$4 sm:$0xff]  }
 0x2b5   :  { %11766 = vmatpush2.bf16.msra.mxu1 %v17412_v4  ;;  %v2125_v4 = vsel %vm2056_vm3, %v16666_v59, %v16667_v33  ;;  %v17486_v33 = vld [vmem:[%s25152_s3 + $0x16d4] ss:$20 sps:$4 sm:$0xff]   ;;  %v17484_v59 = vld [vmem:[%s25152_s3 + $0x16d0] ss:$20 sps:$4 sm:$0xff]  }
 0x2b6   :  { %11767 = vmatprep.subr.bf16.mxu1 %v17420_v9  ;;  %v17456_v9 = vld [vmem:[%s25152_s3 + $0x179c] ss:$20 sps:$4 sm:$0xff]  }
 0x2b7   :  { %11727 = vmatpush2.bf16.msra.mxu0 %v17415_v7  ;;  %v2150_v7 = vrot.slane %v2111_v62, 2  ;;  %v17492_v62 = vld [vmem:[%s25152_s3 + $0x16ac] ss:$20 sps:$4 sm:$0xff]  }
 0x2b8   :  { %11728 = vmatprep.subr.bf16.mxu0 %v17423_v14  ;;  %v17454_v14 = vld [vmem:[%s25152_s3 + $0x1798] ss:$20 sps:$4 sm:$0xff]  }
 0x2b9   :  { %11768 = vmatpush2.bf16.msra.mxu1 %v17418_v11  ;;  %v2152_v11 = vrot.slane %v2125_v4, 2  ;;  %v17493_v4 = vld [vmem:[%s25152_s3 + $0x1400] ss:$20 sps:$4 sm:$0xff]  }
 0x2ba   :  { %11769 = vmatprep.subr.bf16.mxu1 %v17426_v16  ;;  %v17462_v16 = vld [vmem:[%s25152_s3 + $0x1774] ss:$20 sps:$4 sm:$0xff]  }
 0x2bb   :  { %11729 = vmatpush2.bf16.msra.mxu0 %v17421_v15  ;;  %v17459_v15 = vld [vmem:[%s25152_s3 + $0x14f4] ss:$20 sps:$4 sm:$0xff]  }
 0x2bc   :  { %11730 = vmatprep.subr.bf16.mxu0 %v17429_v20  ;;  %v21114_v20 = vpack.c.bf16 %v20441_v39, %v20441_v39  ;;  %v17460_v39 = vld [vmem:[%s25152_s3 + $0x1770] ss:$20 sps:$4 sm:$0xff]  }
 0x2bd   :  { %11770 = vmatpush2.bf16.msra.mxu1 %v17424_v19  ;;  %v21109_v19 = vpack.c.bf16 %v2150_v7, %v2150_v7  ;;  %v17496_v7 = vld [vmem:[%s25152_s3 + $0x1680] ss:$20 sps:$4 sm:$0xff]  }
 0x2be   :  { %11771 = vmatprep.subr.bf16.mxu1 %v17432_v22  ;;  %v17457_v22 = vld [vmem:[%s25152_s3 + $0x14f0] ss:$20 sps:$4 sm:$0xff]  }
 0x2bf   :  { %11731 = vmatpush2.bf16.msra.mxu0 %v17427_v21  ;;  %v21116_v21 = vpack.c.bf16 %v2152_v11, %v2152_v11  ;;  %v17499_v11 = vld [vmem:[%s25152_s3 + $0x1658] ss:$20 sps:$4 sm:$0xff]  }
 0x2c0   :  { %11732 = vmatprep.subr.bf16.mxu0 %v17435_v25  ;;  %v17463_v25 = vld [vmem:[%s25152_s3 + $0x14c8] ss:$20 sps:$4 sm:$0xff]  }
 0x2c1   :  { %11772 = vmatpush2.bf16.msra.mxu1 %v17430_v30  ;;  %v17468_v30 = vld [vmem:[%s25152_s3 + $0x174c] ss:$20 sps:$4 sm:$0xff]  }
 0x2c2   :  { %11773 = vmatprep.subr.bf16.mxu1 %v17438_v27  ;;  %v17471_v27 = vld [vmem:[%s25152_s3 + $0x14a4] ss:$20 sps:$4 sm:$0xff]  }
 0x2c3   :  { %11733 = vmatpush2.bf16.msra.mxu0 %v17433_v26  ;;  %v17466_v26 = vld [vmem:[%s25152_s3 + $0x1748] ss:$20 sps:$4 sm:$0xff]  }
 0x2c4   :  { %11734 = vmatprep.subr.bf16.mxu0 %v17441_v36  ;;  %v17474_v36 = vld [vmem:[%s25152_s3 + $0x1724] ss:$20 sps:$4 sm:$0xff]  }
 0x2c5   :  { %11774 = vmatpush2.bf16.msra.mxu1 %v17436_v34  ;;  %v17469_v34 = vld [vmem:[%s25152_s3 + $0x14a0] ss:$20 sps:$4 sm:$0xff]  }
 0x2c6   :  { %11775 = vmatprep.subr.bf16.mxu1 %v17444_v51  ;;  %v17475_v51 = vld [vmem:[%s25152_s3 + $0x1478] ss:$20 sps:$4 sm:$0xff]  }
 0x2c7   :  { %11735 = vmatpush2.bf16.msra.mxu0 %v17439_v45  ;;  %v17477_v45 = vld [vmem:[%s25152_s3 + $0x147c] ss:$20 sps:$4 sm:$0xff]  }
 0x2c8   :  { %11736 = vmatprep.subr.bf16.mxu0 %v17447_v32  ;;  %v17481_v32 = vld [vmem:[%s25152_s3 + $0x1450] ss:$20 sps:$4 sm:$0xff]  }
 0x2c9   :  { %11776 = vmatpush2.bf16.msra.mxu1 %v17442_v55  ;;  %v17483_v55 = vld [vmem:[%s25152_s3 + $0x1454] ss:$20 sps:$4 sm:$0xff]  }
 0x2ca   :  { %11777 = vmatprep.subr.bf16.mxu1 %v17450_v5  ;;  %v17487_v5 = vld [vmem:[%s25152_s3 + $0x1428] ss:$20 sps:$4 sm:$0xff]  }
 0x2cb   :  { %11737 = vmatpush2.bf16.msra.mxu0 %v17445_v61  ;;  %v17489_v61 = vld [vmem:[%s25152_s3 + $0x142c] ss:$20 sps:$4 sm:$0xff]  }
 0x2cc   :  { %11788 = vmatprep.subr.bf16.mxu0 %v17453_v3  ;;  %v17495_v3 = vld [vmem:[%s25152_s3 + $0x1404] ss:$20 sps:$4 sm:$0xff]  }
 0x2cd   :  { %11778 = vmatpush2.bf16.msra.mxu1 %v17448_v0  ;;  %v17490_v0 = vld [vmem:[%s25152_s3 + $0x16a8] ss:$20 sps:$4 sm:$0xff]  }
 0x2ce   :  { %11739 = vmatmul.mubr.bf16.vlgmr.msra.gmra.mxu0 %v20366_v10  ;;  %11829 = vmatprep.subr.bf16.mxu1 %v17456_v9  ;;  %v17501_v9 = vld [vmem:[%s25152_s3 + $0x165c] ss:$20 sps:$4 sm:$0xff]  }
 0x2cf   :  { %11789 = vmatpush1.bf16.msra.mxu0 %v17451_v6  ;;  %11820 = vmatprep.mubr.bf16.mxu0 %v21109_v19  ;;  %v17498_v6 = vld [vmem:[%s25152_s3 + $0x1684] ss:$20 sps:$4 sm:$0xff]  }
 0x2d0   :  { %11780 = vmatmul.mubr.bf16.vlgmr.msra.gmra.mxu1 %v21114_v20  ;;  %11790 = vmatprep.subr.bf16.mxu0 %v17459_v15  ;;  %v17502_v15 = vld [vmem:[%s25152_s3 + $0x18d8] ss:$20 sps:$4 sm:$0xff]  }
 0x2d1   :  { %11830 = vmatpush1.bf16.msra.mxu1 %v17454_v14  ;;  %11861 = vmatprep.mubr.bf16.mxu1 %v21116_v21  ;;  %v17504_v14 = vld [vmem:[%s25152_s3 + $0x18dc] ss:$20 sps:$4 sm:$0xff]  }
 0x2d2   :  { %11831 = vmatprep.subr.bf16.mxu1 %v17462_v16  ;;  %v17507_v16 = vld [vmem:[%s25152_s3 + $0x1634] ss:$20 sps:$4 sm:$0xff]  }
 0x2d3   :  { %11791 = vmatpush1.bf16.msra.mxu0 %v17457_v22  ;;  %v17505_v22 = vld [vmem:[%s25152_s3 + $0x1630] ss:$20 sps:$4 sm:$0xff]  }
 0x2d4   :  { %11792 = vmatprep.subr.bf16.mxu0 %v17465_v23  ;;  %v17510_v23 = vld [vmem:[%s25152_s3 + $0x18b4] ss:$20 sps:$4 sm:$0xff]  }
 0x2d5   :  { %11832 = vmatpush1.bf16.msra.mxu1 %v17460_v39  ;;  %v17508_v39 = vld [vmem:[%s25152_s3 + $0x18b0] ss:$20 sps:$4 sm:$0xff]  }
 0x2d6   :  { %11833 = vmatprep.subr.bf16.mxu1 %v17468_v30  ;;  %v17513_v30 = vld [vmem:[%s25152_s3 + $0x160c] ss:$20 sps:$4 sm:$0xff]  }
 0x2d7   :  { %11793 = vmatpush1.bf16.msra.mxu0 %v17463_v25  ;;  %v17511_v25 = vld [vmem:[%s25152_s3 + $0x1608] ss:$20 sps:$4 sm:$0xff]  }
 0x2d8   :  { %11794 = vmatprep.subr.bf16.mxu0 %v17471_v27  ;;  %v17514_v27 = vld [vmem:[%s25152_s3 + $0x1888] ss:$20 sps:$4 sm:$0xff]  }
 0x2d9   :  { %11834 = vmatpush1.bf16.msra.mxu1 %v17466_v26  ;;  %v17516_v26 = vld [vmem:[%s25152_s3 + $0x188c] ss:$20 sps:$4 sm:$0xff]  }
 0x2da   :  { %11835 = vmatprep.subr.bf16.mxu1 %v17474_v36  ;;  %v17517_v36 = vld [vmem:[%s25152_s3 + $0x15e0] ss:$20 sps:$4 sm:$0xff]  }
 0x2db   :  { %11795 = vmatpush1.bf16.msra.mxu0 %v17469_v34  ;;  %v17519_v34 = vld [vmem:[%s25152_s3 + $0x15e4] ss:$20 sps:$4 sm:$0xff]  }
 0x2dc   :  { %11796 = vmatprep.subr.bf16.mxu0 %v17477_v45  ;;  %v17520_v45 = vld [vmem:[%s25152_s3 + $0x1860] ss:$20 sps:$4 sm:$0xff]  }
 0x2dd   :  { %11836 = vmatpush1.bf16.msra.mxu1 %v17472_v28  ;;  %v17522_v28 = vld [vmem:[%s25152_s3 + $0x1864] ss:$20 sps:$4 sm:$0xff]  }
 0x2de   :  { %11837 = vmatprep.subr.bf16.mxu1 %v17480_v13  ;;  %v17523_v13 = vld [vmem:[%s25152_s3 + $0x15b8] ss:$20 sps:$4 sm:$0xff]  }
 0x2df   :  { %11797 = vmatpush1.bf16.msra.mxu0 %v17475_v51  ;;  %v17525_v51 = vld [vmem:[%s25152_s3 + $0x15bc] ss:$20 sps:$4 sm:$0xff]  }
 0x2e0   :  { %11798 = vmatprep.subr.bf16.mxu0 %v17483_v55  ;;  %v16660_v55 = vpop.permute.xlu1 %16659 }
 0x2e1   :  { %11838 = vmatpush1.bf16.msra.mxu1 %v17478_v48  ;;  %v17528_v48 = vld [vmem:[%s25152_s3 + $0x183c] ss:$20 sps:$4 sm:$0xff]  }
 0x2e2   :  { %11839 = vmatprep.subr.bf16.mxu1 %v17486_v33  ;;  %v17531_v33 = vld [vmem:[%s25152_s3 + $0x1594] ss:$20 sps:$4 sm:$0xff]  }
 0x2e3   :  { %11799 = vmatpush1.bf16.msra.mxu0 %v17481_v32  ;;  %v17526_v32 = vld [vmem:[%s25152_s3 + $0x1838] ss:$20 sps:$4 sm:$0xff]  }
 0x2e4   :  { %11800 = vmatprep.subr.bf16.mxu0 %v17489_v61  ;;  %v17534_v61 = vld [vmem:[%s25152_s3 + $0x1814] ss:$20 sps:$4 sm:$0xff]  }
 0x2e5   :  { %11840 = vmatpush1.bf16.msra.mxu1 %v17484_v59  ;;  %v17529_v59 = vld [vmem:[%s25152_s3 + $0x1590] ss:$20 sps:$4 sm:$0xff]  }
 0x2e6   :  { %11841 = vmatprep.subr.bf16.mxu1 %v17492_v62  ;;  %v17537_v62 = vld [vmem:[%s25152_s3 + $0x156c] ss:$20 sps:$4 sm:$0xff]  }
 0x2e7   :  { %11801 = vmatpush1.bf16.msra.mxu0 %v17487_v5  ;;  %v17532_v5 = vld [vmem:[%s25152_s3 + $0x1810] ss:$20 sps:$4 sm:$0xff]  }
 0x2e8   :  { %11802 = vmatprep.subr.bf16.mxu0 %v17495_v3  ;;  %v16662_v3 = vunpack.i.h.bf16 %v16660_v55 }
 0x2e9   :  { %11842 = vmatpush1.bf16.msra.mxu1 %v17490_v0  ;;  %v16670_v0 = vpop.permute.xlu1 %16669 }
 0x2ea   :  { %11843 = vmatprep.subr.bf16.mxu1 %v17498_v6  ;;  %v17535_v6 = vld [vmem:[%s25152_s3 + $0x1568] ss:$20 sps:$4 sm:$0xff]  }
 0x2eb   :  { %11803 = vmatpush1.bf16.msra.mxu0 %v17493_v4  ;;  %v16661_v4 = vunpack.i.l.bf16 %v16660_v55 }
 0x2ec   :  { %11804 = vmatprep.subr.bf16.mxu0 %v17501_v9  ;;  %v16672_v9 = vunpack.i.h.bf16 %v16670_v0 }
 0x2ed   :  { %11844 = vmatpush1.bf16.msra.mxu1 %v17496_v7  ;;  %v17540_v7 = vld [vmem:[%s25152_s3 + $0x17ec] ss:$20 sps:$4 sm:$0xff]  }
 0x2ee   :  { %11845 = vmatprep.subr.bf16.mxu1 %v17504_v14  ;;  %v17538_v14 = vld [vmem:[%s25152_s3 + $0x17e8] ss:$20 sps:$4 sm:$0xff]  }
 0x2ef   :  { %11805 = vmatpush2.bf16.msra.mxu0 %v17499_v11  ;;  %v16671_v11 = vunpack.i.l.bf16 %v16670_v0 }
 0x2f0   :  { %11806 = vmatprep.subr.bf16.mxu0 %v17507_v16  ;;  %v2104_v16 = vsel %vm2056_vm3, %v16661_v4, %v16662_v3  ;;  %v17556_v4 = vld [vmem:[%s25152_s3 + $0x1c70] ss:$20 sps:$4 sm:$0xff]  }
 0x2f1   :  { %11846 = vmatpush2.bf16.msra.mxu1 %v17502_v15  ;;  %v17543_v15 = vld [vmem:[%s25152_s3 + $0x1544] ss:$20 sps:$4 sm:$0xff]  }
 0x2f2   :  { %11847 = vmatprep.subr.bf16.mxu1 %v17510_v23  ;;  %v17546_v23 = vld [vmem:[%s25152_s3 + $0x17c4] ss:$20 sps:$4 sm:$0xff]  }
 0x2f3   :  { %11807 = vmatpush2.bf16.msra.mxu0 %v17505_v22  ;;  %v17541_v22 = vld [vmem:[%s25152_s3 + $0x1540] ss:$20 sps:$4 sm:$0xff]  }
 0x2f4   :  { %11808 = vmatprep.subr.bf16.mxu0 %v17513_v30  ;;  %v17544_v30 = vld [vmem:[%s25152_s3 + $0x17c0] ss:$20 sps:$4 sm:$0xff]  }
 0x2f5   :  { %11848 = vmatpush2.bf16.msra.mxu1 %v17508_v39  ;;  %v2118_v39 = vsel %vm2056_vm3, %v16671_v11, %v16672_v9 }
 0x2f6   :  { %11849 = vmatprep.subr.bf16.mxu1 %v17516_v26  ;;  %v2149_v26 = vrot.slane %v2104_v16, 2  ;;  %v17562_v16 = vld [vmem:[%s25152_s3 + $0x1c48] ss:$20 sps:$4 sm:$0xff]  }
 0x2f7   :  { %11809 = vmatpush2.bf16.msra.mxu0 %v17511_v25  ;;  %v17549_v25 = vld [vmem:[%s25152_s3 + $0x1a1c] ss:$20 sps:$4 sm:$0xff]  }
 0x2f8   :  { %11810 = vmatprep.subr.bf16.mxu0 %v17519_v34  ;;  %v2154_v34 = vrot.slane %v20392_v17, 2  ;;  %v17558_v17 = vld [vmem:[%s25152_s3 + $0x1c74] ss:$20 sps:$4 sm:$0xff]  }
 0x2f9   :  { %11850 = vmatpush2.bf16.msra.mxu1 %v17514_v27  ;;  %v17547_v27 = vld [vmem:[%s25152_s3 + $0x1a18] ss:$20 sps:$4 sm:$0xff]  }
 0x2fa   :  { %11851 = vmatprep.subr.bf16.mxu1 %v17522_v28  ;;  %v2151_v28 = vrot.slane %v2118_v39, 2  ;;  %v21319_v55 = vpack.c.bf16 %v2154_v34, %v2154_v34  ;;  %v17565_v39 = vld [vmem:[%s25152_s3 + $0x19a0] ss:$20 sps:$4 sm:$0xff]   ;;  %v17576_v34 = vld [vmem:[%s25152_s3 + $0x1bfc] ss:$20 sps:$4 sm:$0xff]  }
 0x2fb   :  { %11811 = vmatpush2.bf16.msra.mxu0 %v17517_v36  ;;  %v17552_v36 = vld [vmem:[%s25152_s3 + $0x1c9c] ss:$20 sps:$4 sm:$0xff]  }
 0x2fc   :  { %11812 = vmatprep.subr.bf16.mxu0 %v17525_v51  ;;  %v2156_v51 = vrot.slane %v20426_v35, 2 }
 0x2fd   :  { %11852 = vmatpush2.bf16.msra.mxu1 %v17520_v45  ;;  %v17550_v45 = vld [vmem:[%s25152_s3 + $0x1c98] ss:$20 sps:$4 sm:$0xff]  }
 0x2fe   :  { %11853 = vmatprep.subr.bf16.mxu1 %v17528_v48  ;;  %v21314_v48 = vpack.c.bf16 %v2149_v26, %v2149_v26  ;;  %v17573_v26 = vld [vmem:[%s25152_s3 + $0x197c] ss:$20 sps:$4 sm:$0xff]  }
 0x2ff   :  { %11813 = vmatpush2.bf16.msra.mxu0 %v17523_v13  ;;  %v17555_v13 = vld [vmem:[%s25152_s3 + $0x19f4] ss:$20 sps:$4 sm:$0xff]  }
 0x300   :  { %11814 = vmatprep.subr.bf16.mxu0 %v17531_v33 }
 0x301   :  { %11854 = vmatpush2.bf16.msra.mxu1 %v17526_v32  ;;  %v21321_v32 = vpack.c.bf16 %v2151_v28, %v2151_v28  ;;  %v17579_v28 = vld [vmem:[%s25152_s3 + $0x1954] ss:$20 sps:$4 sm:$0xff]  }
 0x302   :  { %11855 = vmatprep.subr.bf16.mxu1 %v17534_v61  ;;  %v17553_v61 = vld [vmem:[%s25152_s3 + $0x19f0] ss:$20 sps:$4 sm:$0xff]  }
 0x303   :  { %11815 = vmatpush2.bf16.msra.mxu0 %v17529_v59  ;;  %v21326_v59 = vpack.c.bf16 %v2156_v51, %v2156_v51  ;;  %v17582_v51 = vld [vmem:[%s25152_s3 + $0x1bd4] ss:$20 sps:$4 sm:$0xff]  }
 0x304   :  { %11816 = vmatprep.subr.bf16.mxu0 %v17537_v62 }
 0x305   :  { %11856 = vmatpush2.bf16.msra.mxu1 %v17532_v5  ;;  %v17561_v5 = vld [vmem:[%s25152_s3 + $0x19cc] ss:$20 sps:$4 sm:$0xff]  }
 0x306   :  { %11857 = vmatprep.subr.bf16.mxu1 %v17540_v7 }
 0x307   :  { %11817 = vmatpush2.bf16.msra.mxu0 %v17535_v6  ;;  %v17564_v6 = vld [vmem:[%s25152_s3 + $0x1c4c] ss:$20 sps:$4 sm:$0xff]  }
 0x308   :  { %11818 = vmatprep.subr.bf16.mxu0 %v17543_v15 }
 0x309   :  { %11858 = vmatpush2.bf16.msra.mxu1 %v17538_v14 }
 0x30a   :  { %11859 = vmatprep.subr.bf16.mxu1 %v17546_v23 }
 0x30b   :  { %11819 = vmatpush2.bf16.msra.mxu0 %v17541_v22  ;;  %v17567_v22 = vld [vmem:[%s25152_s3 + $0x19a4] ss:$20 sps:$4 sm:$0xff]  }
 0x30c   :  { %11870 = vmatprep.subr.bf16.mxu0 %v17549_v25  ;;  %v17568_v25 = vld [vmem:[%s25152_s3 + $0x1c20] ss:$20 sps:$4 sm:$0xff]  }
 0x30d   :  { %11860 = vmatpush2.bf16.msra.mxu1 %v17544_v30  ;;  %v17570_v30 = vld [vmem:[%s25152_s3 + $0x1c24] ss:$20 sps:$4 sm:$0xff]  }
 0x30e   :  { %11821 = vmatmul.mubr.bf16.vlgmr.msra.gmra.mxu0 %v21314_v48  ;;  %v11576_v33 = vpop.f32.mrf.mxu0  ;;  %11911 = vmatprep.subr.bf16.mxu1 %v17552_v36  ;;  %v17574_v36 = vld [vmem:[%s25152_s3 + $0x1bf8] ss:$20 sps:$4 sm:$0xff]  }
 0x30f   :  { %v11577_v35 = vadd.f32 %v11576_v33, %v20938_v8  ;;  %11871 = vmatpush1.bf16.msra.mxu0 %v17547_v27  ;;  %11902 = vmatprep.mubr.bf16.mxu0 %v21319_v55  ;;  %v17571_v27 = vld [vmem:[%s25152_s3 + $0x1978] ss:$20 sps:$4 sm:$0xff]   ;;  %v17583_v33 = vld [vmem:[%s25152_s3 + $0x1928] ss:$20 sps:$4 sm:$0xff]  }
 0x310   :  { %11862 = vmatmul.mubr.bf16.vlgmr.msra.gmra.mxu1 %v21321_v32  ;;  %v11578_v62 = vpop.f32.mrf.mxu0  ;;  %v11617_v0 = vpop.f32.mrf.mxu1  ;;  %11872 = vmatprep.subr.bf16.mxu0 %v17555_v13  ;;  %v17580_v13 = vld [vmem:[%s25152_s3 + $0x1bd0] ss:$20 sps:$4 sm:$0xff]  }
 0x311   :  { %v11579_v8 = vadd.f32 %v11578_v62, %v20946_v18  ;;  %v21336_v3 = vadd.f32 %v11617_v0, %v11577_v35  ;;  %11912 = vmatpush1.bf16.msra.mxu1 %v17550_v45  ;;  %11943 = vmatprep.mubr.bf16.mxu1 %v21326_v59  ;;  %v17559_v18 = vld [vmem:[%s25152_s3 + $0x19c8] ss:$20 sps:$4 sm:$0xff]   ;;  %v17577_v45 = vld [vmem:[%s25152_s3 + $0x1950] ss:$20 sps:$4 sm:$0xff]   ;;  %v17588_v35 = vld [vmem:[%s25152_s3 + $0x1bac] ss:$20 sps:$4 sm:$0xff]  }
 0x312   :  { %v11580_v7 = vpop.f32.mrf.mxu0  ;;  %v11619_v9 = vpop.f32.mrf.mxu1  ;;  %11913 = vmatprep.subr.bf16.mxu1 %v17558_v17  ;;  %v17585_v17 = vld [vmem:[%s25152_s3 + $0x192c] ss:$20 sps:$4 sm:$0xff]   ;;  %v17594_v0 = vld [vmem:[%s25152_s3 + $0x1b84] ss:$20 sps:$4 sm:$0xff]  }
 0x313   :  { %v21345_v11 = vadd.f32 %v11619_v9, %v11579_v8  ;;  %11873 = vmatpush1.bf16.msra.mxu0 %v17553_v61  ;;  %v17586_v61 = vld [vmem:[%s25152_s3 + $0x1ba8] ss:$20 sps:$4 sm:$0xff]   ;;  %v17589_v62 = vld [vmem:[%s25152_s3 + $0x1900] ss:$20 sps:$4 sm:$0xff]   ;;  %v17598_v9 = vld [vmem:[%s25152_s3 + $0x1dd8] ss:$20 sps:$4 sm:$0xff]  }
 0x314   :  { %v11581_v14 = vpop.f32.mrf.mxu0  ;;  %v11621_v15 = vpop.f32.mrf.mxu1  ;;  %11874 = vmatprep.subr.bf16.mxu0 %v17561_v5  ;;  %v17591_v5 = vld [vmem:[%s25152_s3 + $0x1904] ss:$20 sps:$4 sm:$0xff]   ;;  %v17592_v8 = vld [vmem:[%s25152_s3 + $0x1b80] ss:$20 sps:$4 sm:$0xff]   ;;  %v17600_v7 = vld [vmem:[%s25152_s3 + $0x1ddc] ss:$20 sps:$4 sm:$0xff]  }
 0x315   :  { %11914 = vmatpush1.bf16.msra.mxu1 %v17556_v4  ;;  %v17597_v4 = vld [vmem:[%s25152_s3 + $0x1b5c] ss:$20 sps:$4 sm:$0xff]   ;;  %v2153_v14 = vrot.slane %v20409_v29, 2  ;;  %v2157_v15 = vrot.slane %v20476_v58, 2 }
 0x316   :  { %v11622_v23 = vpop.f32.mrf.mxu1  ;;  %11915 = vmatprep.subr.bf16.mxu1 %v17564_v6  ;;  %v17595_v6 = vld [vmem:[%s25152_s3 + $0x1b58] ss:$20 sps:$4 sm:$0xff]  }
 0x317   :  { %11875 = vmatpush1.bf16.msra.mxu0 %v17559_v18  ;;  %v17603_v18 = vld [vmem:[%s25152_s3 + $0x1b34] ss:$20 sps:$4 sm:$0xff]  }
 0x318   :  { %11876 = vmatprep.subr.bf16.mxu0 %v17567_v22  ;;  %v17601_v22 = vld [vmem:[%s25152_s3 + $0x1b30] ss:$20 sps:$4 sm:$0xff]   ;;  %v17606_v23 = vld [vmem:[%s25152_s3 + $0x1db4] ss:$20 sps:$4 sm:$0xff]  }
 0x319   :  { %11916 = vmatpush1.bf16.msra.mxu1 %v17562_v16  ;;  %v2155_v16 = vrot.slane %v20453_v41, 2  ;;  %v17649_v41 = vld [vmem:[%s25152_s3 + $0x1ef0] ss:$20 sps:$4 sm:$0xff]  }
 0x31a   :  { %11917 = vmatprep.subr.bf16.mxu1 %v17570_v30  ;;  %v2158_v30 = vrot.slane %v20448_v40, 2 }
 0x31b   :  { %11877 = vmatpush1.bf16.msra.mxu0 %v17565_v39  ;;  %v2159_v39 = vrot.slane %v20514_v2, 2  ;;  %v21546_v29 = vpack.c.bf16 %v2155_v16, %v2155_v16  ;;  %v17657_v16 = vld [vmem:[%s25152_s3 + $0x1ecc] ss:$20 sps:$4 sm:$0xff]   ;;  %v17745_v2 = vld [vmem:[%s25152_s3 + $0x23f0] ss:$20 sps:$4 sm:$0xff]  }
 0x31c   :  { %11878 = vmatprep.subr.bf16.mxu0 %v17573_v26  ;;  %v17604_v26 = vld [vmem:[%s25152_s3 + $0x1db0] ss:$20 sps:$4 sm:$0xff]  }
 0x31d   :  { %11918 = vmatpush1.bf16.msra.mxu1 %v17568_v25  ;;  %v2160_v25 = vrot.slane %v20499_v56, 2 }
 0x31e   :  { %11919 = vmatprep.subr.bf16.mxu1 %v17576_v34  ;;  %v17607_v34 = vld [vmem:[%s25152_s3 + $0x1b08] ss:$20 sps:$4 sm:$0xff]  }
 0x31f   :  { %11879 = vmatpush1.bf16.msra.mxu0 %v17571_v27  ;;  %v17609_v27 = vld [vmem:[%s25152_s3 + $0x1b0c] ss:$20 sps:$4 sm:$0xff]   ;;  %v21554_v40 = vpack.c.bf16 %v2160_v25, %v2160_v25 }
 0x320   :  { %11880 = vmatprep.subr.bf16.mxu0 %v17579_v28  ;;  %v17610_v28 = vld [vmem:[%s25152_s3 + $0x1d88] ss:$20 sps:$4 sm:$0xff]  }
 0x321   :  { %11920 = vmatpush1.bf16.msra.mxu1 %v17574_v36  ;;  %v17612_v36 = vld [vmem:[%s25152_s3 + $0x1d8c] ss:$20 sps:$4 sm:$0xff]  }
 0x322   :  { %11921 = vmatprep.subr.bf16.mxu1 %v17582_v51  ;;  %v17613_v51 = vld [vmem:[%s25152_s3 + $0x1ae0] ss:$20 sps:$4 sm:$0xff]  }
 0x323   :  { %11881 = vmatpush1.bf16.msra.mxu0 %v17577_v45  ;;  %v17615_v45 = vld [vmem:[%s25152_s3 + $0x1ae4] ss:$20 sps:$4 sm:$0xff]  }
 0x324   :  { %11882 = vmatprep.subr.bf16.mxu0 %v17585_v17  ;;  %v17616_v17 = vld [vmem:[%s25152_s3 + $0x1d60] ss:$20 sps:$4 sm:$0xff]  }
 0x325   :  { %11922 = vmatpush1.bf16.msra.mxu1 %v17580_v13  ;;  %v17618_v13 = vld [vmem:[%s25152_s3 + $0x1d64] ss:$20 sps:$4 sm:$0xff]  }
 0x326   :  { %11923 = vmatprep.subr.bf16.mxu1 %v17588_v35  ;;  %v17619_v35 = vld [vmem:[%s25152_s3 + $0x1ab8] ss:$20 sps:$4 sm:$0xff]  }
 0x327   :  { %11883 = vmatpush1.bf16.msra.mxu0 %v17583_v33  ;;  %v17621_v33 = vld [vmem:[%s25152_s3 + $0x1abc] ss:$20 sps:$4 sm:$0xff]  }
 0x328   :  { %11884 = vmatprep.subr.bf16.mxu0 %v17591_v5  ;;  %v17622_v5 = vld [vmem:[%s25152_s3 + $0x1d38] ss:$20 sps:$4 sm:$0xff]  }
 0x329   :  { %11924 = vmatpush1.bf16.msra.mxu1 %v17586_v61  ;;  %v17624_v61 = vld [vmem:[%s25152_s3 + $0x1d3c] ss:$20 sps:$4 sm:$0xff]  }
 0x32a   :  { %11925 = vmatprep.subr.bf16.mxu1 %v17594_v0  ;;  %v17625_v0 = vld [vmem:[%s25152_s3 + $0x1a90] ss:$20 sps:$4 sm:$0xff]  }
 0x32b   :  { %11885 = vmatpush1.bf16.msra.mxu0 %v17589_v62  ;;  %v17627_v62 = vld [vmem:[%s25152_s3 + $0x1a94] ss:$20 sps:$4 sm:$0xff]  }
 0x32c   :  { %11886 = vmatprep.subr.bf16.mxu0 %v17597_v4  ;;  %v17628_v4 = vld [vmem:[%s25152_s3 + $0x1d10] ss:$20 sps:$4 sm:$0xff]  }
 0x32d   :  { %11926 = vmatpush1.bf16.msra.mxu1 %v17592_v8  ;;  %v17630_v8 = vld [vmem:[%s25152_s3 + $0x1d14] ss:$20 sps:$4 sm:$0xff]  }
 0x32e   :  { %11927 = vmatprep.subr.bf16.mxu1 %v17600_v7  ;;  %v17631_v7 = vld [vmem:[%s25152_s3 + $0x1a68] ss:$20 sps:$4 sm:$0xff]  }
 0x32f   :  { %11887 = vmatpush2.bf16.msra.mxu0 %v17595_v6  ;;  %v17633_v6 = vld [vmem:[%s25152_s3 + $0x1a6c] ss:$20 sps:$4 sm:$0xff]  }
 0x330   :  { %11888 = vmatprep.subr.bf16.mxu0 %v17603_v18  ;;  %v17634_v18 = vld [vmem:[%s25152_s3 + $0x1ce8] ss:$20 sps:$4 sm:$0xff]  }
 0x331   :  { %11928 = vmatpush2.bf16.msra.mxu1 %v17598_v9  ;;  %v17636_v9 = vld [vmem:[%s25152_s3 + $0x1cec] ss:$20 sps:$4 sm:$0xff]  }
 0x332   :  { %11929 = vmatprep.subr.bf16.mxu1 %v17606_v23  ;;  %v17637_v23 = vld [vmem:[%s25152_s3 + $0x1a40] ss:$20 sps:$4 sm:$0xff]  }
 0x333   :  { %11889 = vmatpush2.bf16.msra.mxu0 %v17601_v22  ;;  %v17639_v22 = vld [vmem:[%s25152_s3 + $0x1a44] ss:$20 sps:$4 sm:$0xff]  }
 0x334   :  { %11890 = vmatprep.subr.bf16.mxu0 %v17609_v27  ;;  %v17640_v27 = vld [vmem:[%s25152_s3 + $0x1cc0] ss:$20 sps:$4 sm:$0xff]  }
 0x335   :  { %11930 = vmatpush2.bf16.msra.mxu1 %v17604_v26  ;;  %v17642_v26 = vld [vmem:[%s25152_s3 + $0x1cc4] ss:$20 sps:$4 sm:$0xff]  }
 0x336   :  { %11931 = vmatprep.subr.bf16.mxu1 %v17612_v36  ;;  %v16675_v36 = vpop.permute.xlu0 %16674 }
 0x337   :  { %11891 = vmatpush2.bf16.msra.mxu0 %v17607_v34  ;;  %v17645_v34 = vld [vmem:[%s25152_s3 + $0x1f1c] ss:$20 sps:$4 sm:$0xff]  }
 0x338   :  { %11892 = vmatprep.subr.bf16.mxu0 %v17615_v45  ;;  %v17648_v45 = vld [vmem:[%s25152_s3 + $0x219c] ss:$20 sps:$4 sm:$0xff]  }
 0x339   :  { %11932 = vmatpush2.bf16.msra.mxu1 %v17610_v28  ;;  %v17643_v28 = vld [vmem:[%s25152_s3 + $0x1f18] ss:$20 sps:$4 sm:$0xff]  }
 0x33a   :  { %11933 = vmatprep.subr.bf16.mxu1 %v17618_v13  ;;  %v17651_v13 = vld [vmem:[%s25152_s3 + $0x1ef4] ss:$20 sps:$4 sm:$0xff]  }
 0x33b   :  { %11893 = vmatpush2.bf16.msra.mxu0 %v17613_v51  ;;  %v17646_v51 = vld [vmem:[%s25152_s3 + $0x2198] ss:$20 sps:$4 sm:$0xff]  }
 0x33c   :  { %11894 = vmatprep.subr.bf16.mxu0 %v17621_v33  ;;  %v16677_v33 = vunpack.i.h.bf16 %v16675_v36 }
 0x33d   :  { %11934 = vmatpush2.bf16.msra.mxu1 %v17616_v17  ;;  %v21533_v17 = vpack.c.bf16 %v2153_v14, %v2153_v14 }
 0x33e   :  { %11935 = vmatprep.subr.bf16.mxu1 %v17624_v61  ;;  %v17654_v61 = vld [vmem:[%s25152_s3 + $0x2174] ss:$20 sps:$4 sm:$0xff]  }
 0x33f   :  { %11895 = vmatpush2.bf16.msra.mxu0 %v17619_v35  ;;  %v16676_v35 = vunpack.i.l.bf16 %v16675_v36 }
 0x340   :  { %11896 = vmatprep.subr.bf16.mxu0 %v17627_v62 }
 0x341   :  { %11936 = vmatpush2.bf16.msra.mxu1 %v17622_v5  ;;  %v21541_v5 = vpack.c.bf16 %v2158_v30, %v2158_v30 }
 0x342   :  { %11937 = vmatprep.subr.bf16.mxu1 %v17630_v8  ;;  %v17652_v8 = vld [vmem:[%s25152_s3 + $0x2170] ss:$20 sps:$4 sm:$0xff]  }
 0x343   :  { %11897 = vmatpush2.bf16.msra.mxu0 %v17625_v0 }
 0x344   :  { %11898 = vmatprep.subr.bf16.mxu0 %v17633_v6 }
 0x345   :  { %11938 = vmatpush2.bf16.msra.mxu1 %v17628_v4  ;;  %v17660_v4 = vld [vmem:[%s25152_s3 + $0x214c] ss:$20 sps:$4 sm:$0xff]  }
 0x346   :  { %11939 = vmatprep.subr.bf16.mxu1 %v17636_v9 }
 0x347   :  { %11899 = vmatpush2.bf16.msra.mxu0 %v17631_v7 }
 0x348   :  { %11900 = vmatprep.subr.bf16.mxu0 %v17639_v22  ;;  %v2178_v22 = vrot.slane %v20464_v46, 4 }
 0x349   :  { %11940 = vmatpush2.bf16.msra.mxu1 %v17634_v18 }
 0x34a   :  { %11941 = vmatprep.subr.bf16.mxu1 %v17642_v26 }
 0x34b   :  { %11901 = vmatpush2.bf16.msra.mxu0 %v17637_v23 }
 0x34c   :  { %11952 = vmatprep.subr.bf16.mxu0 %v17645_v34  ;;  %v17663_v34 = vld [vmem:[%s25152_s3 + $0x1ea4] ss:$20 sps:$4 sm:$0xff]  }
 0x34d   :  { %11942 = vmatpush2.bf16.msra.mxu1 %v17640_v27  ;;  %v17658_v27 = vld [vmem:[%s25152_s3 + $0x2148] ss:$20 sps:$4 sm:$0xff]  }
 0x34e   :  { %v11658_v14 = vpop.f32.mrf.mxu0  ;;  %11903 = vmatmul.mubr.bf16.vlgmr.msra.gmra.mxu0 %v21533_v17  ;;  %11993 = vmatprep.subr.bf16.mxu1 %v17648_v45  ;;  %v17666_v45 = vld [vmem:[%s25152_s3 + $0x2124] ss:$20 sps:$4 sm:$0xff]  }
 0x34f   :  { %v11659_v62 = vadd.f32 %v11658_v14, %v21336_v3  ;;  %11953 = vmatpush1.bf16.msra.mxu0 %v17643_v28  ;;  %11984 = vmatprep.mubr.bf16.mxu0 %v21541_v5  ;;  %v21564_v3 = vsel %vm2056_vm3, %v16676_v35, %v16677_v33  ;;  %v17661_v28 = vld [vmem:[%s25152_s3 + $0x1ea0] ss:$20 sps:$4 sm:$0xff]   ;;  %v17667_v33 = vld [vmem:[%s25152_s3 + $0x1e78] ss:$20 sps:$4 sm:$0xff]   ;;  %v17672_v35 = vld [vmem:[%s25152_s3 + $0x20fc] ss:$20 sps:$4 sm:$0xff]  }
 0x350   :  { %v11660_v30 = vpop.f32.mrf.mxu0  ;;  %v11699_v0 = vpop.f32.mrf.mxu1  ;;  %11944 = vmatmul.mubr.bf16.vlgmr.msra.gmra.mxu1 %v21546_v29  ;;  %11954 = vmatprep.subr.bf16.mxu0 %v17651_v13  ;;  %v2162_v18 = vrot.slane %v21564_v3, 2  ;;  %v17669_v13 = vld [vmem:[%s25152_s3 + $0x1e7c] ss:$20 sps:$4 sm:$0xff]   ;;  %v17675_v14 = vld [vmem:[%s25152_s3 + $0x1e54] ss:$20 sps:$4 sm:$0xff]  }
 0x351   :  { %v11661_v56 = vadd.f32 %v11660_v30, %v21345_v11  ;;  %v21567_v25 = vadd.f32 %v11699_v0, %v11659_v62  ;;  %11994 = vmatpush1.bf16.msra.mxu1 %v17646_v51  ;;  %12025 = vmatprep.mubr.bf16.mxu1 %v21554_v40  ;;  %v17655_v11 = vld [vmem:[%s25152_s3 + $0x1ec8] ss:$20 sps:$4 sm:$0xff]   ;;  %v17664_v51 = vld [vmem:[%s25152_s3 + $0x2120] ss:$20 sps:$4 sm:$0xff]   ;;  %v17673_v62 = vld [vmem:[%s25152_s3 + $0x1e50] ss:$20 sps:$4 sm:$0xff]  }
 0x352   :  { %v11662_v6 = vpop.f32.mrf.mxu0  ;;  %v11701_v7 = vpop.f32.mrf.mxu1  ;;  %11995 = vmatprep.subr.bf16.mxu1 %v17654_v61  ;;  %v17670_v61 = vld [vmem:[%s25152_s3 + $0x20f8] ss:$20 sps:$4 sm:$0xff]   ;;  %v17679_v0 = vld [vmem:[%s25152_s3 + $0x1e28] ss:$20 sps:$4 sm:$0xff]  }
 0x353   :  { %v21576_v9 = vadd.f32 %v11701_v7, %v11661_v56  ;;  %11955 = vmatpush1.bf16.msra.mxu0 %v17649_v41  ;;  %v17678_v41 = vld [vmem:[%s25152_s3 + $0x20d4] ss:$20 sps:$4 sm:$0xff]   ;;  %v17681_v30 = vld [vmem:[%s25152_s3 + $0x1e2c] ss:$20 sps:$4 sm:$0xff]   ;;  %v17690_v7 = vld [vmem:[%s25152_s3 + $0x2084] ss:$20 sps:$4 sm:$0xff]  }
 0x354   :  { %v11663_v23 = vpop.f32.mrf.mxu0  ;;  %v11703_v26 = vpop.f32.mrf.mxu1  ;;  %11956 = vmatprep.subr.bf16.mxu0 %v17657_v16  ;;  %v17676_v16 = vld [vmem:[%s25152_s3 + $0x20d0] ss:$20 sps:$4 sm:$0xff]   ;;  %v17684_v56 = vld [vmem:[%s25152_s3 + $0x20ac] ss:$20 sps:$4 sm:$0xff]  }
 0x355   :  { %11996 = vmatpush1.bf16.msra.mxu1 %v17652_v8  ;;  %v17682_v8 = vld [vmem:[%s25152_s3 + $0x20a8] ss:$20 sps:$4 sm:$0xff]   ;;  %v17685_v6 = vld [vmem:[%s25152_s3 + $0x1e00] ss:$20 sps:$4 sm:$0xff]   ;;  %v17691_v26 = vld [vmem:[%s25152_s3 + $0x2058] ss:$20 sps:$4 sm:$0xff]  }
 0x356   :  { %v11704_v36 = vpop.f32.mrf.mxu1  ;;  %11997 = vmatprep.subr.bf16.mxu1 %v17660_v4  ;;  %v17687_v4 = vld [vmem:[%s25152_s3 + $0x1e04] ss:$20 sps:$4 sm:$0xff]   ;;  %v17693_v23 = vld [vmem:[%s25152_s3 + $0x205c] ss:$20 sps:$4 sm:$0xff]  }
 0x357   :  { %11957 = vmatpush1.bf16.msra.mxu0 %v17655_v11  ;;  %v17688_v11 = vld [vmem:[%s25152_s3 + $0x2080] ss:$20 sps:$4 sm:$0xff]  }
 0x358   :  { %11958 = vmatprep.subr.bf16.mxu0 %v17663_v34  ;;  %v17694_v34 = vld [vmem:[%s25152_s3 + $0x22d8] ss:$20 sps:$4 sm:$0xff]   ;;  %v17699_v36 = vld [vmem:[%s25152_s3 + $0x2034] ss:$20 sps:$4 sm:$0xff]  }
 0x359   :  { %11998 = vmatpush1.bf16.msra.mxu1 %v17658_v27  ;;  %v17696_v27 = vld [vmem:[%s25152_s3 + $0x22dc] ss:$20 sps:$4 sm:$0xff]  }
 0x35a   :  { %11999 = vmatprep.subr.bf16.mxu1 %v17666_v45  ;;  %v17702_v45 = vld [vmem:[%s25152_s3 + $0x22b4] ss:$20 sps:$4 sm:$0xff]  }
 0x35b   :  { %11959 = vmatpush1.bf16.msra.mxu0 %v17661_v28  ;;  %v17697_v28 = vld [vmem:[%s25152_s3 + $0x2030] ss:$20 sps:$4 sm:$0xff]  }
 0x35c   :  { %11960 = vmatprep.subr.bf16.mxu0 %v17669_v13  ;;  %v17705_v13 = vld [vmem:[%s25152_s3 + $0x200c] ss:$20 sps:$4 sm:$0xff]  }
 0x35d   :  { %12000 = vmatpush1.bf16.msra.mxu1 %v17664_v51  ;;  %v17700_v51 = vld [vmem:[%s25152_s3 + $0x22b0] ss:$20 sps:$4 sm:$0xff]  }
 0x35e   :  { %12001 = vmatprep.subr.bf16.mxu1 %v17672_v35  ;;  %v17708_v35 = vld [vmem:[%s25152_s3 + $0x228c] ss:$20 sps:$4 sm:$0xff]  }
 0x35f   :  { %11961 = vmatpush1.bf16.msra.mxu0 %v17667_v33  ;;  %v17703_v33 = vld [vmem:[%s25152_s3 + $0x2008] ss:$20 sps:$4 sm:$0xff]  }
 0x360   :  { %11962 = vmatprep.subr.bf16.mxu0 %v17675_v14  ;;  %v17711_v14 = vld [vmem:[%s25152_s3 + $0x1fe4] ss:$20 sps:$4 sm:$0xff]  }
 0x361   :  { %12002 = vmatpush1.bf16.msra.mxu1 %v17670_v61  ;;  %v17706_v61 = vld [vmem:[%s25152_s3 + $0x2288] ss:$20 sps:$4 sm:$0xff]  }
 0x362   :  { %12003 = vmatprep.subr.bf16.mxu1 %v17678_v41  ;;  %v17714_v41 = vld [vmem:[%s25152_s3 + $0x2264] ss:$20 sps:$4 sm:$0xff]  }
 0x363   :  { %11963 = vmatpush1.bf16.msra.mxu0 %v17673_v62  ;;  %v17709_v62 = vld [vmem:[%s25152_s3 + $0x1fe0] ss:$20 sps:$4 sm:$0xff]  }
 0x364   :  { %11964 = vmatprep.subr.bf16.mxu0 %v17681_v30  ;;  %v17717_v30 = vld [vmem:[%s25152_s3 + $0x1fbc] ss:$20 sps:$4 sm:$0xff]  }
 0x365   :  { %12004 = vmatpush1.bf16.msra.mxu1 %v17676_v16  ;;  %v17712_v16 = vld [vmem:[%s25152_s3 + $0x2260] ss:$20 sps:$4 sm:$0xff]  }
 0x366   :  { %12005 = vmatprep.subr.bf16.mxu1 %v17684_v56  ;;  %v17720_v56 = vld [vmem:[%s25152_s3 + $0x223c] ss:$20 sps:$4 sm:$0xff]  }
 0x367   :  { %11965 = vmatpush1.bf16.msra.mxu0 %v17679_v0  ;;  %v17715_v0 = vld [vmem:[%s25152_s3 + $0x1fb8] ss:$20 sps:$4 sm:$0xff]  }
 0x368   :  { %11966 = vmatprep.subr.bf16.mxu0 %v17687_v4  ;;  %v17723_v4 = vld [vmem:[%s25152_s3 + $0x1f94] ss:$20 sps:$4 sm:$0xff]  }
 0x369   :  { %12006 = vmatpush1.bf16.msra.mxu1 %v17682_v8  ;;  %v17718_v8 = vld [vmem:[%s25152_s3 + $0x2238] ss:$20 sps:$4 sm:$0xff]  }
 0x36a   :  { %12007 = vmatprep.subr.bf16.mxu1 %v17690_v7  ;;  %v17726_v7 = vld [vmem:[%s25152_s3 + $0x2214] ss:$20 sps:$4 sm:$0xff]  }
 0x36b   :  { %11967 = vmatpush1.bf16.msra.mxu0 %v17685_v6  ;;  %v17721_v6 = vld [vmem:[%s25152_s3 + $0x1f90] ss:$20 sps:$4 sm:$0xff]  }
 0x36c   :  { %11968 = vmatprep.subr.bf16.mxu0 %v17693_v23  ;;  %v17729_v23 = vld [vmem:[%s25152_s3 + $0x1f6c] ss:$20 sps:$4 sm:$0xff]  }
 0x36d   :  { %12008 = vmatpush1.bf16.msra.mxu1 %v17688_v11  ;;  %v17724_v11 = vld [vmem:[%s25152_s3 + $0x2210] ss:$20 sps:$4 sm:$0xff]  }
 0x36e   :  { %12009 = vmatprep.subr.bf16.mxu1 %v17696_v27  ;;  %v17732_v27 = vld [vmem:[%s25152_s3 + $0x21ec] ss:$20 sps:$4 sm:$0xff]  }
 0x36f   :  { %11969 = vmatpush2.bf16.msra.mxu0 %v17691_v26  ;;  %v17727_v26 = vld [vmem:[%s25152_s3 + $0x1f68] ss:$20 sps:$4 sm:$0xff]  }
 0x370   :  { %11970 = vmatprep.subr.bf16.mxu0 %v17699_v36  ;;  %v17735_v36 = vld [vmem:[%s25152_s3 + $0x1f44] ss:$20 sps:$4 sm:$0xff]  }
 0x371   :  { %12010 = vmatpush2.bf16.msra.mxu1 %v17694_v34  ;;  %v17730_v34 = vld [vmem:[%s25152_s3 + $0x21e8] ss:$20 sps:$4 sm:$0xff]  }
 0x372   :  { %12011 = vmatprep.subr.bf16.mxu1 %v17702_v45  ;;  %v17738_v45 = vld [vmem:[%s25152_s3 + $0x21c4] ss:$20 sps:$4 sm:$0xff]  }
 0x373   :  { %11971 = vmatpush2.bf16.msra.mxu0 %v17697_v28  ;;  %v17733_v28 = vld [vmem:[%s25152_s3 + $0x1f40] ss:$20 sps:$4 sm:$0xff]  }
 0x374   :  { %11972 = vmatprep.subr.bf16.mxu0 %v17705_v13  ;;  %v17741_v13 = vld [vmem:[%s25152_s3 + $0x241c] ss:$20 sps:$4 sm:$0xff]  }
 0x375   :  { %12012 = vmatpush2.bf16.msra.mxu1 %v17700_v51  ;;  %v17736_v51 = vld [vmem:[%s25152_s3 + $0x21c0] ss:$20 sps:$4 sm:$0xff]  }
 0x376   :  { %12013 = vmatprep.subr.bf16.mxu1 %v17708_v35  ;;  %v17739_v35 = vld [vmem:[%s25152_s3 + $0x2418] ss:$20 sps:$4 sm:$0xff]  }
 0x377   :  { %11973 = vmatpush2.bf16.msra.mxu0 %v17703_v33  ;;  %v16680_v33 = vpop.permute.xlu1 %16679 }
 0x378   :  { %11974 = vmatprep.subr.bf16.mxu0 %v17711_v14  ;;  %v17742_v14 = vld [vmem:[%s25152_s3 + $0x2698] ss:$20 sps:$4 sm:$0xff]  }
 0x379   :  { %12014 = vmatpush2.bf16.msra.mxu1 %v17706_v61  ;;  %v17744_v61 = vld [vmem:[%s25152_s3 + $0x269c] ss:$20 sps:$4 sm:$0xff]  }
 0x37a   :  { %12015 = vmatprep.subr.bf16.mxu1 %v17714_v41  ;;  %v21760_v41 = vpack.c.bf16 %v2157_v15, %v2157_v15  ;;  %v21776_v15 = vpack.c.bf16 %v2162_v18, %v2162_v18 }
 0x37b   :  { %11975 = vmatpush2.bf16.msra.mxu0 %v17709_v62  ;;  %v17747_v62 = vld [vmem:[%s25152_s3 + $0x23f4] ss:$20 sps:$4 sm:$0xff]  }
 0x37c   :  { %11976 = vmatprep.subr.bf16.mxu0 %v17717_v30  ;;  %v16681_v30 = vunpack.i.l.bf16 %v16680_v33 }
 0x37d   :  { %12016 = vmatpush2.bf16.msra.mxu1 %v17712_v16  ;;  %v16682_v16 = vunpack.i.h.bf16 %v16680_v33 }
 0x37e   :  { %12017 = vmatprep.subr.bf16.mxu1 %v17720_v56  ;;  %v21768_v56 = vpack.c.bf16 %v2159_v39, %v2159_v39  ;;  %v17753_v39 = vld [vmem:[%s25152_s3 + $0x23cc] ss:$20 sps:$4 sm:$0xff]  }
 0x37f   :  { %11977 = vmatpush2.bf16.msra.mxu0 %v17715_v0  ;;  %v17750_v0 = vld [vmem:[%s25152_s3 + $0x2674] ss:$20 sps:$4 sm:$0xff]  }
 0x380   :  { %11978 = vmatprep.subr.bf16.mxu0 %v17723_v4  ;;  %v21785_v4 = vsel %vm2056_vm3, %v16681_v30, %v16682_v16  ;;  %v17763_v16 = vld [vmem:[%s25152_s3 + $0x2378] ss:$20 sps:$4 sm:$0xff]   ;;  %v17768_v30 = vld [vmem:[%s25152_s3 + $0x25fc] ss:$20 sps:$4 sm:$0xff]  }
 0x381   :  { %12018 = vmatpush2.bf16.msra.mxu1 %v17718_v8 }
 0x382   :  { %12019 = vmatprep.subr.bf16.mxu1 %v17726_v7  ;;  %v17748_v7 = vld [vmem:[%s25152_s3 + $0x2670] ss:$20 sps:$4 sm:$0xff]  }
 0x383   :  { %11979 = vmatpush2.bf16.msra.mxu0 %v17721_v6 }
 0x384   :  { %11980 = vmatprep.subr.bf16.mxu0 %v17729_v23 }
 0x385   :  { %12020 = vmatpush2.bf16.msra.mxu1 %v17724_v11  ;;  %v17756_v11 = vld [vmem:[%s25152_s3 + $0x264c] ss:$20 sps:$4 sm:$0xff]  }
 0x386   :  { %12021 = vmatprep.subr.bf16.mxu1 %v17732_v27  ;;  %v2161_v27 = vrot.slane %v21785_v4, 2  ;;  %v17849_v4 = vld [vmem:[%s25152_s3 + $0x28cc] ss:$20 sps:$4 sm:$0xff]  }
 0x387   :  { %11981 = vmatpush2.bf16.msra.mxu0 %v17727_v26 }
 0x388   :  { %11982 = vmatprep.subr.bf16.mxu0 %v17735_v36  ;;  %v2180_v36 = vrot.slane %v20469_v52, 4  ;;  %v17844_v52 = vld [vmem:[%s25152_s3 + $0x2b70] ss:$20 sps:$4 sm:$0xff]  }
 0x389   :  { %12022 = vmatpush2.bf16.msra.mxu1 %v17730_v34 }
 0x38a   :  { %12023 = vmatprep.subr.bf16.mxu1 %v17738_v45  ;;  %v21998_v46 = vpack.c.bf16 %v2180_v36, %v2180_v36  ;;  %v17852_v36 = vld [vmem:[%s25152_s3 + $0x2b4c] ss:$20 sps:$4 sm:$0xff]  }
 0x38b   :  { %11983 = vmatpush2.bf16.msra.mxu0 %v17733_v28 }
 0x38c   :  { %12034 = vmatprep.subr.bf16.mxu0 %v17741_v13  ;;  %v17759_v13 = vld [vmem:[%s25152_s3 + $0x23a4] ss:$20 sps:$4 sm:$0xff]  }
 0x38d   :  { %12024 = vmatpush2.bf16.msra.mxu1 %v17736_v51  ;;  %v17754_v51 = vld [vmem:[%s25152_s3 + $0x2648] ss:$20 sps:$4 sm:$0xff]  }
 0x38e   :  { %v11740_v8 = vpop.f32.mrf.mxu0  ;;  %11985 = vmatmul.mubr.bf16.vlgmr.msra.gmra.mxu0 %v21760_v41  ;;  %12075 = vmatprep.subr.bf16.mxu1 %v17744_v61  ;;  %v17762_v61 = vld [vmem:[%s25152_s3 + $0x2624] ss:$20 sps:$4 sm:$0xff]  }
 0x38f   :  { %v11741_v58 = vadd.f32 %v11740_v8, %v21567_v25  ;;  %12035 = vmatpush1.bf16.msra.mxu0 %v17739_v35  ;;  %12066 = vmatprep.mubr.bf16.mxu0 %v21116_v21  ;;  %v17757_v35 = vld [vmem:[%s25152_s3 + $0x23a0] ss:$20 sps:$4 sm:$0xff]  }
 0x390   :  { %v11742_v25 = vpop.f32.mrf.mxu0  ;;  %v11781_v6 = vpop.f32.mrf.mxu1  ;;  %12026 = vmatmul.mubr.bf16.vlgmr.msra.gmra.mxu1 %v21768_v56  ;;  %12036 = vmatprep.subr.bf16.mxu0 %v17747_v62  ;;  %v17765_v62 = vld [vmem:[%s25152_s3 + $0x237c] ss:$20 sps:$4 sm:$0xff]   ;;  %v17771_v8 = vld [vmem:[%s25152_s3 + $0x2354] ss:$20 sps:$4 sm:$0xff]  }
 0x391   :  { %v11743_v3 = vadd.f32 %v11742_v25, %v21576_v9  ;;  %v21789_v18 = vadd.f32 %v11781_v6, %v11741_v58  ;;  %12076 = vmatpush1.bf16.msra.mxu1 %v17742_v14  ;;  %12107 = vmatprep.mubr.bf16.mxu1 %v21776_v15  ;;  %v17751_v9 = vld [vmem:[%s25152_s3 + $0x23c8] ss:$20 sps:$4 sm:$0xff]   ;;  %v17760_v14 = vld [vmem:[%s25152_s3 + $0x2620] ss:$20 sps:$4 sm:$0xff]   ;;  %v17769_v58 = vld [vmem:[%s25152_s3 + $0x2350] ss:$20 sps:$4 sm:$0xff]  }
 0x392   :  { %v11744_v23 = vpop.f32.mrf.mxu0  ;;  %v11783_v26 = vpop.f32.mrf.mxu1  ;;  %12077 = vmatprep.subr.bf16.mxu1 %v17750_v0  ;;  %v17766_v0 = vld [vmem:[%s25152_s3 + $0x25f8] ss:$20 sps:$4 sm:$0xff]   ;;  %v17775_v6 = vld [vmem:[%s25152_s3 + $0x2328] ss:$20 sps:$4 sm:$0xff]  }
 0x393   :  { %v21799_v34 = vadd.f32 %v11783_v26, %v11743_v3  ;;  %12037 = vmatpush1.bf16.msra.mxu0 %v17745_v2  ;;  %v17774_v2 = vld [vmem:[%s25152_s3 + $0x25d4] ss:$20 sps:$4 sm:$0xff]   ;;  %v17777_v25 = vld [vmem:[%s25152_s3 + $0x232c] ss:$20 sps:$4 sm:$0xff]   ;;  %v17786_v26 = vld [vmem:[%s25152_s3 + $0x2584] ss:$20 sps:$4 sm:$0xff]  }
 0x394   :  { %v11745_v28 = vpop.f32.mrf.mxu0  ;;  %v11785_v45 = vpop.f32.mrf.mxu1  ;;  %12038 = vmatprep.subr.bf16.mxu0 %v17753_v39  ;;  %v17772_v39 = vld [vmem:[%s25152_s3 + $0x25d0] ss:$20 sps:$4 sm:$0xff]   ;;  %v17780_v3 = vld [vmem:[%s25152_s3 + $0x25ac] ss:$20 sps:$4 sm:$0xff]  }
 0x395   :  { %12078 = vmatpush1.bf16.msra.mxu1 %v17748_v7  ;;  %v17778_v7 = vld [vmem:[%s25152_s3 + $0x25a8] ss:$20 sps:$4 sm:$0xff]   ;;  %v17781_v23 = vld [vmem:[%s25152_s3 + $0x2300] ss:$20 sps:$4 sm:$0xff]   ;;  %v17787_v45 = vld [vmem:[%s25152_s3 + $0x2558] ss:$20 sps:$4 sm:$0xff]  }
 0x396   :  { %v11786_v33 = vpop.f32.mrf.mxu1  ;;  %12079 = vmatprep.subr.bf16.mxu1 %v17756_v11  ;;  %v17783_v11 = vld [vmem:[%s25152_s3 + $0x2304] ss:$20 sps:$4 sm:$0xff]   ;;  %v17789_v28 = vld [vmem:[%s25152_s3 + $0x255c] ss:$20 sps:$4 sm:$0xff]  }
 0x397   :  { %12039 = vmatpush1.bf16.msra.mxu0 %v17751_v9  ;;  %v17784_v9 = vld [vmem:[%s25152_s3 + $0x2580] ss:$20 sps:$4 sm:$0xff]  }
 0x398   :  { %12040 = vmatprep.subr.bf16.mxu0 %v17759_v13  ;;  %v17790_v13 = vld [vmem:[%s25152_s3 + $0x27d8] ss:$20 sps:$4 sm:$0xff]   ;;  %v17795_v33 = vld [vmem:[%s25152_s3 + $0x2534] ss:$20 sps:$4 sm:$0xff]  }
 0x399   :  { %12080 = vmatpush1.bf16.msra.mxu1 %v17754_v51  ;;  %v17792_v51 = vld [vmem:[%s25152_s3 + $0x27dc] ss:$20 sps:$4 sm:$0xff]  }
 0x39a   :  { %12081 = vmatprep.subr.bf16.mxu1 %v17762_v61  ;;  %v17798_v61 = vld [vmem:[%s25152_s3 + $0x27b4] ss:$20 sps:$4 sm:$0xff]  }
 0x39b   :  { %12041 = vmatpush1.bf16.msra.mxu0 %v17757_v35  ;;  %v17793_v35 = vld [vmem:[%s25152_s3 + $0x2530] ss:$20 sps:$4 sm:$0xff]  }
 0x39c   :  { %12042 = vmatprep.subr.bf16.mxu0 %v17765_v62  ;;  %v17801_v62 = vld [vmem:[%s25152_s3 + $0x250c] ss:$20 sps:$4 sm:$0xff]  }
 0x39d   :  { %12082 = vmatpush1.bf16.msra.mxu1 %v17760_v14  ;;  %v17796_v14 = vld [vmem:[%s25152_s3 + $0x27b0] ss:$20 sps:$4 sm:$0xff]  }
 0x39e   :  { %12083 = vmatprep.subr.bf16.mxu1 %v17768_v30  ;;  %v17804_v30 = vld [vmem:[%s25152_s3 + $0x278c] ss:$20 sps:$4 sm:$0xff]  }
 0x39f   :  { %12043 = vmatpush1.bf16.msra.mxu0 %v17763_v16  ;;  %v17799_v16 = vld [vmem:[%s25152_s3 + $0x2508] ss:$20 sps:$4 sm:$0xff]  }
 0x3a0   :  { %12044 = vmatprep.subr.bf16.mxu0 %v17771_v8  ;;  %v17807_v8 = vld [vmem:[%s25152_s3 + $0x24e4] ss:$20 sps:$4 sm:$0xff]  }
 0x3a1   :  { %12084 = vmatpush1.bf16.msra.mxu1 %v17766_v0  ;;  %v17802_v0 = vld [vmem:[%s25152_s3 + $0x2788] ss:$20 sps:$4 sm:$0xff]  }
 0x3a2   :  { %12085 = vmatprep.subr.bf16.mxu1 %v17774_v2  ;;  %v17810_v2 = vld [vmem:[%s25152_s3 + $0x2764] ss:$20 sps:$4 sm:$0xff]  }
 0x3a3   :  { %12045 = vmatpush1.bf16.msra.mxu0 %v17769_v58  ;;  %v17805_v58 = vld [vmem:[%s25152_s3 + $0x24e0] ss:$20 sps:$4 sm:$0xff]  }
 0x3a4   :  { %12046 = vmatprep.subr.bf16.mxu0 %v17777_v25  ;;  %v17813_v25 = vld [vmem:[%s25152_s3 + $0x24bc] ss:$20 sps:$4 sm:$0xff]  }
 0x3a5   :  { %12086 = vmatpush1.bf16.msra.mxu1 %v17772_v39  ;;  %v17808_v39 = vld [vmem:[%s25152_s3 + $0x2760] ss:$20 sps:$4 sm:$0xff]  }
 0x3a6   :  { %12087 = vmatprep.subr.bf16.mxu1 %v17780_v3  ;;  %v17816_v3 = vld [vmem:[%s25152_s3 + $0x273c] ss:$20 sps:$4 sm:$0xff]  }
 0x3a7   :  { %12047 = vmatpush1.bf16.msra.mxu0 %v17775_v6  ;;  %v17811_v6 = vld [vmem:[%s25152_s3 + $0x24b8] ss:$20 sps:$4 sm:$0xff]  }
 0x3a8   :  { %12048 = vmatprep.subr.bf16.mxu0 %v17783_v11  ;;  %v17819_v11 = vld [vmem:[%s25152_s3 + $0x2494] ss:$20 sps:$4 sm:$0xff]  }
 0x3a9   :  { %12088 = vmatpush1.bf16.msra.mxu1 %v17778_v7  ;;  %v17814_v7 = vld [vmem:[%s25152_s3 + $0x2738] ss:$20 sps:$4 sm:$0xff]  }
 0x3aa   :  { %12089 = vmatprep.subr.bf16.mxu1 %v17786_v26  ;;  %v17822_v26 = vld [vmem:[%s25152_s3 + $0x2714] ss:$20 sps:$4 sm:$0xff]  }
 0x3ab   :  { %12049 = vmatpush1.bf16.msra.mxu0 %v17781_v23  ;;  %v17817_v23 = vld [vmem:[%s25152_s3 + $0x2490] ss:$20 sps:$4 sm:$0xff]  }
 0x3ac   :  { %12050 = vmatprep.subr.bf16.mxu0 %v17789_v28  ;;  %v17825_v28 = vld [vmem:[%s25152_s3 + $0x246c] ss:$20 sps:$4 sm:$0xff]  }
 0x3ad   :  { %12090 = vmatpush1.bf16.msra.mxu1 %v17784_v9  ;;  %v17820_v9 = vld [vmem:[%s25152_s3 + $0x2710] ss:$20 sps:$4 sm:$0xff]  }
 0x3ae   :  { %12091 = vmatprep.subr.bf16.mxu1 %v17792_v51  ;;  %v17828_v51 = vld [vmem:[%s25152_s3 + $0x26ec] ss:$20 sps:$4 sm:$0xff]  }
 0x3af   :  { %12051 = vmatpush2.bf16.msra.mxu0 %v17787_v45  ;;  %v17823_v45 = vld [vmem:[%s25152_s3 + $0x2468] ss:$20 sps:$4 sm:$0xff]  }
 0x3b0   :  { %12052 = vmatprep.subr.bf16.mxu0 %v17795_v33  ;;  %v17831_v33 = vld [vmem:[%s25152_s3 + $0x2444] ss:$20 sps:$4 sm:$0xff]  }
 0x3b1   :  { %12092 = vmatpush2.bf16.msra.mxu1 %v17790_v13  ;;  %v17826_v13 = vld [vmem:[%s25152_s3 + $0x26e8] ss:$20 sps:$4 sm:$0xff]  }
 0x3b2   :  { %12093 = vmatprep.subr.bf16.mxu1 %v17798_v61  ;;  %v17834_v61 = vld [vmem:[%s25152_s3 + $0x26c4] ss:$20 sps:$4 sm:$0xff]  }
 0x3b3   :  { %12053 = vmatpush2.bf16.msra.mxu0 %v17793_v35  ;;  %v17829_v35 = vld [vmem:[%s25152_s3 + $0x2440] ss:$20 sps:$4 sm:$0xff]  }
 0x3b4   :  { %12054 = vmatprep.subr.bf16.mxu0 %v17801_v62  ;;  %v17837_v62 = vld [vmem:[%s25152_s3 + $0x291c] ss:$20 sps:$4 sm:$0xff]  }
 0x3b5   :  { %12094 = vmatpush2.bf16.msra.mxu1 %v17796_v14  ;;  %v17832_v14 = vld [vmem:[%s25152_s3 + $0x26c0] ss:$20 sps:$4 sm:$0xff]  }
 0x3b6   :  { %12095 = vmatprep.subr.bf16.mxu1 %v17804_v30  ;;  %v17840_v30 = vld [vmem:[%s25152_s3 + $0x2b9c] ss:$20 sps:$4 sm:$0xff]  }
 0x3b7   :  { %12055 = vmatpush2.bf16.msra.mxu0 %v17799_v16  ;;  %v17835_v16 = vld [vmem:[%s25152_s3 + $0x2918] ss:$20 sps:$4 sm:$0xff]  }
 0x3b8   :  { %12056 = vmatprep.subr.bf16.mxu0 %v17807_v8  ;;  %v17843_v8 = vld [vmem:[%s25152_s3 + $0x28f4] ss:$20 sps:$4 sm:$0xff]  }
 0x3b9   :  { %12096 = vmatpush2.bf16.msra.mxu1 %v17802_v0  ;;  %v17838_v0 = vld [vmem:[%s25152_s3 + $0x2b98] ss:$20 sps:$4 sm:$0xff]  }
 0x3ba   :  { %12097 = vmatprep.subr.bf16.mxu1 %v17810_v2  ;;  %v21985_v2 = vpack.c.bf16 %v2178_v22, %v2178_v22  ;;  %v17841_v22 = vld [vmem:[%s25152_s3 + $0x28f0] ss:$20 sps:$4 sm:$0xff]  }
 0x3bb   :  { %12057 = vmatpush2.bf16.msra.mxu0 %v17805_v58  ;;  %v17846_v58 = vld [vmem:[%s25152_s3 + $0x2b74] ss:$20 sps:$4 sm:$0xff]  }
 0x3bc   :  { %12058 = vmatprep.subr.bf16.mxu0 %v17813_v25 }
 0x3bd   :  { %12098 = vmatpush2.bf16.msra.mxu1 %v17808_v39  ;;  %v21990_v39 = vpack.c.bf16 %v2161_v27, %v2161_v27 }
 0x3be   :  { %12099 = vmatprep.subr.bf16.mxu1 %v17816_v3 }
 0x3bf   :  { %12059 = vmatpush2.bf16.msra.mxu0 %v17811_v6 }
 0x3c0   :  { %12060 = vmatprep.subr.bf16.mxu0 %v17819_v11 }
 0x3c1   :  { %12100 = vmatpush2.bf16.msra.mxu1 %v17814_v7 }
 0x3c2   :  { %12101 = vmatprep.subr.bf16.mxu1 %v17822_v26 }
 0x3c3   :  { %12061 = vmatpush2.bf16.msra.mxu0 %v17817_v23 }
 0x3c4   :  { %12062 = vmatprep.subr.bf16.mxu0 %v17825_v28  ;;  %v2179_v28 = vrot.slane %v20490_v38, 4 }
 0x3c5   :  { %12102 = vmatpush2.bf16.msra.mxu1 %v17820_v9  ;;  %v2177_v9 = vrot.slane %v20485_v49, 4 }
 0x3c6   :  { %12103 = vmatprep.subr.bf16.mxu1 %v17828_v51 }
 0x3c7   :  { %12063 = vmatpush2.bf16.msra.mxu0 %v17823_v45 }
 0x3c8   :  { %12064 = vmatprep.subr.bf16.mxu0 %v17831_v33  ;;  %v17855_v33 = vld [vmem:[%s25152_s3 + $0x28a4] ss:$20 sps:$4 sm:$0xff]  }
 0x3c9   :  { %12104 = vmatpush2.bf16.msra.mxu1 %v17826_v13  ;;  %v17850_v13 = vld [vmem:[%s25152_s3 + $0x2b48] ss:$20 sps:$4 sm:$0xff]  }
 0x3ca   :  { %12105 = vmatprep.subr.bf16.mxu1 %v17834_v61  ;;  %v17853_v61 = vld [vmem:[%s25152_s3 + $0x28a0] ss:$20 sps:$4 sm:$0xff]  }
 0x3cb   :  { %12065 = vmatpush2.bf16.msra.mxu0 %v17829_v35 }
 0x3cc   :  { %12116 = vmatprep.subr.bf16.mxu0 %v17837_v62  ;;  %v17856_v62 = vld [vmem:[%s25152_s3 + $0x2b20] ss:$20 sps:$4 sm:$0xff]  }
 0x3cd   :  { %12106 = vmatpush2.bf16.msra.mxu1 %v17832_v14  ;;  %v17858_v14 = vld [vmem:[%s25152_s3 + $0x2b24] ss:$20 sps:$4 sm:$0xff]  }
 0x3ce   :  { %v11822_v25 = vpop.f32.mrf.mxu0  ;;  %12067 = vmatmul.mubr.bf16.vlgmr.msra.gmra.mxu0 %v21321_v32  ;;  %12157 = vmatprep.subr.bf16.mxu1 %v17840_v30  ;;  %v17859_v30 = vld [vmem:[%s25152_s3 + $0x2878] ss:$20 sps:$4 sm:$0xff]  }
 0x3cf   :  { %v11823_v6 = vadd.f32 %v11822_v25, %v21789_v18  ;;  %12117 = vmatpush1.bf16.msra.mxu0 %v17835_v16  ;;  %12148 = vmatprep.mubr.bf16.mxu0 %v21985_v2  ;;  %v17861_v16 = vld [vmem:[%s25152_s3 + $0x287c] ss:$20 sps:$4 sm:$0xff]  }
 0x3d0   :  { %v11824_v27 = vpop.f32.mrf.mxu0  ;;  %v11863_v3 = vpop.f32.mrf.mxu1  ;;  %12108 = vmatmul.mubr.bf16.vlgmr.msra.gmra.mxu1 %v21990_v39  ;;  %12118 = vmatprep.subr.bf16.mxu0 %v17843_v8  ;;  %v17862_v8 = vld [vmem:[%s25152_s3 + $0x2af8] ss:$20 sps:$4 sm:$0xff]   ;;  %v17865_v25 = vld [vmem:[%s25152_s3 + $0x2850] ss:$20 sps:$4 sm:$0xff]  }
 0x3d1   :  { %v11825_v18 = vadd.f32 %v11824_v27, %v21799_v34  ;;  %v22008_v7 = vadd.f32 %v11863_v3, %v11823_v6  ;;  %12158 = vmatpush1.bf16.msra.mxu1 %v17838_v0  ;;  %12189 = vmatprep.mubr.bf16.mxu1 %v21998_v46  ;;  %v17847_v34 = vld [vmem:[%s25152_s3 + $0x28c8] ss:$20 sps:$4 sm:$0xff]   ;;  %v17876_v3 = vld [vmem:[%s25152_s3 + $0x2aac] ss:$20 sps:$4 sm:$0xff]  }
 0x3d2   :  { %v11826_v11 = vpop.f32.mrf.mxu0  ;;  %v11865_v23 = vpop.f32.mrf.mxu1  ;;  %12159 = vmatprep.subr.bf16.mxu1 %v17846_v58  ;;  %v17864_v0 = vld [vmem:[%s25152_s3 + $0x2afc] ss:$20 sps:$4 sm:$0xff]   ;;  %v17867_v58 = vld [vmem:[%s25152_s3 + $0x2854] ss:$20 sps:$4 sm:$0xff]  }
 0x3d3   :  { %v22017_v26 = vadd.f32 %v11865_v23, %v11825_v18  ;;  %12119 = vmatpush1.bf16.msra.mxu0 %v17841_v22  ;;  %v17870_v6 = vld [vmem:[%s25152_s3 + $0x2ad4] ss:$20 sps:$4 sm:$0xff]   ;;  %v17868_v22 = vld [vmem:[%s25152_s3 + $0x2ad0] ss:$20 sps:$4 sm:$0xff]  }
 0x3d4   :  { %v11827_v45 = vpop.f32.mrf.mxu0  ;;  %v11867_v51 = vpop.f32.mrf.mxu1  ;;  %12120 = vmatprep.subr.bf16.mxu0 %v17849_v4  ;;  %v17873_v4 = vld [vmem:[%s25152_s3 + $0x282c] ss:$20 sps:$4 sm:$0xff]   ;;  %v17871_v27 = vld [vmem:[%s25152_s3 + $0x2828] ss:$20 sps:$4 sm:$0xff]   ;;  %v17882_v11 = vld [vmem:[%s25152_s3 + $0x2a84] ss:$20 sps:$4 sm:$0xff]  }
 0x3d5   :  { %12160 = vmatpush1.bf16.msra.mxu1 %v17844_v52  ;;  %v17874_v18 = vld [vmem:[%s25152_s3 + $0x2aa8] ss:$20 sps:$4 sm:$0xff]   ;;  %v17879_v52 = vld [vmem:[%s25152_s3 + $0x2804] ss:$20 sps:$4 sm:$0xff]   ;;  %v17880_v23 = vld [vmem:[%s25152_s3 + $0x2a80] ss:$20 sps:$4 sm:$0xff]  }
 0x3d6   :  { %v11868_v35 = vpop.f32.mrf.mxu1  ;;  %12161 = vmatprep.subr.bf16.mxu1 %v17852_v36  ;;  %v17877_v36 = vld [vmem:[%s25152_s3 + $0x2800] ss:$20 sps:$4 sm:$0xff]   ;;  %v17883_v45 = vld [vmem:[%s25152_s3 + $0x2a58] ss:$20 sps:$4 sm:$0xff]   ;;  %v17888_v51 = vld [vmem:[%s25152_s3 + $0x2cdc] ss:$20 sps:$4 sm:$0xff]  }
 0x3d7   :  { %12121 = vmatpush1.bf16.msra.mxu0 %v17847_v34  ;;  %v17885_v34 = vld [vmem:[%s25152_s3 + $0x2a5c] ss:$20 sps:$4 sm:$0xff]  }
 0x3d8   :  { %12122 = vmatprep.subr.bf16.mxu0 %v17855_v33  ;;  %v17891_v33 = vld [vmem:[%s25152_s3 + $0x2a34] ss:$20 sps:$4 sm:$0xff]   ;;  %v17889_v35 = vld [vmem:[%s25152_s3 + $0x2a30] ss:$20 sps:$4 sm:$0xff]  }
 0x3d9   :  { %12162 = vmatpush1.bf16.msra.mxu1 %v17850_v13  ;;  %v17886_v13 = vld [vmem:[%s25152_s3 + $0x2cd8] ss:$20 sps:$4 sm:$0xff]  }
 0x3da   :  { %12163 = vmatprep.subr.bf16.mxu1 %v17858_v14  ;;  %v17892_v14 = vld [vmem:[%s25152_s3 + $0x2cb0] ss:$20 sps:$4 sm:$0xff]  }
 0x3db   :  { %12123 = vmatpush1.bf16.msra.mxu0 %v17853_v61  ;;  %v17894_v61 = vld [vmem:[%s25152_s3 + $0x2cb4] ss:$20 sps:$4 sm:$0xff]  }
 0x3dc   :  { %12124 = vmatprep.subr.bf16.mxu0 %v17861_v16  ;;  %v17895_v16 = vld [vmem:[%s25152_s3 + $0x2a08] ss:$20 sps:$4 sm:$0xff]  }
 0x3dd   :  { %12164 = vmatpush1.bf16.msra.mxu1 %v17856_v62  ;;  %v17897_v62 = vld [vmem:[%s25152_s3 + $0x2a0c] ss:$20 sps:$4 sm:$0xff]  }
 0x3de   :  { %12165 = vmatprep.subr.bf16.mxu1 %v17864_v0  ;;  %v17898_v0 = vld [vmem:[%s25152_s3 + $0x2c88] ss:$20 sps:$4 sm:$0xff]  }
 0x3df   :  { %12125 = vmatpush1.bf16.msra.mxu0 %v17859_v30  ;;  %v17900_v30 = vld [vmem:[%s25152_s3 + $0x2c8c] ss:$20 sps:$4 sm:$0xff]  }
 0x3e0   :  { %12126 = vmatprep.subr.bf16.mxu0 %v17867_v58  ;;  %v17901_v58 = vld [vmem:[%s25152_s3 + $0x29e0] ss:$20 sps:$4 sm:$0xff]  }
 0x3e1   :  { %12166 = vmatpush1.bf16.msra.mxu1 %v17862_v8  ;;  %v17903_v8 = vld [vmem:[%s25152_s3 + $0x29e4] ss:$20 sps:$4 sm:$0xff]  }
 0x3e2   :  { %12167 = vmatprep.subr.bf16.mxu1 %v17870_v6  ;;  %v17904_v6 = vld [vmem:[%s25152_s3 + $0x2c60] ss:$20 sps:$4 sm:$0xff]  }
 0x3e3   :  { %12127 = vmatpush1.bf16.msra.mxu0 %v17865_v25  ;;  %v17906_v25 = vld [vmem:[%s25152_s3 + $0x2c64] ss:$20 sps:$4 sm:$0xff]  }
 0x3e4   :  { %12128 = vmatprep.subr.bf16.mxu0 %v17873_v4  ;;  %v17907_v4 = vld [vmem:[%s25152_s3 + $0x29b8] ss:$20 sps:$4 sm:$0xff]  }
 0x3e5   :  { %12168 = vmatpush1.bf16.msra.mxu1 %v17868_v22  ;;  %v17909_v22 = vld [vmem:[%s25152_s3 + $0x29bc] ss:$20 sps:$4 sm:$0xff]  }
 0x3e6   :  { %12169 = vmatprep.subr.bf16.mxu1 %v17876_v3  ;;  %v17910_v3 = vld [vmem:[%s25152_s3 + $0x2c38] ss:$20 sps:$4 sm:$0xff]  }
 0x3e7   :  { %12129 = vmatpush1.bf16.msra.mxu0 %v17871_v27  ;;  %v17912_v27 = vld [vmem:[%s25152_s3 + $0x2c3c] ss:$20 sps:$4 sm:$0xff]  }
 0x3e8   :  { %12130 = vmatprep.subr.bf16.mxu0 %v17879_v52  ;;  %v17913_v52 = vld [vmem:[%s25152_s3 + $0x2990] ss:$20 sps:$4 sm:$0xff]  }
 0x3e9   :  { %12170 = vmatpush1.bf16.msra.mxu1 %v17874_v18  ;;  %v17915_v18 = vld [vmem:[%s25152_s3 + $0x2994] ss:$20 sps:$4 sm:$0xff]  }
 0x3ea   :  { %12171 = vmatprep.subr.bf16.mxu1 %v17882_v11  ;;  %v17916_v11 = vld [vmem:[%s25152_s3 + $0x2c10] ss:$20 sps:$4 sm:$0xff]  }
 0x3eb   :  { %12131 = vmatpush1.bf16.msra.mxu0 %v17877_v36  ;;  %v17918_v36 = vld [vmem:[%s25152_s3 + $0x2c14] ss:$20 sps:$4 sm:$0xff]  }
 0x3ec   :  { %12132 = vmatprep.subr.bf16.mxu0 %v17885_v34  ;;  %v17919_v34 = vld [vmem:[%s25152_s3 + $0x2968] ss:$20 sps:$4 sm:$0xff]  }
 0x3ed   :  { %12172 = vmatpush1.bf16.msra.mxu1 %v17880_v23  ;;  %v17921_v23 = vld [vmem:[%s25152_s3 + $0x296c] ss:$20 sps:$4 sm:$0xff]  }
 0x3ee   :  { %12173 = vmatprep.subr.bf16.mxu1 %v17888_v51  ;;  %v17922_v51 = vld [vmem:[%s25152_s3 + $0x2be8] ss:$20 sps:$4 sm:$0xff]  }
 0x3ef   :  { %12133 = vmatpush2.bf16.msra.mxu0 %v17883_v45  ;;  %v17924_v45 = vld [vmem:[%s25152_s3 + $0x2bec] ss:$20 sps:$4 sm:$0xff]  }
 0x3f0   :  { %12134 = vmatprep.subr.bf16.mxu0 %v17891_v33  ;;  %v17925_v33 = vld [vmem:[%s25152_s3 + $0x2940] ss:$20 sps:$4 sm:$0xff]  }
 0x3f1   :  { %12174 = vmatpush2.bf16.msra.mxu1 %v17886_v13  ;;  %v17927_v13 = vld [vmem:[%s25152_s3 + $0x2944] ss:$20 sps:$4 sm:$0xff]  }
 0x3f2   :  { %12175 = vmatprep.subr.bf16.mxu1 %v17894_v61  ;;  %v17928_v61 = vld [vmem:[%s25152_s3 + $0x2bc0] ss:$20 sps:$4 sm:$0xff]  }
 0x3f3   :  { %12135 = vmatpush2.bf16.msra.mxu0 %v17889_v35  ;;  %v17930_v35 = vld [vmem:[%s25152_s3 + $0x2bc4] ss:$20 sps:$4 sm:$0xff]  }
 0x3f4   :  { %12136 = vmatprep.subr.bf16.mxu0 %v17897_v62  ;;  %v17931_v62 = vld [vmem:[%s25152_s3 + $0x120] ss:$20 sps:$4 sm:$0xff]  }
 0x3f5   :  { %12176 = vmatpush2.bf16.msra.mxu1 %v17892_v14  ;;  %v17933_v14 = vld [vmem:[%s25152_s3 + $0x124] ss:$20 sps:$4 sm:$0xff]  }
 0x3f6   :  { %12177 = vmatprep.subr.bf16.mxu1 %v17900_v30  ;;  %v17934_v30 = vld [vmem:[%s25152_s3 + $0x3a0] ss:$20 sps:$4 sm:$0xff]  }
 0x3f7   :  { %12137 = vmatpush2.bf16.msra.mxu0 %v17895_v16  ;;  %v17936_v16 = vld [vmem:[%s25152_s3 + $0x3a4] ss:$20 sps:$4 sm:$0xff]  }
 0x3f8   :  { %12138 = vmatprep.subr.bf16.mxu0 %v17903_v8  ;;  %v22201_v8 = vpack.c.bf16 %v2177_v9, %v2177_v9  ;;  %v17937_v9 = vld [vmem:[%s25152_s3 + $0xf8] ss:$20 sps:$4 sm:$0xff]  }
 0x3f9   :  { %12178 = vmatpush2.bf16.msra.mxu1 %v17898_v0  ;;  %v17939_v0 = vld [vmem:[%s25152_s3 + $0xfc] ss:$20 sps:$4 sm:$0xff]  }
 0x3fa   :  { %12179 = vmatprep.subr.bf16.mxu1 %v17906_v25 }
 0x3fb   :  { %12139 = vmatpush2.bf16.msra.mxu0 %v17901_v58  ;;  %v17942_v58 = vld [vmem:[%s25152_s3 + $0x37c] ss:$20 sps:$4 sm:$0xff]  }
 0x3fc   :  { %12140 = vmatprep.subr.bf16.mxu0 %v17909_v22  ;;  %v17945_v22 = vld [vmem:[%s25152_s3 + $0xd4] ss:$20 sps:$4 sm:$0xff]  }
 0x3fd   :  { %12180 = vmatpush2.bf16.msra.mxu1 %v17904_v6  ;;  %v22210_v6 = vpack.c.bf16 %v2179_v28, %v2179_v28 }
 0x3fe   :  { %12181 = vmatprep.subr.bf16.mxu1 %v17912_v27 }
 0x3ff   :  { %12141 = vmatpush2.bf16.msra.mxu0 %v17907_v4 }
 0x400   :  { %12142 = vmatprep.subr.bf16.mxu0 %v17915_v18 }
 0x401   :  { %12182 = vmatpush2.bf16.msra.mxu1 %v17910_v3  ;;  %v17948_v3 = vld [vmem:[%s25152_s3 + $0x354] ss:$20 sps:$4 sm:$0xff]  }
 0x402   :  { %12183 = vmatprep.subr.bf16.mxu1 %v17918_v36 }
 0x403   :  { %12143 = vmatpush2.bf16.msra.mxu0 %v17913_v52 }
 0x404   :  { %12144 = vmatprep.subr.bf16.mxu0 %v17921_v23 }
 0x405   :  { %12184 = vmatpush2.bf16.msra.mxu1 %v17916_v11 }
 0x406   :  { %12185 = vmatprep.subr.bf16.mxu1 %v17924_v45  ;;  %v17951_v45 = vld [vmem:[%s25152_s3 + $0xac] ss:$20 sps:$4 sm:$0xff]  }
 0x407   :  { %12145 = vmatpush2.bf16.msra.mxu0 %v17919_v34  ;;  %v17946_v34 = vld [vmem:[%s25152_s3 + $0x350] ss:$20 sps:$4 sm:$0xff]  }
 0x408   :  { %12146 = vmatprep.subr.bf16.mxu0 %v17927_v13  ;;  %v17949_v13 = vld [vmem:[%s25152_s3 + $0xa8] ss:$20 sps:$4 sm:$0xff]  }
 0x409   :  { %12186 = vmatpush2.bf16.msra.mxu1 %v17922_v51 }
 0x40a   :  { %12187 = vmatprep.subr.bf16.mxu1 %v17930_v35  ;;  %v17952_v35 = vld [vmem:[%s25152_s3 + $0x328] ss:$20 sps:$4 sm:$0xff]  }
 0x40b   :  { %12147 = vmatpush2.bf16.msra.mxu0 %v17925_v33  ;;  %v17954_v33 = vld [vmem:[%s25152_s3 + $0x32c] ss:$20 sps:$4 sm:$0xff]  }
 0x40c   :  { %12198 = vmatprep.subr.bf16.mxu0 %v17933_v14  ;;  %v17955_v14 = vld [vmem:[%s25152_s3 + $0x80] ss:$20 sps:$4 sm:$0xff]  }
 0x40d   :  { %12188 = vmatpush2.bf16.msra.mxu1 %v17928_v61  ;;  %v17957_v61 = vld [vmem:[%s25152_s3 + $0x84] ss:$20 sps:$4 sm:$0xff]  }
 0x40e   :  { %v11904_v25 = vpop.f32.mrf.mxu0  ;;  %12149 = vmatmul.mubr.bf16.vlgmr.msra.gmra.mxu0 %v22201_v8  ;;  %12239 = vmatprep.subr.bf16.mxu1 %v17936_v16  ;;  %v17958_v16 = vld [vmem:[%s25152_s3 + $0x300] ss:$20 sps:$4 sm:$0xff]  }
 0x40f   :  { %v11905_v49 = vadd.f32 %v11904_v25, %v22008_v7  ;;  %12199 = vmatpush1.bf16.msra.mxu0 %v17931_v62  ;;  %12230 = vmatprep.mubr.bf16.mxu0 %v20305_v54  ;;  %v17940_v7 = vld [vmem:[%s25152_s3 + $0x378] ss:$20 sps:$4 sm:$0xff]  }
 0x410   :  { %v11906_v4 = vpop.f32.mrf.mxu0  ;;  %v11945_v27 = vpop.f32.mrf.mxu1  ;;  %12190 = vmatmul.mubr.bf16.vlgmr.msra.gmra.mxu1 %v22210_v6  ;;  %12200 = vmatprep.subr.bf16.mxu0 %v17939_v0  ;;  %v17960_v62 = vld [vmem:[%s25152_s3 + $0x304] ss:$20 sps:$4 sm:$0xff]  }
 0x411   :  { %v11907_v38 = vadd.f32 %v11906_v4, %v22017_v26  ;;  %v22222_v28 = vadd.f32 %v11945_v27, %v11905_v49  ;;  %12240 = vmatpush1.bf16.msra.mxu1 %v17934_v30  ;;  %12271 = vmatprep.mubr.bf16.mxu1 %v20331_v63  ;;  %v17943_v26 = vld [vmem:[%s25152_s3 + $0xd0] ss:$20 sps:$4 sm:$0xff]   ;;  %v17961_v0 = vld [vmem:[%s25152_s3 + $0x58] ss:$20 sps:$4 sm:$0xff]   ;;  %v17969_v49 = vld [vmem:[%s25152_s3 + $0x34] ss:$20 sps:$4 sm:$0xff]  }
 0x412   :  { %v11908_v18 = vpop.f32.mrf.mxu0  ;;  %v11947_v52 = vpop.f32.mrf.mxu1  ;;  %12241 = vmatprep.subr.bf16.mxu1 %v17942_v58  ;;  %v17963_v30 = vld [vmem:[%s25152_s3 + $0x5c] ss:$20 sps:$4 sm:$0xff]   ;;  %v17964_v25 = vld [vmem:[%s25152_s3 + $0x2d8] ss:$20 sps:$4 sm:$0xff]  }
 0x413   :  { %v22231_v36 = vadd.f32 %v11947_v52, %v11907_v38  ;;  %12201 = vmatpush1.bf16.msra.mxu0 %v17937_v9  ;;  %v17966_v58 = vld [vmem:[%s25152_s3 + $0x2dc] ss:$20 sps:$4 sm:$0xff]   ;;  %v17975_v27 = vld [vmem:[%s25152_s3 + $0xc] ss:$20 sps:$4 sm:$0xff]   ;;  %v17981_v18 = vld [vmem:[%s25152_s3 + $0x264] ss:$20 sps:$4 sm:$0xff]  }
 0x414   :  { %v11909_v11 = vpop.f32.mrf.mxu0  ;;  %v11949_v23 = vpop.f32.mrf.mxu1  ;;  %12202 = vmatprep.subr.bf16.mxu0 %v17945_v22  ;;  %v17967_v9 = vld [vmem:[%s25152_s3 + $0x30] ss:$20 sps:$4 sm:$0xff]   ;;  %v17972_v22 = vld [vmem:[%s25152_s3 + $0x2b4] ss:$20 sps:$4 sm:$0xff]  }
 0x415   :  { %12242 = vmatpush1.bf16.msra.mxu1 %v17940_v7  ;;  %v17970_v4 = vld [vmem:[%s25152_s3 + $0x2b0] ss:$20 sps:$4 sm:$0xff]   ;;  %v17973_v38 = vld [vmem:[%s25152_s3 + $0x8] ss:$20 sps:$4 sm:$0xff]   ;;  %v17978_v7 = vld [vmem:[%s25152_s3 + $0x28c] ss:$20 sps:$4 sm:$0xff]  }
 0x416   :  { %v11950_v51 = vpop.f32.mrf.mxu1  ;;  %12243 = vmatprep.subr.bf16.mxu1 %v17948_v3  ;;  %v17976_v3 = vld [vmem:[%s25152_s3 + $0x288] ss:$20 sps:$4 sm:$0xff]   ;;  %v17979_v52 = vld [vmem:[%s25152_s3 + $0x260] ss:$20 sps:$4 sm:$0xff]  }
 0x417   :  { %12203 = vmatpush1.bf16.msra.mxu0 %v17943_v26  ;;  %v17984_v26 = vld [vmem:[%s25152_s3 + $0x4e4] ss:$20 sps:$4 sm:$0xff]   ;;  %v17982_v11 = vld [vmem:[%s25152_s3 + $0x4e0] ss:$20 sps:$4 sm:$0xff]   ;;  %v17987_v23 = vld [vmem:[%s25152_s3 + $0x23c] ss:$20 sps:$4 sm:$0xff]  }
 0x418   :  { %12204 = vmatprep.subr.bf16.mxu0 %v17951_v45  ;;  %v17990_v45 = vld [vmem:[%s25152_s3 + $0x4bc] ss:$20 sps:$4 sm:$0xff]   ;;  %v17988_v51 = vld [vmem:[%s25152_s3 + $0x4b8] ss:$20 sps:$4 sm:$0xff]  }
 0x419   :  { %12244 = vmatpush1.bf16.msra.mxu1 %v17946_v34  ;;  %v17985_v34 = vld [vmem:[%s25152_s3 + $0x238] ss:$20 sps:$4 sm:$0xff]  }
 0x41a   :  { %12245 = vmatprep.subr.bf16.mxu1 %v17954_v33  ;;  %v17991_v33 = vld [vmem:[%s25152_s3 + $0x210] ss:$20 sps:$4 sm:$0xff]  }
 0x41b   :  { %12205 = vmatpush1.bf16.msra.mxu0 %v17949_v13  ;;  %v17993_v13 = vld [vmem:[%s25152_s3 + $0x214] ss:$20 sps:$4 sm:$0xff]  }
 0x41c   :  { %12206 = vmatprep.subr.bf16.mxu0 %v17957_v61  ;;  %v17994_v61 = vld [vmem:[%s25152_s3 + $0x490] ss:$20 sps:$4 sm:$0xff]  }
 0x41d   :  { %12246 = vmatpush1.bf16.msra.mxu1 %v17952_v35  ;;  %v17996_v35 = vld [vmem:[%s25152_s3 + $0x494] ss:$20 sps:$4 sm:$0xff]  }
 0x41e   :  { %12247 = vmatprep.subr.bf16.mxu1 %v17960_v62  ;;  %v17997_v62 = vld [vmem:[%s25152_s3 + $0x1e8] ss:$20 sps:$4 sm:$0xff]  }
 0x41f   :  { %12207 = vmatpush1.bf16.msra.mxu0 %v17955_v14  ;;  %v17999_v14 = vld [vmem:[%s25152_s3 + $0x1ec] ss:$20 sps:$4 sm:$0xff]  }
 0x420   :  { %12208 = vmatprep.subr.bf16.mxu0 %v17963_v30  ;;  %v18000_v30 = vld [vmem:[%s25152_s3 + $0x468] ss:$20 sps:$4 sm:$0xff]  }
 0x421   :  { %12248 = vmatpush1.bf16.msra.mxu1 %v17958_v16  ;;  %v18002_v16 = vld [vmem:[%s25152_s3 + $0x46c] ss:$20 sps:$4 sm:$0xff]  }
 0x422   :  { %12249 = vmatprep.subr.bf16.mxu1 %v17966_v58  ;;  %v18003_v58 = vld [vmem:[%s25152_s3 + $0x1c0] ss:$20 sps:$4 sm:$0xff]  }
 0x423   :  { %12209 = vmatpush1.bf16.msra.mxu0 %v17961_v0  ;;  %v18005_v0 = vld [vmem:[%s25152_s3 + $0x1c4] ss:$20 sps:$4 sm:$0xff]  }
 0x424   :  { %12210 = vmatprep.subr.bf16.mxu0 %v17969_v49  ;;  %v18006_v49 = vld [vmem:[%s25152_s3 + $0x440] ss:$20 sps:$4 sm:$0xff]  }
 0x425   :  { %12250 = vmatpush1.bf16.msra.mxu1 %v17964_v25  ;;  %v18008_v25 = vld [vmem:[%s25152_s3 + $0x444] ss:$20 sps:$4 sm:$0xff]  }
 0x426   :  { %12251 = vmatprep.subr.bf16.mxu1 %v17972_v22  ;;  %v18009_v22 = vld [vmem:[%s25152_s3 + $0x198] ss:$20 sps:$4 sm:$0xff]  }
 0x427   :  { %12211 = vmatpush1.bf16.msra.mxu0 %v17967_v9  ;;  %v18011_v9 = vld [vmem:[%s25152_s3 + $0x19c] ss:$20 sps:$4 sm:$0xff]  }
 0x428   :  { %12212 = vmatprep.subr.bf16.mxu0 %v17975_v27  ;;  %v18012_v27 = vld [vmem:[%s25152_s3 + $0x418] ss:$20 sps:$4 sm:$0xff]  }
 0x429   :  { %12252 = vmatpush1.bf16.msra.mxu1 %v17970_v4  ;;  %v18014_v4 = vld [vmem:[%s25152_s3 + $0x41c] ss:$20 sps:$4 sm:$0xff]  }
 0x42a   :  { %12253 = vmatprep.subr.bf16.mxu1 %v17978_v7  ;;  %v18015_v7 = vld [vmem:[%s25152_s3 + $0x170] ss:$20 sps:$4 sm:$0xff]  }
 0x42b   :  { %12213 = vmatpush1.bf16.msra.mxu0 %v17973_v38  ;;  %v18017_v38 = vld [vmem:[%s25152_s3 + $0x174] ss:$20 sps:$4 sm:$0xff]  }
 0x42c   :  { %12214 = vmatprep.subr.bf16.mxu0 %v17981_v18  ;;  %v18018_v18 = vld [vmem:[%s25152_s3 + $0x3f0] ss:$20 sps:$4 sm:$0xff]  }
 0x42d   :  { %12254 = vmatpush1.bf16.msra.mxu1 %v17976_v3  ;;  %v18020_v3 = vld [vmem:[%s25152_s3 + $0x3f4] ss:$20 sps:$4 sm:$0xff]  }
 0x42e   :  { %12255 = vmatprep.subr.bf16.mxu1 %v17984_v26  ;;  %v18021_v26 = vld [vmem:[%s25152_s3 + $0x148] ss:$20 sps:$4 sm:$0xff]  }
 0x42f   :  { %12215 = vmatpush2.bf16.msra.mxu0 %v17979_v52  ;;  %v18023_v52 = vld [vmem:[%s25152_s3 + $0x14c] ss:$20 sps:$4 sm:$0xff]  }
 0x430   :  { %12216 = vmatprep.subr.bf16.mxu0 %v17987_v23  ;;  %v18024_v23 = vld [vmem:[%s25152_s3 + $0x3c8] ss:$20 sps:$4 sm:$0xff]  }
 0x431   :  { %12256 = vmatpush2.bf16.msra.mxu1 %v17982_v11  ;;  %v18026_v11 = vld [vmem:[%s25152_s3 + $0x3cc] ss:$20 sps:$4 sm:$0xff]  }
 0x432   :  { %12257 = vmatprep.subr.bf16.mxu1 %v17990_v45  ;;  %v18027_v45 = vld [vmem:[%s25152_s3 + $0x620] ss:$20 sps:$4 sm:$0xff]  }
 0x433   :  { %12217 = vmatpush2.bf16.msra.mxu0 %v17985_v34  ;;  %v18029_v34 = vld [vmem:[%s25152_s3 + $0x624] ss:$20 sps:$4 sm:$0xff]  }
 0x434   :  { %12218 = vmatprep.subr.bf16.mxu0 %v17993_v13  ;;  %v18030_v13 = vld [vmem:[%s25152_s3 + $0x8a0] ss:$20 sps:$4 sm:$0xff]  }
 0x435   :  { %12258 = vmatpush2.bf16.msra.mxu1 %v17988_v51  ;;  %v18032_v51 = vld [vmem:[%s25152_s3 + $0x8a4] ss:$20 sps:$4 sm:$0xff]  }
 0x436   :  { %12259 = vmatprep.subr.bf16.mxu1 %v17996_v35 }
 0x437   :  { %12219 = vmatpush2.bf16.msra.mxu0 %v17991_v33  ;;  %v18035_v33 = vld [vmem:[%s25152_s3 + $0x5fc] ss:$20 sps:$4 sm:$0xff]  }
 0x438   :  { %12220 = vmatprep.subr.bf16.mxu0 %v17999_v14 }
 0x439   :  { %12260 = vmatpush2.bf16.msra.mxu1 %v17994_v61  ;;  %v18038_v61 = vld [vmem:[%s25152_s3 + $0x87c] ss:$20 sps:$4 sm:$0xff]  }
 0x43a   :  { %12261 = vmatprep.subr.bf16.mxu1 %v18002_v16 }
 0x43b   :  { %12221 = vmatpush2.bf16.msra.mxu0 %v17997_v62  ;;  %v18033_v62 = vld [vmem:[%s25152_s3 + $0x5f8] ss:$20 sps:$4 sm:$0xff]  }
 0x43c   :  { %12222 = vmatprep.subr.bf16.mxu0 %v18005_v0  ;;  %v18041_v0 = vld [vmem:[%s25152_s3 + $0x5d4] ss:$20 sps:$4 sm:$0xff]  }
 0x43d   :  { %12262 = vmatpush2.bf16.msra.mxu1 %v18000_v30 }
 0x43e   :  { %12263 = vmatprep.subr.bf16.mxu1 %v18008_v25 }
 0x43f   :  { %12223 = vmatpush2.bf16.msra.mxu0 %v18003_v58 }
 0x440   :  { %12224 = vmatprep.subr.bf16.mxu0 %v18011_v9 }
 0x441   :  { %12264 = vmatpush2.bf16.msra.mxu1 %v18006_v49 }
 0x442   :  { %12265 = vmatprep.subr.bf16.mxu1 %v18014_v4 }
 0x443   :  { %12225 = vmatpush2.bf16.msra.mxu0 %v18009_v22  ;;  %v18044_v22 = vld [vmem:[%s25152_s3 + $0x854] ss:$20 sps:$4 sm:$0xff]  }
 0x444   :  { %12226 = vmatprep.subr.bf16.mxu0 %v18017_v38 }
 0x445   :  { %12266 = vmatpush2.bf16.msra.mxu1 %v18012_v27 }
 0x446   :  { %12267 = vmatprep.subr.bf16.mxu1 %v18020_v3  ;;  %v18042_v3 = vld [vmem:[%s25152_s3 + $0x850] ss:$20 sps:$4 sm:$0xff]  }
 0x447   :  { %12227 = vmatpush2.bf16.msra.mxu0 %v18015_v7  ;;  %v18047_v7 = vld [vmem:[%s25152_s3 + $0x5ac] ss:$20 sps:$4 sm:$0xff]  }
 0x448   :  { %12228 = vmatprep.subr.bf16.mxu0 %v18023_v52  ;;  %v18050_v52 = vld [vmem:[%s25152_s3 + $0x82c] ss:$20 sps:$4 sm:$0xff]  }
 0x449   :  { %12268 = vmatpush2.bf16.msra.mxu1 %v18018_v18 }
 0x44a   :  { %12269 = vmatprep.subr.bf16.mxu1 %v18026_v11  ;;  %v18053_v11 = vld [vmem:[%s25152_s3 + $0x584] ss:$20 sps:$4 sm:$0xff]  }
 0x44b   :  { %12229 = vmatpush2.bf16.msra.mxu0 %v18021_v26  ;;  %v18045_v26 = vld [vmem:[%s25152_s3 + $0x5a8] ss:$20 sps:$4 sm:$0xff]  }
 0x44c   :  { %12280 = vmatprep.subr.bf16.mxu0 %v18029_v34  ;;  %v18056_v34 = vld [vmem:[%s25152_s3 + $0x804] ss:$20 sps:$4 sm:$0xff]  }
 0x44d   :  { %12270 = vmatpush2.bf16.msra.mxu1 %v18024_v23  ;;  %v18048_v23 = vld [vmem:[%s25152_s3 + $0x828] ss:$20 sps:$4 sm:$0xff]  }
 0x44e   :  { %v11986_v35 = vpop.f32.mrf.mxu0  ;;  %12231 = vmatmul.mubr.bf16.vlgmr.msra.gmra.mxu0 %v20334_v1  ;;  %12321 = vmatprep.subr.bf16.mxu1 %v18032_v51  ;;  %v18059_v51 = vld [vmem:[%s25152_s3 + $0x55c] ss:$20 sps:$4 sm:$0xff]  }
 0x44f   :  { %v11987_v14 = vadd.f32 %v11986_v35, %v22222_v28  ;;  %12281 = vmatpush1.bf16.msra.mxu0 %v18027_v45  ;;  %12312 = vmatprep.mubr.bf16.mxu0 %v20661_v24  ;;  %v18036_v28 = vld [vmem:[%s25152_s3 + $0x878] ss:$20 sps:$4 sm:$0xff]   ;;  %v18051_v45 = vld [vmem:[%s25152_s3 + $0x580] ss:$20 sps:$4 sm:$0xff]  }
 0x450   :  { %v11988_v16 = vpop.f32.mrf.mxu0  ;;  %v12027_v30 = vpop.f32.mrf.mxu1  ;;  %12272 = vmatmul.mubr.bf16.vlgmr.msra.gmra.mxu1 %v20366_v10  ;;  %12282 = vmatprep.subr.bf16.mxu0 %v18035_v33  ;;  %v18062_v33 = vld [vmem:[%s25152_s3 + $0x7dc] ss:$20 sps:$4 sm:$0xff]   ;;  %v18057_v35 = vld [vmem:[%s25152_s3 + $0x558] ss:$20 sps:$4 sm:$0xff]  }
 0x451   :  { %v11989_v58 = vadd.f32 %v11988_v16, %v22231_v36  ;;  %v22424_v25 = vadd.f32 %v12027_v30, %v11987_v14  ;;  %12322 = vmatpush1.bf16.msra.mxu1 %v18030_v13  ;;  %12353 = vmatprep.mubr.bf16.mxu1 %v20668_v37  ;;  %v18039_v36 = vld [vmem:[%s25152_s3 + $0x5d0] ss:$20 sps:$4 sm:$0xff]   ;;  %v18054_v13 = vld [vmem:[%s25152_s3 + $0x800] ss:$20 sps:$4 sm:$0xff]   ;;  %v18060_v14 = vld [vmem:[%s25152_s3 + $0x7d8] ss:$20 sps:$4 sm:$0xff]  }
 0x452   :  { %v11990_v49 = vpop.f32.mrf.mxu0  ;;  %v12029_v9 = vpop.f32.mrf.mxu1  ;;  %12323 = vmatprep.subr.bf16.mxu1 %v18038_v61  ;;  %v18065_v61 = vld [vmem:[%s25152_s3 + $0x534] ss:$20 sps:$4 sm:$0xff]   ;;  %v18063_v16 = vld [vmem:[%s25152_s3 + $0x530] ss:$20 sps:$4 sm:$0xff]   ;;  %v18071_v30 = vld [vmem:[%s25152_s3 + $0x50c] ss:$20 sps:$4 sm:$0xff]  }
 0x453   :  { %v22433_v4 = vadd.f32 %v12029_v9, %v11989_v58  ;;  %12283 = vmatpush1.bf16.msra.mxu0 %v18033_v62  ;;  %v18068_v62 = vld [vmem:[%s25152_s3 + $0x7b4] ss:$20 sps:$4 sm:$0xff]   ;;  %v18074_v58 = vld [vmem:[%s25152_s3 + $0x78c] ss:$20 sps:$4 sm:$0xff]   ;;  %v18077_v49 = vld [vmem:[%s25152_s3 + $0x764] ss:$20 sps:$4 sm:$0xff]  }
 0x454   :  { %v11991_v27 = vpop.f32.mrf.mxu0  ;;  %v12031_v38 = vpop.f32.mrf.mxu1  ;;  %12284 = vmatprep.subr.bf16.mxu0 %v18041_v0  ;;  %v18066_v0 = vld [vmem:[%s25152_s3 + $0x7b0] ss:$20 sps:$4 sm:$0xff]   ;;  %v18072_v9 = vld [vmem:[%s25152_s3 + $0x788] ss:$20 sps:$4 sm:$0xff]  }
 0x455   :  { %12324 = vmatpush1.bf16.msra.mxu1 %v18036_v28  ;;  %v18069_v28 = vld [vmem:[%s25152_s3 + $0x508] ss:$20 sps:$4 sm:$0xff]   ;;  %v18078_v38 = vld [vmem:[%s25152_s3 + $0x9e0] ss:$20 sps:$4 sm:$0xff]  }
 0x456   :  { %v12032_v18 = vpop.f32.mrf.mxu1  ;;  %12325 = vmatprep.subr.bf16.mxu1 %v18044_v22  ;;  %v18080_v22 = vld [vmem:[%s25152_s3 + $0x9e4] ss:$20 sps:$4 sm:$0xff]   ;;  %v18083_v27 = vld [vmem:[%s25152_s3 + $0x73c] ss:$20 sps:$4 sm:$0xff]  }
 0x457   :  { %12285 = vmatpush1.bf16.msra.mxu0 %v18039_v36  ;;  %v18075_v36 = vld [vmem:[%s25152_s3 + $0x760] ss:$20 sps:$4 sm:$0xff]  }
 0x458   :  { %12286 = vmatprep.subr.bf16.mxu0 %v18047_v7  ;;  %v18086_v7 = vld [vmem:[%s25152_s3 + $0x9bc] ss:$20 sps:$4 sm:$0xff]   ;;  %v18089_v18 = vld [vmem:[%s25152_s3 + $0x714] ss:$20 sps:$4 sm:$0xff]  }
 0x459   :  { %12326 = vmatpush1.bf16.msra.mxu1 %v18042_v3  ;;  %v18081_v3 = vld [vmem:[%s25152_s3 + $0x738] ss:$20 sps:$4 sm:$0xff]  }
 0x45a   :  { %12327 = vmatprep.subr.bf16.mxu1 %v18050_v52  ;;  %v18084_v52 = vld [vmem:[%s25152_s3 + $0x9b8] ss:$20 sps:$4 sm:$0xff]  }
 0x45b   :  { %12287 = vmatpush1.bf16.msra.mxu0 %v18045_v26  ;;  %v18092_v26 = vld [vmem:[%s25152_s3 + $0x994] ss:$20 sps:$4 sm:$0xff]  }
 0x45c   :  { %12288 = vmatprep.subr.bf16.mxu0 %v18053_v11  ;;  %v18087_v11 = vld [vmem:[%s25152_s3 + $0x710] ss:$20 sps:$4 sm:$0xff]  }
 0x45d   :  { %12328 = vmatpush1.bf16.msra.mxu1 %v18048_v23  ;;  %v18095_v23 = vld [vmem:[%s25152_s3 + $0x6ec] ss:$20 sps:$4 sm:$0xff]  }
 0x45e   :  { %12329 = vmatprep.subr.bf16.mxu1 %v18056_v34  ;;  %v18090_v34 = vld [vmem:[%s25152_s3 + $0x990] ss:$20 sps:$4 sm:$0xff]  }
 0x45f   :  { %12289 = vmatpush1.bf16.msra.mxu0 %v18051_v45  ;;  %v18098_v45 = vld [vmem:[%s25152_s3 + $0x96c] ss:$20 sps:$4 sm:$0xff]  }
 0x460   :  { %12290 = vmatprep.subr.bf16.mxu0 %v18059_v51  ;;  %v18093_v51 = vld [vmem:[%s25152_s3 + $0x6e8] ss:$20 sps:$4 sm:$0xff]  }
 0x461   :  { %12330 = vmatpush1.bf16.msra.mxu1 %v18054_v13  ;;  %v18101_v13 = vld [vmem:[%s25152_s3 + $0x6c4] ss:$20 sps:$4 sm:$0xff]  }
 0x462   :  { %12331 = vmatprep.subr.bf16.mxu1 %v18062_v33  ;;  %v18096_v33 = vld [vmem:[%s25152_s3 + $0x968] ss:$20 sps:$4 sm:$0xff]  }
 0x463   :  { %12291 = vmatpush1.bf16.msra.mxu0 %v18057_v35  ;;  %v18104_v35 = vld [vmem:[%s25152_s3 + $0x944] ss:$20 sps:$4 sm:$0xff]  }
 0x464   :  { %12292 = vmatprep.subr.bf16.mxu0 %v18065_v61  ;;  %v18099_v61 = vld [vmem:[%s25152_s3 + $0x6c0] ss:$20 sps:$4 sm:$0xff]  }
 0x465   :  { %12332 = vmatpush1.bf16.msra.mxu1 %v18060_v14  ;;  %v18107_v14 = vld [vmem:[%s25152_s3 + $0x69c] ss:$20 sps:$4 sm:$0xff]  }
 0x466   :  { %12333 = vmatprep.subr.bf16.mxu1 %v18068_v62  ;;  %v18102_v62 = vld [vmem:[%s25152_s3 + $0x940] ss:$20 sps:$4 sm:$0xff]  }
 0x467   :  { %12293 = vmatpush1.bf16.msra.mxu0 %v18063_v16  ;;  %v18110_v16 = vld [vmem:[%s25152_s3 + $0x91c] ss:$20 sps:$4 sm:$0xff]  }
 0x468   :  { %12294 = vmatprep.subr.bf16.mxu0 %v18071_v30  ;;  %v18105_v30 = vld [vmem:[%s25152_s3 + $0x698] ss:$20 sps:$4 sm:$0xff]  }
 0x469   :  { %12334 = vmatpush1.bf16.msra.mxu1 %v18066_v0  ;;  %v18113_v0 = vld [vmem:[%s25152_s3 + $0x674] ss:$20 sps:$4 sm:$0xff]  }
 0x46a   :  { %12335 = vmatprep.subr.bf16.mxu1 %v18074_v58  ;;  %v18108_v58 = vld [vmem:[%s25152_s3 + $0x918] ss:$20 sps:$4 sm:$0xff]  }
 0x46b   :  { %12295 = vmatpush1.bf16.msra.mxu0 %v18069_v28  ;;  %v18116_v28 = vld [vmem:[%s25152_s3 + $0x8f4] ss:$20 sps:$4 sm:$0xff]  }
 0x46c   :  { %12296 = vmatprep.subr.bf16.mxu0 %v18077_v49  ;;  %v18111_v49 = vld [vmem:[%s25152_s3 + $0x670] ss:$20 sps:$4 sm:$0xff]  }
 0x46d   :  { %12336 = vmatpush1.bf16.msra.mxu1 %v18072_v9  ;;  %v18119_v9 = vld [vmem:[%s25152_s3 + $0x64c] ss:$20 sps:$4 sm:$0xff]  }
 0x46e   :  { %12337 = vmatprep.subr.bf16.mxu1 %v18080_v22  ;;  %v18114_v22 = vld [vmem:[%s25152_s3 + $0x8f0] ss:$20 sps:$4 sm:$0xff]  }
 0x46f   :  { %12297 = vmatpush2.bf16.msra.mxu0 %v18075_v36  ;;  %v18122_v36 = vld [vmem:[%s25152_s3 + $0x8cc] ss:$20 sps:$4 sm:$0xff]  }
 0x470   :  { %12298 = vmatprep.subr.bf16.mxu0 %v18083_v27  ;;  %v18117_v27 = vld [vmem:[%s25152_s3 + $0x648] ss:$20 sps:$4 sm:$0xff]  }
 0x471   :  { %12338 = vmatpush2.bf16.msra.mxu1 %v18078_v38  ;;  %v18125_v38 = vld [vmem:[%s25152_s3 + $0xb24] ss:$20 sps:$4 sm:$0xff]  }
 0x472   :  { %12339 = vmatprep.subr.bf16.mxu1 %v18086_v7  ;;  %v18120_v7 = vld [vmem:[%s25152_s3 + $0x8c8] ss:$20 sps:$4 sm:$0xff]  }
 0x473   :  { %12299 = vmatpush2.bf16.msra.mxu0 %v18081_v3  ;;  %v18128_v3 = vld [vmem:[%s25152_s3 + $0xda4] ss:$20 sps:$4 sm:$0xff]  }
 0x474   :  { %12300 = vmatprep.subr.bf16.mxu0 %v18089_v18  ;;  %v18123_v18 = vld [vmem:[%s25152_s3 + $0xb20] ss:$20 sps:$4 sm:$0xff]  }
 0x475   :  { %12340 = vmatpush2.bf16.msra.mxu1 %v18084_v52  ;;  %v18131_v52 = vld [vmem:[%s25152_s3 + $0xafc] ss:$20 sps:$4 sm:$0xff]  }
 0x476   :  { %12341 = vmatprep.subr.bf16.mxu1 %v18092_v26  ;;  %v18126_v26 = vld [vmem:[%s25152_s3 + $0xda0] ss:$20 sps:$4 sm:$0xff]  }
 0x477   :  { %12301 = vmatpush2.bf16.msra.mxu0 %v18087_v11 }
 0x478   :  { %12302 = vmatprep.subr.bf16.mxu0 %v18095_v23  ;;  %v18134_v23 = vld [vmem:[%s25152_s3 + $0xd7c] ss:$20 sps:$4 sm:$0xff]  }
 0x479   :  { %12342 = vmatpush2.bf16.msra.mxu1 %v18090_v34 }
 0x47a   :  { %12343 = vmatprep.subr.bf16.mxu1 %v18098_v45  ;;  %v18129_v45 = vld [vmem:[%s25152_s3 + $0xaf8] ss:$20 sps:$4 sm:$0xff]  }
 0x47b   :  { %12303 = vmatpush2.bf16.msra.mxu0 %v18093_v51 }
 0x47c   :  { %12304 = vmatprep.subr.bf16.mxu0 %v18101_v13 }
 0x47d   :  { %12344 = vmatpush2.bf16.msra.mxu1 %v18096_v33  ;;  %v18137_v33 = vld [vmem:[%s25152_s3 + $0xad4] ss:$20 sps:$4 sm:$0xff]  }
 0x47e   :  { %12345 = vmatprep.subr.bf16.mxu1 %v18104_v35 }
 0x47f   :  { %12305 = vmatpush2.bf16.msra.mxu0 %v18099_v61 }
 0x480   :  { %12306 = vmatprep.subr.bf16.mxu0 %v18107_v14 }
 0x481   :  { %12346 = vmatpush2.bf16.msra.mxu1 %v18102_v62 }
 0x482   :  { %12347 = vmatprep.subr.bf16.mxu1 %v18110_v16  ;;  %v18140_v16 = vld [vmem:[%s25152_s3 + $0xd54] ss:$20 sps:$4 sm:$0xff]  }
 0x483   :  { %12307 = vmatpush2.bf16.msra.mxu0 %v18105_v30 }
 0x484   :  { %12308 = vmatprep.subr.bf16.mxu0 %v18113_v0 }
 0x485   :  { %12348 = vmatpush2.bf16.msra.mxu1 %v18108_v58 }
 0x486   :  { %12349 = vmatprep.subr.bf16.mxu1 %v18116_v28  ;;  %v18143_v28 = vld [vmem:[%s25152_s3 + $0xaac] ss:$20 sps:$4 sm:$0xff]  }
 0x487   :  { %12309 = vmatpush2.bf16.msra.mxu0 %v18111_v49  ;;  %v18138_v49 = vld [vmem:[%s25152_s3 + $0xd50] ss:$20 sps:$4 sm:$0xff]  }
 0x488   :  { %12310 = vmatprep.subr.bf16.mxu0 %v18119_v9 }
 0x489   :  { %12350 = vmatpush2.bf16.msra.mxu1 %v18114_v22  ;;  %v18146_v22 = vld [vmem:[%s25152_s3 + $0xd2c] ss:$20 sps:$4 sm:$0xff]  }
 0x48a   :  { %12351 = vmatprep.subr.bf16.mxu1 %v18122_v36  ;;  %v18141_v36 = vld [vmem:[%s25152_s3 + $0xaa8] ss:$20 sps:$4 sm:$0xff]  }
 0x48b   :  { %12311 = vmatpush2.bf16.msra.mxu0 %v18117_v27  ;;  %v18149_v27 = vld [vmem:[%s25152_s3 + $0xa84] ss:$20 sps:$4 sm:$0xff]  }
 0x48c   :  { %12362 = vmatprep.subr.bf16.mxu0 %v18125_v38  ;;  %v18144_v38 = vld [vmem:[%s25152_s3 + $0xd28] ss:$20 sps:$4 sm:$0xff]  }
 0x48d   :  { %12352 = vmatpush2.bf16.msra.mxu1 %v18120_v7  ;;  %v18152_v7 = vld [vmem:[%s25152_s3 + $0xd04] ss:$20 sps:$4 sm:$0xff]  }
 0x48e   :  { %v12068_v11 = vpop.f32.mrf.mxu0  ;;  %12313 = vmatmul.mubr.bf16.vlgmr.msra.gmra.mxu0 %v20677_v53  ;;  %12403 = vmatprep.subr.bf16.mxu1 %v18128_v3  ;;  %v18147_v3 = vld [vmem:[%s25152_s3 + $0xa80] ss:$20 sps:$4 sm:$0xff]  }
 0x48f   :  { %v12069_v34 = vadd.f32 %v12068_v11, %v22424_v25  ;;  %12363 = vmatpush1.bf16.msra.mxu0 %v18123_v18  ;;  %12394 = vmatprep.mubr.bf16.mxu0 %v20682_v60  ;;  %v18132_v25 = vld [vmem:[%s25152_s3 + $0xd78] ss:$20 sps:$4 sm:$0xff]   ;;  %v18155_v18 = vld [vmem:[%s25152_s3 + $0xa5c] ss:$20 sps:$4 sm:$0xff]  }
 0x490   :  { %v12070_v51 = vpop.f32.mrf.mxu0  ;;  %v12109_v13 = vpop.f32.mrf.mxu1  ;;  %12354 = vmatmul.mubr.bf16.vlgmr.msra.gmra.mxu1 %v20685_v42  ;;  %12364 = vmatprep.subr.bf16.mxu0 %v18131_v52  ;;  %v18150_v52 = vld [vmem:[%s25152_s3 + $0xd00] ss:$20 sps:$4 sm:$0xff]   ;;  %v18153_v11 = vld [vmem:[%s25152_s3 + $0xa58] ss:$20 sps:$4 sm:$0xff]  }
 0x491   :  { %v12071_v35 = vadd.f32 %v12070_v51, %v22433_v4  ;;  %v22626_v61 = vadd.f32 %v12109_v13, %v12069_v34  ;;  %12404 = vmatpush1.bf16.msra.mxu1 %v18126_v26  ;;  %12435 = vmatprep.mubr.bf16.mxu1 %v20696_v57  ;;  %v18135_v4 = vld [vmem:[%s25152_s3 + $0xad0] ss:$20 sps:$4 sm:$0xff]   ;;  %v18156_v34 = vld [vmem:[%s25152_s3 + $0xcd8] ss:$20 sps:$4 sm:$0xff]  }
 0x492   :  { %v12072_v14 = vpop.f32.mrf.mxu0  ;;  %v12111_v62 = vpop.f32.mrf.mxu1  ;;  %12405 = vmatprep.subr.bf16.mxu1 %v18134_v23  ;;  %v18158_v26 = vld [vmem:[%s25152_s3 + $0xcdc] ss:$20 sps:$4 sm:$0xff]   ;;  %v18161_v23 = vld [vmem:[%s25152_s3 + $0xa34] ss:$20 sps:$4 sm:$0xff]   ;;  %v18167_v13 = vld [vmem:[%s25152_s3 + $0xa0c] ss:$20 sps:$4 sm:$0xff]  }
 0x493   :  { %v22635_v30 = vadd.f32 %v12111_v62, %v12071_v35  ;;  %12365 = vmatpush1.bf16.msra.mxu0 %v18129_v45  ;;  %v18164_v45 = vld [vmem:[%s25152_s3 + $0xcb4] ss:$20 sps:$4 sm:$0xff]   ;;  %v18159_v51 = vld [vmem:[%s25152_s3 + $0xa30] ss:$20 sps:$4 sm:$0xff]   ;;  %v18170_v35 = vld [vmem:[%s25152_s3 + $0xc8c] ss:$20 sps:$4 sm:$0xff]  }
 0x494   :  { %v12073_v0 = vpop.f32.mrf.mxu0  ;;  %v12113_v58 = vpop.f32.mrf.mxu1  ;;  %12366 = vmatprep.subr.bf16.mxu0 %v18137_v33  ;;  %v18162_v33 = vld [vmem:[%s25152_s3 + $0xcb0] ss:$20 sps:$4 sm:$0xff]   ;;  %v18168_v62 = vld [vmem:[%s25152_s3 + $0xc88] ss:$20 sps:$4 sm:$0xff]  }
 0x495   :  { %12406 = vmatpush1.bf16.msra.mxu1 %v18132_v25  ;;  %v18165_v25 = vld [vmem:[%s25152_s3 + $0xa08] ss:$20 sps:$4 sm:$0xff]   ;;  %v18173_v14 = vld [vmem:[%s25152_s3 + $0xc64] ss:$20 sps:$4 sm:$0xff]   ;;  %v18174_v58 = vld [vmem:[%s25152_s3 + $0xee0] ss:$20 sps:$4 sm:$0xff]  }
 0x496   :  { %v12114_v9 = vpop.f32.mrf.mxu1  ;;  %12407 = vmatprep.subr.bf16.mxu1 %v18140_v16  ;;  %v18176_v16 = vld [vmem:[%s25152_s3 + $0xee4] ss:$20 sps:$4 sm:$0xff]   ;;  %v18179_v0 = vld [vmem:[%s25152_s3 + $0xc3c] ss:$20 sps:$4 sm:$0xff]  }
 0x497   :  { %12367 = vmatpush1.bf16.msra.mxu0 %v18135_v4  ;;  %v18171_v4 = vld [vmem:[%s25152_s3 + $0xc60] ss:$20 sps:$4 sm:$0xff]  }
 0x498   :  { %12368 = vmatprep.subr.bf16.mxu0 %v18143_v28  ;;  %v18182_v28 = vld [vmem:[%s25152_s3 + $0xebc] ss:$20 sps:$4 sm:$0xff]   ;;  %v18185_v9 = vld [vmem:[%s25152_s3 + $0xc14] ss:$20 sps:$4 sm:$0xff]  }
 0x499   :  { %12408 = vmatpush1.bf16.msra.mxu1 %v18138_v49  ;;  %v18177_v49 = vld [vmem:[%s25152_s3 + $0xc38] ss:$20 sps:$4 sm:$0xff]  }
 0x49a   :  { %12409 = vmatprep.subr.bf16.mxu1 %v18146_v22  ;;  %v18180_v22 = vld [vmem:[%s25152_s3 + $0xeb8] ss:$20 sps:$4 sm:$0xff]  }
 0x49b   :  { %12369 = vmatpush1.bf16.msra.mxu0 %v18141_v36  ;;  %v18188_v36 = vld [vmem:[%s25152_s3 + $0xe94] ss:$20 sps:$4 sm:$0xff]  }
 0x49c   :  { %12370 = vmatprep.subr.bf16.mxu0 %v18149_v27  ;;  %v18183_v27 = vld [vmem:[%s25152_s3 + $0xc10] ss:$20 sps:$4 sm:$0xff]  }
 0x49d   :  { %12410 = vmatpush1.bf16.msra.mxu1 %v18144_v38  ;;  %v18191_v38 = vld [vmem:[%s25152_s3 + $0xbec] ss:$20 sps:$4 sm:$0xff]  }
 0x49e   :  { %12411 = vmatprep.subr.bf16.mxu1 %v18152_v7  ;;  %v18186_v7 = vld [vmem:[%s25152_s3 + $0xe90] ss:$20 sps:$4 sm:$0xff]  }
 0x49f   :  { %12371 = vmatpush1.bf16.msra.mxu0 %v18147_v3  ;;  %v18194_v3 = vld [vmem:[%s25152_s3 + $0xe6c] ss:$20 sps:$4 sm:$0xff]  }
 0x4a0   :  { %12372 = vmatprep.subr.bf16.mxu0 %v18155_v18  ;;  %v18189_v18 = vld [vmem:[%s25152_s3 + $0xbe8] ss:$20 sps:$4 sm:$0xff]  }
 0x4a1   :  { %12412 = vmatpush1.bf16.msra.mxu1 %v18150_v52  ;;  %v18197_v52 = vld [vmem:[%s25152_s3 + $0xbc4] ss:$20 sps:$4 sm:$0xff]  }
 0x4a2   :  { %12413 = vmatprep.subr.bf16.mxu1 %v18158_v26  ;;  %v18192_v26 = vld [vmem:[%s25152_s3 + $0xe68] ss:$20 sps:$4 sm:$0xff]  }
 0x4a3   :  { %12373 = vmatpush1.bf16.msra.mxu0 %v18153_v11  ;;  %v18200_v11 = vld [vmem:[%s25152_s3 + $0xe44] ss:$20 sps:$4 sm:$0xff]  }
 0x4a4   :  { %12374 = vmatprep.subr.bf16.mxu0 %v18161_v23  ;;  %v18195_v23 = vld [vmem:[%s25152_s3 + $0xbc0] ss:$20 sps:$4 sm:$0xff]  }
 0x4a5   :  { %12414 = vmatpush1.bf16.msra.mxu1 %v18156_v34  ;;  %v18203_v34 = vld [vmem:[%s25152_s3 + $0xb9c] ss:$20 sps:$4 sm:$0xff]  }
 0x4a6   :  { %12415 = vmatprep.subr.bf16.mxu1 %v18164_v45  ;;  %v18198_v45 = vld [vmem:[%s25152_s3 + $0xe40] ss:$20 sps:$4 sm:$0xff]  }
 0x4a7   :  { %12375 = vmatpush1.bf16.msra.mxu0 %v18159_v51  ;;  %v18206_v51 = vld [vmem:[%s25152_s3 + $0xe1c] ss:$20 sps:$4 sm:$0xff]  }
 0x4a8   :  { %12376 = vmatprep.subr.bf16.mxu0 %v18167_v13  ;;  %v18201_v13 = vld [vmem:[%s25152_s3 + $0xb98] ss:$20 sps:$4 sm:$0xff]  }
 0x4a9   :  { %12416 = vmatpush1.bf16.msra.mxu1 %v18162_v33  ;;  %v18209_v33 = vld [vmem:[%s25152_s3 + $0xb74] ss:$20 sps:$4 sm:$0xff]  }
 0x4aa   :  { %12417 = vmatprep.subr.bf16.mxu1 %v18170_v35  ;;  %v18204_v35 = vld [vmem:[%s25152_s3 + $0xe18] ss:$20 sps:$4 sm:$0xff]  }
 0x4ab   :  { %12377 = vmatpush1.bf16.msra.mxu0 %v18165_v25  ;;  %v18212_v25 = vld [vmem:[%s25152_s3 + $0xdf4] ss:$20 sps:$4 sm:$0xff]  }
 0x4ac   :  { %12378 = vmatprep.subr.bf16.mxu0 %v18173_v14  ;;  %v18207_v14 = vld [vmem:[%s25152_s3 + $0xb70] ss:$20 sps:$4 sm:$0xff]  }
 0x4ad   :  { %12418 = vmatpush1.bf16.msra.mxu1 %v18168_v62  ;;  %v18215_v62 = vld [vmem:[%s25152_s3 + $0xb4c] ss:$20 sps:$4 sm:$0xff]  }
 0x4ae   :  { %12419 = vmatprep.subr.bf16.mxu1 %v18176_v16  ;;  %v18210_v16 = vld [vmem:[%s25152_s3 + $0xdf0] ss:$20 sps:$4 sm:$0xff]  }
 0x4af   :  { %12379 = vmatpush2.bf16.msra.mxu0 %v18171_v4  ;;  %v18218_v4 = vld [vmem:[%s25152_s3 + $0xdcc] ss:$20 sps:$4 sm:$0xff]  }
 0x4b0   :  { %12380 = vmatprep.subr.bf16.mxu0 %v18179_v0  ;;  %v18213_v0 = vld [vmem:[%s25152_s3 + $0xb48] ss:$20 sps:$4 sm:$0xff]  }
 0x4b1   :  { %12420 = vmatpush2.bf16.msra.mxu1 %v18174_v58  ;;  %v18221_v58 = vld [vmem:[%s25152_s3 + $0x1024] ss:$20 sps:$4 sm:$0xff]  }
 0x4b2   :  { %12421 = vmatprep.subr.bf16.mxu1 %v18182_v28  ;;  %v18216_v28 = vld [vmem:[%s25152_s3 + $0xdc8] ss:$20 sps:$4 sm:$0xff]  }
 0x4b3   :  { %12381 = vmatpush2.bf16.msra.mxu0 %v18177_v49  ;;  %v18224_v49 = vld [vmem:[%s25152_s3 + $0x12a4] ss:$20 sps:$4 sm:$0xff]  }
 0x4b4   :  { %12382 = vmatprep.subr.bf16.mxu0 %v18185_v9  ;;  %v18219_v9 = vld [vmem:[%s25152_s3 + $0x1020] ss:$20 sps:$4 sm:$0xff]  }
 0x4b5   :  { %12422 = vmatpush2.bf16.msra.mxu1 %v18180_v22  ;;  %v18227_v22 = vld [vmem:[%s25152_s3 + $0xffc] ss:$20 sps:$4 sm:$0xff]  }
 0x4b6   :  { %12423 = vmatprep.subr.bf16.mxu1 %v18188_v36  ;;  %v18222_v36 = vld [vmem:[%s25152_s3 + $0x12a0] ss:$20 sps:$4 sm:$0xff]  }
 0x4b7   :  { %12383 = vmatpush2.bf16.msra.mxu0 %v18183_v27 }
 0x4b8   :  { %12384 = vmatprep.subr.bf16.mxu0 %v18191_v38  ;;  %v18230_v38 = vld [vmem:[%s25152_s3 + $0x127c] ss:$20 sps:$4 sm:$0xff]  }
 0x4b9   :  { %12424 = vmatpush2.bf16.msra.mxu1 %v18186_v7 }
 0x4ba   :  { %12425 = vmatprep.subr.bf16.mxu1 %v18194_v3  ;;  %v18225_v3 = vld [vmem:[%s25152_s3 + $0xff8] ss:$20 sps:$4 sm:$0xff]  }
 0x4bb   :  { %12385 = vmatpush2.bf16.msra.mxu0 %v18189_v18 }
 0x4bc   :  { %12386 = vmatprep.subr.bf16.mxu0 %v18197_v52 }
 0x4bd   :  { %12426 = vmatpush2.bf16.msra.mxu1 %v18192_v26  ;;  %v18233_v26 = vld [vmem:[%s25152_s3 + $0xfd4] ss:$20 sps:$4 sm:$0xff]  }
 0x4be   :  { %12427 = vmatprep.subr.bf16.mxu1 %v18200_v11 }
 0x4bf   :  { %12387 = vmatpush2.bf16.msra.mxu0 %v18195_v23 }
 0x4c0   :  { %12388 = vmatprep.subr.bf16.mxu0 %v18203_v34 }
 0x4c1   :  { %12428 = vmatpush2.bf16.msra.mxu1 %v18198_v45 }
 0x4c2   :  { %12429 = vmatprep.subr.bf16.mxu1 %v18206_v51  ;;  %v18236_v51 = vld [vmem:[%s25152_s3 + $0x1254] ss:$20 sps:$4 sm:$0xff]  }
 0x4c3   :  { %12389 = vmatpush2.bf16.msra.mxu0 %v18201_v13 }
 0x4c4   :  { %12390 = vmatprep.subr.bf16.mxu0 %v18209_v33 }
 0x4c5   :  { %12430 = vmatpush2.bf16.msra.mxu1 %v18204_v35 }
 0x4c6   :  { %12431 = vmatprep.subr.bf16.mxu1 %v18212_v25  ;;  %v18239_v25 = vld [vmem:[%s25152_s3 + $0xfac] ss:$20 sps:$4 sm:$0xff]  }
 0x4c7   :  { %12391 = vmatpush2.bf16.msra.mxu0 %v18207_v14  ;;  %v18234_v14 = vld [vmem:[%s25152_s3 + $0x1250] ss:$20 sps:$4 sm:$0xff]  }
 0x4c8   :  { %12392 = vmatprep.subr.bf16.mxu0 %v18215_v62 }
 0x4c9   :  { %12432 = vmatpush2.bf16.msra.mxu1 %v18210_v16  ;;  %v18242_v16 = vld [vmem:[%s25152_s3 + $0x122c] ss:$20 sps:$4 sm:$0xff]  }
 0x4ca   :  { %12433 = vmatprep.subr.bf16.mxu1 %v18218_v4  ;;  %v18237_v4 = vld [vmem:[%s25152_s3 + $0xfa8] ss:$20 sps:$4 sm:$0xff]  }
 0x4cb   :  { %12393 = vmatpush2.bf16.msra.mxu0 %v18213_v0  ;;  %v18245_v0 = vld [vmem:[%s25152_s3 + $0xf84] ss:$20 sps:$4 sm:$0xff]  }
 0x4cc   :  { %12444 = vmatprep.subr.bf16.mxu0 %v18221_v58  ;;  %v18240_v58 = vld [vmem:[%s25152_s3 + $0x1228] ss:$20 sps:$4 sm:$0xff]  }
 0x4cd   :  { %12434 = vmatpush2.bf16.msra.mxu1 %v18216_v28  ;;  %v18248_v28 = vld [vmem:[%s25152_s3 + $0x1204] ss:$20 sps:$4 sm:$0xff]  }
 0x4ce   :  { %v12150_v27 = vpop.f32.mrf.mxu0  ;;  %12395 = vmatmul.mubr.bf16.vlgmr.msra.gmra.mxu0 %v20892_v31  ;;  %12485 = vmatprep.subr.bf16.mxu1 %v18224_v49  ;;  %v18243_v49 = vld [vmem:[%s25152_s3 + $0xf80] ss:$20 sps:$4 sm:$0xff]  }
 0x4cf   :  { %v12151_v7 = vadd.f32 %v12150_v27, %v22626_v61  ;;  %12445 = vmatpush1.bf16.msra.mxu0 %v18219_v9  ;;  %12476 = vmatprep.mubr.bf16.mxu0 %v20331_v63  ;;  %v18228_v61 = vld [vmem:[%s25152_s3 + $0x1278] ss:$20 sps:$4 sm:$0xff]   ;;  %v18251_v9 = vld [vmem:[%s25152_s3 + $0xf5c] ss:$20 sps:$4 sm:$0xff]  }
 0x4d0   :  { %v12152_v18 = vpop.f32.mrf.mxu0  ;;  %v12191_v52 = vpop.f32.mrf.mxu1  ;;  %12436 = vmatmul.mubr.bf16.vlgmr.msra.gmra.mxu1 %v20896_v44  ;;  %12446 = vmatprep.subr.bf16.mxu0 %v18227_v22  ;;  %v18246_v22 = vld [vmem:[%s25152_s3 + $0x1200] ss:$20 sps:$4 sm:$0xff]   ;;  %v18249_v27 = vld [vmem:[%s25152_s3 + $0xf58] ss:$20 sps:$4 sm:$0xff]  }
 0x4d1   :  { %v12153_v11 = vadd.f32 %v12152_v18, %v22635_v30  ;;  %v22828_v23 = vadd.f32 %v12191_v52, %v12151_v7  ;;  %12486 = vmatpush1.bf16.msra.mxu1 %v18222_v36  ;;  %12517 = vmatprep.mubr.bf16.mxu1 %v20908_v12  ;;  %v18231_v30 = vld [vmem:[%s25152_s3 + $0xfd0] ss:$20 sps:$4 sm:$0xff]   ;;  %v18252_v7 = vld [vmem:[%s25152_s3 + $0x11d8] ss:$20 sps:$4 sm:$0xff]  }
 0x4d2   :  { %v12154_v34 = vpop.f32.mrf.mxu0  ;;  %v12193_v45 = vpop.f32.mrf.mxu1  ;;  %12487 = vmatprep.subr.bf16.mxu1 %v18230_v38  ;;  %v18254_v36 = vld [vmem:[%s25152_s3 + $0x11dc] ss:$20 sps:$4 sm:$0xff]   ;;  %v18257_v38 = vld [vmem:[%s25152_s3 + $0xf34] ss:$20 sps:$4 sm:$0xff]   ;;  %v18263_v52 = vld [vmem:[%s25152_s3 + $0xf0c] ss:$20 sps:$4 sm:$0xff]  }
 0x4d3   :  { %v22837_v13 = vadd.f32 %v12193_v45, %v12153_v11  ;;  %12447 = vmatpush1.bf16.msra.mxu0 %v18225_v3  ;;  %v18260_v3 = vld [vmem:[%s25152_s3 + $0x11b4] ss:$20 sps:$4 sm:$0xff]   ;;  %v18255_v18 = vld [vmem:[%s25152_s3 + $0xf30] ss:$20 sps:$4 sm:$0xff]   ;;  %v18266_v11 = vld [vmem:[%s25152_s3 + $0x118c] ss:$20 sps:$4 sm:$0xff]  }
 0x4d4   :  { %v12155_v33 = vpop.f32.mrf.mxu0  ;;  %v12195_v35 = vpop.f32.mrf.mxu1  ;;  %12448 = vmatprep.subr.bf16.mxu0 %v18233_v26  ;;  %v18258_v26 = vld [vmem:[%s25152_s3 + $0x11b0] ss:$20 sps:$4 sm:$0xff]   ;;  %v18264_v45 = vld [vmem:[%s25152_s3 + $0x1188] ss:$20 sps:$4 sm:$0xff]  }
 0x4d5   :  { %12488 = vmatpush1.bf16.msra.mxu1 %v18228_v61  ;;  %v18261_v61 = vld [vmem:[%s25152_s3 + $0xf08] ss:$20 sps:$4 sm:$0xff]   ;;  %v18269_v34 = vld [vmem:[%s25152_s3 + $0x1164] ss:$20 sps:$4 sm:$0xff]   ;;  %v18270_v35 = vld [vmem:[%s25152_s3 + $0x13e0] ss:$20 sps:$4 sm:$0xff]  }
 0x4d6   :  { %v12196_v62 = vpop.f32.mrf.mxu1  ;;  %12489 = vmatprep.subr.bf16.mxu1 %v18236_v51  ;;  %v18272_v51 = vld [vmem:[%s25152_s3 + $0x13e4] ss:$20 sps:$4 sm:$0xff]   ;;  %v18275_v33 = vld [vmem:[%s25152_s3 + $0x113c] ss:$20 sps:$4 sm:$0xff]  }
 0x4d7   :  { %12449 = vmatpush1.bf16.msra.mxu0 %v18231_v30  ;;  %v18267_v30 = vld [vmem:[%s25152_s3 + $0x1160] ss:$20 sps:$4 sm:$0xff]  }
 0x4d8   :  { %12450 = vmatprep.subr.bf16.mxu0 %v18239_v25  ;;  %v18278_v25 = vld [vmem:[%s25152_s3 + $0x13bc] ss:$20 sps:$4 sm:$0xff]   ;;  %v18281_v62 = vld [vmem:[%s25152_s3 + $0x1114] ss:$20 sps:$4 sm:$0xff]  }
 0x4d9   :  { %12490 = vmatpush1.bf16.msra.mxu1 %v18234_v14  ;;  %v18273_v14 = vld [vmem:[%s25152_s3 + $0x1138] ss:$20 sps:$4 sm:$0xff]  }
 0x4da   :  { %12491 = vmatprep.subr.bf16.mxu1 %v18242_v16  ;;  %v18276_v16 = vld [vmem:[%s25152_s3 + $0x13b8] ss:$20 sps:$4 sm:$0xff]  }
 0x4db   :  { %12451 = vmatpush1.bf16.msra.mxu0 %v18237_v4  ;;  %v18284_v4 = vld [vmem:[%s25152_s3 + $0x1394] ss:$20 sps:$4 sm:$0xff]  }
 0x4dc   :  { %12452 = vmatprep.subr.bf16.mxu0 %v18245_v0  ;;  %v18279_v0 = vld [vmem:[%s25152_s3 + $0x1110] ss:$20 sps:$4 sm:$0xff]  }
 0x4dd   :  { %12492 = vmatpush1.bf16.msra.mxu1 %v18240_v58  ;;  %v18287_v58 = vld [vmem:[%s25152_s3 + $0x10ec] ss:$20 sps:$4 sm:$0xff]  }
 0x4de   :  { %12493 = vmatprep.subr.bf16.mxu1 %v18248_v28  ;;  %v18282_v28 = vld [vmem:[%s25152_s3 + $0x1390] ss:$20 sps:$4 sm:$0xff]  }
 0x4df   :  { %12453 = vmatpush1.bf16.msra.mxu0 %v18243_v49  ;;  %v18290_v49 = vld [vmem:[%s25152_s3 + $0x136c] ss:$20 sps:$4 sm:$0xff]  }
 0x4e0   :  { %12454 = vmatprep.subr.bf16.mxu0 %v18251_v9  ;;  %v18285_v9 = vld [vmem:[%s25152_s3 + $0x10e8] ss:$20 sps:$4 sm:$0xff]  }
 0x4e1   :  { %12494 = vmatpush1.bf16.msra.mxu1 %v18246_v22  ;;  %v18293_v22 = vld [vmem:[%s25152_s3 + $0x10c4] ss:$20 sps:$4 sm:$0xff]  }
 0x4e2   :  { %12495 = vmatprep.subr.bf16.mxu1 %v18254_v36  ;;  %v18288_v36 = vld [vmem:[%s25152_s3 + $0x1368] ss:$20 sps:$4 sm:$0xff]  }
 0x4e3   :  { %12455 = vmatpush1.bf16.msra.mxu0 %v18249_v27  ;;  %v18296_v27 = vld [vmem:[%s25152_s3 + $0x1344] ss:$20 sps:$4 sm:$0xff]  }
 0x4e4   :  { %12456 = vmatprep.subr.bf16.mxu0 %v18257_v38  ;;  %v18291_v38 = vld [vmem:[%s25152_s3 + $0x10c0] ss:$20 sps:$4 sm:$0xff]  }
 0x4e5   :  { %12496 = vmatpush1.bf16.msra.mxu1 %v18252_v7  ;;  %v18299_v7 = vld [vmem:[%s25152_s3 + $0x109c] ss:$20 sps:$4 sm:$0xff]  }
 0x4e6   :  { %12497 = vmatprep.subr.bf16.mxu1 %v18260_v3  ;;  %v18294_v3 = vld [vmem:[%s25152_s3 + $0x1340] ss:$20 sps:$4 sm:$0xff]  }
 0x4e7   :  { %12457 = vmatpush1.bf16.msra.mxu0 %v18255_v18  ;;  %v18302_v18 = vld [vmem:[%s25152_s3 + $0x131c] ss:$20 sps:$4 sm:$0xff]  }
 0x4e8   :  { %12458 = vmatprep.subr.bf16.mxu0 %v18263_v52  ;;  %v18297_v52 = vld [vmem:[%s25152_s3 + $0x1098] ss:$20 sps:$4 sm:$0xff]  }
 0x4e9   :  { %12498 = vmatpush1.bf16.msra.mxu1 %v18258_v26  ;;  %v18305_v26 = vld [vmem:[%s25152_s3 + $0x1074] ss:$20 sps:$4 sm:$0xff]  }
 0x4ea   :  { %12499 = vmatprep.subr.bf16.mxu1 %v18266_v11  ;;  %v18300_v11 = vld [vmem:[%s25152_s3 + $0x1318] ss:$20 sps:$4 sm:$0xff]  }
 0x4eb   :  { %12459 = vmatpush1.bf16.msra.mxu0 %v18261_v61  ;;  %v18308_v61 = vld [vmem:[%s25152_s3 + $0x12f4] ss:$20 sps:$4 sm:$0xff]  }
 0x4ec   :  { %12460 = vmatprep.subr.bf16.mxu0 %v18269_v34  ;;  %v18303_v34 = vld [vmem:[%s25152_s3 + $0x1070] ss:$20 sps:$4 sm:$0xff]  }
 0x4ed   :  { %12500 = vmatpush1.bf16.msra.mxu1 %v18264_v45  ;;  %v18311_v45 = vld [vmem:[%s25152_s3 + $0x104c] ss:$20 sps:$4 sm:$0xff]  }
 0x4ee   :  { %12501 = vmatprep.subr.bf16.mxu1 %v18272_v51  ;;  %v18306_v51 = vld [vmem:[%s25152_s3 + $0x12f0] ss:$20 sps:$4 sm:$0xff]  }
 0x4ef   :  { %12461 = vmatpush2.bf16.msra.mxu0 %v18267_v30  ;;  %v18314_v30 = vld [vmem:[%s25152_s3 + $0x12cc] ss:$20 sps:$4 sm:$0xff]  }
 0x4f0   :  { %12462 = vmatprep.subr.bf16.mxu0 %v18275_v33  ;;  %v18309_v33 = vld [vmem:[%s25152_s3 + $0x1048] ss:$20 sps:$4 sm:$0xff]  }
 0x4f1   :  { %12502 = vmatpush2.bf16.msra.mxu1 %v18270_v35  ;;  %v3957_v35 = vsub.s32 2, %v20275_v43 }
 0x4f2   :  { %12503 = vmatprep.subr.bf16.mxu1 %v18278_v25  ;;  %v18317_v25 = vld [vmem:[%s25152_s3 + $0x1524] ss:$20 sps:$4 sm:$0xff]  }
 0x4f3   :  { %12463 = vmatpush2.bf16.msra.mxu0 %v18273_v14  ;;  %v18312_v14 = vld [vmem:[%s25152_s3 + $0x12c8] ss:$20 sps:$4 sm:$0xff]  }
 0x4f4   :  { %12464 = vmatprep.subr.bf16.mxu0 %v18281_v62  ;;  %v3961_v62 = vsub.s32 3, %v20275_v43 }
 0x4f5   :  { %12504 = vmatpush2.bf16.msra.mxu1 %v18276_v16  ;;  %v18320_v16 = vld [vmem:[%s25152_s3 + $0x17a4] ss:$20 sps:$4 sm:$0xff]  }
 0x4f6   :  { %12505 = vmatprep.subr.bf16.mxu1 %v18284_v4  ;;  %v19147_v4 = vld [vmem:[%s25154_s4] sm:$0x1f] }
 0x4f7   :  { %12465 = vmatpush2.bf16.msra.mxu0 %v18279_v0  ;;  %v3958_v0 = vrot.slane %v19147_v4, %v3957_v35 }
 0x4f8   :  { %12466 = vmatprep.subr.bf16.mxu0 %v18287_v58  ;;  %v18315_v58 = vld [vmem:[%s25152_s3 + $0x1520] ss:$20 sps:$4 sm:$0xff]  }
 0x4f9   :  { %12506 = vmatpush2.bf16.msra.mxu1 %v18282_v28  ;;  %v18323_v28 = vld [vmem:[%s25152_s3 + $0x14fc] ss:$20 sps:$4 sm:$0xff]  }
 0x4fa   :  { %12507 = vmatprep.subr.bf16.mxu1 %v18290_v49  ;;  %v3962_v49 = vrot.slane %v19147_v4, %v3961_v62  ;;  %v18333_v4 = vld [vmem:[%s25152_s3 + $0x14a8] ss:$20 sps:$4 sm:$0xff]  }
 0x4fb   :  { %12467 = vmatpush2.bf16.msra.mxu0 %v18285_v9  ;;  %v18318_v9 = vld [vmem:[%s25152_s3 + $0x17a0] ss:$20 sps:$4 sm:$0xff]  }
 0x4fc   :  { %12468 = vmatprep.subr.bf16.mxu0 %v18293_v22 }
 0x4fd   :  { %12508 = vmatpush2.bf16.msra.mxu1 %v18288_v36  ;;  %v18326_v36 = vld [vmem:[%s25152_s3 + $0x177c] ss:$20 sps:$4 sm:$0xff]  }
 0x4fe   :  { %12509 = vmatprep.subr.bf16.mxu1 %v18296_v27 }
 0x4ff   :  { %12469 = vmatpush2.bf16.msra.mxu0 %v18291_v38  ;;  %v18321_v38 = vld [vmem:[%s25152_s3 + $0x14f8] ss:$20 sps:$4 sm:$0xff]  }
 0x500   :  { %12470 = vmatprep.subr.bf16.mxu0 %v18299_v7 }
 0x501   :  { %12510 = vmatpush2.bf16.msra.mxu1 %v18294_v3 }
 0x502   :  { %12511 = vmatprep.subr.bf16.mxu1 %v18302_v18  ;;  %v18329_v18 = vld [vmem:[%s25152_s3 + $0x14d4] ss:$20 sps:$4 sm:$0xff]  }
 0x503   :  { %12471 = vmatpush2.bf16.msra.mxu0 %v18297_v52 }
 0x504   :  { %12472 = vmatprep.subr.bf16.mxu0 %v18305_v26 }
 0x505   :  { %12512 = vmatpush2.bf16.msra.mxu1 %v18300_v11  ;;  %v18324_v11 = vld [vmem:[%s25152_s3 + $0x1778] ss:$20 sps:$4 sm:$0xff]  }
 0x506   :  { %12513 = vmatprep.subr.bf16.mxu1 %v18308_v61 }
 0x507   :  { %12473 = vmatpush2.bf16.msra.mxu0 %v18303_v34 }
 0x508   :  { %12474 = vmatprep.subr.bf16.mxu0 %v18311_v45  ;;  %v18332_v45 = vld [vmem:[%s25152_s3 + $0x1754] ss:$20 sps:$4 sm:$0xff]  }
 0x509   :  { %12514 = vmatpush2.bf16.msra.mxu1 %v18306_v51 }
 0x50a   :  { %12515 = vmatprep.subr.bf16.mxu1 %v18314_v30  ;;  %v18327_v30 = vld [vmem:[%s25152_s3 + $0x14d0] ss:$20 sps:$4 sm:$0xff]  }
 0x50b   :  { %12475 = vmatpush2.bf16.msra.mxu0 %v18309_v33 }
 0x50c   :  { %12526 = vmatprep.subr.bf16.mxu0 %v18317_v25  ;;  %v18335_v25 = vld [vmem:[%s25152_s3 + $0x14ac] ss:$20 sps:$4 sm:$0xff]  }
 0x50d   :  { %12516 = vmatpush2.bf16.msra.mxu1 %v18312_v14  ;;  %v18330_v14 = vld [vmem:[%s25152_s3 + $0x1750] ss:$20 sps:$4 sm:$0xff]  }
 0x50e   :  { %v12232_v22 = vpop.f32.mrf.mxu0  ;;  %12477 = vmatmul.mubr.bf16.vlgmr.msra.gmra.mxu0 %v20366_v10  ;;  %12567 = vmatprep.subr.bf16.mxu1 %v18320_v16  ;;  %v18338_v16 = vld [vmem:[%s25152_s3 + $0x172c] ss:$20 sps:$4 sm:$0xff]  }
 0x50f   :  { %v12233_v27 = vadd.f32 %v12232_v22, %v3958_v0  ;;  %12527 = vmatpush1.bf16.msra.mxu0 %v18315_v58  ;;  %12558 = vmatprep.mubr.bf16.mxu0 %v21109_v19  ;;  %v18341_v0 = vld [vmem:[%s25152_s3 + $0x1484] ss:$20 sps:$4 sm:$0xff]   ;;  %v18336_v58 = vld [vmem:[%s25152_s3 + $0x1728] ss:$20 sps:$4 sm:$0xff]   ;;  %v18342_v22 = vld [vmem:[%s25152_s3 + $0x1700] ss:$20 sps:$4 sm:$0xff]  }
 0x510   :  { %v12234_v7 = vpop.f32.mrf.mxu0  ;;  %v12273_v3 = vpop.f32.mrf.mxu1  ;;  %12518 = vmatmul.mubr.bf16.vlgmr.msra.gmra.mxu1 %v21114_v20  ;;  %12528 = vmatprep.subr.bf16.mxu0 %v18323_v28  ;;  %v18344_v28 = vld [vmem:[%s25152_s3 + $0x1704] ss:$20 sps:$4 sm:$0xff]  }
 0x511   :  { %v12235_v52 = vadd.f32 %v12234_v7, %v3962_v49  ;;  %v23033_v26 = vadd.f32 %v12273_v3, %v12233_v27  ;;  %12568 = vmatpush1.bf16.msra.mxu1 %v18318_v9  ;;  %12599 = vmatprep.mubr.bf16.mxu1 %v21116_v21  ;;  %v18339_v49 = vld [vmem:[%s25152_s3 + $0x1480] ss:$20 sps:$4 sm:$0xff]   ;;  %v18347_v9 = vld [vmem:[%s25152_s3 + $0x145c] ss:$20 sps:$4 sm:$0xff]   ;;  %v18345_v27 = vld [vmem:[%s25152_s3 + $0x1458] ss:$20 sps:$4 sm:$0xff]  }
 0x512   :  { %v12236_v61 = vpop.f32.mrf.mxu0  ;;  %v12275_v34 = vpop.f32.mrf.mxu1  ;;  %12569 = vmatprep.subr.bf16.mxu1 %v18326_v36  ;;  %v18350_v36 = vld [vmem:[%s25152_s3 + $0x16dc] ss:$20 sps:$4 sm:$0xff]   ;;  %v18348_v7 = vld [vmem:[%s25152_s3 + $0x16d8] ss:$20 sps:$4 sm:$0xff]   ;;  %v18356_v3 = vld [vmem:[%s25152_s3 + $0x16b4] ss:$20 sps:$4 sm:$0xff]  }
 0x513   :  { %v23042_v51 = vadd.f32 %v12275_v34, %v12235_v52  ;;  %12529 = vmatpush1.bf16.msra.mxu0 %v18321_v38  ;;  %v18353_v38 = vld [vmem:[%s25152_s3 + $0x1434] ss:$20 sps:$4 sm:$0xff]   ;;  %v18359_v52 = vld [vmem:[%s25152_s3 + $0x140c] ss:$20 sps:$4 sm:$0xff]  }
 0x514   :  { %v12237_v33 = vpop.f32.mrf.mxu0  ;;  %v12277_v35 = vpop.f32.mrf.mxu1  ;;  %12530 = vmatprep.subr.bf16.mxu0 %v18329_v18  ;;  %v18351_v18 = vld [vmem:[%s25152_s3 + $0x1430] ss:$20 sps:$4 sm:$0xff]   ;;  %v18362_v61 = vld [vmem:[%s25152_s3 + $0x168c] ss:$20 sps:$4 sm:$0xff]   ;;  %v18357_v34 = vld [vmem:[%s25152_s3 + $0x1408] ss:$20 sps:$4 sm:$0xff]  }
 0x515   :  { %12570 = vmatpush1.bf16.msra.mxu1 %v18324_v11  ;;  %v18354_v11 = vld [vmem:[%s25152_s3 + $0x16b0] ss:$20 sps:$4 sm:$0xff]   ;;  %v18363_v35 = vld [vmem:[%s25152_s3 + $0x1660] ss:$20 sps:$4 sm:$0xff]  }
 0x516   :  { %v12278_v62 = vpop.f32.mrf.mxu1  ;;  %12571 = vmatprep.subr.bf16.mxu1 %v18332_v45  ;;  %v18365_v45 = vld [vmem:[%s25152_s3 + $0x1664] ss:$20 sps:$4 sm:$0xff]  }
 0x517   :  { %12531 = vmatpush1.bf16.msra.mxu0 %v18327_v30  ;;  %v18360_v30 = vld [vmem:[%s25152_s3 + $0x1688] ss:$20 sps:$4 sm:$0xff]   ;;  %v18368_v33 = vld [vmem:[%s25152_s3 + $0x18e4] ss:$20 sps:$4 sm:$0xff]  }
 0x518   :  { %12532 = vmatprep.subr.bf16.mxu0 %v18335_v25  ;;  %v18371_v25 = vld [vmem:[%s25152_s3 + $0x163c] ss:$20 sps:$4 sm:$0xff]  }
 0x519   :  { %12572 = vmatpush1.bf16.msra.mxu1 %v18330_v14  ;;  %v18366_v14 = vld [vmem:[%s25152_s3 + $0x18e0] ss:$20 sps:$4 sm:$0xff]   ;;  %v18374_v62 = vld [vmem:[%s25152_s3 + $0x18bc] ss:$20 sps:$4 sm:$0xff]  }
 0x51a   :  { %12573 = vmatprep.subr.bf16.mxu1 %v18338_v16  ;;  %v18369_v16 = vld [vmem:[%s25152_s3 + $0x1638] ss:$20 sps:$4 sm:$0xff]  }
 0x51b   :  { %12533 = vmatpush1.bf16.msra.mxu0 %v18333_v4  ;;  %v18377_v4 = vld [vmem:[%s25152_s3 + $0x1614] ss:$20 sps:$4 sm:$0xff]  }
 0x51c   :  { %12534 = vmatprep.subr.bf16.mxu0 %v18341_v0  ;;  %v18372_v0 = vld [vmem:[%s25152_s3 + $0x18b8] ss:$20 sps:$4 sm:$0xff]  }
 0x51d   :  { %12574 = vmatpush1.bf16.msra.mxu1 %v18336_v58  ;;  %v18380_v58 = vld [vmem:[%s25152_s3 + $0x1894] ss:$20 sps:$4 sm:$0xff]  }
 0x51e   :  { %12575 = vmatprep.subr.bf16.mxu1 %v18344_v28  ;;  %v18375_v28 = vld [vmem:[%s25152_s3 + $0x1610] ss:$20 sps:$4 sm:$0xff]  }
 0x51f   :  { %12535 = vmatpush1.bf16.msra.mxu0 %v18339_v49  ;;  %v18383_v49 = vld [vmem:[%s25152_s3 + $0x15ec] ss:$20 sps:$4 sm:$0xff]  }
 0x520   :  { %12536 = vmatprep.subr.bf16.mxu0 %v18347_v9  ;;  %v18378_v9 = vld [vmem:[%s25152_s3 + $0x1890] ss:$20 sps:$4 sm:$0xff]  }
 0x521   :  { %12576 = vmatpush1.bf16.msra.mxu1 %v18342_v22  ;;  %v18386_v22 = vld [vmem:[%s25152_s3 + $0x186c] ss:$20 sps:$4 sm:$0xff]  }
 0x522   :  { %12577 = vmatprep.subr.bf16.mxu1 %v18350_v36  ;;  %v18381_v36 = vld [vmem:[%s25152_s3 + $0x15e8] ss:$20 sps:$4 sm:$0xff]  }
 0x523   :  { %12537 = vmatpush1.bf16.msra.mxu0 %v18345_v27  ;;  %v18389_v27 = vld [vmem:[%s25152_s3 + $0x15c4] ss:$20 sps:$4 sm:$0xff]  }
 0x524   :  { %12538 = vmatprep.subr.bf16.mxu0 %v18353_v38  ;;  %v18384_v38 = vld [vmem:[%s25152_s3 + $0x1868] ss:$20 sps:$4 sm:$0xff]  }
 0x525   :  { %12578 = vmatpush1.bf16.msra.mxu1 %v18348_v7  ;;  %v18392_v7 = vld [vmem:[%s25152_s3 + $0x1844] ss:$20 sps:$4 sm:$0xff]  }
 0x526   :  { %12579 = vmatprep.subr.bf16.mxu1 %v18356_v3  ;;  %v18387_v3 = vld [vmem:[%s25152_s3 + $0x15c0] ss:$20 sps:$4 sm:$0xff]  }
 0x527   :  { %12539 = vmatpush1.bf16.msra.mxu0 %v18351_v18  ;;  %v18395_v18 = vld [vmem:[%s25152_s3 + $0x159c] ss:$20 sps:$4 sm:$0xff]  }
 0x528   :  { %12540 = vmatprep.subr.bf16.mxu0 %v18359_v52  ;;  %v18390_v52 = vld [vmem:[%s25152_s3 + $0x1840] ss:$20 sps:$4 sm:$0xff]  }
 0x529   :  { %12580 = vmatpush1.bf16.msra.mxu1 %v18354_v11  ;;  %v18398_v11 = vld [vmem:[%s25152_s3 + $0x181c] ss:$20 sps:$4 sm:$0xff]  }
 0x52a   :  { %12581 = vmatprep.subr.bf16.mxu1 %v18362_v61  ;;  %v18393_v61 = vld [vmem:[%s25152_s3 + $0x1598] ss:$20 sps:$4 sm:$0xff]  }
 0x52b   :  { %12541 = vmatpush1.bf16.msra.mxu0 %v18357_v34  ;;  %v18401_v34 = vld [vmem:[%s25152_s3 + $0x1574] ss:$20 sps:$4 sm:$0xff]  }
 0x52c   :  { %12542 = vmatprep.subr.bf16.mxu0 %v18365_v45  ;;  %v18396_v45 = vld [vmem:[%s25152_s3 + $0x1818] ss:$20 sps:$4 sm:$0xff]  }
 0x52d   :  { %12582 = vmatpush1.bf16.msra.mxu1 %v18360_v30  ;;  %v18404_v30 = vld [vmem:[%s25152_s3 + $0x17f4] ss:$20 sps:$4 sm:$0xff]  }
 0x52e   :  { %12583 = vmatprep.subr.bf16.mxu1 %v18368_v33  ;;  %v18399_v33 = vld [vmem:[%s25152_s3 + $0x1570] ss:$20 sps:$4 sm:$0xff]  }
 0x52f   :  { %12543 = vmatpush2.bf16.msra.mxu0 %v18363_v35  ;;  %v18407_v35 = vld [vmem:[%s25152_s3 + $0x154c] ss:$20 sps:$4 sm:$0xff]  }
 0x530   :  { %12544 = vmatprep.subr.bf16.mxu0 %v18371_v25  ;;  %v18402_v25 = vld [vmem:[%s25152_s3 + $0x17f0] ss:$20 sps:$4 sm:$0xff]  }
 0x531   :  { %12584 = vmatpush2.bf16.msra.mxu1 %v18366_v14  ;;  %v18410_v14 = vld [vmem:[%s25152_s3 + $0x17cc] ss:$20 sps:$4 sm:$0xff]  }
 0x532   :  { %12585 = vmatprep.subr.bf16.mxu1 %v18374_v62  ;;  %v18405_v62 = vld [vmem:[%s25152_s3 + $0x1548] ss:$20 sps:$4 sm:$0xff]  }
 0x533   :  { %12545 = vmatpush2.bf16.msra.mxu0 %v18369_v16  ;;  %v18413_v16 = vld [vmem:[%s25152_s3 + $0x1a24] ss:$20 sps:$4 sm:$0xff]  }
 0x534   :  { %12546 = vmatprep.subr.bf16.mxu0 %v18377_v4  ;;  %v18408_v4 = vld [vmem:[%s25152_s3 + $0x17c8] ss:$20 sps:$4 sm:$0xff]  }
 0x535   :  { %12586 = vmatpush2.bf16.msra.mxu1 %v18372_v0  ;;  %v18416_v0 = vld [vmem:[%s25152_s3 + $0x1ca4] ss:$20 sps:$4 sm:$0xff]  }
 0x536   :  { %12587 = vmatprep.subr.bf16.mxu1 %v18380_v58  ;;  %v18411_v58 = vld [vmem:[%s25152_s3 + $0x1a20] ss:$20 sps:$4 sm:$0xff]  }
 0x537   :  { %12547 = vmatpush2.bf16.msra.mxu0 %v18375_v28  ;;  %v18419_v28 = vld [vmem:[%s25152_s3 + $0x19fc] ss:$20 sps:$4 sm:$0xff]  }
 0x538   :  { %12548 = vmatprep.subr.bf16.mxu0 %v18383_v49  ;;  %v18414_v49 = vld [vmem:[%s25152_s3 + $0x1ca0] ss:$20 sps:$4 sm:$0xff]  }
 0x539   :  { %12588 = vmatpush2.bf16.msra.mxu1 %v18378_v9 }
 0x53a   :  { %12589 = vmatprep.subr.bf16.mxu1 %v18386_v22  ;;  %v18422_v22 = vld [vmem:[%s25152_s3 + $0x1c7c] ss:$20 sps:$4 sm:$0xff]  }
 0x53b   :  { %12549 = vmatpush2.bf16.msra.mxu0 %v18381_v36 }
 0x53c   :  { %12550 = vmatprep.subr.bf16.mxu0 %v18389_v27  ;;  %v18417_v27 = vld [vmem:[%s25152_s3 + $0x19f8] ss:$20 sps:$4 sm:$0xff]  }
 0x53d   :  { %12590 = vmatpush2.bf16.msra.mxu1 %v18384_v38 }
 0x53e   :  { %12591 = vmatprep.subr.bf16.mxu1 %v18392_v7 }
 0x53f   :  { %12551 = vmatpush2.bf16.msra.mxu0 %v18387_v3  ;;  %v18425_v3 = vld [vmem:[%s25152_s3 + $0x19d4] ss:$20 sps:$4 sm:$0xff]  }
 0x540   :  { %12552 = vmatprep.subr.bf16.mxu0 %v18395_v18 }
 0x541   :  { %12592 = vmatpush2.bf16.msra.mxu1 %v18390_v52 }
 0x542   :  { %12593 = vmatprep.subr.bf16.mxu1 %v18398_v11 }
 0x543   :  { %12553 = vmatpush2.bf16.msra.mxu0 %v18393_v61 }
 0x544   :  { %12554 = vmatprep.subr.bf16.mxu0 %v18401_v34  ;;  %v18428_v34 = vld [vmem:[%s25152_s3 + $0x1c54] ss:$20 sps:$4 sm:$0xff]  }
 0x545   :  { %12594 = vmatpush2.bf16.msra.mxu1 %v18396_v45 }
 0x546   :  { %12595 = vmatprep.subr.bf16.mxu1 %v18404_v30 }
 0x547   :  { %12555 = vmatpush2.bf16.msra.mxu0 %v18399_v33 }
 0x548   :  { %12556 = vmatprep.subr.bf16.mxu0 %v18407_v35  ;;  %v18431_v35 = vld [vmem:[%s25152_s3 + $0x19ac] ss:$20 sps:$4 sm:$0xff]  }
 0x549   :  { %12596 = vmatpush2.bf16.msra.mxu1 %v18402_v25  ;;  %v18426_v25 = vld [vmem:[%s25152_s3 + $0x1c50] ss:$20 sps:$4 sm:$0xff]  }
 0x54a   :  { %12597 = vmatprep.subr.bf16.mxu1 %v18410_v14 }
 0x54b   :  { %12557 = vmatpush2.bf16.msra.mxu0 %v18405_v62  ;;  %v18434_v62 = vld [vmem:[%s25152_s3 + $0x1c2c] ss:$20 sps:$4 sm:$0xff]  }
 0x54c   :  { %12608 = vmatprep.subr.bf16.mxu0 %v18413_v16  ;;  %v18429_v16 = vld [vmem:[%s25152_s3 + $0x19a8] ss:$20 sps:$4 sm:$0xff]  }
 0x54d   :  { %12598 = vmatpush2.bf16.msra.mxu1 %v18408_v4  ;;  %v18437_v4 = vld [vmem:[%s25152_s3 + $0x1984] ss:$20 sps:$4 sm:$0xff]  }
 0x54e   :  { %v12314_v9 = vpop.f32.mrf.mxu0  ;;  %12559 = vmatmul.mubr.bf16.vlgmr.msra.gmra.mxu0 %v21314_v48  ;;  %12649 = vmatprep.subr.bf16.mxu1 %v18416_v0  ;;  %v18432_v0 = vld [vmem:[%s25152_s3 + $0x1c28] ss:$20 sps:$4 sm:$0xff]  }
 0x54f   :  { %v12315_v36 = vadd.f32 %v12314_v9, %v23033_v26  ;;  %12609 = vmatpush1.bf16.msra.mxu0 %v18411_v58  ;;  %12640 = vmatprep.mubr.bf16.mxu0 %v21319_v55  ;;  %v18420_v26 = vld [vmem:[%s25152_s3 + $0x1c78] ss:$20 sps:$4 sm:$0xff]   ;;  %v18438_v9 = vld [vmem:[%s25152_s3 + $0x1c00] ss:$20 sps:$4 sm:$0xff]  }
 0x550   :  { %v12316_v38 = vpop.f32.mrf.mxu0  ;;  %v12355_v7 = vpop.f32.mrf.mxu1  ;;  %12600 = vmatmul.mubr.bf16.vlgmr.msra.gmra.mxu1 %v21321_v32  ;;  %12610 = vmatprep.subr.bf16.mxu0 %v18419_v28  ;;  %v18440_v58 = vld [vmem:[%s25152_s3 + $0x1c04] ss:$20 sps:$4 sm:$0xff]   ;;  %v18435_v28 = vld [vmem:[%s25152_s3 + $0x1980] ss:$20 sps:$4 sm:$0xff]  }
 0x551   :  { %v12317_v18 = vadd.f32 %v12316_v38, %v23042_v51  ;;  %v23235_v52 = vadd.f32 %v12355_v7, %v12315_v36  ;;  %12650 = vmatpush1.bf16.msra.mxu1 %v18414_v49  ;;  %12681 = vmatprep.mubr.bf16.mxu1 %v21326_v59  ;;  %v18423_v51 = vld [vmem:[%s25152_s3 + $0x19d0] ss:$20 sps:$4 sm:$0xff]   ;;  %v18441_v36 = vld [vmem:[%s25152_s3 + $0x1958] ss:$20 sps:$4 sm:$0xff]   ;;  %v18452_v7 = vld [vmem:[%s25152_s3 + $0x1bb4] ss:$20 sps:$4 sm:$0xff]  }
 0x552   :  { %v12318_v11 = vpop.f32.mrf.mxu0  ;;  %v12357_v61 = vpop.f32.mrf.mxu1  ;;  %12651 = vmatprep.subr.bf16.mxu1 %v18422_v22  ;;  %v18443_v49 = vld [vmem:[%s25152_s3 + $0x195c] ss:$20 sps:$4 sm:$0xff]   ;;  %v18444_v38 = vld [vmem:[%s25152_s3 + $0x1bd8] ss:$20 sps:$4 sm:$0xff]  }
 0x553   :  { %v23244_v45 = vadd.f32 %v12357_v61, %v12317_v18  ;;  %12611 = vmatpush1.bf16.msra.mxu0 %v18417_v27  ;;  %v18446_v22 = vld [vmem:[%s25152_s3 + $0x1bdc] ss:$20 sps:$4 sm:$0xff]   ;;  %v18449_v27 = vld [vmem:[%s25152_s3 + $0x1934] ss:$20 sps:$4 sm:$0xff]   ;;  %v18455_v18 = vld [vmem:[%s25152_s3 + $0x190c] ss:$20 sps:$4 sm:$0xff]  }
 0x554   :  { %v12319_v30 = vpop.f32.mrf.mxu0  ;;  %v12359_v33 = vpop.f32.mrf.mxu1  ;;  %12612 = vmatprep.subr.bf16.mxu0 %v18425_v3  ;;  %v18447_v3 = vld [vmem:[%s25152_s3 + $0x1930] ss:$20 sps:$4 sm:$0xff]   ;;  %v18458_v11 = vld [vmem:[%s25152_s3 + $0x1b8c] ss:$20 sps:$4 sm:$0xff]   ;;  %v18453_v61 = vld [vmem:[%s25152_s3 + $0x1908] ss:$20 sps:$4 sm:$0xff]  }
 0x555   :  { %12652 = vmatpush1.bf16.msra.mxu1 %v18420_v26  ;;  %v18450_v26 = vld [vmem:[%s25152_s3 + $0x1bb0] ss:$20 sps:$4 sm:$0xff]   ;;  %v18459_v33 = vld [vmem:[%s25152_s3 + $0x1b60] ss:$20 sps:$4 sm:$0xff]  }
 0x556   :  { %v12360_v14 = vpop.f32.mrf.mxu1  ;;  %12653 = vmatprep.subr.bf16.mxu1 %v18428_v34  ;;  %v18461_v34 = vld [vmem:[%s25152_s3 + $0x1b64] ss:$20 sps:$4 sm:$0xff]  }
 0x557   :  { %12613 = vmatpush1.bf16.msra.mxu0 %v18423_v51  ;;  %v18456_v51 = vld [vmem:[%s25152_s3 + $0x1b88] ss:$20 sps:$4 sm:$0xff]   ;;  %v18464_v30 = vld [vmem:[%s25152_s3 + $0x1de4] ss:$20 sps:$4 sm:$0xff]  }
 0x558   :  { %12614 = vmatprep.subr.bf16.mxu0 %v18431_v35  ;;  %v18467_v35 = vld [vmem:[%s25152_s3 + $0x1b3c] ss:$20 sps:$4 sm:$0xff]  }
 0x559   :  { %12654 = vmatpush1.bf16.msra.mxu1 %v18426_v25  ;;  %v18462_v25 = vld [vmem:[%s25152_s3 + $0x1de0] ss:$20 sps:$4 sm:$0xff]   ;;  %v18470_v14 = vld [vmem:[%s25152_s3 + $0x1dbc] ss:$20 sps:$4 sm:$0xff]  }
 0x55a   :  { %12655 = vmatprep.subr.bf16.mxu1 %v18434_v62  ;;  %v18465_v62 = vld [vmem:[%s25152_s3 + $0x1b38] ss:$20 sps:$4 sm:$0xff]  }
 0x55b   :  { %12615 = vmatpush1.bf16.msra.mxu0 %v18429_v16  ;;  %v18473_v16 = vld [vmem:[%s25152_s3 + $0x1b14] ss:$20 sps:$4 sm:$0xff]  }
 0x55c   :  { %12616 = vmatprep.subr.bf16.mxu0 %v18437_v4  ;;  %v18468_v4 = vld [vmem:[%s25152_s3 + $0x1db8] ss:$20 sps:$4 sm:$0xff]  }
 0x55d   :  { %12656 = vmatpush1.bf16.msra.mxu1 %v18432_v0  ;;  %v18476_v0 = vld [vmem:[%s25152_s3 + $0x1d94] ss:$20 sps:$4 sm:$0xff]  }
 0x55e   :  { %12657 = vmatprep.subr.bf16.mxu1 %v18440_v58  ;;  %v18471_v58 = vld [vmem:[%s25152_s3 + $0x1b10] ss:$20 sps:$4 sm:$0xff]  }
 0x55f   :  { %12617 = vmatpush1.bf16.msra.mxu0 %v18435_v28  ;;  %v18479_v28 = vld [vmem:[%s25152_s3 + $0x1aec] ss:$20 sps:$4 sm:$0xff]  }
 0x560   :  { %12618 = vmatprep.subr.bf16.mxu0 %v18443_v49  ;;  %v18474_v49 = vld [vmem:[%s25152_s3 + $0x1d90] ss:$20 sps:$4 sm:$0xff]  }
 0x561   :  { %12658 = vmatpush1.bf16.msra.mxu1 %v18438_v9  ;;  %v18482_v9 = vld [vmem:[%s25152_s3 + $0x1d6c] ss:$20 sps:$4 sm:$0xff]  }
 0x562   :  { %12659 = vmatprep.subr.bf16.mxu1 %v18446_v22  ;;  %v18477_v22 = vld [vmem:[%s25152_s3 + $0x1ae8] ss:$20 sps:$4 sm:$0xff]  }
 0x563   :  { %12619 = vmatpush1.bf16.msra.mxu0 %v18441_v36  ;;  %v18485_v36 = vld [vmem:[%s25152_s3 + $0x1ac4] ss:$20 sps:$4 sm:$0xff]  }
 0x564   :  { %12620 = vmatprep.subr.bf16.mxu0 %v18449_v27  ;;  %v18480_v27 = vld [vmem:[%s25152_s3 + $0x1d68] ss:$20 sps:$4 sm:$0xff]  }
 0x565   :  { %12660 = vmatpush1.bf16.msra.mxu1 %v18444_v38  ;;  %v18488_v38 = vld [vmem:[%s25152_s3 + $0x1d44] ss:$20 sps:$4 sm:$0xff]  }
 0x566   :  { %12661 = vmatprep.subr.bf16.mxu1 %v18452_v7  ;;  %v18483_v7 = vld [vmem:[%s25152_s3 + $0x1ac0] ss:$20 sps:$4 sm:$0xff]  }
 0x567   :  { %12621 = vmatpush1.bf16.msra.mxu0 %v18447_v3  ;;  %v18491_v3 = vld [vmem:[%s25152_s3 + $0x1a9c] ss:$20 sps:$4 sm:$0xff]  }
 0x568   :  { %12622 = vmatprep.subr.bf16.mxu0 %v18455_v18  ;;  %v18486_v18 = vld [vmem:[%s25152_s3 + $0x1d40] ss:$20 sps:$4 sm:$0xff]  }
 0x569   :  { %12662 = vmatpush1.bf16.msra.mxu1 %v18450_v26  ;;  %v18494_v26 = vld [vmem:[%s25152_s3 + $0x1d1c] ss:$20 sps:$4 sm:$0xff]  }
 0x56a   :  { %12663 = vmatprep.subr.bf16.mxu1 %v18458_v11  ;;  %v18489_v11 = vld [vmem:[%s25152_s3 + $0x1a98] ss:$20 sps:$4 sm:$0xff]  }
 0x56b   :  { %12623 = vmatpush1.bf16.msra.mxu0 %v18453_v61  ;;  %v18497_v61 = vld [vmem:[%s25152_s3 + $0x1a74] ss:$20 sps:$4 sm:$0xff]  }
 0x56c   :  { %12624 = vmatprep.subr.bf16.mxu0 %v18461_v34  ;;  %v18492_v34 = vld [vmem:[%s25152_s3 + $0x1d18] ss:$20 sps:$4 sm:$0xff]  }
 0x56d   :  { %12664 = vmatpush1.bf16.msra.mxu1 %v18456_v51  ;;  %v18500_v51 = vld [vmem:[%s25152_s3 + $0x1cf4] ss:$20 sps:$4 sm:$0xff]  }
 0x56e   :  { %12665 = vmatprep.subr.bf16.mxu1 %v18464_v30  ;;  %v18495_v30 = vld [vmem:[%s25152_s3 + $0x1a70] ss:$20 sps:$4 sm:$0xff]  }
 0x56f   :  { %12625 = vmatpush2.bf16.msra.mxu0 %v18459_v33  ;;  %v18503_v33 = vld [vmem:[%s25152_s3 + $0x1a4c] ss:$20 sps:$4 sm:$0xff]  }
 0x570   :  { %12626 = vmatprep.subr.bf16.mxu0 %v18467_v35  ;;  %v18498_v35 = vld [vmem:[%s25152_s3 + $0x1cf0] ss:$20 sps:$4 sm:$0xff]  }
 0x571   :  { %12666 = vmatpush2.bf16.msra.mxu1 %v18462_v25  ;;  %v18506_v25 = vld [vmem:[%s25152_s3 + $0x1ccc] ss:$20 sps:$4 sm:$0xff]  }
 0x572   :  { %12667 = vmatprep.subr.bf16.mxu1 %v18470_v14  ;;  %v18501_v14 = vld [vmem:[%s25152_s3 + $0x1a48] ss:$20 sps:$4 sm:$0xff]  }
 0x573   :  { %12627 = vmatpush2.bf16.msra.mxu0 %v18465_v62  ;;  %v18509_v62 = vld [vmem:[%s25152_s3 + $0x1f24] ss:$20 sps:$4 sm:$0xff]  }
 0x574   :  { %12628 = vmatprep.subr.bf16.mxu0 %v18473_v16  ;;  %v18504_v16 = vld [vmem:[%s25152_s3 + $0x1cc8] ss:$20 sps:$4 sm:$0xff]  }
 0x575   :  { %12668 = vmatpush2.bf16.msra.mxu1 %v18468_v4  ;;  %v18512_v4 = vld [vmem:[%s25152_s3 + $0x21a4] ss:$20 sps:$4 sm:$0xff]  }
 0x576   :  { %12669 = vmatprep.subr.bf16.mxu1 %v18476_v0  ;;  %v18507_v0 = vld [vmem:[%s25152_s3 + $0x1f20] ss:$20 sps:$4 sm:$0xff]  }
 0x577   :  { %12629 = vmatpush2.bf16.msra.mxu0 %v18471_v58  ;;  %v18515_v58 = vld [vmem:[%s25152_s3 + $0x1efc] ss:$20 sps:$4 sm:$0xff]  }
 0x578   :  { %12630 = vmatprep.subr.bf16.mxu0 %v18479_v28  ;;  %v18510_v28 = vld [vmem:[%s25152_s3 + $0x21a0] ss:$20 sps:$4 sm:$0xff]  }
 0x579   :  { %12670 = vmatpush2.bf16.msra.mxu1 %v18474_v49 }
 0x57a   :  { %12671 = vmatprep.subr.bf16.mxu1 %v18482_v9  ;;  %v18518_v9 = vld [vmem:[%s25152_s3 + $0x217c] ss:$20 sps:$4 sm:$0xff]  }
 0x57b   :  { %12631 = vmatpush2.bf16.msra.mxu0 %v18477_v22 }
 0x57c   :  { %12632 = vmatprep.subr.bf16.mxu0 %v18485_v36  ;;  %v18513_v36 = vld [vmem:[%s25152_s3 + $0x1ef8] ss:$20 sps:$4 sm:$0xff]  }
 0x57d   :  { %12672 = vmatpush2.bf16.msra.mxu1 %v18480_v27 }
 0x57e   :  { %12673 = vmatprep.subr.bf16.mxu1 %v18488_v38 }
 0x57f   :  { %12633 = vmatpush2.bf16.msra.mxu0 %v18483_v7  ;;  %v18521_v7 = vld [vmem:[%s25152_s3 + $0x1ed4] ss:$20 sps:$4 sm:$0xff]  }
 0x580   :  { %12634 = vmatprep.subr.bf16.mxu0 %v18491_v3 }
 0x581   :  { %12674 = vmatpush2.bf16.msra.mxu1 %v18486_v18 }
 0x582   :  { %12675 = vmatprep.subr.bf16.mxu1 %v18494_v26 }
 0x583   :  { %12635 = vmatpush2.bf16.msra.mxu0 %v18489_v11 }
 0x584   :  { %12636 = vmatprep.subr.bf16.mxu0 %v18497_v61  ;;  %v18524_v61 = vld [vmem:[%s25152_s3 + $0x2154] ss:$20 sps:$4 sm:$0xff]  }
 0x585   :  { %12676 = vmatpush2.bf16.msra.mxu1 %v18492_v34 }
 0x586   :  { %12677 = vmatprep.subr.bf16.mxu1 %v18500_v51 }
 0x587   :  { %12637 = vmatpush2.bf16.msra.mxu0 %v18495_v30 }
 0x588   :  { %12638 = vmatprep.subr.bf16.mxu0 %v18503_v33  ;;  %v18527_v33 = vld [vmem:[%s25152_s3 + $0x1eac] ss:$20 sps:$4 sm:$0xff]  }
 0x589   :  { %12678 = vmatpush2.bf16.msra.mxu1 %v18498_v35  ;;  %v18522_v35 = vld [vmem:[%s25152_s3 + $0x2150] ss:$20 sps:$4 sm:$0xff]  }
 0x58a   :  { %12679 = vmatprep.subr.bf16.mxu1 %v18506_v25 }
 0x58b   :  { %12639 = vmatpush2.bf16.msra.mxu0 %v18501_v14  ;;  %v18530_v14 = vld [vmem:[%s25152_s3 + $0x212c] ss:$20 sps:$4 sm:$0xff]  }
 0x58c   :  { %12690 = vmatprep.subr.bf16.mxu0 %v18509_v62  ;;  %v18525_v62 = vld [vmem:[%s25152_s3 + $0x1ea8] ss:$20 sps:$4 sm:$0xff]  }
 0x58d   :  { %12680 = vmatpush2.bf16.msra.mxu1 %v18504_v16  ;;  %v18533_v16 = vld [vmem:[%s25152_s3 + $0x1e84] ss:$20 sps:$4 sm:$0xff]  }
 0x58e   :  { %v12396_v49 = vpop.f32.mrf.mxu0  ;;  %12641 = vmatmul.mubr.bf16.vlgmr.msra.gmra.mxu0 %v21533_v17  ;;  %12731 = vmatprep.subr.bf16.mxu1 %v18512_v4  ;;  %v18528_v4 = vld [vmem:[%s25152_s3 + $0x2128] ss:$20 sps:$4 sm:$0xff]  }
 0x58f   :  { %v12397_v22 = vadd.f32 %v12396_v49, %v23235_v52  ;;  %12691 = vmatpush1.bf16.msra.mxu0 %v18507_v0  ;;  %12722 = vmatprep.mubr.bf16.mxu0 %v21541_v5  ;;  %v18516_v52 = vld [vmem:[%s25152_s3 + $0x2178] ss:$20 sps:$4 sm:$0xff]   ;;  %v18534_v49 = vld [vmem:[%s25152_s3 + $0x2100] ss:$20 sps:$4 sm:$0xff]  }
 0x590   :  { %v12398_v27 = vpop.f32.mrf.mxu0  ;;  %v12437_v38 = vpop.f32.mrf.mxu1  ;;  %12682 = vmatmul.mubr.bf16.vlgmr.msra.gmra.mxu1 %v21546_v29  ;;  %12692 = vmatprep.subr.bf16.mxu0 %v18515_v58  ;;  %v18536_v0 = vld [vmem:[%s25152_s3 + $0x2104] ss:$20 sps:$4 sm:$0xff]   ;;  %v18531_v58 = vld [vmem:[%s25152_s3 + $0x1e80] ss:$20 sps:$4 sm:$0xff]  }
 0x591   :  { %v12399_v3 = vadd.f32 %v12398_v27, %v23244_v45  ;;  %v23437_v18 = vadd.f32 %v12437_v38, %v12397_v22  ;;  %12732 = vmatpush1.bf16.msra.mxu1 %v18510_v28  ;;  %12763 = vmatprep.mubr.bf16.mxu1 %v21554_v40  ;;  %v18519_v45 = vld [vmem:[%s25152_s3 + $0x1ed0] ss:$20 sps:$4 sm:$0xff]   ;;  %v18537_v22 = vld [vmem:[%s25152_s3 + $0x1e58] ss:$20 sps:$4 sm:$0xff]   ;;  %v18548_v38 = vld [vmem:[%s25152_s3 + $0x20b4] ss:$20 sps:$4 sm:$0xff]  }
 0x592   :  { %v12400_v26 = vpop.f32.mrf.mxu0  ;;  %v12439_v11 = vpop.f32.mrf.mxu1  ;;  %12733 = vmatprep.subr.bf16.mxu1 %v18518_v9  ;;  %v18539_v28 = vld [vmem:[%s25152_s3 + $0x1e5c] ss:$20 sps:$4 sm:$0xff]   ;;  %v18540_v27 = vld [vmem:[%s25152_s3 + $0x20d8] ss:$20 sps:$4 sm:$0xff]  }
 0x593   :  { %v23446_v34 = vadd.f32 %v12439_v11, %v12399_v3  ;;  %12693 = vmatpush1.bf16.msra.mxu0 %v18513_v36  ;;  %v18542_v9 = vld [vmem:[%s25152_s3 + $0x20dc] ss:$20 sps:$4 sm:$0xff]   ;;  %v18545_v36 = vld [vmem:[%s25152_s3 + $0x1e34] ss:$20 sps:$4 sm:$0xff]   ;;  %v18551_v3 = vld [vmem:[%s25152_s3 + $0x1e0c] ss:$20 sps:$4 sm:$0xff]  }
 0x594   :  { %v12401_v51 = vpop.f32.mrf.mxu0  ;;  %v12441_v30 = vpop.f32.mrf.mxu1  ;;  %12694 = vmatprep.subr.bf16.mxu0 %v18521_v7  ;;  %v18543_v7 = vld [vmem:[%s25152_s3 + $0x1e30] ss:$20 sps:$4 sm:$0xff]   ;;  %v18554_v26 = vld [vmem:[%s25152_s3 + $0x208c] ss:$20 sps:$4 sm:$0xff]   ;;  %v18549_v11 = vld [vmem:[%s25152_s3 + $0x1e08] ss:$20 sps:$4 sm:$0xff]  }
 0x595   :  { %12734 = vmatpush1.bf16.msra.mxu1 %v18516_v52  ;;  %v18546_v52 = vld [vmem:[%s25152_s3 + $0x20b0] ss:$20 sps:$4 sm:$0xff]   ;;  %v18555_v30 = vld [vmem:[%s25152_s3 + $0x2060] ss:$20 sps:$4 sm:$0xff]  }
 0x596   :  { %v12442_v25 = vpop.f32.mrf.mxu1  ;;  %12735 = vmatprep.subr.bf16.mxu1 %v18524_v61  ;;  %v18557_v61 = vld [vmem:[%s25152_s3 + $0x2064] ss:$20 sps:$4 sm:$0xff]  }
 0x597   :  { %12695 = vmatpush1.bf16.msra.mxu0 %v18519_v45  ;;  %v18552_v45 = vld [vmem:[%s25152_s3 + $0x2088] ss:$20 sps:$4 sm:$0xff]   ;;  %v18560_v51 = vld [vmem:[%s25152_s3 + $0x22e4] ss:$20 sps:$4 sm:$0xff]  }
 0x598   :  { %12696 = vmatprep.subr.bf16.mxu0 %v18527_v33  ;;  %v18563_v33 = vld [vmem:[%s25152_s3 + $0x203c] ss:$20 sps:$4 sm:$0xff]  }
 0x599   :  { %12736 = vmatpush1.bf16.msra.mxu1 %v18522_v35  ;;  %v18558_v35 = vld [vmem:[%s25152_s3 + $0x22e0] ss:$20 sps:$4 sm:$0xff]   ;;  %v18566_v25 = vld [vmem:[%s25152_s3 + $0x22bc] ss:$20 sps:$4 sm:$0xff]  }
 0x59a   :  { %12737 = vmatprep.subr.bf16.mxu1 %v18530_v14  ;;  %v18561_v14 = vld [vmem:[%s25152_s3 + $0x2038] ss:$20 sps:$4 sm:$0xff]  }
 0x59b   :  { %12697 = vmatpush1.bf16.msra.mxu0 %v18525_v62  ;;  %v18569_v62 = vld [vmem:[%s25152_s3 + $0x2014] ss:$20 sps:$4 sm:$0xff]  }
 0x59c   :  { %12698 = vmatprep.subr.bf16.mxu0 %v18533_v16  ;;  %v18564_v16 = vld [vmem:[%s25152_s3 + $0x22b8] ss:$20 sps:$4 sm:$0xff]  }
 0x59d   :  { %12738 = vmatpush1.bf16.msra.mxu1 %v18528_v4  ;;  %v18572_v4 = vld [vmem:[%s25152_s3 + $0x2294] ss:$20 sps:$4 sm:$0xff]  }
 0x59e   :  { %12739 = vmatprep.subr.bf16.mxu1 %v18536_v0  ;;  %v18567_v0 = vld [vmem:[%s25152_s3 + $0x2010] ss:$20 sps:$4 sm:$0xff]  }
 0x59f   :  { %12699 = vmatpush1.bf16.msra.mxu0 %v18531_v58  ;;  %v18575_v58 = vld [vmem:[%s25152_s3 + $0x1fec] ss:$20 sps:$4 sm:$0xff]  }
 0x5a0   :  { %12700 = vmatprep.subr.bf16.mxu0 %v18539_v28  ;;  %v18570_v28 = vld [vmem:[%s25152_s3 + $0x2290] ss:$20 sps:$4 sm:$0xff]  }
 0x5a1   :  { %12740 = vmatpush1.bf16.msra.mxu1 %v18534_v49  ;;  %v18578_v49 = vld [vmem:[%s25152_s3 + $0x226c] ss:$20 sps:$4 sm:$0xff]  }
 0x5a2   :  { %12741 = vmatprep.subr.bf16.mxu1 %v18542_v9  ;;  %v18573_v9 = vld [vmem:[%s25152_s3 + $0x1fe8] ss:$20 sps:$4 sm:$0xff]  }
 0x5a3   :  { %12701 = vmatpush1.bf16.msra.mxu0 %v18537_v22  ;;  %v18581_v22 = vld [vmem:[%s25152_s3 + $0x1fc4] ss:$20 sps:$4 sm:$0xff]  }
 0x5a4   :  { %12702 = vmatprep.subr.bf16.mxu0 %v18545_v36  ;;  %v18576_v36 = vld [vmem:[%s25152_s3 + $0x2268] ss:$20 sps:$4 sm:$0xff]  }
 0x5a5   :  { %12742 = vmatpush1.bf16.msra.mxu1 %v18540_v27  ;;  %v18584_v27 = vld [vmem:[%s25152_s3 + $0x2244] ss:$20 sps:$4 sm:$0xff]  }
 0x5a6   :  { %12743 = vmatprep.subr.bf16.mxu1 %v18548_v38  ;;  %v18579_v38 = vld [vmem:[%s25152_s3 + $0x1fc0] ss:$20 sps:$4 sm:$0xff]  }
 0x5a7   :  { %12703 = vmatpush1.bf16.msra.mxu0 %v18543_v7  ;;  %v18587_v7 = vld [vmem:[%s25152_s3 + $0x1f9c] ss:$20 sps:$4 sm:$0xff]  }
 0x5a8   :  { %12704 = vmatprep.subr.bf16.mxu0 %v18551_v3  ;;  %v18582_v3 = vld [vmem:[%s25152_s3 + $0x2240] ss:$20 sps:$4 sm:$0xff]  }
 0x5a9   :  { %12744 = vmatpush1.bf16.msra.mxu1 %v18546_v52  ;;  %v18590_v52 = vld [vmem:[%s25152_s3 + $0x221c] ss:$20 sps:$4 sm:$0xff]  }
 0x5aa   :  { %12745 = vmatprep.subr.bf16.mxu1 %v18554_v26  ;;  %v18585_v26 = vld [vmem:[%s25152_s3 + $0x1f98] ss:$20 sps:$4 sm:$0xff]  }
 0x5ab   :  { %12705 = vmatpush1.bf16.msra.mxu0 %v18549_v11  ;;  %v18593_v11 = vld [vmem:[%s25152_s3 + $0x1f74] ss:$20 sps:$4 sm:$0xff]  }
 0x5ac   :  { %12706 = vmatprep.subr.bf16.mxu0 %v18557_v61  ;;  %v18588_v61 = vld [vmem:[%s25152_s3 + $0x2218] ss:$20 sps:$4 sm:$0xff]  }
 0x5ad   :  { %12746 = vmatpush1.bf16.msra.mxu1 %v18552_v45  ;;  %v18596_v45 = vld [vmem:[%s25152_s3 + $0x21f4] ss:$20 sps:$4 sm:$0xff]  }
 0x5ae   :  { %12747 = vmatprep.subr.bf16.mxu1 %v18560_v51  ;;  %v18591_v51 = vld [vmem:[%s25152_s3 + $0x1f70] ss:$20 sps:$4 sm:$0xff]  }
 0x5af   :  { %12707 = vmatpush2.bf16.msra.mxu0 %v18555_v30  ;;  %v18599_v30 = vld [vmem:[%s25152_s3 + $0x1f4c] ss:$20 sps:$4 sm:$0xff]  }
 0x5b0   :  { %12708 = vmatprep.subr.bf16.mxu0 %v18563_v33  ;;  %v18594_v33 = vld [vmem:[%s25152_s3 + $0x21f0] ss:$20 sps:$4 sm:$0xff]  }
 0x5b1   :  { %12748 = vmatpush2.bf16.msra.mxu1 %v18558_v35  ;;  %v18602_v35 = vld [vmem:[%s25152_s3 + $0x21cc] ss:$20 sps:$4 sm:$0xff]  }
 0x5b2   :  { %12749 = vmatprep.subr.bf16.mxu1 %v18566_v25  ;;  %v18597_v25 = vld [vmem:[%s25152_s3 + $0x1f48] ss:$20 sps:$4 sm:$0xff]  }
 0x5b3   :  { %12709 = vmatpush2.bf16.msra.mxu0 %v18561_v14  ;;  %v18605_v14 = vld [vmem:[%s25152_s3 + $0x2424] ss:$20 sps:$4 sm:$0xff]  }
 0x5b4   :  { %12710 = vmatprep.subr.bf16.mxu0 %v18569_v62  ;;  %v18600_v62 = vld [vmem:[%s25152_s3 + $0x21c8] ss:$20 sps:$4 sm:$0xff]  }
 0x5b5   :  { %12750 = vmatpush2.bf16.msra.mxu1 %v18564_v16  ;;  %v18608_v16 = vld [vmem:[%s25152_s3 + $0x26a4] ss:$20 sps:$4 sm:$0xff]  }
 0x5b6   :  { %12751 = vmatprep.subr.bf16.mxu1 %v18572_v4  ;;  %v18603_v4 = vld [vmem:[%s25152_s3 + $0x2420] ss:$20 sps:$4 sm:$0xff]  }
 0x5b7   :  { %12711 = vmatpush2.bf16.msra.mxu0 %v18567_v0  ;;  %v18611_v0 = vld [vmem:[%s25152_s3 + $0x23fc] ss:$20 sps:$4 sm:$0xff]  }
 0x5b8   :  { %12712 = vmatprep.subr.bf16.mxu0 %v18575_v58  ;;  %v18606_v58 = vld [vmem:[%s25152_s3 + $0x26a0] ss:$20 sps:$4 sm:$0xff]  }
 0x5b9   :  { %12752 = vmatpush2.bf16.msra.mxu1 %v18570_v28 }
 0x5ba   :  { %12753 = vmatprep.subr.bf16.mxu1 %v18578_v49  ;;  %v18614_v49 = vld [vmem:[%s25152_s3 + $0x267c] ss:$20 sps:$4 sm:$0xff]  }
 0x5bb   :  { %12713 = vmatpush2.bf16.msra.mxu0 %v18573_v9 }
 0x5bc   :  { %12714 = vmatprep.subr.bf16.mxu0 %v18581_v22  ;;  %v18609_v22 = vld [vmem:[%s25152_s3 + $0x23f8] ss:$20 sps:$4 sm:$0xff]  }
 0x5bd   :  { %12754 = vmatpush2.bf16.msra.mxu1 %v18576_v36 }
 0x5be   :  { %12755 = vmatprep.subr.bf16.mxu1 %v18584_v27 }
 0x5bf   :  { %12715 = vmatpush2.bf16.msra.mxu0 %v18579_v38  ;;  %v18617_v38 = vld [vmem:[%s25152_s3 + $0x23d4] ss:$20 sps:$4 sm:$0xff]  }
 0x5c0   :  { %12716 = vmatprep.subr.bf16.mxu0 %v18587_v7 }
 0x5c1   :  { %12756 = vmatpush2.bf16.msra.mxu1 %v18582_v3 }
 0x5c2   :  { %12757 = vmatprep.subr.bf16.mxu1 %v18590_v52 }
 0x5c3   :  { %12717 = vmatpush2.bf16.msra.mxu0 %v18585_v26 }
 0x5c4   :  { %12718 = vmatprep.subr.bf16.mxu0 %v18593_v11  ;;  %v18620_v11 = vld [vmem:[%s25152_s3 + $0x2654] ss:$20 sps:$4 sm:$0xff]  }
 0x5c5   :  { %12758 = vmatpush2.bf16.msra.mxu1 %v18588_v61 }
 0x5c6   :  { %12759 = vmatprep.subr.bf16.mxu1 %v18596_v45 }
 0x5c7   :  { %12719 = vmatpush2.bf16.msra.mxu0 %v18591_v51 }
 0x5c8   :  { %12720 = vmatprep.subr.bf16.mxu0 %v18599_v30  ;;  %v18623_v30 = vld [vmem:[%s25152_s3 + $0x23ac] ss:$20 sps:$4 sm:$0xff]  }
 0x5c9   :  { %12760 = vmatpush2.bf16.msra.mxu1 %v18594_v33  ;;  %v18618_v33 = vld [vmem:[%s25152_s3 + $0x2650] ss:$20 sps:$4 sm:$0xff]  }
 0x5ca   :  { %12761 = vmatprep.subr.bf16.mxu1 %v18602_v35 }
 0x5cb   :  { %12721 = vmatpush2.bf16.msra.mxu0 %v18597_v25  ;;  %v18626_v25 = vld [vmem:[%s25152_s3 + $0x262c] ss:$20 sps:$4 sm:$0xff]  }
 0x5cc   :  { %12772 = vmatprep.subr.bf16.mxu0 %v18605_v14  ;;  %v18621_v14 = vld [vmem:[%s25152_s3 + $0x23a8] ss:$20 sps:$4 sm:$0xff]  }
 0x5cd   :  { %12762 = vmatpush2.bf16.msra.mxu1 %v18600_v62  ;;  %v18629_v62 = vld [vmem:[%s25152_s3 + $0x2384] ss:$20 sps:$4 sm:$0xff]  }
 0x5ce   :  { %v12478_v28 = vpop.f32.mrf.mxu0  ;;  %12723 = vmatmul.mubr.bf16.vlgmr.msra.gmra.mxu0 %v21760_v41  ;;  %12813 = vmatprep.subr.bf16.mxu1 %v18608_v16  ;;  %v18624_v16 = vld [vmem:[%s25152_s3 + $0x2628] ss:$20 sps:$4 sm:$0xff]  }
 0x5cf   :  { %v12479_v9 = vadd.f32 %v12478_v28, %v23437_v18  ;;  %12773 = vmatpush1.bf16.msra.mxu0 %v18603_v4  ;;  %12804 = vmatprep.mubr.bf16.mxu0 %v21116_v21  ;;  %v18612_v18 = vld [vmem:[%s25152_s3 + $0x2678] ss:$20 sps:$4 sm:$0xff]   ;;  %v18630_v28 = vld [vmem:[%s25152_s3 + $0x2600] ss:$20 sps:$4 sm:$0xff]  }
 0x5d0   :  { %v12480_v36 = vpop.f32.mrf.mxu0  ;;  %v12519_v27 = vpop.f32.mrf.mxu1  ;;  %12764 = vmatmul.mubr.bf16.vlgmr.msra.gmra.mxu1 %v21768_v56  ;;  %12774 = vmatprep.subr.bf16.mxu0 %v18611_v0  ;;  %v18632_v4 = vld [vmem:[%s25152_s3 + $0x2604] ss:$20 sps:$4 sm:$0xff]   ;;  %v18627_v0 = vld [vmem:[%s25152_s3 + $0x2380] ss:$20 sps:$4 sm:$0xff]  }
 0x5d1   :  { %v12481_v7 = vadd.f32 %v12480_v36, %v23446_v34  ;;  %v23639_v3 = vadd.f32 %v12519_v27, %v12479_v9  ;;  %12814 = vmatpush1.bf16.msra.mxu1 %v18606_v58  ;;  %12845 = vmatprep.mubr.bf16.mxu1 %v21776_v15  ;;  %v18615_v34 = vld [vmem:[%s25152_s3 + $0x23d0] ss:$20 sps:$4 sm:$0xff]   ;;  %v18633_v9 = vld [vmem:[%s25152_s3 + $0x2358] ss:$20 sps:$4 sm:$0xff]   ;;  %v18644_v27 = vld [vmem:[%s25152_s3 + $0x25b4] ss:$20 sps:$4 sm:$0xff]  }
 0x5d2   :  { %v12482_v52 = vpop.f32.mrf.mxu0  ;;  %v12521_v26 = vpop.f32.mrf.mxu1  ;;  %12815 = vmatprep.subr.bf16.mxu1 %v18614_v49  ;;  %v18635_v58 = vld [vmem:[%s25152_s3 + $0x235c] ss:$20 sps:$4 sm:$0xff]   ;;  %v18636_v36 = vld [vmem:[%s25152_s3 + $0x25d8] ss:$20 sps:$4 sm:$0xff]  }
 0x5d3   :  { %v23648_v61 = vadd.f32 %v12521_v26, %v12481_v7  ;;  %12775 = vmatpush1.bf16.msra.mxu0 %v18609_v22  ;;  %v18638_v49 = vld [vmem:[%s25152_s3 + $0x25dc] ss:$20 sps:$4 sm:$0xff]   ;;  %v18641_v22 = vld [vmem:[%s25152_s3 + $0x2334] ss:$20 sps:$4 sm:$0xff]   ;;  %v18647_v7 = vld [vmem:[%s25152_s3 + $0x230c] ss:$20 sps:$4 sm:$0xff]  }
 0x5d4   :  { %v12483_v45 = vpop.f32.mrf.mxu0  ;;  %v12523_v51 = vpop.f32.mrf.mxu1  ;;  %12776 = vmatprep.subr.bf16.mxu0 %v18617_v38  ;;  %v18639_v38 = vld [vmem:[%s25152_s3 + $0x2330] ss:$20 sps:$4 sm:$0xff]   ;;  %v18650_v52 = vld [vmem:[%s25152_s3 + $0x258c] ss:$20 sps:$4 sm:$0xff]   ;;  %v18645_v26 = vld [vmem:[%s25152_s3 + $0x2308] ss:$20 sps:$4 sm:$0xff]  }
 0x5d5   :  { %12816 = vmatpush1.bf16.msra.mxu1 %v18612_v18  ;;  %v18642_v18 = vld [vmem:[%s25152_s3 + $0x25b0] ss:$20 sps:$4 sm:$0xff]   ;;  %v18651_v51 = vld [vmem:[%s25152_s3 + $0x2560] ss:$20 sps:$4 sm:$0xff]  }
 0x5d6   :  { %v12524_v35 = vpop.f32.mrf.mxu1  ;;  %12817 = vmatprep.subr.bf16.mxu1 %v18620_v11  ;;  %v18653_v11 = vld [vmem:[%s25152_s3 + $0x2564] ss:$20 sps:$4 sm:$0xff]  }
 0x5d7   :  { %12777 = vmatpush1.bf16.msra.mxu0 %v18615_v34  ;;  %v18648_v34 = vld [vmem:[%s25152_s3 + $0x2588] ss:$20 sps:$4 sm:$0xff]   ;;  %v18656_v45 = vld [vmem:[%s25152_s3 + $0x27e4] ss:$20 sps:$4 sm:$0xff]  }
 0x5d8   :  { %12778 = vmatprep.subr.bf16.mxu0 %v18623_v30  ;;  %v18659_v30 = vld [vmem:[%s25152_s3 + $0x253c] ss:$20 sps:$4 sm:$0xff]  }
 0x5d9   :  { %12818 = vmatpush1.bf16.msra.mxu1 %v18618_v33  ;;  %v18654_v33 = vld [vmem:[%s25152_s3 + $0x27e0] ss:$20 sps:$4 sm:$0xff]   ;;  %v18662_v35 = vld [vmem:[%s25152_s3 + $0x27bc] ss:$20 sps:$4 sm:$0xff]  }
 0x5da   :  { %12819 = vmatprep.subr.bf16.mxu1 %v18626_v25  ;;  %v18657_v25 = vld [vmem:[%s25152_s3 + $0x2538] ss:$20 sps:$4 sm:$0xff]  }
 0x5db   :  { %12779 = vmatpush1.bf16.msra.mxu0 %v18621_v14  ;;  %v18665_v14 = vld [vmem:[%s25152_s3 + $0x2514] ss:$20 sps:$4 sm:$0xff]  }
 0x5dc   :  { %12780 = vmatprep.subr.bf16.mxu0 %v18629_v62  ;;  %v18660_v62 = vld [vmem:[%s25152_s3 + $0x27b8] ss:$20 sps:$4 sm:$0xff]  }
 0x5dd   :  { %12820 = vmatpush1.bf16.msra.mxu1 %v18624_v16  ;;  %v18668_v16 = vld [vmem:[%s25152_s3 + $0x2794] ss:$20 sps:$4 sm:$0xff]  }
 0x5de   :  { %12821 = vmatprep.subr.bf16.mxu1 %v18632_v4  ;;  %v18663_v4 = vld [vmem:[%s25152_s3 + $0x2510] ss:$20 sps:$4 sm:$0xff]  }
 0x5df   :  { %12781 = vmatpush1.bf16.msra.mxu0 %v18627_v0  ;;  %v18671_v0 = vld [vmem:[%s25152_s3 + $0x24ec] ss:$20 sps:$4 sm:$0xff]  }
 0x5e0   :  { %12782 = vmatprep.subr.bf16.mxu0 %v18635_v58  ;;  %v18666_v58 = vld [vmem:[%s25152_s3 + $0x2790] ss:$20 sps:$4 sm:$0xff]  }
 0x5e1   :  { %12822 = vmatpush1.bf16.msra.mxu1 %v18630_v28  ;;  %v18674_v28 = vld [vmem:[%s25152_s3 + $0x276c] ss:$20 sps:$4 sm:$0xff]  }
 0x5e2   :  { %12823 = vmatprep.subr.bf16.mxu1 %v18638_v49  ;;  %v18669_v49 = vld [vmem:[%s25152_s3 + $0x24e8] ss:$20 sps:$4 sm:$0xff]  }
 0x5e3   :  { %12783 = vmatpush1.bf16.msra.mxu0 %v18633_v9  ;;  %v18677_v9 = vld [vmem:[%s25152_s3 + $0x24c4] ss:$20 sps:$4 sm:$0xff]  }
 0x5e4   :  { %12784 = vmatprep.subr.bf16.mxu0 %v18641_v22  ;;  %v18672_v22 = vld [vmem:[%s25152_s3 + $0x2768] ss:$20 sps:$4 sm:$0xff]  }
 0x5e5   :  { %12824 = vmatpush1.bf16.msra.mxu1 %v18636_v36  ;;  %v18680_v36 = vld [vmem:[%s25152_s3 + $0x2744] ss:$20 sps:$4 sm:$0xff]  }
 0x5e6   :  { %12825 = vmatprep.subr.bf16.mxu1 %v18644_v27  ;;  %v18675_v27 = vld [vmem:[%s25152_s3 + $0x24c0] ss:$20 sps:$4 sm:$0xff]  }
 0x5e7   :  { %12785 = vmatpush1.bf16.msra.mxu0 %v18639_v38  ;;  %v18683_v38 = vld [vmem:[%s25152_s3 + $0x249c] ss:$20 sps:$4 sm:$0xff]  }
 0x5e8   :  { %12786 = vmatprep.subr.bf16.mxu0 %v18647_v7  ;;  %v18678_v7 = vld [vmem:[%s25152_s3 + $0x2740] ss:$20 sps:$4 sm:$0xff]  }
 0x5e9   :  { %12826 = vmatpush1.bf16.msra.mxu1 %v18642_v18  ;;  %v18686_v18 = vld [vmem:[%s25152_s3 + $0x271c] ss:$20 sps:$4 sm:$0xff]  }
 0x5ea   :  { %12827 = vmatprep.subr.bf16.mxu1 %v18650_v52  ;;  %v18681_v52 = vld [vmem:[%s25152_s3 + $0x2498] ss:$20 sps:$4 sm:$0xff]  }
 0x5eb   :  { %12787 = vmatpush1.bf16.msra.mxu0 %v18645_v26  ;;  %v18689_v26 = vld [vmem:[%s25152_s3 + $0x2474] ss:$20 sps:$4 sm:$0xff]  }
 0x5ec   :  { %12788 = vmatprep.subr.bf16.mxu0 %v18653_v11  ;;  %v18684_v11 = vld [vmem:[%s25152_s3 + $0x2718] ss:$20 sps:$4 sm:$0xff]  }
 0x5ed   :  { %12828 = vmatpush1.bf16.msra.mxu1 %v18648_v34  ;;  %v18692_v34 = vld [vmem:[%s25152_s3 + $0x26f4] ss:$20 sps:$4 sm:$0xff]  }
 0x5ee   :  { %12829 = vmatprep.subr.bf16.mxu1 %v18656_v45  ;;  %v18687_v45 = vld [vmem:[%s25152_s3 + $0x2470] ss:$20 sps:$4 sm:$0xff]  }
 0x5ef   :  { %12789 = vmatpush2.bf16.msra.mxu0 %v18651_v51  ;;  %v18695_v51 = vld [vmem:[%s25152_s3 + $0x244c] ss:$20 sps:$4 sm:$0xff]  }
 0x5f0   :  { %12790 = vmatprep.subr.bf16.mxu0 %v18659_v30  ;;  %v18690_v30 = vld [vmem:[%s25152_s3 + $0x26f0] ss:$20 sps:$4 sm:$0xff]  }
 0x5f1   :  { %12830 = vmatpush2.bf16.msra.mxu1 %v18654_v33  ;;  %v18698_v33 = vld [vmem:[%s25152_s3 + $0x26cc] ss:$20 sps:$4 sm:$0xff]  }
 0x5f2   :  { %12831 = vmatprep.subr.bf16.mxu1 %v18662_v35  ;;  %v18693_v35 = vld [vmem:[%s25152_s3 + $0x2448] ss:$20 sps:$4 sm:$0xff]  }
 0x5f3   :  { %12791 = vmatpush2.bf16.msra.mxu0 %v18657_v25  ;;  %v18701_v25 = vld [vmem:[%s25152_s3 + $0x2924] ss:$20 sps:$4 sm:$0xff]  }
 0x5f4   :  { %12792 = vmatprep.subr.bf16.mxu0 %v18665_v14  ;;  %v18696_v14 = vld [vmem:[%s25152_s3 + $0x26c8] ss:$20 sps:$4 sm:$0xff]  }
 0x5f5   :  { %12832 = vmatpush2.bf16.msra.mxu1 %v18660_v62  ;;  %v18704_v62 = vld [vmem:[%s25152_s3 + $0x2ba4] ss:$20 sps:$4 sm:$0xff]  }
 0x5f6   :  { %12833 = vmatprep.subr.bf16.mxu1 %v18668_v16  ;;  %v18699_v16 = vld [vmem:[%s25152_s3 + $0x2920] ss:$20 sps:$4 sm:$0xff]  }
 0x5f7   :  { %12793 = vmatpush2.bf16.msra.mxu0 %v18663_v4  ;;  %v18707_v4 = vld [vmem:[%s25152_s3 + $0x28fc] ss:$20 sps:$4 sm:$0xff]  }
 0x5f8   :  { %12794 = vmatprep.subr.bf16.mxu0 %v18671_v0  ;;  %v18702_v0 = vld [vmem:[%s25152_s3 + $0x2ba0] ss:$20 sps:$4 sm:$0xff]  }
 0x5f9   :  { %12834 = vmatpush2.bf16.msra.mxu1 %v18666_v58 }
 0x5fa   :  { %12835 = vmatprep.subr.bf16.mxu1 %v18674_v28  ;;  %v18710_v28 = vld [vmem:[%s25152_s3 + $0x2b7c] ss:$20 sps:$4 sm:$0xff]  }
 0x5fb   :  { %12795 = vmatpush2.bf16.msra.mxu0 %v18669_v49 }
 0x5fc   :  { %12796 = vmatprep.subr.bf16.mxu0 %v18677_v9  ;;  %v18705_v9 = vld [vmem:[%s25152_s3 + $0x28f8] ss:$20 sps:$4 sm:$0xff]  }
 0x5fd   :  { %12836 = vmatpush2.bf16.msra.mxu1 %v18672_v22 }
 0x5fe   :  { %12837 = vmatprep.subr.bf16.mxu1 %v18680_v36 }
 0x5ff   :  { %12797 = vmatpush2.bf16.msra.mxu0 %v18675_v27  ;;  %v18713_v27 = vld [vmem:[%s25152_s3 + $0x28d4] ss:$20 sps:$4 sm:$0xff]  }
 0x600   :  { %12798 = vmatprep.subr.bf16.mxu0 %v18683_v38 }
 0x601   :  { %12838 = vmatpush2.bf16.msra.mxu1 %v18678_v7 }
 0x602   :  { %12839 = vmatprep.subr.bf16.mxu1 %v18686_v18 }
 0x603   :  { %12799 = vmatpush2.bf16.msra.mxu0 %v18681_v52 }
 0x604   :  { %12800 = vmatprep.subr.bf16.mxu0 %v18689_v26  ;;  %v18716_v26 = vld [vmem:[%s25152_s3 + $0x2b54] ss:$20 sps:$4 sm:$0xff]  }
 0x605   :  { %12840 = vmatpush2.bf16.msra.mxu1 %v18684_v11 }
 0x606   :  { %12841 = vmatprep.subr.bf16.mxu1 %v18692_v34 }
 0x607   :  { %12801 = vmatpush2.bf16.msra.mxu0 %v18687_v45 }
 0x608   :  { %12802 = vmatprep.subr.bf16.mxu0 %v18695_v51  ;;  %v18719_v51 = vld [vmem:[%s25152_s3 + $0x28ac] ss:$20 sps:$4 sm:$0xff]  }
 0x609   :  { %12842 = vmatpush2.bf16.msra.mxu1 %v18690_v30  ;;  %v18714_v30 = vld [vmem:[%s25152_s3 + $0x2b50] ss:$20 sps:$4 sm:$0xff]  }
 0x60a   :  { %12843 = vmatprep.subr.bf16.mxu1 %v18698_v33 }
 0x60b   :  { %12803 = vmatpush2.bf16.msra.mxu0 %v18693_v35  ;;  %v18722_v35 = vld [vmem:[%s25152_s3 + $0x2b2c] ss:$20 sps:$4 sm:$0xff]  }
 0x60c   :  { %12854 = vmatprep.subr.bf16.mxu0 %v18701_v25  ;;  %v18717_v25 = vld [vmem:[%s25152_s3 + $0x28a8] ss:$20 sps:$4 sm:$0xff]  }
 0x60d   :  { %12844 = vmatpush2.bf16.msra.mxu1 %v18696_v14  ;;  %v18725_v14 = vld [vmem:[%s25152_s3 + $0x2884] ss:$20 sps:$4 sm:$0xff]  }
 0x60e   :  { %v12560_v58 = vpop.f32.mrf.mxu0  ;;  %12805 = vmatmul.mubr.bf16.vlgmr.msra.gmra.mxu0 %v21321_v32  ;;  %12895 = vmatprep.subr.bf16.mxu1 %v18704_v62  ;;  %v18720_v62 = vld [vmem:[%s25152_s3 + $0x2b28] ss:$20 sps:$4 sm:$0xff]  }
 0x60f   :  { %v12561_v49 = vadd.f32 %v12560_v58, %v23639_v3  ;;  %12855 = vmatpush1.bf16.msra.mxu0 %v18699_v16  ;;  %12886 = vmatprep.mubr.bf16.mxu0 %v21985_v2  ;;  %v18708_v3 = vld [vmem:[%s25152_s3 + $0x2b78] ss:$20 sps:$4 sm:$0xff]   ;;  %v18726_v58 = vld [vmem:[%s25152_s3 + $0x2b00] ss:$20 sps:$4 sm:$0xff]  }
 0x610   :  { %v12562_v22 = vpop.f32.mrf.mxu0  ;;  %v12601_v36 = vpop.f32.mrf.mxu1  ;;  %12846 = vmatmul.mubr.bf16.vlgmr.msra.gmra.mxu1 %v21990_v39  ;;  %12856 = vmatprep.subr.bf16.mxu0 %v18707_v4  ;;  %v18728_v16 = vld [vmem:[%s25152_s3 + $0x2b04] ss:$20 sps:$4 sm:$0xff]   ;;  %v18723_v4 = vld [vmem:[%s25152_s3 + $0x2880] ss:$20 sps:$4 sm:$0xff]  }
 0x611   :  { %v12563_v38 = vadd.f32 %v12562_v22, %v23648_v61  ;;  %v23841_v7 = vadd.f32 %v12601_v36, %v12561_v49  ;;  %12896 = vmatpush1.bf16.msra.mxu1 %v18702_v0  ;;  %12927 = vmatprep.mubr.bf16.mxu1 %v21998_v46  ;;  %v18711_v61 = vld [vmem:[%s25152_s3 + $0x28d0] ss:$20 sps:$4 sm:$0xff]   ;;  %v18729_v49 = vld [vmem:[%s25152_s3 + $0x2858] ss:$20 sps:$4 sm:$0xff]   ;;  %v18740_v36 = vld [vmem:[%s25152_s3 + $0x2ab4] ss:$20 sps:$4 sm:$0xff]  }
 0x612   :  { %v12564_v18 = vpop.f32.mrf.mxu0  ;;  %v12603_v52 = vpop.f32.mrf.mxu1  ;;  %12897 = vmatprep.subr.bf16.mxu1 %v18710_v28  ;;  %v18731_v0 = vld [vmem:[%s25152_s3 + $0x285c] ss:$20 sps:$4 sm:$0xff]   ;;  %v18732_v22 = vld [vmem:[%s25152_s3 + $0x2ad8] ss:$20 sps:$4 sm:$0xff]  }
 0x613   :  { %v23850_v11 = vadd.f32 %v12603_v52, %v12563_v38  ;;  %12857 = vmatpush1.bf16.msra.mxu0 %v18705_v9  ;;  %v18734_v28 = vld [vmem:[%s25152_s3 + $0x2adc] ss:$20 sps:$4 sm:$0xff]   ;;  %v18737_v9 = vld [vmem:[%s25152_s3 + $0x2834] ss:$20 sps:$4 sm:$0xff]   ;;  %v18743_v38 = vld [vmem:[%s25152_s3 + $0x280c] ss:$20 sps:$4 sm:$0xff]  }
 0x614   :  { %v12565_v34 = vpop.f32.mrf.mxu0  ;;  %v12605_v45 = vpop.f32.mrf.mxu1  ;;  %12858 = vmatprep.subr.bf16.mxu0 %v18713_v27  ;;  %v18735_v27 = vld [vmem:[%s25152_s3 + $0x2830] ss:$20 sps:$4 sm:$0xff]   ;;  %v18746_v18 = vld [vmem:[%s25152_s3 + $0x2a8c] ss:$20 sps:$4 sm:$0xff]   ;;  %v18741_v52 = vld [vmem:[%s25152_s3 + $0x2808] ss:$20 sps:$4 sm:$0xff]  }
 0x615   :  { %12898 = vmatpush1.bf16.msra.mxu1 %v18708_v3  ;;  %v18738_v3 = vld [vmem:[%s25152_s3 + $0x2ab0] ss:$20 sps:$4 sm:$0xff]   ;;  %v18747_v45 = vld [vmem:[%s25152_s3 + $0x2a60] ss:$20 sps:$4 sm:$0xff]  }
 0x616   :  { %v12606_v33 = vpop.f32.mrf.mxu1  ;;  %12899 = vmatprep.subr.bf16.mxu1 %v18716_v26  ;;  %v18749_v26 = vld [vmem:[%s25152_s3 + $0x2a64] ss:$20 sps:$4 sm:$0xff]  }
 0x617   :  { %12859 = vmatpush1.bf16.msra.mxu0 %v18711_v61  ;;  %v18744_v61 = vld [vmem:[%s25152_s3 + $0x2a88] ss:$20 sps:$4 sm:$0xff]   ;;  %v18752_v34 = vld [vmem:[%s25152_s3 + $0x2ce4] ss:$20 sps:$4 sm:$0xff]  }
 0x618   :  { %12860 = vmatprep.subr.bf16.mxu0 %v18719_v51  ;;  %v18755_v51 = vld [vmem:[%s25152_s3 + $0x2a3c] ss:$20 sps:$4 sm:$0xff]  }
 0x619   :  { %12900 = vmatpush1.bf16.msra.mxu1 %v18714_v30  ;;  %v18750_v30 = vld [vmem:[%s25152_s3 + $0x2ce0] ss:$20 sps:$4 sm:$0xff]   ;;  %v18758_v33 = vld [vmem:[%s25152_s3 + $0x2cbc] ss:$20 sps:$4 sm:$0xff]  }
 0x61a   :  { %12901 = vmatprep.subr.bf16.mxu1 %v18722_v35  ;;  %v18753_v35 = vld [vmem:[%s25152_s3 + $0x2a38] ss:$20 sps:$4 sm:$0xff]  }
 0x61b   :  { %12861 = vmatpush1.bf16.msra.mxu0 %v18717_v25  ;;  %v18761_v25 = vld [vmem:[%s25152_s3 + $0x2a14] ss:$20 sps:$4 sm:$0xff]  }
 0x61c   :  { %12862 = vmatprep.subr.bf16.mxu0 %v18725_v14  ;;  %v18756_v14 = vld [vmem:[%s25152_s3 + $0x2cb8] ss:$20 sps:$4 sm:$0xff]  }
 0x61d   :  { %12902 = vmatpush1.bf16.msra.mxu1 %v18720_v62  ;;  %v18764_v62 = vld [vmem:[%s25152_s3 + $0x2c94] ss:$20 sps:$4 sm:$0xff]  }
 0x61e   :  { %12903 = vmatprep.subr.bf16.mxu1 %v18728_v16  ;;  %v18759_v16 = vld [vmem:[%s25152_s3 + $0x2a10] ss:$20 sps:$4 sm:$0xff]  }
 0x61f   :  { %12863 = vmatpush1.bf16.msra.mxu0 %v18723_v4  ;;  %v18767_v4 = vld [vmem:[%s25152_s3 + $0x29ec] ss:$20 sps:$4 sm:$0xff]  }
 0x620   :  { %12864 = vmatprep.subr.bf16.mxu0 %v18731_v0  ;;  %v18762_v0 = vld [vmem:[%s25152_s3 + $0x2c90] ss:$20 sps:$4 sm:$0xff]  }
 0x621   :  { %12904 = vmatpush1.bf16.msra.mxu1 %v18726_v58  ;;  %v18770_v58 = vld [vmem:[%s25152_s3 + $0x2c6c] ss:$20 sps:$4 sm:$0xff]  }
 0x622   :  { %12905 = vmatprep.subr.bf16.mxu1 %v18734_v28  ;;  %v18765_v28 = vld [vmem:[%s25152_s3 + $0x29e8] ss:$20 sps:$4 sm:$0xff]  }
 0x623   :  { %12865 = vmatpush1.bf16.msra.mxu0 %v18729_v49  ;;  %v18773_v49 = vld [vmem:[%s25152_s3 + $0x29c4] ss:$20 sps:$4 sm:$0xff]  }
 0x624   :  { %12866 = vmatprep.subr.bf16.mxu0 %v18737_v9  ;;  %v18768_v9 = vld [vmem:[%s25152_s3 + $0x2c68] ss:$20 sps:$4 sm:$0xff]  }
 0x625   :  { %12906 = vmatpush1.bf16.msra.mxu1 %v18732_v22  ;;  %v18776_v22 = vld [vmem:[%s25152_s3 + $0x2c44] ss:$20 sps:$4 sm:$0xff]  }
 0x626   :  { %12907 = vmatprep.subr.bf16.mxu1 %v18740_v36  ;;  %v18771_v36 = vld [vmem:[%s25152_s3 + $0x29c0] ss:$20 sps:$4 sm:$0xff]  }
 0x627   :  { %12867 = vmatpush1.bf16.msra.mxu0 %v18735_v27  ;;  %v18779_v27 = vld [vmem:[%s25152_s3 + $0x299c] ss:$20 sps:$4 sm:$0xff]  }
 0x628   :  { %12868 = vmatprep.subr.bf16.mxu0 %v18743_v38  ;;  %v18774_v38 = vld [vmem:[%s25152_s3 + $0x2c40] ss:$20 sps:$4 sm:$0xff]  }
 0x629   :  { %12908 = vmatpush1.bf16.msra.mxu1 %v18738_v3  ;;  %v18782_v3 = vld [vmem:[%s25152_s3 + $0x2c1c] ss:$20 sps:$4 sm:$0xff]  }
 0x62a   :  { %12909 = vmatprep.subr.bf16.mxu1 %v18746_v18  ;;  %v18777_v18 = vld [vmem:[%s25152_s3 + $0x2998] ss:$20 sps:$4 sm:$0xff]  }
 0x62b   :  { %12869 = vmatpush1.bf16.msra.mxu0 %v18741_v52  ;;  %v18785_v52 = vld [vmem:[%s25152_s3 + $0x2974] ss:$20 sps:$4 sm:$0xff]  }
 0x62c   :  { %12870 = vmatprep.subr.bf16.mxu0 %v18749_v26  ;;  %v18780_v26 = vld [vmem:[%s25152_s3 + $0x2c18] ss:$20 sps:$4 sm:$0xff]  }
 0x62d   :  { %12910 = vmatpush1.bf16.msra.mxu1 %v18744_v61  ;;  %v18788_v61 = vld [vmem:[%s25152_s3 + $0x2bf4] ss:$20 sps:$4 sm:$0xff]  }
 0x62e   :  { %12911 = vmatprep.subr.bf16.mxu1 %v18752_v34  ;;  %v18783_v34 = vld [vmem:[%s25152_s3 + $0x2970] ss:$20 sps:$4 sm:$0xff]  }
 0x62f   :  { %12871 = vmatpush2.bf16.msra.mxu0 %v18747_v45  ;;  %v18791_v45 = vld [vmem:[%s25152_s3 + $0x294c] ss:$20 sps:$4 sm:$0xff]  }
 0x630   :  { %12872 = vmatprep.subr.bf16.mxu0 %v18755_v51  ;;  %v18786_v51 = vld [vmem:[%s25152_s3 + $0x2bf0] ss:$20 sps:$4 sm:$0xff]  }
 0x631   :  { %12912 = vmatpush2.bf16.msra.mxu1 %v18750_v30  ;;  %v18794_v30 = vld [vmem:[%s25152_s3 + $0x2bcc] ss:$20 sps:$4 sm:$0xff]  }
 0x632   :  { %12913 = vmatprep.subr.bf16.mxu1 %v18758_v33  ;;  %v18789_v33 = vld [vmem:[%s25152_s3 + $0x2948] ss:$20 sps:$4 sm:$0xff]  }
 0x633   :  { %12873 = vmatpush2.bf16.msra.mxu0 %v18753_v35  ;;  %v18795_v35 = vld [vmem:[%s25152_s3 + $0x268] ss:$20 sps:$4 sm:$0xff]  }
 0x634   :  { %12874 = vmatprep.subr.bf16.mxu0 %v18761_v25  ;;  %v18792_v25 = vld [vmem:[%s25152_s3 + $0x2bc8] ss:$20 sps:$4 sm:$0xff]  }
 0x635   :  { %12914 = vmatpush2.bf16.msra.mxu1 %v18756_v14  ;;  %v18797_v14 = vld [vmem:[%s25152_s3 + $0x4e8] ss:$20 sps:$4 sm:$0xff]  }
 0x636   :  { %12915 = vmatprep.subr.bf16.mxu1 %v18764_v62  ;;  %v18796_v62 = vld [vmem:[%s25152_s3 + $0x128] ss:$20 sps:$4 sm:$0xff]  }
 0x637   :  { %12875 = vmatpush2.bf16.msra.mxu0 %v18759_v16  ;;  %v18799_v16 = vld [vmem:[%s25152_s3 + $0x240] ss:$20 sps:$4 sm:$0xff]  }
 0x638   :  { %12876 = vmatprep.subr.bf16.mxu0 %v18767_v4  ;;  %v18798_v4 = vld [vmem:[%s25152_s3 + $0x3a8] ss:$20 sps:$4 sm:$0xff]  }
 0x639   :  { %12916 = vmatpush2.bf16.msra.mxu1 %v18762_v0 }
 0x63a   :  { %12917 = vmatprep.subr.bf16.mxu1 %v18770_v58  ;;  %v18801_v58 = vld [vmem:[%s25152_s3 + $0x4c0] ss:$20 sps:$4 sm:$0xff]  }
 0x63b   :  { %12877 = vmatpush2.bf16.msra.mxu0 %v18765_v28 }
 0x63c   :  { %12878 = vmatprep.subr.bf16.mxu0 %v18773_v49  ;;  %v18800_v49 = vld [vmem:[%s25152_s3 + $0x100] ss:$20 sps:$4 sm:$0xff]  }
 0x63d   :  { %12918 = vmatpush2.bf16.msra.mxu1 %v18768_v9 }
 0x63e   :  { %12919 = vmatprep.subr.bf16.mxu1 %v18776_v22 }
 0x63f   :  { %12879 = vmatpush2.bf16.msra.mxu0 %v18771_v36  ;;  %v18803_v36 = vld [vmem:[%s25152_s3 + $0x218] ss:$20 sps:$4 sm:$0xff]  }
 0x640   :  { %12880 = vmatprep.subr.bf16.mxu0 %v18779_v27 }
 0x641   :  { %12920 = vmatpush2.bf16.msra.mxu1 %v18774_v38 }
 0x642   :  { %12921 = vmatprep.subr.bf16.mxu1 %v18782_v3 }
 0x643   :  { %12881 = vmatpush2.bf16.msra.mxu0 %v18777_v18  ;;  %v18805_v18 = vld [vmem:[%s25152_s3 + $0x498] ss:$20 sps:$4 sm:$0xff]  }
 0x644   :  { %12882 = vmatprep.subr.bf16.mxu0 %v18785_v52 }
 0x645   :  { %12922 = vmatpush2.bf16.msra.mxu1 %v18780_v26 }
 0x646   :  { %12923 = vmatprep.subr.bf16.mxu1 %v18788_v61 }
 0x647   :  { %12883 = vmatpush2.bf16.msra.mxu0 %v18783_v34  ;;  %v18807_v34 = vld [vmem:[%s25152_s3 + $0x1f0] ss:$20 sps:$4 sm:$0xff]  }
 0x648   :  { %12884 = vmatprep.subr.bf16.mxu0 %v18791_v45  ;;  %v18806_v45 = vld [vmem:[%s25152_s3 + $0x358] ss:$20 sps:$4 sm:$0xff]  }
 0x649   :  { %12924 = vmatpush2.bf16.msra.mxu1 %v18786_v51 }
 0x64a   :  { %12925 = vmatprep.subr.bf16.mxu1 %v18794_v30  ;;  %v18809_v30 = vld [vmem:[%s25152_s3 + $0x470] ss:$20 sps:$4 sm:$0xff]  }
 0x64b   :  { %12885 = vmatpush2.bf16.msra.mxu0 %v18789_v33  ;;  %v18808_v33 = vld [vmem:[%s25152_s3 + $0xb0] ss:$20 sps:$4 sm:$0xff]  }
 0x64c   :  { %16150 = vmatprep.subr.bf16.mxu0 %v18795_v35  ;;  %v18811_v35 = vld [vmem:[%s25152_s3 + $0x1c8] ss:$20 sps:$4 sm:$0xff]  }
 0x64d   :  { %12926 = vmatpush2.bf16.msra.mxu1 %v18792_v25  ;;  %v18810_v25 = vld [vmem:[%s25152_s3 + $0x330] ss:$20 sps:$4 sm:$0xff]  }
 0x64e   :  { %v12642_v0 = vpop.f32.mrf.mxu0  ;;  %12887 = vmatmul.mubr.bf16.vlgmr.msra.gmra.mxu0 %v22201_v8  ;;  %16172 = vmatprep.subr.bf16.mxu1 %v18797_v14  ;;  %v18813_v14 = vld [vmem:[%s25152_s3 + $0x448] ss:$20 sps:$4 sm:$0xff]  }
 0x64f   :  { %v12643_v28 = vadd.f32 %v12642_v0, %v23841_v7  ;;  %16151 = vmatpush3.bf16.msra.mxu0 %v18796_v62  ;;  %12968 = vmatprep.mubr.bf16.mxu0 %v20305_v54  ;;  %v18802_v54 = vld [vmem:[%s25152_s3 + $0x380] ss:$20 sps:$4 sm:$0xff]   ;;  %v18812_v62 = vld [vmem:[%s25152_s3 + $0x88] ss:$20 sps:$4 sm:$0xff]  }
 0x650   :  { %v12644_v9 = vpop.f32.mrf.mxu0  ;;  %v12683_v22 = vpop.f32.mrf.mxu1  ;;  %12928 = vmatmul.mubr.bf16.vlgmr.msra.gmra.mxu1 %v22210_v6  ;;  %16152 = vmatprep.subr.bf16.mxu0 %v18799_v16  ;;  %v18815_v16 = vld [vmem:[%s25152_s3 + $0x1a0] ss:$20 sps:$4 sm:$0xff]  }
 0x651   :  { %v12645_v27 = vadd.f32 %v12644_v9, %v23850_v11  ;;  %v24043_v38 = vadd.f32 %v12683_v22, %v12643_v28  ;;  %16173 = vmatpush3.bf16.msra.mxu1 %v18798_v4  ;;  %13008 = vmatprep.mubr.bf16.mxu1 %v20331_v63  ;;  %v18804_v11 = vld [vmem:[%s25152_s3 + $0xd8] ss:$20 sps:$4 sm:$0xff]   ;;  %v18814_v4 = vld [vmem:[%s25152_s3 + $0x308] ss:$20 sps:$4 sm:$0xff]   ;;  %v18817_v0 = vld [vmem:[%s25152_s3 + $0x420] ss:$20 sps:$4 sm:$0xff]  }
 0x652   :  { %v12646_v7 = vpop.f32.mrf.mxu0  ;;  %v12685_v3 = vpop.f32.mrf.mxu1  ;;  %16174 = vmatprep.subr.bf16.mxu1 %v18801_v58  ;;  %v18816_v58 = vld [vmem:[%s25152_s3 + $0x60] ss:$20 sps:$4 sm:$0xff]   ;;  %v18819_v28 = vld [vmem:[%s25152_s3 + $0x178] ss:$20 sps:$4 sm:$0xff]  }
 0x653   :  { %v24052_v52 = vadd.f32 %v12685_v3, %v12645_v27  ;;  %16153 = vmatpush3.bf16.msra.mxu0 %v18800_v49  ;;  %v18818_v49 = vld [vmem:[%s25152_s3 + $0x2e0] ss:$20 sps:$4 sm:$0xff]   ;;  %v18821_v9 = vld [vmem:[%s25152_s3 + $0x3f8] ss:$20 sps:$4 sm:$0xff]   ;;  %v18824_v7 = vld [vmem:[%s25152_s3 + $0x10] ss:$20 sps:$4 sm:$0xff]  }
 0x654   :  { %v12647_v26 = vpop.f32.mrf.mxu0  ;;  %v12687_v61 = vpop.f32.mrf.mxu1  ;;  %16154 = vmatprep.subr.bf16.mxu0 %v18803_v36  ;;  %v18820_v22 = vld [vmem:[%s25152_s3 + $0x38] ss:$20 sps:$4 sm:$0xff]   ;;  %v18823_v36 = vld [vmem:[%s25152_s3 + $0x150] ss:$20 sps:$4 sm:$0xff]   ;;  %v18827_v3 = vld [vmem:[%s25152_s3 + $0x768] ss:$20 sps:$4 sm:$0xff]  }
 0x655   :  { %16175 = vmatpush3.bf16.msra.mxu1 %v18802_v54  ;;  %v18822_v27 = vld [vmem:[%s25152_s3 + $0x2b8] ss:$20 sps:$4 sm:$0xff]   ;;  %v18825_v54 = vld [vmem:[%s25152_s3 + $0x3d0] ss:$20 sps:$4 sm:$0xff]   ;;  %v18828_v26 = vld [vmem:[%s25152_s3 + $0x628] ss:$20 sps:$4 sm:$0xff]  }
 0x656   :  { %v12688_v51 = vpop.f32.mrf.mxu1  ;;  %16176 = vmatprep.subr.bf16.mxu1 %v18805_v18  ;;  %v18826_v18 = vld [vmem:[%s25152_s3 + $0x290] ss:$20 sps:$4 sm:$0xff]   ;;  %v18831_v61 = vld [vmem:[%s25152_s3 + $0x740] ss:$20 sps:$4 sm:$0xff]  }
 0x657   :  { %16155 = vmatpush3.bf16.msra.mxu0 %v18804_v11  ;;  %v18829_v11 = vld [vmem:[%s25152_s3 + $0x9e8] ss:$20 sps:$4 sm:$0xff]   ;;  %v18832_v51 = vld [vmem:[%s25152_s3 + $0x600] ss:$20 sps:$4 sm:$0xff]  }
 0x658   :  { %16156 = vmatprep.subr.bf16.mxu0 %v18807_v34  ;;  %v18830_v34 = vld [vmem:[%s25152_s3 + $0x8a8] ss:$20 sps:$4 sm:$0xff]  }
 0x659   :  { %16177 = vmatpush3.bf16.msra.mxu1 %v18806_v45  ;;  %v18833_v45 = vld [vmem:[%s25152_s3 + $0x9c0] ss:$20 sps:$4 sm:$0xff]  }
 0x65a   :  { %16178 = vmatprep.subr.bf16.mxu1 %v18809_v30  ;;  %v18835_v30 = vld [vmem:[%s25152_s3 + $0x718] ss:$20 sps:$4 sm:$0xff]  }
 0x65b   :  { %16157 = vmatpush3.bf16.msra.mxu0 %v18808_v33  ;;  %v18836_v33 = vld [vmem:[%s25152_s3 + $0x5d8] ss:$20 sps:$4 sm:$0xff]  }
 0x65c   :  { %16158 = vmatprep.subr.bf16.mxu0 %v18811_v35  ;;  %v18839_v35 = vld [vmem:[%s25152_s3 + $0x6f0] ss:$20 sps:$4 sm:$0xff]  }
 0x65d   :  { %16179 = vmatpush3.bf16.msra.mxu1 %v18810_v25  ;;  %v18841_v25 = vld [vmem:[%s25152_s3 + $0x970] ss:$20 sps:$4 sm:$0xff]  }
 0x65e   :  { %16180 = vmatprep.subr.bf16.mxu1 %v18813_v14  ;;  %v18840_v14 = vld [vmem:[%s25152_s3 + $0x5b0] ss:$20 sps:$4 sm:$0xff]  }
 0x65f   :  { %16159 = vmatpush3.bf16.msra.mxu0 %v18812_v62  ;;  %v18843_v62 = vld [vmem:[%s25152_s3 + $0x6c8] ss:$20 sps:$4 sm:$0xff]  }
 0x660   :  { %16160 = vmatprep.subr.bf16.mxu0 %v18815_v16  ;;  %v18842_v16 = vld [vmem:[%s25152_s3 + $0x830] ss:$20 sps:$4 sm:$0xff]  }
 0x661   :  { %16181 = vmatpush3.bf16.msra.mxu1 %v18814_v4  ;;  %v18845_v4 = vld [vmem:[%s25152_s3 + $0x948] ss:$20 sps:$4 sm:$0xff]  }
 0x662   :  { %16182 = vmatprep.subr.bf16.mxu1 %v18817_v0  ;;  %v18844_v0 = vld [vmem:[%s25152_s3 + $0x588] ss:$20 sps:$4 sm:$0xff]  }
 0x663   :  { %16161 = vmatpush3.bf16.msra.mxu0 %v18816_v58  ;;  %v18847_v58 = vld [vmem:[%s25152_s3 + $0x6a0] ss:$20 sps:$4 sm:$0xff]  }
 0x664   :  { %16162 = vmatprep.subr.bf16.mxu0 %v18819_v28  ;;  %v18846_v28 = vld [vmem:[%s25152_s3 + $0x808] ss:$20 sps:$4 sm:$0xff]  }
 0x665   :  { %16183 = vmatpush3.bf16.msra.mxu1 %v18818_v49  ;;  %v18849_v49 = vld [vmem:[%s25152_s3 + $0x920] ss:$20 sps:$4 sm:$0xff]  }
 0x666   :  { %16184 = vmatprep.subr.bf16.mxu1 %v18821_v9  ;;  %v18848_v9 = vld [vmem:[%s25152_s3 + $0x560] ss:$20 sps:$4 sm:$0xff]  }
 0x667   :  { %16163 = vmatpush3.bf16.msra.mxu0 %v18820_v22  ;;  %v18851_v22 = vld [vmem:[%s25152_s3 + $0x678] ss:$20 sps:$4 sm:$0xff]  }
 0x668   :  { %16164 = vmatprep.subr.bf16.mxu0 %v18823_v36  ;;  %v18850_v36 = vld [vmem:[%s25152_s3 + $0x7e0] ss:$20 sps:$4 sm:$0xff]  }
 0x669   :  { %16185 = vmatpush3.bf16.msra.mxu1 %v18822_v27  ;;  %v18853_v27 = vld [vmem:[%s25152_s3 + $0x8f8] ss:$20 sps:$4 sm:$0xff]  }
 0x66a   :  { %16186 = vmatprep.subr.bf16.mxu1 %v18825_v54  ;;  %v18852_v54 = vld [vmem:[%s25152_s3 + $0x538] ss:$20 sps:$4 sm:$0xff]  }
 0x66b   :  { %16165 = vmatpush3.bf16.msra.mxu0 %v18824_v7  ;;  %v18855_v7 = vld [vmem:[%s25152_s3 + $0x650] ss:$20 sps:$4 sm:$0xff]  }
 0x66c   :  { %16194 = vmatprep.subr.bf16.mxu0 %v18827_v3  ;;  %v18854_v3 = vld [vmem:[%s25152_s3 + $0x7b8] ss:$20 sps:$4 sm:$0xff]  }
 0x66d   :  { %16187 = vmatpush3.bf16.msra.mxu1 %v18826_v18  ;;  %v18857_v18 = vld [vmem:[%s25152_s3 + $0x8d0] ss:$20 sps:$4 sm:$0xff]  }
 0x66e   :  { %12969 = vmatmul.mubr.bf16.vlgmr.msra.gmra.mxu0 %v20334_v1  ;;  %16216 = vmatprep.subr.bf16.mxu1 %v18829_v11  ;;  %v18834_v1 = vld [vmem:[%s25152_s3 + $0x880] ss:$20 sps:$4 sm:$0xff]   ;;  %v18856_v11 = vld [vmem:[%s25152_s3 + $0x510] ss:$20 sps:$4 sm:$0xff]  }
 0x66f   :  { %16195 = vmatpush3.bf16.msra.mxu0 %v18828_v26  ;;  %13048 = vmatprep.mubr.bf16.mxu0 %v20661_v24  ;;  %v18837_v24 = vld [vmem:[%s25152_s3 + $0x998] ss:$20 sps:$4 sm:$0xff]   ;;  %v18859_v26 = vld [vmem:[%s25152_s3 + $0xc68] ss:$20 sps:$4 sm:$0xff]  }
 0x670   :  { %13009 = vmatmul.mubr.bf16.vlgmr.msra.gmra.mxu1 %v20366_v10  ;;  %16196 = vmatprep.subr.bf16.mxu0 %v18831_v61  ;;  %v18858_v61 = vld [vmem:[%s25152_s3 + $0x790] ss:$20 sps:$4 sm:$0xff]  }
 0x671   :  { %16217 = vmatpush3.bf16.msra.mxu1 %v18830_v34  ;;  %13088 = vmatprep.mubr.bf16.mxu1 %v20668_v37  ;;  %v18838_v37 = vld [vmem:[%s25152_s3 + $0x858] ss:$20 sps:$4 sm:$0xff]   ;;  %v18861_v34 = vld [vmem:[%s25152_s3 + $0xee8] ss:$20 sps:$4 sm:$0xff]  }
 0x672   :  { %16218 = vmatprep.subr.bf16.mxu1 %v18833_v45  ;;  %v18860_v45 = vld [vmem:[%s25152_s3 + $0xb28] ss:$20 sps:$4 sm:$0xff]  }
 0x673   :  { %16197 = vmatpush3.bf16.msra.mxu0 %v18832_v51  ;;  %v18863_v51 = vld [vmem:[%s25152_s3 + $0xc40] ss:$20 sps:$4 sm:$0xff]  }
 0x674   :  { %16198 = vmatprep.subr.bf16.mxu0 %v18835_v30  ;;  %v18862_v30 = vld [vmem:[%s25152_s3 + $0xda8] ss:$20 sps:$4 sm:$0xff]  }
 0x675   :  { %16219 = vmatpush3.bf16.msra.mxu1 %v18834_v1 }
 0x676   :  { %16220 = vmatprep.subr.bf16.mxu1 %v18837_v24  ;;  %v18865_v24 = vld [vmem:[%s25152_s3 + $0xec0] ss:$20 sps:$4 sm:$0xff]  }
 0x677   :  { %16199 = vmatpush3.bf16.msra.mxu0 %v18836_v33 }
 0x678   :  { %16200 = vmatprep.subr.bf16.mxu0 %v18839_v35  ;;  %v18864_v35 = vld [vmem:[%s25152_s3 + $0xb00] ss:$20 sps:$4 sm:$0xff]  }
 0x679   :  { %16221 = vmatpush3.bf16.msra.mxu1 %v18838_v37 }
 0x67a   :  { %16222 = vmatprep.subr.bf16.mxu1 %v18841_v25 }
 0x67b   :  { %16201 = vmatpush3.bf16.msra.mxu0 %v18840_v14 }
 0x67c   :  { %16202 = vmatprep.subr.bf16.mxu0 %v18843_v62 }
 0x67d   :  { %16223 = vmatpush3.bf16.msra.mxu1 %v18842_v16 }
 0x67e   :  { %16224 = vmatprep.subr.bf16.mxu1 %v18845_v4 }
 0x67f   :  { %16203 = vmatpush3.bf16.msra.mxu0 %v18844_v0 }
 0x680   :  { %16204 = vmatprep.subr.bf16.mxu0 %v18847_v58  ;;  %v18871_v58 = vld [vmem:[%s25152_s3 + $0xbf0] ss:$20 sps:$4 sm:$0xff]  }
 0x681   :  { %16225 = vmatpush3.bf16.msra.mxu1 %v18846_v28  ;;  %v18870_v28 = vld [vmem:[%s25152_s3 + $0xd58] ss:$20 sps:$4 sm:$0xff]  }
 0x682   :  { %16226 = vmatprep.subr.bf16.mxu1 %v18849_v49 }
 0x683   :  { %16205 = vmatpush3.bf16.msra.mxu0 %v18848_v9  ;;  %v18873_v9 = vld [vmem:[%s25152_s3 + $0xe70] ss:$20 sps:$4 sm:$0xff]  }
 0x684   :  { %16206 = vmatprep.subr.bf16.mxu0 %v18851_v22  ;;  %v18872_v22 = vld [vmem:[%s25152_s3 + $0xab0] ss:$20 sps:$4 sm:$0xff]  }
 0x685   :  { %16227 = vmatpush3.bf16.msra.mxu1 %v18850_v36  ;;  %v18875_v36 = vld [vmem:[%s25152_s3 + $0xbc8] ss:$20 sps:$4 sm:$0xff]  }
 0x686   :  { %16228 = vmatprep.subr.bf16.mxu1 %v18853_v27  ;;  %v18874_v27 = vld [vmem:[%s25152_s3 + $0xd30] ss:$20 sps:$4 sm:$0xff]  }
 0x687   :  { %16207 = vmatpush3.bf16.msra.mxu0 %v18852_v54  ;;  %v18877_v54 = vld [vmem:[%s25152_s3 + $0xe48] ss:$20 sps:$4 sm:$0xff]  }
 0x688   :  { %16208 = vmatprep.subr.bf16.mxu0 %v18855_v7  ;;  %v18876_v7 = vld [vmem:[%s25152_s3 + $0xa88] ss:$20 sps:$4 sm:$0xff]  }
 0x689   :  { %16229 = vmatpush3.bf16.msra.mxu1 %v18854_v3  ;;  %v18879_v3 = vld [vmem:[%s25152_s3 + $0xba0] ss:$20 sps:$4 sm:$0xff]  }
 0x68a   :  { %16230 = vmatprep.subr.bf16.mxu1 %v18857_v18  ;;  %v18878_v18 = vld [vmem:[%s25152_s3 + $0xd08] ss:$20 sps:$4 sm:$0xff]  }
 0x68b   :  { %16209 = vmatpush3.bf16.msra.mxu0 %v18856_v11  ;;  %v18881_v11 = vld [vmem:[%s25152_s3 + $0xe20] ss:$20 sps:$4 sm:$0xff]  }
 0x68c   :  { %16238 = vmatprep.subr.bf16.mxu0 %v18859_v26  ;;  %v18880_v26 = vld [vmem:[%s25152_s3 + $0xa60] ss:$20 sps:$4 sm:$0xff]  }
 0x68d   :  { %16231 = vmatpush3.bf16.msra.mxu1 %v18858_v61  ;;  %v18883_v61 = vld [vmem:[%s25152_s3 + $0xb78] ss:$20 sps:$4 sm:$0xff]  }
 0x68e   :  { %v12724_v1 = vpop.f32.mrf.mxu0  ;;  %13049 = vmatmul.mubr.bf16.vlgmr.msra.gmra.mxu0 %v20677_v53  ;;  %16260 = vmatprep.subr.bf16.mxu1 %v18861_v34  ;;  %v18867_v53 = vld [vmem:[%s25152_s3 + $0xc18] ss:$20 sps:$4 sm:$0xff]   ;;  %v18882_v34 = vld [vmem:[%s25152_s3 + $0xce0] ss:$20 sps:$4 sm:$0xff]  }
 0x68f   :  { %v12725_v33 = vadd.f32 %v12724_v1, %v24043_v38  ;;  %16239 = vmatpush3.bf16.msra.mxu0 %v18860_v45  ;;  %13128 = vmatprep.mubr.bf16.mxu0 %v20682_v60  ;;  %v18866_v60 = vld [vmem:[%s25152_s3 + $0xd80] ss:$20 sps:$4 sm:$0xff]   ;;  %v18885_v45 = vld [vmem:[%s25152_s3 + $0xdf8] ss:$20 sps:$4 sm:$0xff]  }
 0x690   :  { %v12726_v37 = vpop.f32.mrf.mxu0  ;;  %v12765_v25 = vpop.f32.mrf.mxu1  ;;  %13089 = vmatmul.mubr.bf16.vlgmr.msra.gmra.mxu1 %v20685_v42  ;;  %16240 = vmatprep.subr.bf16.mxu0 %v18863_v51  ;;  %v18869_v42 = vld [vmem:[%s25152_s3 + $0xe98] ss:$20 sps:$4 sm:$0xff]  }
 0x691   :  { %v12727_v14 = vadd.f32 %v12726_v37, %v24052_v52  ;;  %v24249_v62 = vadd.f32 %v12765_v25, %v12725_v33  ;;  %16261 = vmatpush3.bf16.msra.mxu1 %v18862_v30  ;;  %13168 = vmatprep.mubr.bf16.mxu1 %v20696_v57  ;;  %v18868_v52 = vld [vmem:[%s25152_s3 + $0xad8] ss:$20 sps:$4 sm:$0xff]   ;;  %v18887_v30 = vld [vmem:[%s25152_s3 + $0xb50] ss:$20 sps:$4 sm:$0xff]   ;;  %v18893_v25 = vld [vmem:[%s25152_s3 + $0x13e8] ss:$20 sps:$4 sm:$0xff]  }
 0x692   :  { %v12728_v38 = vpop.f32.mrf.mxu0  ;;  %v12767_v16 = vpop.f32.mrf.mxu1  ;;  %16262 = vmatprep.subr.bf16.mxu1 %v18865_v24  ;;  %v18884_v51 = vld [vmem:[%s25152_s3 + $0xa38] ss:$20 sps:$4 sm:$0xff]   ;;  %v18889_v24 = vld [vmem:[%s25152_s3 + $0xdd0] ss:$20 sps:$4 sm:$0xff]  }
 0x693   :  { %v24258_v4 = vadd.f32 %v12767_v16, %v12727_v14  ;;  %16241 = vmatpush3.bf16.msra.mxu0 %v18864_v35  ;;  %v18886_v1 = vld [vmem:[%s25152_s3 + $0xcb8] ss:$20 sps:$4 sm:$0xff]   ;;  %v18888_v33 = vld [vmem:[%s25152_s3 + $0xa10] ss:$20 sps:$4 sm:$0xff]   ;;  %v18891_v35 = vld [vmem:[%s25152_s3 + $0x1168] ss:$20 sps:$4 sm:$0xff]  }
 0x694   :  { %v12729_v0 = vpop.f32.mrf.mxu0  ;;  %v12769_v57 = vpop.f32.mrf.mxu1  ;;  %16242 = vmatprep.subr.bf16.mxu0 %v18867_v53  ;;  %v18890_v37 = vld [vmem:[%s25152_s3 + $0xc90] ss:$20 sps:$4 sm:$0xff]   ;;  %v18892_v53 = vld [vmem:[%s25152_s3 + $0x1028] ss:$20 sps:$4 sm:$0xff]   ;;  %v18895_v14 = vld [vmem:[%s25152_s3 + $0x1140] ss:$20 sps:$4 sm:$0xff]  }
 0x695   :  { %16263 = vmatpush3.bf16.msra.mxu1 %v18866_v60  ;;  %v18894_v60 = vld [vmem:[%s25152_s3 + $0x12a8] ss:$20 sps:$4 sm:$0xff]   ;;  %v18897_v38 = vld [vmem:[%s25152_s3 + $0x13c0] ss:$20 sps:$4 sm:$0xff]   ;;  %v18905_v0 = vld [vmem:[%s25152_s3 + $0x1370] ss:$20 sps:$4 sm:$0xff]  }
 0x696   :  { %v12770_v49 = vpop.f32.mrf.mxu1  ;;  %16264 = vmatprep.subr.bf16.mxu1 %v18869_v42  ;;  %v18896_v16 = vld [vmem:[%s25152_s3 + $0x1000] ss:$20 sps:$4 sm:$0xff]   ;;  %v18899_v42 = vld [vmem:[%s25152_s3 + $0x1118] ss:$20 sps:$4 sm:$0xff]   ;;  %v18904_v57 = vld [vmem:[%s25152_s3 + $0xfb0] ss:$20 sps:$4 sm:$0xff]  }
 0x697   :  { %16243 = vmatpush3.bf16.msra.mxu0 %v18868_v52  ;;  %v18903_v52 = vld [vmem:[%s25152_s3 + $0x10f0] ss:$20 sps:$4 sm:$0xff]   ;;  %v18909_v49 = vld [vmem:[%s25152_s3 + $0x1348] ss:$20 sps:$4 sm:$0xff]  }
 0x698   :  { %16244 = vmatprep.subr.bf16.mxu0 %v18871_v58  ;;  %v18907_v58 = vld [vmem:[%s25152_s3 + $0x10c8] ss:$20 sps:$4 sm:$0xff]  }
 0x699   :  { %16265 = vmatpush3.bf16.msra.mxu1 %v18870_v28  ;;  %v18906_v28 = vld [vmem:[%s25152_s3 + $0x1230] ss:$20 sps:$4 sm:$0xff]  }
 0x69a   :  { %16266 = vmatprep.subr.bf16.mxu1 %v18873_v9  ;;  %v18908_v9 = vld [vmem:[%s25152_s3 + $0xf88] ss:$20 sps:$4 sm:$0xff]  }
 0x69b   :  { %16245 = vmatpush3.bf16.msra.mxu0 %v18872_v22  ;;  %v18911_v22 = vld [vmem:[%s25152_s3 + $0x10a0] ss:$20 sps:$4 sm:$0xff]  }
 0x69c   :  { %16246 = vmatprep.subr.bf16.mxu0 %v18875_v36  ;;  %v18910_v36 = vld [vmem:[%s25152_s3 + $0x1208] ss:$20 sps:$4 sm:$0xff]  }
 0x69d   :  { %16267 = vmatpush3.bf16.msra.mxu1 %v18874_v27  ;;  %v18913_v27 = vld [vmem:[%s25152_s3 + $0x1320] ss:$20 sps:$4 sm:$0xff]  }
 0x69e   :  { %16268 = vmatprep.subr.bf16.mxu1 %v18877_v54  ;;  %v18912_v54 = vld [vmem:[%s25152_s3 + $0xf60] ss:$20 sps:$4 sm:$0xff]  }
 0x69f   :  { %16247 = vmatpush3.bf16.msra.mxu0 %v18876_v7  ;;  %v18915_v7 = vld [vmem:[%s25152_s3 + $0x1078] ss:$20 sps:$4 sm:$0xff]  }
 0x6a0   :  { %16248 = vmatprep.subr.bf16.mxu0 %v18879_v3  ;;  %v18914_v3 = vld [vmem:[%s25152_s3 + $0x11e0] ss:$20 sps:$4 sm:$0xff]  }
 0x6a1   :  { %16269 = vmatpush3.bf16.msra.mxu1 %v18878_v18  ;;  %v18917_v18 = vld [vmem:[%s25152_s3 + $0x12f8] ss:$20 sps:$4 sm:$0xff]  }
 0x6a2   :  { %16270 = vmatprep.subr.bf16.mxu1 %v18881_v11  ;;  %v18916_v11 = vld [vmem:[%s25152_s3 + $0xf38] ss:$20 sps:$4 sm:$0xff]  }
 0x6a3   :  { %16249 = vmatpush3.bf16.msra.mxu0 %v18880_v26  ;;  %v18919_v26 = vld [vmem:[%s25152_s3 + $0x1050] ss:$20 sps:$4 sm:$0xff]  }
 0x6a4   :  { %16250 = vmatprep.subr.bf16.mxu0 %v18883_v61  ;;  %v18918_v61 = vld [vmem:[%s25152_s3 + $0x11b8] ss:$20 sps:$4 sm:$0xff]  }
 0x6a5   :  { %16271 = vmatpush3.bf16.msra.mxu1 %v18882_v34  ;;  %v18921_v34 = vld [vmem:[%s25152_s3 + $0x12d0] ss:$20 sps:$4 sm:$0xff]  }
 0x6a6   :  { %16272 = vmatprep.subr.bf16.mxu1 %v18885_v45  ;;  %v18920_v45 = vld [vmem:[%s25152_s3 + $0xf10] ss:$20 sps:$4 sm:$0xff]  }
 0x6a7   :  { %16251 = vmatpush3.bf16.msra.mxu0 %v18884_v51  ;;  %v18923_v51 = vld [vmem:[%s25152_s3 + $0x1668] ss:$20 sps:$4 sm:$0xff]  }
 0x6a8   :  { %16252 = vmatprep.subr.bf16.mxu0 %v18887_v30  ;;  %v18922_v30 = vld [vmem:[%s25152_s3 + $0x1190] ss:$20 sps:$4 sm:$0xff]  }
 0x6a9   :  { %16273 = vmatpush3.bf16.msra.mxu1 %v18886_v1  ;;  %v18925_v1 = vld [vmem:[%s25152_s3 + $0x18e8] ss:$20 sps:$4 sm:$0xff]  }
 0x6aa   :  { %16274 = vmatprep.subr.bf16.mxu1 %v18889_v24  ;;  %v18924_v24 = vld [vmem:[%s25152_s3 + $0x1528] ss:$20 sps:$4 sm:$0xff]  }
 0x6ab   :  { %16253 = vmatpush3.bf16.msra.mxu0 %v18888_v33  ;;  %v18927_v33 = vld [vmem:[%s25152_s3 + $0x1640] ss:$20 sps:$4 sm:$0xff]  }
 0x6ac   :  { %16282 = vmatprep.subr.bf16.mxu0 %v18891_v35  ;;  %v18926_v35 = vld [vmem:[%s25152_s3 + $0x17a8] ss:$20 sps:$4 sm:$0xff]  }
 0x6ad   :  { %16275 = vmatpush3.bf16.msra.mxu1 %v18890_v37 }
 0x6ae   :  { %13129 = vmatmul.mubr.bf16.vlgmr.msra.gmra.mxu0 %v20892_v31  ;;  %16304 = vmatprep.subr.bf16.mxu1 %v18893_v25  ;;  %v18898_v31 = vld [vmem:[%s25152_s3 + $0x1280] ss:$20 sps:$4 sm:$0xff]  }
 0x6af   :  { %16283 = vmatpush3.bf16.msra.mxu0 %v18892_v53  ;;  %13208 = vmatprep.mubr.bf16.mxu0 %v20331_v63  ;;  %v18901_v63 = vld [vmem:[%s25152_s3 + $0x1398] ss:$20 sps:$4 sm:$0xff]   ;;  %v18929_v25 = vld [vmem:[%s25152_s3 + $0x18c0] ss:$20 sps:$4 sm:$0xff]  }
 0x6b0   :  { %13169 = vmatmul.mubr.bf16.vlgmr.msra.gmra.mxu1 %v20896_v44  ;;  %16284 = vmatprep.subr.bf16.mxu0 %v18895_v14  ;;  %v18900_v44 = vld [vmem:[%s25152_s3 + $0xfd8] ss:$20 sps:$4 sm:$0xff]   ;;  %v18928_v14 = vld [vmem:[%s25152_s3 + $0x1500] ss:$20 sps:$4 sm:$0xff]  }
 0x6b1   :  { %16305 = vmatpush3.bf16.msra.mxu1 %v18894_v60  ;;  %13248 = vmatprep.mubr.bf16.mxu1 %v20908_v12  ;;  %v18902_v12 = vld [vmem:[%s25152_s3 + $0x1258] ss:$20 sps:$4 sm:$0xff]  }
 0x6b2   :  { %16306 = vmatprep.subr.bf16.mxu1 %v18897_v38 }
 0x6b3   :  { %16285 = vmatpush3.bf16.msra.mxu0 %v18896_v16 }
 0x6b4   :  { %16286 = vmatprep.subr.bf16.mxu0 %v18899_v42 }
 0x6b5   :  { %16307 = vmatpush3.bf16.msra.mxu1 %v18898_v31 }
 0x6b6   :  { %16308 = vmatprep.subr.bf16.mxu1 %v18901_v63 }
 0x6b7   :  { %16287 = vmatpush3.bf16.msra.mxu0 %v18900_v44 }
 0x6b8   :  { %16288 = vmatprep.subr.bf16.mxu0 %v18903_v52 }
 0x6b9   :  { %16309 = vmatpush3.bf16.msra.mxu1 %v18902_v12  ;;  %v18935_v12 = vld [vmem:[%s25152_s3 + $0x15f0] ss:$20 sps:$4 sm:$0xff]  }
 0x6ba   :  { %16310 = vmatprep.subr.bf16.mxu1 %v18905_v0  ;;  %v18934_v0 = vld [vmem:[%s25152_s3 + $0x1758] ss:$20 sps:$4 sm:$0xff]  }
 0x6bb   :  { %16289 = vmatpush3.bf16.msra.mxu0 %v18904_v57 }
 0x6bc   :  { %16290 = vmatprep.subr.bf16.mxu0 %v18907_v58  ;;  %v18937_v58 = vld [vmem:[%s25152_s3 + $0x1870] ss:$20 sps:$4 sm:$0xff]  }
 0x6bd   :  { %16311 = vmatpush3.bf16.msra.mxu1 %v18906_v28  ;;  %v18936_v28 = vld [vmem:[%s25152_s3 + $0x14b0] ss:$20 sps:$4 sm:$0xff]  }
 0x6be   :  { %16312 = vmatprep.subr.bf16.mxu1 %v18909_v49  ;;  %v18939_v49 = vld [vmem:[%s25152_s3 + $0x15c8] ss:$20 sps:$4 sm:$0xff]  }
 0x6bf   :  { %16291 = vmatpush3.bf16.msra.mxu0 %v18908_v9  ;;  %v18938_v9 = vld [vmem:[%s25152_s3 + $0x1730] ss:$20 sps:$4 sm:$0xff]  }
 0x6c0   :  { %16292 = vmatprep.subr.bf16.mxu0 %v18911_v22  ;;  %v18941_v22 = vld [vmem:[%s25152_s3 + $0x1848] ss:$20 sps:$4 sm:$0xff]  }
 0x6c1   :  { %16313 = vmatpush3.bf16.msra.mxu1 %v18910_v36  ;;  %v18940_v36 = vld [vmem:[%s25152_s3 + $0x1488] ss:$20 sps:$4 sm:$0xff]  }
 0x6c2   :  { %16314 = vmatprep.subr.bf16.mxu1 %v18913_v27  ;;  %v18943_v27 = vld [vmem:[%s25152_s3 + $0x15a0] ss:$20 sps:$4 sm:$0xff]  }
 0x6c3   :  { %16293 = vmatpush3.bf16.msra.mxu0 %v18912_v54  ;;  %v18942_v54 = vld [vmem:[%s25152_s3 + $0x1708] ss:$20 sps:$4 sm:$0xff]  }
 0x6c4   :  { %16294 = vmatprep.subr.bf16.mxu0 %v18915_v7  ;;  %v18945_v7 = vld [vmem:[%s25152_s3 + $0x1820] ss:$20 sps:$4 sm:$0xff]  }
 0x6c5   :  { %16315 = vmatpush3.bf16.msra.mxu1 %v18914_v3  ;;  %v18944_v3 = vld [vmem:[%s25152_s3 + $0x1460] ss:$20 sps:$4 sm:$0xff]  }
 0x6c6   :  { %16316 = vmatprep.subr.bf16.mxu1 %v18917_v18  ;;  %v18947_v18 = vld [vmem:[%s25152_s3 + $0x1578] ss:$20 sps:$4 sm:$0xff]  }
 0x6c7   :  { %16295 = vmatpush3.bf16.msra.mxu0 %v18916_v11  ;;  %v18946_v11 = vld [vmem:[%s25152_s3 + $0x16e0] ss:$20 sps:$4 sm:$0xff]  }
 0x6c8   :  { %16296 = vmatprep.subr.bf16.mxu0 %v18919_v26  ;;  %v18949_v26 = vld [vmem:[%s25152_s3 + $0x17f8] ss:$20 sps:$4 sm:$0xff]  }
 0x6c9   :  { %16317 = vmatpush3.bf16.msra.mxu1 %v18918_v61  ;;  %v18948_v61 = vld [vmem:[%s25152_s3 + $0x1438] ss:$20 sps:$4 sm:$0xff]  }
 0x6ca   :  { %16318 = vmatprep.subr.bf16.mxu1 %v18921_v34  ;;  %v18951_v34 = vld [vmem:[%s25152_s3 + $0x1550] ss:$20 sps:$4 sm:$0xff]  }
 0x6cb   :  { %16297 = vmatpush3.bf16.msra.mxu0 %v18920_v45  ;;  %v18950_v45 = vld [vmem:[%s25152_s3 + $0x16b8] ss:$20 sps:$4 sm:$0xff]  }
 0x6cc   :  { %16326 = vmatprep.subr.bf16.mxu0 %v18923_v51  ;;  %v18953_v51 = vld [vmem:[%s25152_s3 + $0x17d0] ss:$20 sps:$4 sm:$0xff]  }
 0x6cd   :  { %16319 = vmatpush3.bf16.msra.mxu1 %v18922_v30  ;;  %v18952_v30 = vld [vmem:[%s25152_s3 + $0x1410] ss:$20 sps:$4 sm:$0xff]  }
 0x6ce   :  { %v12806_v37 = vpop.f32.mrf.mxu0  ;;  %13209 = vmatmul.mubr.bf16.vlgmr.msra.gmra.mxu0 %v20366_v10  ;;  %16348 = vmatprep.subr.bf16.mxu1 %v18925_v1  ;;  %v18931_v10 = vld [vmem:[%s25152_s3 + $0x1618] ss:$20 sps:$4 sm:$0xff]   ;;  %v18955_v1 = vld [vmem:[%s25152_s3 + $0x1b68] ss:$20 sps:$4 sm:$0xff]  }
 0x6cf   :  { %v12807_v53 = vadd.f32 %v12806_v37, %v24249_v62  ;;  %16327 = vmatpush3.bf16.msra.mxu0 %v18924_v24  ;;  %13288 = vmatprep.mubr.bf16.mxu0 %v21109_v19  ;;  %v18930_v19 = vld [vmem:[%s25152_s3 + $0x1780] ss:$20 sps:$4 sm:$0xff]   ;;  %v18954_v24 = vld [vmem:[%s25152_s3 + $0x1690] ss:$20 sps:$4 sm:$0xff]  }
 0x6d0   :  { %v12808_v60 = vpop.f32.mrf.mxu0  ;;  %v12847_v38 = vpop.f32.mrf.mxu1  ;;  %13249 = vmatmul.mubr.bf16.vlgmr.msra.gmra.mxu1 %v21114_v20  ;;  %16328 = vmatprep.subr.bf16.mxu0 %v18927_v33  ;;  %v18933_v20 = vld [vmem:[%s25152_s3 + $0x1898] ss:$20 sps:$4 sm:$0xff]   ;;  %v18957_v33 = vld [vmem:[%s25152_s3 + $0x1de8] ss:$20 sps:$4 sm:$0xff]   ;;  %v18959_v37 = vld [vmem:[%s25152_s3 + $0x1b40] ss:$20 sps:$4 sm:$0xff]  }
 0x6d1   :  { %v12809_v16 = vadd.f32 %v12808_v60, %v24258_v4  ;;  %v24455_v42 = vadd.f32 %v12847_v38, %v12807_v53  ;;  %16349 = vmatpush3.bf16.msra.mxu1 %v18926_v35  ;;  %13328 = vmatprep.mubr.bf16.mxu1 %v21116_v21  ;;  %v18932_v4 = vld [vmem:[%s25152_s3 + $0x14d8] ss:$20 sps:$4 sm:$0xff]   ;;  %v18956_v35 = vld [vmem:[%s25152_s3 + $0x1a28] ss:$20 sps:$4 sm:$0xff]   ;;  %v18960_v53 = vld [vmem:[%s25152_s3 + $0x1a00] ss:$20 sps:$4 sm:$0xff]  }
 0x6d2   :  { %v12810_v62 = vpop.f32.mrf.mxu0  ;;  %v12849_v31 = vpop.f32.mrf.mxu1  ;;  %16350 = vmatprep.subr.bf16.mxu1 %v18929_v25  ;;  %v18958_v25 = vld [vmem:[%s25152_s3 + $0x1ca8] ss:$20 sps:$4 sm:$0xff]   ;;  %v18962_v60 = vld [vmem:[%s25152_s3 + $0x1c80] ss:$20 sps:$4 sm:$0xff]   ;;  %v18965_v38 = vld [vmem:[%s25152_s3 + $0x1d98] ss:$20 sps:$4 sm:$0xff]  }
 0x6d3   :  { %v24464_v63 = vadd.f32 %v12849_v31, %v12809_v16  ;;  %16329 = vmatpush3.bf16.msra.mxu0 %v18928_v14  ;;  %v18961_v14 = vld [vmem:[%s25152_s3 + $0x1dc0] ss:$20 sps:$4 sm:$0xff]   ;;  %v18966_v16 = vld [vmem:[%s25152_s3 + $0x1c58] ss:$20 sps:$4 sm:$0xff]   ;;  %v18970_v62 = vld [vmem:[%s25152_s3 + $0x1c30] ss:$20 sps:$4 sm:$0xff]  }
 0x6d4   :  { %v12811_v44 = vpop.f32.mrf.mxu0  ;;  %v12851_v52 = vpop.f32.mrf.mxu1  ;;  %16330 = vmatprep.subr.bf16.mxu0 %v18931_v10  ;;  %v18967_v10 = vld [vmem:[%s25152_s3 + $0x1af0] ss:$20 sps:$4 sm:$0xff]   ;;  %v18971_v31 = vld [vmem:[%s25152_s3 + $0x1ac8] ss:$20 sps:$4 sm:$0xff]  }
 0x6d5   :  { %16351 = vmatpush3.bf16.msra.mxu1 %v18930_v19  ;;  %v18969_v19 = vld [vmem:[%s25152_s3 + $0x1d70] ss:$20 sps:$4 sm:$0xff]   ;;  %v18974_v44 = vld [vmem:[%s25152_s3 + $0x1c08] ss:$20 sps:$4 sm:$0xff]   ;;  %v18975_v52 = vld [vmem:[%s25152_s3 + $0x1aa0] ss:$20 sps:$4 sm:$0xff]  }
 0x6d6   :  { %v12852_v57 = vpop.f32.mrf.mxu1  ;;  %16352 = vmatprep.subr.bf16.mxu1 %v18933_v20  ;;  %v18972_v20 = vld [vmem:[%s25152_s3 + $0x1988] ss:$20 sps:$4 sm:$0xff]  }
 0x6d7   :  { %16331 = vmatpush3.bf16.msra.mxu0 %v18932_v4  ;;  %v18973_v4 = vld [vmem:[%s25152_s3 + $0x1d48] ss:$20 sps:$4 sm:$0xff]   ;;  %v18978_v57 = vld [vmem:[%s25152_s3 + $0x1be0] ss:$20 sps:$4 sm:$0xff]  }
 0x6d8   :  { %16332 = vmatprep.subr.bf16.mxu0 %v18935_v12  ;;  %v18976_v12 = vld [vmem:[%s25152_s3 + $0x1960] ss:$20 sps:$4 sm:$0xff]  }
 0x6d9   :  { %16353 = vmatpush3.bf16.msra.mxu1 %v18934_v0  ;;  %v18977_v0 = vld [vmem:[%s25152_s3 + $0x1d20] ss:$20 sps:$4 sm:$0xff]  }
 0x6da   :  { %16354 = vmatprep.subr.bf16.mxu1 %v18937_v58  ;;  %v18979_v58 = vld [vmem:[%s25152_s3 + $0x1a78] ss:$20 sps:$4 sm:$0xff]  }
 0x6db   :  { %16333 = vmatpush3.bf16.msra.mxu0 %v18936_v28  ;;  %v18980_v28 = vld [vmem:[%s25152_s3 + $0x1938] ss:$20 sps:$4 sm:$0xff]  }
 0x6dc   :  { %16334 = vmatprep.subr.bf16.mxu0 %v18939_v49  ;;  %v18981_v49 = vld [vmem:[%s25152_s3 + $0x1cf8] ss:$20 sps:$4 sm:$0xff]  }
 0x6dd   :  { %16355 = vmatpush3.bf16.msra.mxu1 %v18938_v9  ;;  %v18982_v9 = vld [vmem:[%s25152_s3 + $0x1bb8] ss:$20 sps:$4 sm:$0xff]  }
 0x6de   :  { %16356 = vmatprep.subr.bf16.mxu1 %v18941_v22  ;;  %v18983_v22 = vld [vmem:[%s25152_s3 + $0x1a50] ss:$20 sps:$4 sm:$0xff]  }
 0x6df   :  { %16335 = vmatpush3.bf16.msra.mxu0 %v18940_v36  ;;  %v18984_v36 = vld [vmem:[%s25152_s3 + $0x1910] ss:$20 sps:$4 sm:$0xff]  }
 0x6e0   :  { %16336 = vmatprep.subr.bf16.mxu0 %v18943_v27  ;;  %v18985_v27 = vld [vmem:[%s25152_s3 + $0x1cd0] ss:$20 sps:$4 sm:$0xff]  }
 0x6e1   :  { %16357 = vmatpush3.bf16.msra.mxu1 %v18942_v54  ;;  %v18986_v54 = vld [vmem:[%s25152_s3 + $0x1b90] ss:$20 sps:$4 sm:$0xff]  }
 0x6e2   :  { %16358 = vmatprep.subr.bf16.mxu1 %v18945_v7  ;;  %v18987_v7 = vld [vmem:[%s25152_s3 + $0x2068] ss:$20 sps:$4 sm:$0xff]  }
 0x6e3   :  { %16337 = vmatpush3.bf16.msra.mxu0 %v18944_v3  ;;  %v18988_v3 = vld [vmem:[%s25152_s3 + $0x1f28] ss:$20 sps:$4 sm:$0xff]  }
 0x6e4   :  { %16338 = vmatprep.subr.bf16.mxu0 %v18947_v18  ;;  %v18989_v18 = vld [vmem:[%s25152_s3 + $0x22e8] ss:$20 sps:$4 sm:$0xff]  }
 0x6e5   :  { %16359 = vmatpush3.bf16.msra.mxu1 %v18946_v11  ;;  %v18990_v11 = vld [vmem:[%s25152_s3 + $0x21a8] ss:$20 sps:$4 sm:$0xff]  }
 0x6e6   :  { %16360 = vmatprep.subr.bf16.mxu1 %v18949_v26  ;;  %v18991_v26 = vld [vmem:[%s25152_s3 + $0x2040] ss:$20 sps:$4 sm:$0xff]  }
 0x6e7   :  { %16339 = vmatpush3.bf16.msra.mxu0 %v18948_v61  ;;  %v18992_v61 = vld [vmem:[%s25152_s3 + $0x1f00] ss:$20 sps:$4 sm:$0xff]  }
 0x6e8   :  { %16340 = vmatprep.subr.bf16.mxu0 %v18951_v34  ;;  %v18993_v34 = vld [vmem:[%s25152_s3 + $0x22c0] ss:$20 sps:$4 sm:$0xff]  }
 0x6e9   :  { %16361 = vmatpush3.bf16.msra.mxu1 %v18950_v45 }
 0x6ea   :  { %16362 = vmatprep.subr.bf16.mxu1 %v18953_v51  ;;  %v18995_v51 = vld [vmem:[%s25152_s3 + $0x2018] ss:$20 sps:$4 sm:$0xff]  }
 0x6eb   :  { %16341 = vmatpush3.bf16.msra.mxu0 %v18952_v30 }
 0x6ec   :  { %16370 = vmatprep.subr.bf16.mxu0 %v18955_v1 }
 0x6ed   :  { %16363 = vmatpush3.bf16.msra.mxu1 %v18954_v24 }
 0x6ee   :  { %13289 = vmatmul.mubr.bf16.vlgmr.msra.gmra.mxu0 %v21314_v48  ;;  %16392 = vmatprep.subr.bf16.mxu1 %v18957_v33  ;;  %v18963_v48 = vld [vmem:[%s25152_s3 + $0x1b18] ss:$20 sps:$4 sm:$0xff]  }
 0x6ef   :  { %16371 = vmatpush3.bf16.msra.mxu0 %v18956_v35  ;;  %13368 = vmatprep.mubr.bf16.mxu0 %v21319_v55  ;;  %v18964_v55 = vld [vmem:[%s25152_s3 + $0x19d8] ss:$20 sps:$4 sm:$0xff]  }
 0x6f0   :  { %13329 = vmatmul.mubr.bf16.vlgmr.msra.gmra.mxu1 %v21321_v32  ;;  %16372 = vmatprep.subr.bf16.mxu0 %v18959_v37 }
 0x6f1   :  { %16393 = vmatpush3.bf16.msra.mxu1 %v18958_v25  ;;  %13408 = vmatprep.mubr.bf16.mxu1 %v21326_v59  ;;  %v18968_v59 = vld [vmem:[%s25152_s3 + $0x19b0] ss:$20 sps:$4 sm:$0xff]  }
 0x6f2   :  { %16394 = vmatprep.subr.bf16.mxu1 %v18961_v14  ;;  %v18998_v14 = vld [vmem:[%s25152_s3 + $0x2158] ss:$20 sps:$4 sm:$0xff]  }
 0x6f3   :  { %16373 = vmatpush3.bf16.msra.mxu0 %v18960_v53  ;;  %v18999_v53 = vld [vmem:[%s25152_s3 + $0x1ff0] ss:$20 sps:$4 sm:$0xff]  }
 0x6f4   :  { %16374 = vmatprep.subr.bf16.mxu0 %v18963_v48  ;;  %v19001_v48 = vld [vmem:[%s25152_s3 + $0x2270] ss:$20 sps:$4 sm:$0xff]  }
 0x6f5   :  { %16395 = vmatpush3.bf16.msra.mxu1 %v18962_v60 }
 0x6f6   :  { %16396 = vmatprep.subr.bf16.mxu1 %v18965_v38  ;;  %v19000_v38 = vld [vmem:[%s25152_s3 + $0x1eb0] ss:$20 sps:$4 sm:$0xff]  }
 0x6f7   :  { %16375 = vmatpush3.bf16.msra.mxu0 %v18964_v55  ;;  %v19003_v55 = vld [vmem:[%s25152_s3 + $0x1fc8] ss:$20 sps:$4 sm:$0xff]  }
 0x6f8   :  { %16376 = vmatprep.subr.bf16.mxu0 %v18967_v10  ;;  %v19002_v10 = vld [vmem:[%s25152_s3 + $0x2130] ss:$20 sps:$4 sm:$0xff]  }
 0x6f9   :  { %16397 = vmatpush3.bf16.msra.mxu1 %v18966_v16  ;;  %v19005_v16 = vld [vmem:[%s25152_s3 + $0x2248] ss:$20 sps:$4 sm:$0xff]  }
 0x6fa   :  { %16398 = vmatprep.subr.bf16.mxu1 %v18969_v19  ;;  %v19007_v19 = vld [vmem:[%s25152_s3 + $0x1fa0] ss:$20 sps:$4 sm:$0xff]  }
 0x6fb   :  { %16377 = vmatpush3.bf16.msra.mxu0 %v18968_v59  ;;  %v19004_v59 = vld [vmem:[%s25152_s3 + $0x1e88] ss:$20 sps:$4 sm:$0xff]  }
 0x6fc   :  { %16378 = vmatprep.subr.bf16.mxu0 %v18971_v31  ;;  %v19009_v31 = vld [vmem:[%s25152_s3 + $0x2220] ss:$20 sps:$4 sm:$0xff]  }
 0x6fd   :  { %16399 = vmatpush3.bf16.msra.mxu1 %v18970_v62  ;;  %v19006_v62 = vld [vmem:[%s25152_s3 + $0x2108] ss:$20 sps:$4 sm:$0xff]  }
 0x6fe   :  { %16400 = vmatprep.subr.bf16.mxu1 %v18973_v4  ;;  %v19011_v4 = vld [vmem:[%s25152_s3 + $0x1f78] ss:$20 sps:$4 sm:$0xff]  }
 0x6ff   :  { %16379 = vmatpush3.bf16.msra.mxu0 %v18972_v20  ;;  %v19008_v20 = vld [vmem:[%s25152_s3 + $0x1e60] ss:$20 sps:$4 sm:$0xff]  }
 0x700   :  { %16380 = vmatprep.subr.bf16.mxu0 %v18975_v52  ;;  %v19013_v52 = vld [vmem:[%s25152_s3 + $0x21f8] ss:$20 sps:$4 sm:$0xff]  }
 0x701   :  { %16401 = vmatpush3.bf16.msra.mxu1 %v18974_v44  ;;  %v19010_v44 = vld [vmem:[%s25152_s3 + $0x20e0] ss:$20 sps:$4 sm:$0xff]  }
 0x702   :  { %16402 = vmatprep.subr.bf16.mxu1 %v18977_v0  ;;  %v19015_v0 = vld [vmem:[%s25152_s3 + $0x1f50] ss:$20 sps:$4 sm:$0xff]  }
 0x703   :  { %16381 = vmatpush3.bf16.msra.mxu0 %v18976_v12  ;;  %v19012_v12 = vld [vmem:[%s25152_s3 + $0x1e38] ss:$20 sps:$4 sm:$0xff]  }
 0x704   :  { %16382 = vmatprep.subr.bf16.mxu0 %v18979_v58  ;;  %v19017_v58 = vld [vmem:[%s25152_s3 + $0x21d0] ss:$20 sps:$4 sm:$0xff]  }
 0x705   :  { %16403 = vmatpush3.bf16.msra.mxu1 %v18978_v57  ;;  %v19014_v57 = vld [vmem:[%s25152_s3 + $0x20b8] ss:$20 sps:$4 sm:$0xff]  }
 0x706   :  { %16404 = vmatprep.subr.bf16.mxu1 %v18981_v49  ;;  %v19019_v49 = vld [vmem:[%s25152_s3 + $0x2568] ss:$20 sps:$4 sm:$0xff]  }
 0x707   :  { %16383 = vmatpush3.bf16.msra.mxu0 %v18980_v28  ;;  %v19016_v28 = vld [vmem:[%s25152_s3 + $0x1e10] ss:$20 sps:$4 sm:$0xff]  }
 0x708   :  { %16384 = vmatprep.subr.bf16.mxu0 %v18983_v22  ;;  %v19021_v22 = vld [vmem:[%s25152_s3 + $0x27e8] ss:$20 sps:$4 sm:$0xff]  }
 0x709   :  { %16405 = vmatpush3.bf16.msra.mxu1 %v18982_v9  ;;  %v19018_v9 = vld [vmem:[%s25152_s3 + $0x2090] ss:$20 sps:$4 sm:$0xff]  }
 0x70a   :  { %16406 = vmatprep.subr.bf16.mxu1 %v18985_v27  ;;  %v3965_v27 = vsub.s32 4, %v20275_v43  ;;  %v19148_v43 = vld [vmem:[%s25154_s4] sm:$0x1f] }
 0x70b   :  { %16385 = vmatpush3.bf16.msra.mxu0 %v18984_v36  ;;  %v19020_v36 = vld [vmem:[%s25152_s3 + $0x2428] ss:$20 sps:$4 sm:$0xff]  }
 0x70c   :  { %16414 = vmatprep.subr.bf16.mxu0 %v18987_v7  ;;  %v19022_v7 = vld [vmem:[%s25152_s3 + $0x26a8] ss:$20 sps:$4 sm:$0xff]  }
 0x70d   :  { %16407 = vmatpush3.bf16.msra.mxu1 %v18986_v54  ;;  %v19023_v54 = vld [vmem:[%s25152_s3 + $0x2540] ss:$20 sps:$4 sm:$0xff]  }
 0x70e   :  { %v12888_v45 = vpop.f32.mrf.mxu0  ;;  %13369 = vmatmul.mubr.bf16.vlgmr.msra.gmra.mxu0 %v21533_v17  ;;  %16436 = vmatprep.subr.bf16.mxu1 %v18989_v18  ;;  %v18994_v17 = vld [vmem:[%s25152_s3 + $0x2180] ss:$20 sps:$4 sm:$0xff]  }
 0x70f   :  { %v12889_v30 = vadd.f32 %v12888_v45, %v24455_v42  ;;  %16415 = vmatpush3.bf16.msra.mxu0 %v18988_v3  ;;  %13448 = vmatprep.mubr.bf16.mxu0 %v21541_v5  ;;  %v18997_v5 = vld [vmem:[%s25152_s3 + $0x2298] ss:$20 sps:$4 sm:$0xff]   ;;  %v19025_v18 = vld [vmem:[%s25152_s3 + $0x27c0] ss:$20 sps:$4 sm:$0xff]  }
 0x710   :  { %v12890_v1 = vpop.f32.mrf.mxu0  ;;  %v12929_v24 = vpop.f32.mrf.mxu1  ;;  %13409 = vmatmul.mubr.bf16.vlgmr.msra.gmra.mxu1 %v21546_v29  ;;  %16416 = vmatprep.subr.bf16.mxu0 %v18991_v26  ;;  %v19024_v26 = vld [vmem:[%s25152_s3 + $0x2400] ss:$20 sps:$4 sm:$0xff]  }
 0x711   :  { %v12891_v33 = vadd.f32 %v12890_v1, %v24464_v63  ;;  %v24661_v35 = vadd.f32 %v12929_v24, %v12889_v30  ;;  %16437 = vmatpush3.bf16.msra.mxu1 %v18990_v11  ;;  %13488 = vmatprep.mubr.bf16.mxu1 %v21554_v40  ;;  %v18996_v63 = vld [vmem:[%s25152_s3 + $0x1ed8] ss:$20 sps:$4 sm:$0xff]   ;;  %v3966_v11 = vrot.slane %v19148_v43, %v3965_v27 }
 0x712   :  { %v12892_v42 = vpop.f32.mrf.mxu0  ;;  %v12931_v37 = vpop.f32.mrf.mxu1  ;;  %16438 = vmatprep.subr.bf16.mxu1 %v18993_v34 }
 0x713   :  { %v24670_v29 = vadd.f32 %v12931_v37, %v12891_v33  ;;  %16417 = vmatpush3.bf16.msra.mxu0 %v18992_v61  ;;  %v19028_v33 = vld [vmem:[%s25152_s3 + $0x23d8] ss:$20 sps:$4 sm:$0xff]   ;;  %v19031_v42 = vld [vmem:[%s25152_s3 + $0x24f0] ss:$20 sps:$4 sm:$0xff]  }
 0x714   :  { %v12893_v25 = vpop.f32.mrf.mxu0  ;;  %v12933_v40 = vpop.f32.mrf.mxu1  ;;  %16418 = vmatprep.subr.bf16.mxu0 %v18995_v51 }
 0x715   :  { %16439 = vmatpush3.bf16.msra.mxu1 %v18994_v17  ;;  %v19033_v25 = vld [vmem:[%s25152_s3 + $0x2770] ss:$20 sps:$4 sm:$0xff]  }
 0x716   :  { %v12934_v60 = vpop.f32.mrf.mxu1  ;;  %16440 = vmatprep.subr.bf16.mxu1 %v18997_v5  ;;  %v19030_v5 = vld [vmem:[%s25152_s3 + $0x2658] ss:$20 sps:$4 sm:$0xff]   ;;  %v19032_v40 = vld [vmem:[%s25152_s3 + $0x23b0] ss:$20 sps:$4 sm:$0xff]  }
 0x717   :  { %16419 = vmatpush3.bf16.msra.mxu0 %v18996_v63  ;;  %v19037_v60 = vld [vmem:[%s25152_s3 + $0x2748] ss:$20 sps:$4 sm:$0xff]  }
 0x718   :  { %16420 = vmatprep.subr.bf16.mxu0 %v18999_v53  ;;  %v19035_v53 = vld [vmem:[%s25152_s3 + $0x24c8] ss:$20 sps:$4 sm:$0xff]  }
 0x719   :  { %16441 = vmatpush3.bf16.msra.mxu1 %v18998_v14  ;;  %v19034_v14 = vld [vmem:[%s25152_s3 + $0x2630] ss:$20 sps:$4 sm:$0xff]  }
 0x71a   :  { %16442 = vmatprep.subr.bf16.mxu1 %v19001_v48  ;;  %v19036_v48 = vld [vmem:[%s25152_s3 + $0x2388] ss:$20 sps:$4 sm:$0xff]  }
 0x71b   :  { %16421 = vmatpush3.bf16.msra.mxu0 %v19000_v38  ;;  %v19039_v38 = vld [vmem:[%s25152_s3 + $0x24a0] ss:$20 sps:$4 sm:$0xff]  }
 0x71c   :  { %16422 = vmatprep.subr.bf16.mxu0 %v19003_v55  ;;  %v19038_v55 = vld [vmem:[%s25152_s3 + $0x2608] ss:$20 sps:$4 sm:$0xff]  }
 0x71d   :  { %16443 = vmatpush3.bf16.msra.mxu1 %v19002_v10  ;;  %v19041_v10 = vld [vmem:[%s25152_s3 + $0x2720] ss:$20 sps:$4 sm:$0xff]  }
 0x71e   :  { %16444 = vmatprep.subr.bf16.mxu1 %v19005_v16  ;;  %v19040_v16 = vld [vmem:[%s25152_s3 + $0x2360] ss:$20 sps:$4 sm:$0xff]  }
 0x71f   :  { %16423 = vmatpush3.bf16.msra.mxu0 %v19004_v59  ;;  %v19043_v59 = vld [vmem:[%s25152_s3 + $0x2478] ss:$20 sps:$4 sm:$0xff]  }
 0x720   :  { %16424 = vmatprep.subr.bf16.mxu0 %v19007_v19  ;;  %v19042_v19 = vld [vmem:[%s25152_s3 + $0x25e0] ss:$20 sps:$4 sm:$0xff]  }
 0x721   :  { %16445 = vmatpush3.bf16.msra.mxu1 %v19006_v62  ;;  %v19045_v62 = vld [vmem:[%s25152_s3 + $0x26f8] ss:$20 sps:$4 sm:$0xff]  }
 0x722   :  { %16446 = vmatprep.subr.bf16.mxu1 %v19009_v31  ;;  %v19044_v31 = vld [vmem:[%s25152_s3 + $0x2338] ss:$20 sps:$4 sm:$0xff]  }
 0x723   :  { %16425 = vmatpush3.bf16.msra.mxu0 %v19008_v20  ;;  %v19047_v20 = vld [vmem:[%s25152_s3 + $0x2450] ss:$20 sps:$4 sm:$0xff]  }
 0x724   :  { %16426 = vmatprep.subr.bf16.mxu0 %v19011_v4  ;;  %v19046_v4 = vld [vmem:[%s25152_s3 + $0x25b8] ss:$20 sps:$4 sm:$0xff]  }
 0x725   :  { %16447 = vmatpush3.bf16.msra.mxu1 %v19010_v44  ;;  %v19049_v44 = vld [vmem:[%s25152_s3 + $0x26d0] ss:$20 sps:$4 sm:$0xff]  }
 0x726   :  { %16448 = vmatprep.subr.bf16.mxu1 %v19013_v52  ;;  %v19048_v52 = vld [vmem:[%s25152_s3 + $0x2310] ss:$20 sps:$4 sm:$0xff]  }
 0x727   :  { %16427 = vmatpush3.bf16.msra.mxu0 %v19012_v12  ;;  %v19051_v12 = vld [vmem:[%s25152_s3 + $0x2a68] ss:$20 sps:$4 sm:$0xff]  }
 0x728   :  { %16428 = vmatprep.subr.bf16.mxu0 %v19015_v0  ;;  %v19050_v0 = vld [vmem:[%s25152_s3 + $0x2590] ss:$20 sps:$4 sm:$0xff]  }
 0x729   :  { %16449 = vmatpush3.bf16.msra.mxu1 %v19014_v57  ;;  %v19053_v57 = vld [vmem:[%s25152_s3 + $0x2ce8] ss:$20 sps:$4 sm:$0xff]  }
 0x72a   :  { %16450 = vmatprep.subr.bf16.mxu1 %v19017_v58  ;;  %v19052_v58 = vld [vmem:[%s25152_s3 + $0x2928] ss:$20 sps:$4 sm:$0xff]  }
 0x72b   :  { %16429 = vmatpush3.bf16.msra.mxu0 %v19016_v28  ;;  %v19055_v28 = vld [vmem:[%s25152_s3 + $0x2a40] ss:$20 sps:$4 sm:$0xff]  }
 0x72c   :  { %16458 = vmatprep.subr.bf16.mxu0 %v19019_v49  ;;  %v19054_v49 = vld [vmem:[%s25152_s3 + $0x2ba8] ss:$20 sps:$4 sm:$0xff]  }
 0x72d   :  { %16451 = vmatpush3.bf16.msra.mxu1 %v19018_v9 }
 0x72e   :  { %v16166_v3 = vpop.f32.mrf.mxu0  ;;  %13449 = vmatmul.mubr.bf16.vlgmr.msra.gmra.mxu0 %v21760_v41  ;;  %16480 = vmatprep.subr.bf16.mxu1 %v19021_v22  ;;  %v19027_v41 = vld [vmem:[%s25152_s3 + $0x2518] ss:$20 sps:$4 sm:$0xff]   ;;  %v19057_v22 = vld [vmem:[%s25152_s3 + $0x2cc0] ss:$20 sps:$4 sm:$0xff]  }
 0x72f   :  { %16459 = vmatpush3.bf16.msra.mxu0 %v19020_v36  ;;  %13528 = vmatprep.mubr.bf16.mxu0 %v21116_v21  ;;  %v19026_v21 = vld [vmem:[%s25152_s3 + $0x2680] ss:$20 sps:$4 sm:$0xff]  }
 0x730   :  { %v16167_v61 = vpop.f32.mrf.mxu0  ;;  %v16188_v34 = vpop.f32.mrf.mxu1  ;;  %13489 = vmatmul.mubr.bf16.vlgmr.msra.gmra.mxu1 %v21768_v56  ;;  %16460 = vmatprep.subr.bf16.mxu0 %v19023_v54  ;;  %v19029_v56 = vld [vmem:[%s25152_s3 + $0x2798] ss:$20 sps:$4 sm:$0xff]   ;;  %v19056_v36 = vld [vmem:[%s25152_s3 + $0x2900] ss:$20 sps:$4 sm:$0xff]  }
 0x731   :  { %v16168_v45 = vadd.f32 %v16167_v61, %v16166_v3  ;;  %16481 = vmatpush3.bf16.msra.mxu1 %v19022_v7  ;;  %13568 = vmatprep.mubr.bf16.mxu1 %v21776_v15 }
 0x732   :  { %v16169_v51 = vpop.f32.mrf.mxu0  ;;  %v16189_v30 = vpop.f32.mrf.mxu1  ;;  %16482 = vmatprep.subr.bf16.mxu1 %v19025_v18 }
 0x733   :  { %v12971_v1 = vadd.f32 %v16168_v45, %v3966_v11  ;;  %v16190_v24 = vadd.f32 %v16189_v30, %v16188_v34  ;;  %16461 = vmatpush3.bf16.msra.mxu0 %v19024_v26  ;;  %v19060_v26 = vld [vmem:[%s25152_s3 + $0x28d8] ss:$20 sps:$4 sm:$0xff]   ;;  %v19063_v34 = vld [vmem:[%s25152_s3 + $0x29f0] ss:$20 sps:$4 sm:$0xff]  }
 0x734   :  { %v16170_v17 = vpop.f32.mrf.mxu0  ;;  %v16191_v15 = vpop.f32.mrf.mxu1  ;;  %16462 = vmatprep.subr.bf16.mxu0 %v19027_v41  ;;  %v19062_v45 = vld [vmem:[%s25152_s3 + $0x2b58] ss:$20 sps:$4 sm:$0xff]   ;;  %v19065_v51 = vld [vmem:[%s25152_s3 + $0x2c70] ss:$20 sps:$4 sm:$0xff]  }
 0x735   :  { %v24782_v37 = vadd.f32 %v16190_v24, %v12971_v1  ;;  %16483 = vmatpush3.bf16.msra.mxu1 %v19026_v21  ;;  %v19064_v30 = vld [vmem:[%s25152_s3 + $0x28b0] ss:$20 sps:$4 sm:$0xff]   ;;  %v19069_v24 = vld [vmem:[%s25152_s3 + $0x2c48] ss:$20 sps:$4 sm:$0xff]   ;;  %v19071_v17 = vld [vmem:[%s25152_s3 + $0x29a0] ss:$20 sps:$4 sm:$0xff]  }
 0x736   :  { %v16192_v63 = vpop.f32.mrf.mxu1  ;;  %16484 = vmatprep.subr.bf16.mxu1 %v19029_v56  ;;  %v19067_v56 = vld [vmem:[%s25152_s3 + $0x29c8] ss:$20 sps:$4 sm:$0xff]   ;;  %v19066_v1 = vld [vmem:[%s25152_s3 + $0x2b30] ss:$20 sps:$4 sm:$0xff]  }
 0x737   :  { %16463 = vmatpush3.bf16.msra.mxu0 %v19028_v33  ;;  %v19068_v33 = vld [vmem:[%s25152_s3 + $0x2888] ss:$20 sps:$4 sm:$0xff]   ;;  %v19074_v63 = vld [vmem:[%s25152_s3 + $0x2ae0] ss:$20 sps:$4 sm:$0xff]  }
 0x738   :  { %16464 = vmatprep.subr.bf16.mxu0 %v19031_v42  ;;  %v19070_v15 = vld [vmem:[%s25152_s3 + $0x2b08] ss:$20 sps:$4 sm:$0xff]   ;;  %v19073_v42 = vld [vmem:[%s25152_s3 + $0x2c20] ss:$20 sps:$4 sm:$0xff]  }
 0x739   :  { %16485 = vmatpush3.bf16.msra.mxu1 %v19030_v5  ;;  %v19075_v5 = vld [vmem:[%s25152_s3 + $0x2978] ss:$20 sps:$4 sm:$0xff]  }
 0x73a   :  { %16486 = vmatprep.subr.bf16.mxu1 %v19033_v25  ;;  %v19077_v25 = vld [vmem:[%s25152_s3 + $0x2bf8] ss:$20 sps:$4 sm:$0xff]  }
 0x73b   :  { %16465 = vmatpush3.bf16.msra.mxu0 %v19032_v40  ;;  %v19076_v40 = vld [vmem:[%s25152_s3 + $0x2838] ss:$20 sps:$4 sm:$0xff]  }
 0x73c   :  { %16466 = vmatprep.subr.bf16.mxu0 %v19035_v53  ;;  %v19079_v53 = vld [vmem:[%s25152_s3 + $0x2950] ss:$20 sps:$4 sm:$0xff]  }
 0x73d   :  { %16487 = vmatpush3.bf16.msra.mxu1 %v19034_v14  ;;  %v19078_v14 = vld [vmem:[%s25152_s3 + $0x2ab8] ss:$20 sps:$4 sm:$0xff]  }
 0x73e   :  { %16488 = vmatprep.subr.bf16.mxu1 %v19037_v60  ;;  %v19081_v60 = vld [vmem:[%s25152_s3 + $0x2bd0] ss:$20 sps:$4 sm:$0xff]  }
 0x73f   :  { %16467 = vmatpush3.bf16.msra.mxu0 %v19036_v48  ;;  %v19080_v48 = vld [vmem:[%s25152_s3 + $0x2810] ss:$20 sps:$4 sm:$0xff]  }
 0x740   :  { %16468 = vmatprep.subr.bf16.mxu0 %v19039_v38  ;;  %v19083_v38 = vld [vmem:[%s25155_s5 + $0x78] sm:$0xff]  }
 0x741   :  { %16489 = vmatpush3.bf16.msra.mxu1 %v19038_v55  ;;  %v13657_v55 = vmax.f32 %v22837_v13, 0.0  ;;  %v19087_v13 = vld [vmem:[%s25155_s5 + $0x70] sm:$0xff]  }
 0x742   :  { %16490 = vmatprep.subr.bf16.mxu1 %v19041_v10  ;;  %v19082_v10 = vld [vmem:[%s25152_s3 + $0x2a90] ss:$20 sps:$4 sm:$0xff]  }
 0x743   :  { %16469 = vmatpush3.bf16.msra.mxu0 %v19040_v16  ;;  %v19085_v16 = vld [vmem:[%s25155_s5 + $0xf8] sm:$0xff]  }
 0x744   :  { %16470 = vmatprep.subr.bf16.mxu0 %v19043_v59  ;;  %v13659_v59 = vmax.f32 %v24670_v29, 0.0  ;;  %v19089_v29 = vld [vmem:[%s25155_s5 + $0xf0] sm:$0xff]  }
 0x745   :  { %16491 = vmatpush3.bf16.msra.mxu1 %v19042_v19  ;;  %v19084_v19 = vld [vmem:[%s25155_s5 + $0x38] sm:$0xff]  }
 0x746   :  { %16492 = vmatprep.subr.bf16.mxu1 %v19045_v62  ;;  %v13662_v62 = vpack.c.bf16 %v13657_v55, %v13657_v55 }
 0x747   :  { %16471 = vmatpush3.bf16.msra.mxu0 %v19044_v31  ;;  %v19086_v31 = vld [vmem:[%s25155_s5 + $0xb8] sm:$0xff]  }
 0x748   :  { %16472 = vmatprep.subr.bf16.mxu0 %v19047_v20 }
 0x749   :  { %16493 = vmatpush3.bf16.msra.mxu1 %v19046_v4  ;;  %v13664_v4 = vpack.c.bf16 %v13659_v59, %v13659_v59  ;;  %v19150_v59 = vmov 0.0  }
 0x74a   :  { %16494 = vmatprep.subr.bf16.mxu1 %v19049_v44  ;;  %v19088_v44 = vld [vmem:[%s25155_s5 + $0x30] sm:$0xff]  }
 0x74b   :  { %16473 = vmatpush3.bf16.msra.mxu0 %v19048_v52 }
 0x74c   :  { %16502 = vmatprep.subr.bf16.mxu0 %v19051_v12 }
 0x74d   :  { %16495 = vmatpush3.bf16.msra.mxu1 %v19050_v0 }
 0x74e   :  { %v16210_v9 = vpop.f32.mrf.mxu0  ;;  %13529 = vmatmul.mubr.bf16.vlgmr.msra.gmra.mxu0 %v21321_v32  ;;  %16524 = vmatprep.subr.bf16.mxu1 %v19053_v57  ;;  %v19059_v32 = vld [vmem:[%s25152_s3 + $0x2a18] ss:$20 sps:$4 sm:$0xff]   ;;  %v19090_v57 = vld [vmem:[%s25155_s5 + $0xb0] sm:$0xff]  }
 0x74f   :  { %16503 = vmatpush3.bf16.msra.mxu0 %v19052_v58  ;;  %13608 = vmatprep.mubr.bf16.mxu0 %v21985_v2  ;;  %v19058_v2 = vld [vmem:[%s25152_s3 + $0x2b80] ss:$20 sps:$4 sm:$0xff]  }
 0x750   :  { %v16211_v27 = vpop.f32.mrf.mxu0  ;;  %v16232_v54 = vpop.f32.mrf.mxu1  ;;  %13569 = vmatmul.mubr.bf16.vlgmr.msra.gmra.mxu1 %v21990_v39  ;;  %16504 = vmatprep.subr.bf16.mxu0 %v19055_v28  ;;  %v19061_v39 = vld [vmem:[%s25152_s3 + $0x2c98] ss:$20 sps:$4 sm:$0xff]  }
 0x751   :  { %v16212_v7 = vadd.f32 %v16211_v27, %v16210_v9  ;;  %16525 = vmatpush3.bf16.msra.mxu1 %v19054_v49  ;;  %13648 = vmatprep.mubr.bf16.mxu1 %v21998_v46  ;;  %v19093_v49 = vld [vmem:[%s25155_s5 + $0xe8] sm:$0xff]  }
 0x752   :  { %v16213_v3 = vpop.f32.mrf.mxu0  ;;  %v16233_v18 = vpop.f32.mrf.mxu1  ;;  %16526 = vmatprep.subr.bf16.mxu1 %v19057_v22  ;;  %v19092_v22 = vld [vmem:[%s25155_s5 + $0x28] sm:$0xff]  }
 0x753   :  { %v13051_v43 = vadd.f32 %v16212_v7, %v24782_v37  ;;  %v16234_v11 = vadd.f32 %v16233_v18, %v16232_v54  ;;  %16505 = vmatpush3.bf16.msra.mxu0 %v19056_v36  ;;  %v19072_v37 = vld [vmem:[%s25152_s3 + $0x2860] ss:$20 sps:$4 sm:$0xff]   ;;  %v19094_v7 = vld [vmem:[%s25155_s5 + $0xa8] sm:$0xff]  }
 0x754   :  { %v16214_v46 = vpop.f32.mrf.mxu0  ;;  %v16235_v61 = vpop.f32.mrf.mxu1  ;;  %16506 = vmatprep.subr.bf16.mxu0 %v19059_v32  ;;  %v19095_v54 = vld [vmem:[%s25155_s5 + $0x60] sm:$0xff]  }
 0x755   :  { %v24885_v41 = vadd.f32 %v16234_v11, %v13051_v43  ;;  %16527 = vmatpush3.bf16.msra.mxu1 %v19058_v2  ;;  %v19097_v3 = vld [vmem:[%s25155_s5 + $0xe0] sm:$0xff]   ;;  %v19101_v11 = vld [vmem:[%s25155_s5 + $0xd8] sm:$0xff]   ;;  %v19103_v46 = vld [vmem:[%s25155_s5 + $0x50] sm:$0xff]  }
 0x756   :  { %v16236_v21 = vpop.f32.mrf.mxu1  ;;  %16528 = vmatprep.subr.bf16.mxu1 %v19061_v39  ;;  %v19096_v18 = vld [vmem:[%s25155_s5 + $0x20] sm:$0xff]   ;;  %v19099_v39 = vld [vmem:[%s25155_s5 + $0x58] sm:$0xff]  }
 0x757   :  { %16507 = vmatpush3.bf16.msra.mxu0 %v19060_v26  ;;  %v19098_v43 = vld [vmem:[%s25155_s5 + $0xa0] sm:$0xff]   ;;  %v19100_v26 = vld [vmem:[%s25155_s5 + $0x18] sm:$0xff]   ;;  %v19106_v21 = vld [vmem:[%s25155_s5 + $0x90] sm:$0xff]  }
 0x758   :  { %16508 = vmatprep.subr.bf16.mxu0 %v19063_v34  ;;  %v19102_v61 = vld [vmem:[%s25155_s5 + $0x98] sm:$0xff]   ;;  %v19105_v34 = vld [vmem:[%s25155_s5 + $0xd0] sm:$0xff]  }
 0x759   :  { %16529 = vmatpush3.bf16.msra.mxu1 %v19062_v45  ;;  %v19107_v45 = vld [vmem:[%s25155_s5 + $0x48] sm:$0xff]  }
 0x75a   :  { %16530 = vmatprep.subr.bf16.mxu1 %v19065_v51  ;;  %v19109_v51 = vld [vmem:[%s25155_s5 + $0xc8] sm:$0xff]  }
 0x75b   :  { %16509 = vmatpush3.bf16.msra.mxu0 %v19064_v30  ;;  %v19108_v30 = vld [vmem:[%s25155_s5 + $0x8] sm:$0xff]  }
 0x75c   :  { %16510 = vmatprep.subr.bf16.mxu0 %v19067_v56  ;;  %v19111_v56 = vld [vmem:[%s25155_s5 + $0x40] sm:$0xff]  }
 0x75d   :  { %16531 = vmatpush3.bf16.msra.mxu1 %v19066_v1  ;;  %v19110_v1 = vld [vmem:[%s25155_s5 + $0x88] sm:$0xff]  }
 0x75e   :  { %16532 = vmatprep.subr.bf16.mxu1 %v19069_v24  ;;  %v19113_v24 = vld [vmem:[%s25155_s5 + $0xc0] sm:$0xff]  }
 0x75f   :  { %16511 = vmatpush3.bf16.msra.mxu0 %v19068_v33  ;;  %v19112_v33 = vld [vmem:[%s25155_s5] sm:$0xff]  }
 0x760   :  { %16512 = vmatprep.subr.bf16.mxu0 %v19071_v17  ;;  %v13656_v17 = vmax.f32 %v22828_v23, 0.0 }
 0x761   :  { %16533 = vmatpush3.bf16.msra.mxu1 %v19070_v15  ;;  %v19114_v15 = vld [vmem:[%s25155_s5 + $0x80] sm:$0xff]  }
 0x762   :  { %16534 = vmatprep.subr.bf16.mxu1 %v19073_v42  ;;  %v13658_v42 = vmax.f32 %v24661_v35, 0.0  ;;  %v19115_v35 = vld [vmem:[%s25155_s5 + $0x118] sm:$0xff]  }
 0x763   :  { %16513 = vmatpush3.bf16.msra.mxu0 %v19072_v37  ;;  %v13661_v37 = vpack.c.bf16 %v13656_v17, %v13656_v17 }
 0x764   :  { %16514 = vmatprep.subr.bf16.mxu0 %v19075_v5  ;;  %v13663_v5 = vpack.c.bf16 %v13658_v42, %v13658_v42 }
 0x765   :  { %16535 = vmatpush3.bf16.msra.mxu1 %v19074_v63 }
 0x766   :  { %16536 = vmatprep.subr.bf16.mxu1 %v19077_v25 }
 0x767   :  { %16515 = vmatpush3.bf16.msra.mxu0 %v19076_v40 }
 0x768   :  { %16516 = vmatprep.subr.bf16.mxu0 %v19079_v53 }
 0x769   :  { %16537 = vmatpush3.bf16.msra.mxu1 %v19078_v14 }
 0x76a   :  { %16538 = vmatprep.subr.bf16.mxu1 %v19081_v60 }
 0x76b   :  { %16517 = vmatpush3.bf16.msra.mxu0 %v19080_v48 }
 0x76c   :  { %16546 = vmatprep.subr.bf16.mxu0 %v19083_v38 }
 0x76d   :  { %16539 = vmatpush3.bf16.msra.mxu1 %v19082_v10 }
 0x76e   :  { %v16254_v20 = vpop.f32.mrf.mxu0  ;;  %13609 = vmatmul.mubr.bf16.vlgmr.msra.gmra.mxu0 %v22201_v8  ;;  %16568 = vmatprep.subr.bf16.mxu1 %v19085_v16  ;;  %v19091_v8 = vld [vmem:[%s25155_s5 + $0x68] sm:$0xff]  }
 0x76f   :  { %16547 = vmatpush3.bf16.msra.mxu0 %v19084_v19  ;;  %13996 = vmatprep.mubr.bf16.mxu0 %v13662_v62 }
 0x770   :  { %v16255_v52 = vpop.f32.mrf.mxu0  ;;  %v16276_v12 = vpop.f32.mrf.mxu1  ;;  %13649 = vmatmul.mubr.bf16.vlgmr.msra.gmra.mxu1 %v22210_v6  ;;  %16548 = vmatprep.subr.bf16.mxu0 %v19087_v13 }
 0x771   :  { %v16256_v0 = vadd.f32 %v16255_v52, %v16254_v20  ;;  %16569 = vmatpush3.bf16.msra.mxu1 %v19086_v31  ;;  %14036 = vmatprep.mubr.bf16.mxu1 %v13664_v4  ;;  %v19116_v52 = vld [vmem:[%s25155_s5 + $0x110] sm:$0xff]  }
 0x772   :  { %v16257_v58 = vpop.f32.mrf.mxu0  ;;  %v16277_v28 = vpop.f32.mrf.mxu1  ;;  %16570 = vmatprep.subr.bf16.mxu1 %v19089_v29 }
 0x773   :  { %v13131_v6 = vadd.f32 %v16256_v0, %v24885_v41  ;;  %v16278_v9 = vadd.f32 %v16277_v28, %v16276_v12  ;;  %16549 = vmatpush3.bf16.msra.mxu0 %v19088_v44  ;;  %v19104_v41 = vld [vmem:[%s25155_s5 + $0x10] sm:$0xff]   ;;  %v19117_v58 = vld [vmem:[%s25155_s5 + $0x108] sm:$0xff]   ;;  %v19118_v28 = vld [vmem:[%s25155_s5 + $0x100] sm:$0xff]  }
 0x774   :  { %v16258_v36 = vpop.f32.mrf.mxu0  ;;  %v16279_v27 = vpop.f32.mrf.mxu1  ;;  %16550 = vmatprep.subr.bf16.mxu0 %v19091_v8 }
 0x775   :  { %v13171_v32 = vadd.f32 %v16278_v9, %v13131_v6  ;;  %16571 = vmatpush3.bf16.msra.mxu1 %v19090_v57 }
 0x776   :  { %v16280_v2 = vpop.f32.mrf.mxu1  ;;  %16572 = vmatprep.subr.bf16.mxu1 %v19093_v49 }
 0x777   :  { %16551 = vmatpush3.bf16.msra.mxu0 %v19092_v22 }
 0x778   :  { %16552 = vmatprep.subr.bf16.mxu0 %v19095_v54 }
 0x779   :  { %16573 = vmatpush3.bf16.msra.mxu1 %v19094_v7 }
 0x77a   :  { %16574 = vmatprep.subr.bf16.mxu1 %v19097_v3 }
 0x77b   :  { %16553 = vmatpush3.bf16.msra.mxu0 %v19096_v18 }
 0x77c   :  { %16554 = vmatprep.subr.bf16.mxu0 %v19099_v39  ;;  %v19121_v39 = vld [vmem:[%s25156_s7 + $0x34] ss:$8 sps:$4 sm:$0xff]  }
 0x77d   :  { %16575 = vmatpush3.bf16.msra.mxu1 %v19098_v43 }
 0x77e   :  { %16576 = vmatprep.subr.bf16.mxu1 %v19101_v11 }
 0x77f   :  { %16555 = vmatpush3.bf16.msra.mxu0 %v19100_v26 }
 0x780   :  { %16556 = vmatprep.subr.bf16.mxu0 %v19103_v46 }
 0x781   :  { %16577 = vmatpush3.bf16.msra.mxu1 %v19102_v61 }
 0x782   :  { %16578 = vmatprep.subr.bf16.mxu1 %v19105_v34 }
 0x783   :  { %16557 = vmatpush3.bf16.msra.mxu0 %v19104_v41 }
 0x784   :  { %16558 = vmatprep.subr.bf16.mxu0 %v19107_v45 }
 0x785   :  { %16579 = vmatpush3.bf16.msra.mxu1 %v19106_v21 }
 0x786   :  { %16580 = vmatprep.subr.bf16.mxu1 %v19109_v51 }
 0x787   :  { %16559 = vmatpush3.bf16.msra.mxu0 %v19108_v30 }
 0x788   :  { %16560 = vmatprep.subr.bf16.mxu0 %v19111_v56 }
 0x789   :  { %16581 = vmatpush3.bf16.msra.mxu1 %v19110_v1 }
 0x78a   :  { %16582 = vmatprep.subr.bf16.mxu1 %v19113_v24 }
 0x78b   :  { %16561 = vmatpush3.bf16.msra.mxu0 %v19112_v33 }
 0x78d   :  { %16583 = vmatpush3.bf16.msra.mxu1 %v19114_v15 }
 0x78e   :  { %v16298_v63 = vpop.f32.mrf.mxu0  ;;  %13997 = vmatmul.mubr.bf16.vlgmr.msra.gmra.mxu0 %v13661_v37  ;;  %16617 = vmatprep.subr.bf16.mxu1 %v19150_v59 }
 0x790   :  { %v16299_v25 = vpop.f32.mrf.mxu0  ;;  %v16320_v40 = vpop.f32.mrf.mxu1  ;;  %14037 = vmatmul.mubr.bf16.vlgmr.msra.gmra.mxu1 %v13663_v5 }
 0x791   :  { %v16300_v53 = vadd.f32 %v16299_v25, %v16298_v63  ;;  %16618 = vmatpush3.bf16.msra.mxu1 %v19115_v35  ;;  %16625 = vmatprep.mubr.msk.bf16.mxu1 %vm19151_vm4, %v19150_v59 }
 0x792   :  { %v16301_v23 = vpop.f32.mrf.mxu0  ;;  %v16321_v14 = vpop.f32.mrf.mxu1  ;;  %16619 = vmatprep.subr.bf16.mxu1 %v19150_v59 }
 0x793   :  { %v13211_v60 = vadd.f32 %v16300_v53, %v13171_v32  ;;  %v16322_v48 = vadd.f32 %v16321_v14, %v16320_v40 }
 0x794   :  { %v16302_v38 = vpop.f32.mrf.mxu0  ;;  %v16323_v55 = vpop.f32.mrf.mxu1 }
 0x795   :  { %v13251_v10 = vadd.f32 %v16322_v48, %v13211_v60  ;;  %16620 = vmatpush3.bf16.msra.mxu1 %v19116_v52  ;;  %v19125_v52 = vld [vmem:[%s25156_s7 + $0x10] ss:$8 sps:$4 sm:$0xff]  }
 0x796   :  { %v16324_v16 = vpop.f32.mrf.mxu1  ;;  %16621 = vmatprep.subr.bf16.mxu1 %v19150_v59 }
 0x799   :  { %16622 = vmatpush3.bf16.msra.mxu1 %v19117_v58 }
 0x79a   :  { %16623 = vmatprep.subr.bf16.mxu1 %v19150_v59 }
 0x79d   :  { %16624 = vmatpush3.bf16.msra.mxu1 %v19118_v28 }
 0x79e   :  { %14157 = vmatprep.subr.bf16.mxu1 %v19121_v39  ;;  %v19133_v39 = vld [vmem:[%s25158_s9 + $0x70] sm:$0xff]  }
 0x7ae   :  { %v16342_v19 = vpop.f32.mrf.mxu0 }
 0x7b0   :  { %v16343_v13 = vpop.f32.mrf.mxu0  ;;  %v16364_v62 = vpop.f32.mrf.mxu1 }
 0x7b1   :  { %v16344_v31 = vadd.f32 %v16343_v13, %v16342_v19 }
 0x7b2   :  { %v16345_v20 = vpop.f32.mrf.mxu0  ;;  %v16365_v29 = vpop.f32.mrf.mxu1 }
 0x7b3   :  { %v13291_v4 = vadd.f32 %v16344_v31, %v13251_v10  ;;  %v16366_v44 = vadd.f32 %v16365_v29, %v16364_v62  ;;  %v19119_v31 = vld [vmem:[%s25156_s7 + $0x30] ss:$8 sps:$4 sm:$0xff]   ;;  %v19124_v29 = vld [vmem:[%s25156_s7 + $0x24] ss:$8 sps:$4 sm:$0xff]  }
 0x7b4   :  { %v16346_v12 = vpop.f32.mrf.mxu0  ;;  %v16367_v8 = vpop.f32.mrf.mxu1 }
 0x7b5   :  { %v13331_v0 = vadd.f32 %v16366_v44, %v13291_v4  ;;  %v19122_v4 = vld [vmem:[%s25156_s7 + $0x20] ss:$8 sps:$4 sm:$0xff]   ;;  %v19127_v44 = vld [vmem:[%s25156_s7 + $0x14] ss:$8 sps:$4 sm:$0xff]  }
 0x7b6   :  { %v16368_v57 = vpop.f32.mrf.mxu1  ;;  %v16086_v8 = vld [vmem:[%s25157_s6] ss:$0 sm:$0xff] }
 0x7ce   :  { %v16386_v49 = vpop.f32.mrf.mxu0 }
 0x7d0   :  { %v16387_v6 = vpop.f32.mrf.mxu0  ;;  %v16408_v9 = vpop.f32.mrf.mxu1 }
 0x7d1   :  { %v16388_v22 = vadd.f32 %v16387_v6, %v16386_v49 }
 0x7d2   :  { %v16389_v36 = vpop.f32.mrf.mxu0  ;;  %v16409_v27 = vpop.f32.mrf.mxu1 }
 0x7d3   :  { %v13371_v54 = vadd.f32 %v16388_v22, %v13331_v0  ;;  %v16410_v32 = vadd.f32 %v16409_v27, %v16408_v9 }
 0x7d4   :  { %v16390_v7 = vpop.f32.mrf.mxu0  ;;  %v16411_v2 = vpop.f32.mrf.mxu1 }
 0x7d5   :  { %v13411_v3 = vadd.f32 %v16410_v32, %v13371_v54  ;;  %v19128_v32 = vld [vmem:[%s25156_s7] ss:$8 sps:$4 sm:$0xff]   ;;  %v19130_v7 = vld [vmem:[%s25156_s7 + $0x4] ss:$8 sps:$4 sm:$0xff]   ;;  %v19152_v2 = vmov 0  }
 0x7d6   :  { %v16412_v18 = vpop.f32.mrf.mxu1 }
 0x7d7   :  { %v19132_v18 = vld [vmem:[%s25158_s9 + $0x38] sm:$0xff]  }
 0x7ee   :  { %v16430_v43 = vpop.f32.mrf.mxu0 }
 0x7f0   :  { %v16431_v11 = vpop.f32.mrf.mxu0  ;;  %v16452_v26 = vpop.f32.mrf.mxu1 }
 0x7f1   :  { %v16432_v15 = vadd.f32 %v16431_v11, %v16430_v43  ;;  %v19134_v43 = vld [vmem:[%s25158_s9 + $0x30] sm:$0xff]   ;;  %v19135_v11 = vld [vmem:[%s25158_s9 + $0x68] sm:$0xff]  }
 0x7f2   :  { %v16433_v46 = vpop.f32.mrf.mxu0  ;;  %v16453_v61 = vpop.f32.mrf.mxu1 }
 0x7f3   :  { %v13451_v42 = vadd.f32 %v16432_v15, %v13411_v3  ;;  %v16454_v37 = vadd.f32 %v16453_v61, %v16452_v26  ;;  %v19131_v3 = vld [vmem:[%s25158_s9 + $0x78] sm:$0xff]   ;;  %v19136_v26 = vld [vmem:[%s25158_s9 + $0x28] sm:$0xff]   ;;  %v19137_v46 = vld [vmem:[%s25158_s9 + $0x60] sm:$0xff]  }
 0x7f4   :  { %v16434_v34 = vpop.f32.mrf.mxu0  ;;  %v16455_v41 = vpop.f32.mrf.mxu1  ;;  %16595 = vmatprep.subr.bf16.mxu0 %v19131_v3  ;;  %v19138_v61 = vld [vmem:[%s25158_s9 + $0x20] sm:$0xff]   ;;  %v19143_v15 = vld [vmem:[%s25158_s9 + $0x48] sm:$0xff]  }
 0x7f5   :  { %v13491_v63 = vadd.f32 %v16454_v37, %v13451_v42  ;;  %16596 = vmatpush3.bf16.msra.mxu0 %v19132_v18  ;;  %v19139_v34 = vld [vmem:[%s25158_s9 + $0x58] sm:$0xff]   ;;  %v19144_v42 = vld [vmem:[%s25158_s9 + $0x8] sm:$0xff]   ;;  %v19145_v37 = vld [vmem:[%s25158_s9 + $0x40] sm:$0xff]  }
 0x7f6   :  { %v16456_v45 = vpop.f32.mrf.mxu1  ;;  %16597 = vmatprep.subr.bf16.mxu0 %v19133_v39  ;;  %v19140_v41 = vld [vmem:[%s25158_s9 + $0x18] sm:$0xff]  }
 0x7f7   :  { %v19141_v45 = vld [vmem:[%s25158_s9 + $0x50] sm:$0xff]  }
 0x7f9   :  { %16598 = vmatpush3.bf16.msra.mxu0 %v19134_v43 }
 0x7fa   :  { %16599 = vmatprep.subr.bf16.mxu0 %v19135_v11 }
 0x7fd   :  { %16600 = vmatpush3.bf16.msra.mxu0 %v19136_v26 }
 0x7fe   :  { %16601 = vmatprep.subr.bf16.mxu0 %v19137_v46 }
 0x801   :  { %16602 = vmatpush3.bf16.msra.mxu0 %v19138_v61 }
 0x802   :  { %16603 = vmatprep.subr.bf16.mxu0 %v19139_v34 }
 0x805   :  { %16604 = vmatpush3.bf16.msra.mxu0 %v19140_v41 }
 0x806   :  { %16605 = vmatprep.subr.bf16.mxu0 %v19141_v45 }
 0x80e   :  { %v16474_v21 = vpop.f32.mrf.mxu0 }
 0x810   :  { %v16475_v51 = vpop.f32.mrf.mxu0  ;;  %v16496_v30 = vpop.f32.mrf.mxu1 }
 0x811   :  { %v16476_v5 = vadd.f32 %v16475_v51, %v16474_v21  ;;  %v19142_v21 = vld [vmem:[%s25158_s9 + $0x10] sm:$0xff]  }
 0x812   :  { %v16477_v56 = vpop.f32.mrf.mxu0  ;;  %v16497_v1 = vpop.f32.mrf.mxu1  ;;  %16606 = vmatpush3.bf16.msra.mxu0 %v19142_v21 }
 0x813   :  { %v13531_v25 = vadd.f32 %v16476_v5, %v13491_v63  ;;  %v16498_v40 = vadd.f32 %v16497_v1, %v16496_v30  ;;  %16607 = vmatprep.subr.bf16.mxu0 %v19143_v15  ;;  %v19146_v5 = vld [vmem:[%s25158_s9] sm:$0xff]  }
 0x814   :  { %v16478_v24 = vpop.f32.mrf.mxu0  ;;  %v16499_v33 = vpop.f32.mrf.mxu1  ;;  %v14094_v63 = vld [vmem:[%s25159_s8] sm:$0x3] }
 0x815   :  { %v13571_v60 = vadd.f32 %v16498_v40, %v13531_v25  ;;  %v14099_v25 = vrot.slane %v14094_v63, %v20281_v47  ;;  %v14103_v40 = vrot.slane %v14094_v63, %v20284_v50 }
 0x816   :  { %v16500_v17 = vpop.f32.mrf.mxu1  ;;  %16608 = vmatpush3.bf16.msra.mxu0 %v19144_v42 }
 0x817   :  { %16609 = vmatprep.subr.bf16.mxu0 %v19145_v37 }
 0x81a   :  { %16610 = vmatpush3.bf16.msra.mxu0 %v19146_v5 }
 0x82e   :  { %v16518_v53 = vpop.f32.mrf.mxu0 }
 0x830   :  { %v16519_v23 = vpop.f32.mrf.mxu0  ;;  %v16540_v14 = vpop.f32.mrf.mxu1 }
 0x831   :  { %v16520_v48 = vadd.f32 %v16519_v23, %v16518_v53 }
 0x832   :  { %v16521_v38 = vpop.f32.mrf.mxu0  ;;  %v16541_v55 = vpop.f32.mrf.mxu1 }
 0x833   :  { %v13611_v10 = vadd.f32 %v16520_v48, %v13571_v60  ;;  %v16542_v16 = vadd.f32 %v16541_v55, %v16540_v14 }
 0x834   :  { %v16522_v35 = vpop.f32.mrf.mxu0  ;;  %v16543_v59 = vpop.f32.mrf.mxu1 }
 0x835   :  { %v13651_v19 = vadd.f32 %v16542_v16, %v13611_v10 }
 0x836   :  { %v16544_v13 = vpop.f32.mrf.mxu1 }
 0x837   :  { %v13660_v62 = vmax.f32 %v13651_v19, 0.0  ;;  %v16133_v19 = vld [vmem:[%s25160_s10] ss:$0 sm:$0xff] }
 0x839   :  { %v13665_v20 = vpack.c.bf16 %v13660_v62, %v13660_v62 }
 0x83b   :  { %16626 = vmatmul.mubr.msk.bf16.vlgmr.msra.gmra.mxu1 %vm2056_vm3, %v13665_v20 }
 0x83c   :  { %14158 = vmatpush1.bf16.msra.mxu1 %v19119_v31  ;;  %14181 = vmatprep.mubr.bf16.mxu1 %v19152_v2 }
 0x83d   :  { %14159 = vmatprep.subr.bf16.mxu1 %v19124_v29 }
 0x840   :  { %14160 = vmatpush1.bf16.msra.mxu1 %v19122_v4 }
 0x841   :  { %14161 = vmatprep.subr.bf16.mxu1 %v19127_v44 }
 0x844   :  { %14162 = vmatpush1.bf16.msra.mxu1 %v19125_v52 }
 0x845   :  { %14163 = vmatprep.subr.bf16.mxu1 %v19130_v7 }
 0x848   :  { %14164 = vmatpush1.bf16.msra.mxu1 %v19128_v32 }
 0x84e   :  { %v16562_v12 = vpop.f32.mrf.mxu0 }
 0x850   :  { %v16563_v0 = vpop.f32.mrf.mxu0  ;;  %v16584_v57 = vpop.f32.mrf.mxu1 }
 0x851   :  { %v16564_v58 = vadd.f32 %v16563_v0, %v16562_v12 }
 0x852   :  { %v16565_v28 = vpop.f32.mrf.mxu0  ;;  %v16585_v49 = vpop.f32.mrf.mxu1 }
 0x853   :  { %v13999_v6 = vadd.f32 %v16564_v58, %v16086_v8  ;;  %v16586_v9 = vadd.f32 %v16585_v49, %v16584_v57 }
 0x854   :  { %v16566_v22 = vpop.f32.mrf.mxu0  ;;  %v16587_v36 = vpop.f32.mrf.mxu1 }
 0x855   :  { %v14039_v27 = vadd.f32 %v16586_v9, %v13999_v6 }
 0x856   :  { %v16588_v54 = vpop.f32.mrf.mxu1 }
 0x8fb   :  { %v14078_v51 = vpop.f32.mrf.mxu1 }
 0x8fc   :  { %v14079_v30 = vadd.f32 %v14078_v51, %v14039_v27 }
 0x8fd   :  { %v16627_v56 = vpop.f32.mrf.mxu1 }
 0x8fe   :  { %v14084_v1 = vmax.f32 %v14079_v30, 0.0 }
 0x8ff   :  { %v14081_v24 = vpop.f32.mrf.mxu1 }
 0x900   :  { %v14085_v33 = vpack.c.bf16 %v14084_v1, %v14084_v1 }
 0x901   :  { %v16628_v17 = vpop.f32.mrf.mxu1 }
 0x902   :  { %16132 = vmatmul.mubr.msk.bf16.vlgmr.msra.gmra.mxu1 %vm2056_vm3, %v14085_v33 }
 0x9c2   :  { %v14183_v53 = vpop.f32.mrf.mxu1 }
 0x9c3   :  { %v14184_v23 = vadd.f32 %v14183_v53, %v14099_v25 }
 0x9c4   :  { %v14185_v14 = vpop.f32.mrf.mxu1 }
 0x9c5   :  { %v14186_v60 = vadd.f32 %v14185_v14, %v14103_v40  ;;  %v14190_v48 = vmax.f32 %v14184_v23, 0.0 }
 0x9c6   :  { %v14187_v38 = vpop.f32.mrf.mxu1 }
 0x9c7   :  { %v14191_v55 = vmax.f32 %v14186_v60, 0.0  ;;  %v14192_v35 = vpack.c.bf16 %v14190_v48, %v14190_v48 }
 0x9c8   :  { %v14188_v10 = vpop.f32.mrf.mxu1 }
 0x9c9   :  { %v14193_v16 = vpack.c.bf16 %v14191_v55, %v14191_v55 }
 0x9cb   :  { %14361 = vmatprep.mubr.bf16.mxu0 %v14193_v16 }
 0x9cc   :  { %14362 = vmatmul.mubr.bf16.vlgmr.msra.gmra.mxu0 %v14192_v35 }
 0xa8c   :  { %v16611_v59 = vpop.f32.mrf.mxu0 }
 0xa8e   :  { %v16612_v47 = vpop.f32.mrf.mxu0 }
 0xa8f   :  { %v16613_v13 = vadd.f32 %v16612_v47, %v16611_v59 }
 0xa90   :  { %v16614_v50 = vpop.f32.mrf.mxu0 }
 0xa91   :  { %v14364_v62 = vadd.f32 %v16613_v13, %v16133_v19 }
 0xa92   :  { %v16615_v31 = vpop.f32.mrf.mxu0 }
 0xa93   :  { %14369 = vst [vmem:[%s25161_s11] sm:$0x3] %v14364_v62 }

</bundles_post_ra>
